<compile_context>
chip_gen: v6e
topology: v6e:2x2x1
jax: 0.10.0
libtpu: 0.0.40
codegen_flags: <defaults>
</compile_context>

<pallas_src>
import math

import numpy as np
import jax
import jax.numpy as jnp
from jax import lax
from jax.experimental import pallas as pl
from jax.experimental.pallas import tpu as pltpu

SPLIT_SIZE = 11989  # hard-coded in ECGSplitProcessing.forward: torch.split(x, 11989, dim=2)


# -----------------------------------------------------------------------------
# Small helpers
# -----------------------------------------------------------------------------
def _fold_bn(gamma, beta, mean, var, eps=1e-5):
    scale = gamma / jnp.sqrt(var + eps)
    shift = beta - mean * scale
    return scale, shift


def _same_pad(length, k, s, d=1):
    # Conv1dSamePadding.calc_same_pad
    return max((math.ceil(length / s) - 1) * s + (k - 1) * d + 1 - length, 0)


def _default_lane_target():
    # v6e / v7x MXU is 2x256^2 -> target 256-lane operands; v5e & older are 128-wide.
    try:
        kind = jax.devices()[0].device_kind.lower()
    except Exception:
        return 128
    return 256 if ("v6" in kind or "v7" in kind) else 128


def _pick_chunks_per_step(B, cap=8):
    """Largest divisor of B that is <= cap while keeping >= 2 grid steps when B >= 2
    (so both v7x TensorCores get work)."""
    best = 1
    for cb in range(1, min(B, cap) + 1):
        if B % cb == 0 and (B // cb >= 2 or B == 1):
            best = cb
    return best


# -----------------------------------------------------------------------------
# Static op descriptors (consumed at trace time; everything is unrolled).
# -----------------------------------------------------------------------------
class _ConvOp:
    def __init__(self, K, s, cin, cout, pidx):
        self.K, self.s, self.cin, self.cout, self.pidx = K, s, cin, cout, pidx
        self.D = None        # number of row-offset weight slabs (set at weight fold)


class _PoolOp:
    def __init__(self, kp, sp, c):
        self.kp, self.sp, self.cout = kp, sp, c


def _compute_perms(mid_ops, F):
    """Lane-block permutation of every activation's fold phases.
    perms[t][phase] = lane-block position of that phase in activation t.
    Chosen so every MaxPool with kernel == stride becomes a max over contiguous
    full-width lane chunks; convs absorb any permutation into their folded weights."""
    T = len(mid_ops)
    perms = [None] * (T + 1)
    perms[T] = list(range(F[T]))
    for t in range(T - 1, -1, -1):
        op = mid_ops[t]
        if isinstance(op, _PoolOp) and op.kp == op.sp:
            pin = [0] * F[t]
            for p in range(F[t + 1]):
                for k in range(op.kp):
                    pin[op.kp * p + k] = perms[t + 1][p] + k * F[t + 1]
            perms[t] = pin
        else:
            perms[t] = list(range(F[t]))
    return perms


def _fold_conv_weight(w, cin, cout, K, s, F_in, F_out, perm_in, perm_out):
    """Pre-fold a (K, cin, cout) conv weight into one dense (D*F_in*cin, F_out*cout)
    matmul operand for the phase-folded layout.  The D row-offset slabs are
    concatenated along the contraction axis so the kernel needs a single jnp.dot."""
    D = (s * (F_out - 1) + K - 1) // F_in + 1
    wf = np.zeros((D, F_in * cin, F_out * cout), np.float32)
    w_np = np.asarray(w, np.float32)
    for p in range(F_out):
        for k in range(K):
            j = s * p + k
            d, b = divmod(j, F_in)
            wf[d,
               perm_in[b] * cin:(perm_in[b] + 1) * cin,
               perm_out[p] * cout:(perm_out[p] + 1) * cout] = w_np[k]
    w_cat = wf.reshape(D * F_in * cin, F_out * cout)
    return jnp.asarray(w_cat, dtype=jnp.bfloat16), D


# -----------------------------------------------------------------------------
# Fused Pallas kernel: the whole per-chunk pipeline, VMEM resident.
# -----------------------------------------------------------------------------
def _make_kernel(mid_ops, F, C, perms, D_stem, R, L, CB, n_params):
    T = len(mid_ops)

    def kernel(*refs):
        cols_ref = refs[0]
        params = refs[1:1 + 3 * n_params]          # per conv: (W_fold, scale, shift)
        out_ref = refs[1 + 3 * n_params]
        acts = refs[2 + 3 * n_params:]             # one bf16 VMEM scratch per activation

        def conv_bn_relu(views, w_ref, sc_ref, sh_ref, dst):
            # one full-width bf16 MXU matmul == folded im2col conv (+ BN + ReLU in f32)
            a = views[0] if len(views) == 1 else jnp.concatenate(views, axis=1)
            acc = jnp.dot(a, w_ref[...], preferred_element_type=jnp.float32)
            y = jnp.maximum(acc * sc_ref[...] + sh_ref[...], 0.0)
            dst[...] = y.astype(dst.dtype)

        results = []
        for c in range(CB):                        # chunks handled by this grid step
            # ---- stem: Conv1dSamePadding + BN + ReLU (padding baked into cols) ----
            views = [cols_ref[c, d:d + R[0], :] for d in range(D_stem)]
            conv_bn_relu(views, params[0], params[1], params[2], acts[0])

            # ---- ConvLayers / MaxPool1d ----
            for t, op in enumerate(mid_ops):
                src, dst = acts[t], acts[t + 1]
                r_out = R[t + 1]
                cc = C[t]
                if isinstance(op, _ConvOp):
                    b0 = 3 * op.pidx
                    views = [src[d:d + r_out, :] for d in range(op.D)]
                    conv_bn_relu(views, params[b0], params[b0 + 1], params[b0 + 2], dst)
                elif op.kp == op.sp:
                    # kernel == stride pool: max over contiguous full-width lane
                    # chunks + ONE dense store (phases were pre-permuted for this).
                    w_out = F[t + 1] * cc
                    x = src[0:r_out, :]
                    m = x[:, 0:w_out]
                    for k in range(1, op.kp):
                        m = jnp.maximum(m, x[:, k * w_out:(k + 1) * w_out])
                    dst[...] = m.astype(dst.dtype)
                else:
                    # generic pool (kernel != stride): per-phase maxima concatenated
                    # into a single full-width store.
                    f_in, f_out = F[t], F[t + 1]
                    inv = [0] * f_out
                    for p in range(f_out):
                        inv[perms[t + 1][p]] = p
                    parts = []
                    for q in range(f_out):
                        p = inv[q]
                        m = None
                        for k in range(op.kp):
                            j = op.sp * p + k
                            d, b = divmod(j, f_in)
                            v = src[d:d + r_out, b * cc:(b + 1) * cc]
                            m = v if m is None else jnp.maximum(m, v)
                        parts.append(m)
                    dst[...] = jnp.concatenate(parts, axis=1).astype(dst.dtype)

            # ---- AdaptiveAvgPool1d(1): masked mean over the valid length only ----
            # (phantom positions from the over-allocated folded rows never enter it)
            fT, cT, lT = F[T], C[T], L[T]
            r_full, rem = divmod(lT, fT)
            xs = jnp.sum(acts[T][0:r_full, :].astype(jnp.float32),
                         axis=0, keepdims=True)
            tot = xs[:, 0:cT]
            for b in range(1, fT):
                tot = tot + xs[:, b * cT:(b + 1) * cT]
            if rem:
                last = acts[T][r_full:r_full + 1, :].astype(jnp.float32)
                for b in range(rem):
                    tot = tot + last[:, b * cT:(b + 1) * cT]
            results.append(tot * (1.0 / lT))

        out_ref[...] = jnp.stack(results, axis=0).astype(out_ref.dtype)

    return kernel


# -----------------------------------------------------------------------------
# Model
# -----------------------------------------------------------------------------
class ECGSplitProcessingPallas:
    """Pallas/TPU port of ECGSplitProcessing (raw_ecg_layer='ConvLayer')."""

    def __init__(self, key, *, stem_out_channels, stem_kernel_size, stem_stride,
                 stem_en_max_pooling, stem_max_pool_kernel_size,
                 stem_max_pool_stride, layer_type, batch_norm,
                 conv_kernel_sizes, conv_channels, conv_strides,
                 conv_pool_kernels, conv_pool_strides, lane_target=None):
        assert layer_type == "ConvLayer"
        # TODO(synk): ResLayer variant is not implemented; it composes from the same
        #             fused conv stages plus a residual add.
        assert batch_norm
        # TODO(synk): BatchNorm1d is folded with running statistics (inference mode);
        #             training-mode batch statistics are not modelled.

        n_conv = 1 + len(conv_channels)
        keys = iter(jax.random.split(key, 8 * n_conv))

        def make_conv(cin, cout, k):
            w = jax.random.normal(next(keys), (k, cin, cout), jnp.float32)
            w = w * (1.0 / math.sqrt(k * cin))
            gamma = 1.0 + 0.1 * jax.random.normal(next(keys), (cout,), jnp.float32)
            beta = 0.1 * jax.random.normal(next(keys), (cout,), jnp.float32)
            mean = 0.1 * jax.random.normal(next(keys), (cout,), jnp.float32)
            var = jax.random.uniform(next(keys), (cout,), jnp.float32,
                                     minval=0.5, maxval=1.5)
            scale, shift = _fold_bn(gamma, beta, mean, var)
            return w, scale, shift

        self.stem = dict(K=stem_kernel_size, s=stem_stride, cout=stem_out_channels)
        self.stem_pool = ((stem_max_pool_kernel_size, stem_max_pool_stride)
                          if stem_en_max_pooling else None)
        self.conv_cfg = list(zip(conv_channels, conv_kernel_sizes, conv_strides,
                                 conv_pool_kernels, conv_pool_strides))

        raw = [make_conv(1, stem_out_channels, stem_kernel_size)]
        self.mid_ops = []
        if stem_en_max_pooling:
            self.mid_ops.append(_PoolOp(stem_max_pool_kernel_size,
                                        stem_max_pool_stride, stem_out_channels))
        cin = stem_out_channels
        for cout, k, stride, pk, ps in self.conv_cfg:
            raw.append(make_conv(cin, cout, k))
            self.mid_ops.append(_ConvOp(k, stride, cin, cout, len(raw) - 1))
            if ps > 1 or pk > 1:
                self.mid_ops.append(_PoolOp(pk, ps, cout))
            cin = cout
        self.out_channels = cin
        self.params_ref = raw                      # f32 params for the pure-JAX reference

        # ---- folded layout: per-activation fold F, channels C, phase permutations ----
        T = len(self.mid_ops)
        self.C = [stem_out_channels]
        for op in self.mid_ops:
            self.C.append(op.cout if isinstance(op, _ConvOp) else self.C[-1])

        baseF = [1] * (T + 1)                       # product of downstream strides
        for t in range(T - 1, -1, -1):
            op = self.mid_ops[t]
            baseF[t] = baseF[t + 1] * (op.s if isinstance(op, _ConvOp) else op.sp)

        lane_target = lane_target or _default_lane_target()
        over = 1                                    # extra power-of-two over-fold
        max_w = max(f * c for f, c in zip(baseF, self.C))
        while 2 * over * max_w <= lane_target:
            over *= 2
        self.F = [f * over for f in baseF]
        self.perms = _compute_perms(self.mid_ops, self.F)
        self.F_raw = self.stem["s"] * self.F[0]     # fold of the raw (padded) chunk

        # ---- pre-fold conv weights into dense bf16 matmul slabs ----
        self.params = []
        w, sc, sh = raw[0]
        w_cat, self.D_stem = _fold_conv_weight(
            w, 1, stem_out_channels, stem_kernel_size, stem_stride,
            self.F_raw, self.F[0], list(range(self.F_raw)), self.perms[0])
        self.params.append((w_cat,
                            jnp.tile(sc, self.F[0]).reshape(1, -1),
                            jnp.tile(sh, self.F[0]).reshape(1, -1)))
        for t, op in enumerate(self.mid_ops):
            if not isinstance(op, _ConvOp):
                continue
            w, sc, sh = raw[op.pidx]
            w_cat, op.D = _fold_conv_weight(
                w, op.cin, op.cout, op.K, op.s,
                self.F[t], self.F[t + 1], self.perms[t], self.perms[t + 1])
            self.params.append((w_cat,
                                jnp.tile(sc, self.F[t + 1]).reshape(1, -1),
                                jnp.tile(sh, self.F[t + 1]).reshape(1, -1)))

        self._plan_cache = {}

    # ------------------------------------------------------------------ helpers
    def _get_plan(self, Lc):
        if Lc in self._plan_cache:
            return self._plan_cache[Lc]
        stem, F, mid_ops = self.stem, self.F, self.mid_ops
        pad = _same_pad(Lc, stem["K"], stem["s"])
        L = [(Lc + pad - stem["K"]) // stem["s"] + 1]
        for op in mid_ops:
            k, s = (op.K, op.s) if isinstance(op, _ConvOp) else (op.kp, op.sp)
            Lo = (L[-1] - k) // s + 1
            assert Lo >= 1, "ECG chunk too short for this pipeline"
            L.append(Lo)
        T = len(mid_ops)
        assert L[T] >= F[T], "ECG chunk too short for the chosen over-fold"
        # Allocated folded rows: cover every row any downstream consumer reads, so
        # scratch is never read uninitialized.  Phantom positions (>= L[t]) only
        # ever influence other phantom positions (VALID convs/pools) and are masked
        # out of the final adaptive-average-pool sum in the kernel.
        R = [0] * (T + 1)
        R[T] = -(-L[T] // F[T])
        for t in range(T - 1, -1, -1):
            op = mid_ops[t]
            s, k = (op.s, op.K) if isinstance(op, _ConvOp) else (op.sp, op.kp)
            maxd = (s * (F[t + 1] - 1) + k - 1) // F[t]
            R[t] = max(-(-L[t] // F[t]), maxd + R[t + 1])
        R_raw = max(R[0] + self.D_stem - 1, -(-(Lc + pad) // self.F_raw))
        plan = dict(pad=pad, L=L, R=R, R_raw=R_raw)
        self._plan_cache[Lc] = plan
        return plan

    def _run_chunks(self, x2d):
        """Run the fused pipeline on a batch of equal-length chunks.
        x2d: (B, Lc) float32  ->  (B, C_final) float32."""
        B, Lc = x2d.shape
        plan = self._get_plan(Lc)
        F, C, R, L = self.F, self.C, plan["R"], plan["L"]
        F_raw, R_raw = self.F_raw, plan["R_raw"]
        T = len(self.mid_ops)
        c_final = C[T]

        # Single pad + reshape + bf16 cast: the raw chunk enters the kernel already
        # phase-folded; the stem same-padding is baked into the left/right zero pad.
        padl = plan["pad"] // 2
        total = R_raw * F_raw
        cols = (jnp.pad(x2d, ((0, 0), (padl, total - padl - Lc)))
                .reshape(B, R_raw, F_raw).astype(jnp.bfloat16))

        CB = _pick_chunks_per_step(B)               # chunks per grid step

        inputs = [cols]
        in_specs = [pl.BlockSpec((CB, R_raw, F_raw), lambda b: (b, 0, 0))]
        for (w, sc, sh) in self.params:
            for arr in (w, sc, sh):
                inputs.append(arr)
                in_specs.append(pl.BlockSpec(arr.shape, lambda b: (0, 0)))

        scratch = [pltpu.VMEM((R[t], F[t] * C[t]), jnp.bfloat16)
                   for t in range(T + 1)]

        # Advisory cost estimate (MXU flops of the folded matmuls + IO bytes).
        mm = [(R[0], self.D_stem * F_raw, F[0] * C[0])]
        for t, op in enumerate(self.mid_ops):
            if isinstance(op, _ConvOp):
                mm.append((R[t + 1], op.D * F[t] * op.cin, F[t + 1] * op.cout))
        flops = 2 * B * sum(m * k * n for m, k, n in mm)
        w_bytes = sum(int(w.size) * 2 + int(sc.size) * 4 + int(sh.size) * 4
                      for w, sc, sh in self.params)
        bytes_acc = int(cols.size) * 2 + (B // CB) * w_bytes + B * c_final * 4
        cost = pl.CostEstimate(flops=int(flops), transcendentals=0,
                               bytes_accessed=int(bytes_acc))

        kernel = _make_kernel(self.mid_ops, F, C, self.perms, self.D_stem,
                              R, L, CB, len(self.params))
        out = pl.pallas_call(
            kernel,
            out_shape=jax.ShapeDtypeStruct((B, 1, c_final), jnp.float32),
            grid=(B // CB,),
            in_specs=in_specs,
            out_specs=pl.BlockSpec((CB, 1, c_final), lambda b: (b, 0, 0)),
            scratch_shapes=scratch,
            compiler_params=pltpu.CompilerParams(
                dimension_semantics=("parallel",)),
            cost_estimate=cost,
        )(*inputs)
        return out[:, 0, :]

    # ------------------------------------------------------------------ forward
    def __call__(self, raw_ecg):
        # raw_ecg: (N, 1, L) float32 (PyTorch NCL); torch.split(..., 11989, dim=2)
        n, cc, L = raw_ecg.shape
        assert cc == 1
        x = raw_ecg[:, 0, :].astype(jnp.float32)
        num_full, rem = divmod(L, SPLIT_SIZE)

        chunk_outs = []
        if num_full:
            xf = x[:, :num_full * SPLIT_SIZE].reshape(n * num_full, SPLIT_SIZE)
            of = self._run_chunks(xf).reshape(n, num_full, self.out_channels)
            chunk_outs.append(of)
        if rem:
            # Ragged tail chunk: separate exactly-shaped call so same-padding and
            # valid lengths match the PyTorch semantics bit-for-bit.
            orr = self._run_chunks(x[:, num_full * SPLIT_SIZE:])
            chunk_outs.append(orr.reshape(n, 1, self.out_channels))
        out = (jnp.concatenate(chunk_outs, axis=1)
               if len(chunk_outs) > 1 else chunk_outs[0])
        return jnp.transpose(out, (0, 2, 1))       # (N, C_final, num_chunks)

    # ------------------------------------------------------------------ reference
    def reference(self, raw_ecg):
        """Pure-JAX f32 reference of the same forward (for correctness checks)."""
        def conv(x, w, stride, padding):           # x (N,C,L), w (K,Cin,Cout)
            w_oik = jnp.transpose(w, (2, 1, 0))
            return lax.conv_general_dilated(
                x, w_oik, (stride,), padding,
                dimension_numbers=("NCH", "OIH", "NCH"),
                precision=lax.Precision.HIGHEST)

        def bn_relu(x, sc, sh):
            return jnp.maximum(x * sc[None, :, None] + sh[None, :, None], 0.0)

        def maxpool(x, kp, sp):
            return lax.reduce_window(x, -jnp.inf, lax.max,
                                     (1, 1, kp), (1, 1, sp), "VALID")

        n, _, L = raw_ecg.shape
        outs = []
        for start in range(0, L, SPLIT_SIZE):
            x = raw_ecg[:, :, start:start + SPLIT_SIZE].astype(jnp.float32)
            Lc = x.shape[2]
            w, sc, sh = self.params_ref[0]
            pad = _same_pad(Lc, self.stem["K"], self.stem["s"])
            x = bn_relu(conv(x, w, self.stem["s"],
                             [(pad // 2, pad - pad // 2)]), sc, sh)
            if self.stem_pool is not None:
                x = maxpool(x, *self.stem_pool)
            pidx = 1
            for cout, k, stride, pk, ps in self.conv_cfg:
                w, sc, sh = self.params_ref[pidx]
                pidx += 1
                x = bn_relu(conv(x, w, stride, [(0, 0)]), sc, sh)
                if ps > 1 or pk > 1:
                    x = maxpool(x, pk, ps)
            outs.append(jnp.mean(x, axis=2, keepdims=True))
        return jnp.concatenate(outs, axis=2)


if __name__ == "__main__":
    key = jax.random.PRNGKey(0)
    pkey, xkey = jax.random.split(key)

    model = ECGSplitProcessingPallas(
        pkey,
        stem_out_channels=8,
        stem_kernel_size=7,
        stem_stride=2,
        stem_en_max_pooling=True,
        stem_max_pool_kernel_size=2,
        stem_max_pool_stride=2,
        layer_type="ConvLayer",
        batch_norm=True,
        conv_kernel_sizes=[5, 3],
        conv_channels=[16, 32],
        conv_strides=[1, 1],
        conv_pool_kernels=[2, 2],
        conv_pool_strides=[2, 2],
    )

    # Two 11989-sample chunks so the torch.split(..., 11989) path is exercised.
    N, L = 2, 2 * SPLIT_SIZE
    raw_ecg = jax.random.normal(xkey, (N, 1, L), dtype=jnp.float32)

    out = jax.block_until_ready(model(raw_ecg))
    assert out.shape == (N, model.out_channels, 2), out.shape
    assert bool(jnp.all(jnp.isfinite(out)))

    ref = jax.block_until_ready(model.reference(raw_ecg))
    max_err = float(jnp.max(jnp.abs(out - ref)))
    assert max_err < 0.1, f"max abs error vs reference: {max_err}"

    print("KERNEL_OK")
</pallas_src>

<mosaic_0001>
module attributes {stable_mosaic.version = 11 : i64} {
  func.func @kernel(%arg0: i32, %arg1: memref<2x377x32xbf16, #tpu.memory_space<vmem>>, %arg2: memref<64x128xbf16, #tpu.memory_space<vmem>>, %arg3: memref<1x128xf32, #tpu.memory_space<vmem>>, %arg4: memref<1x128xf32, #tpu.memory_space<vmem>>, %arg5: memref<128x128xbf16, #tpu.memory_space<vmem>>, %arg6: memref<1x128xf32, #tpu.memory_space<vmem>>, %arg7: memref<1x128xf32, #tpu.memory_space<vmem>>, %arg8: memref<128x128xbf16, #tpu.memory_space<vmem>>, %arg9: memref<1x128xf32, #tpu.memory_space<vmem>>, %arg10: memref<1x128xf32, #tpu.memory_space<vmem>>, %arg11: memref<2x1x32xf32, #tpu.memory_space<vmem>>, %arg12: memref<376x128xbf16, #tpu.memory_space<vmem>>, %arg13: memref<376x64xbf16, #tpu.memory_space<vmem>>, %arg14: memref<375x128xbf16, #tpu.memory_space<vmem>>, %arg15: memref<375x64xbf16, #tpu.memory_space<vmem>>, %arg16: memref<374x128xbf16, #tpu.memory_space<vmem>>, %arg17: memref<374x64xbf16, #tpu.memory_space<vmem>>) attributes {dimension_semantics = [#tpu.dimension_semantics<parallel>], iteration_bounds = array<i64: 2>, scalar_prefetch = 0 : i64, scratch_operands = 6 : i64, tpu.core_type = #tpu.core_type<tc>, window_params = [{transform_indices = @transform_0, window_bounds = array<i64: 2, 377, 32>}, {pipeline_mode = #tpu.pipeline_mode<synchronous>, transform_indices = @transform_1, window_bounds = array<i64: 64, 128>}, {pipeline_mode = #tpu.pipeline_mode<synchronous>, transform_indices = @transform_2, window_bounds = array<i64: 1, 128>}, {pipeline_mode = #tpu.pipeline_mode<synchronous>, transform_indices = @transform_3, window_bounds = array<i64: 1, 128>}, {pipeline_mode = #tpu.pipeline_mode<synchronous>, transform_indices = @transform_4, window_bounds = array<i64: 128, 128>}, {pipeline_mode = #tpu.pipeline_mode<synchronous>, transform_indices = @transform_5, window_bounds = array<i64: 1, 128>}, {pipeline_mode = #tpu.pipeline_mode<synchronous>, transform_indices = @transform_6, window_bounds = array<i64: 1, 128>}, {pipeline_mode = #tpu.pipeline_mode<synchronous>, transform_indices = @transform_7, window_bounds = array<i64: 128, 128>}, {pipeline_mode = #tpu.pipeline_mode<synchronous>, transform_indices = @transform_8, window_bounds = array<i64: 1, 128>}, {pipeline_mode = #tpu.pipeline_mode<synchronous>, transform_indices = @transform_9, window_bounds = array<i64: 1, 128>}, {transform_indices = @transform_10, window_bounds = array<i64: 2, 1, 32>}]} {
    %c0 = arith.constant 0 : index
    %c0_0 = arith.constant 0 : index
    %c0_1 = arith.constant 0 : index
    %0 = vector.load %arg1[%c0, %c0_0, %c0_1] : memref<2x377x32xbf16, #tpu.memory_space<vmem>>, vector<1x376x32xbf16>
    %1 = vector.shape_cast %0 : vector<1x376x32xbf16> to vector<376x32xbf16>
    %c0_2 = arith.constant 0 : index
    %c1 = arith.constant 1 : index
    %c0_3 = arith.constant 0 : index
    %2 = vector.load %arg1[%c0_2, %c1, %c0_3] : memref<2x377x32xbf16, #tpu.memory_space<vmem>>, vector<1x376x32xbf16>
    %3 = vector.shape_cast %2 : vector<1x376x32xbf16> to vector<376x32xbf16>
    %4 = tpu.concatenate %1, %3 in 1 : vector<376x32xbf16>, vector<376x32xbf16> -> vector<376x64xbf16>
    %c0_4 = arith.constant 0 : index
    %c0_5 = arith.constant 0 : index
    %5 = vector.load %arg2[%c0_4, %c0_5] : memref<64x128xbf16, #tpu.memory_space<vmem>>, vector<64x128xbf16>
    %cst = arith.constant dense<0.000000e+00> : vector<376x128xf32>
    %6 = tpu.matmul %4, %5, %cst {dimension_numbers = #tpu.dot_dimension_numbers<[1], [0], [0], [1], [0, 0, 1, 1], [], []>} : vector<376x64xbf16>, vector<64x128xbf16>, vector<376x128xf32> -> vector<376x128xf32>
    %c0_6 = arith.constant 0 : index
    %c0_7 = arith.constant 0 : index
    %7 = vector.load %arg3[%c0_6, %c0_7] : memref<1x128xf32, #tpu.memory_space<vmem>>, vector<1x128xf32>
    %8 = vector.broadcast %7 : vector<1x128xf32> to vector<376x128xf32>
    %9 = arith.mulf %6, %8 : vector<376x128xf32>
    %c0_8 = arith.constant 0 : index
    %c0_9 = arith.constant 0 : index
    %10 = vector.load %arg4[%c0_8, %c0_9] : memref<1x128xf32, #tpu.memory_space<vmem>>, vector<1x128xf32>
    %11 = vector.broadcast %10 : vector<1x128xf32> to vector<376x128xf32>
    %12 = arith.addf %9, %11 : vector<376x128xf32>
    %cst_10 = arith.constant 0.000000e+00 : f32
    %13 = vector.broadcast %cst_10 : f32 to vector<376x128xf32>
    %14 = arith.maximumf %12, %13 : vector<376x128xf32>
    %15 = arith.truncf %14 : vector<376x128xf32> to vector<376x128xbf16>
    %c0_11 = arith.constant 0 : index
    %c0_12 = arith.constant 0 : index
    %16 = vector.load %arg12[%c0_11, %c0_12] : memref<376x128xbf16, #tpu.memory_space<vmem>>, vector<376x128xbf16>
    tpu.vector_store %arg12[%c0_11, %c0_12], %15 {strides = array<i32>} : memref<376x128xbf16, #tpu.memory_space<vmem>>, vector<376x128xbf16>,
    %c0_13 = arith.constant 0 : index
    %c0_14 = arith.constant 0 : index
    %17 = vector.load %arg12[%c0_13, %c0_14] : memref<376x128xbf16, #tpu.memory_space<vmem>>, vector<376x128xbf16>
    %18 = vector.extract_strided_slice %17 {offsets = [0, 0], sizes = [376, 64], strides = [1, 1]} : vector<376x128xbf16> to vector<376x64xbf16>
    %19 = vector.extract_strided_slice %17 {offsets = [0, 64], sizes = [376, 64], strides = [1, 1]} : vector<376x128xbf16> to vector<376x64xbf16>
    %20 = arith.maximumf %18, %19 : vector<376x64xbf16>
    %c0_15 = arith.constant 0 : index
    %c0_16 = arith.constant 0 : index
    %21 = vector.load %arg13[%c0_15, %c0_16] : memref<376x64xbf16, #tpu.memory_space<vmem>>, vector<376x64xbf16>
    tpu.vector_store %arg13[%c0_15, %c0_16], %20 {strides = array<i32>} : memref<376x64xbf16, #tpu.memory_space<vmem>>, vector<376x64xbf16>,
    %c0_17 = arith.constant 0 : index
    %c0_18 = arith.constant 0 : index
    %22 = vector.load %arg13[%c0_17, %c0_18] : memref<376x64xbf16, #tpu.memory_space<vmem>>, vector<375x64xbf16>
    %c1_19 = arith.constant 1 : index
    %c0_20 = arith.constant 0 : index
    %23 = vector.load %arg13[%c1_19, %c0_20] : memref<376x64xbf16, #tpu.memory_space<vmem>>, vector<375x64xbf16>
    %24 = tpu.concatenate %22, %23 in 1 : vector<375x64xbf16>, vector<375x64xbf16> -> vector<375x128xbf16>
    %c0_21 = arith.constant 0 : index
    %c0_22 = arith.constant 0 : index
    %25 = vector.load %arg5[%c0_21, %c0_22] : memref<128x128xbf16, #tpu.memory_space<vmem>>, vector<128x128xbf16>
    %cst_23 = arith.constant dense<0.000000e+00> : vector<375x128xf32>
    %26 = tpu.matmul %24, %25, %cst_23 {dimension_numbers = #tpu.dot_dimension_numbers<[1], [0], [0], [1], [0, 0, 1, 1], [], []>} : vector<375x128xbf16>, vector<128x128xbf16>, vector<375x128xf32> -> vector<375x128xf32>
    %c0_24 = arith.constant 0 : index
    %c0_25 = arith.constant 0 : index
    %27 = vector.load %arg6[%c0_24, %c0_25] : memref<1x128xf32, #tpu.memory_space<vmem>>, vector<1x128xf32>
    %28 = vector.broadcast %27 : vector<1x128xf32> to vector<375x128xf32>
    %29 = arith.mulf %26, %28 : vector<375x128xf32>
    %c0_26 = arith.constant 0 : index
    %c0_27 = arith.constant 0 : index
    %30 = vector.load %arg7[%c0_26, %c0_27] : memref<1x128xf32, #tpu.memory_space<vmem>>, vector<1x128xf32>
    %31 = vector.broadcast %30 : vector<1x128xf32> to vector<375x128xf32>
    %32 = arith.addf %29, %31 : vector<375x128xf32>
    %cst_28 = arith.constant 0.000000e+00 : f32
    %33 = vector.broadcast %cst_28 : f32 to vector<375x128xf32>
    %34 = arith.maximumf %32, %33 : vector<375x128xf32>
    %35 = arith.truncf %34 : vector<375x128xf32> to vector<375x128xbf16>
    %c0_29 = arith.constant 0 : index
    %c0_30 = arith.constant 0 : index
    %36 = vector.load %arg14[%c0_29, %c0_30] : memref<375x128xbf16, #tpu.memory_space<vmem>>, vector<375x128xbf16>
    tpu.vector_store %arg14[%c0_29, %c0_30], %35 {strides = array<i32>} : memref<375x128xbf16, #tpu.memory_space<vmem>>, vector<375x128xbf16>,
    %c0_31 = arith.constant 0 : index
    %c0_32 = arith.constant 0 : index
    %37 = vector.load %arg14[%c0_31, %c0_32] : memref<375x128xbf16, #tpu.memory_space<vmem>>, vector<375x128xbf16>
    %38 = vector.extract_strided_slice %37 {offsets = [0, 0], sizes = [375, 64], strides = [1, 1]} : vector<375x128xbf16> to vector<375x64xbf16>
    %39 = vector.extract_strided_slice %37 {offsets = [0, 64], sizes = [375, 64], strides = [1, 1]} : vector<375x128xbf16> to vector<375x64xbf16>
    %40 = arith.maximumf %38, %39 : vector<375x64xbf16>
    %c0_33 = arith.constant 0 : index
    %c0_34 = arith.constant 0 : index
    %41 = vector.load %arg15[%c0_33, %c0_34] : memref<375x64xbf16, #tpu.memory_space<vmem>>, vector<375x64xbf16>
    tpu.vector_store %arg15[%c0_33, %c0_34], %40 {strides = array<i32>} : memref<375x64xbf16, #tpu.memory_space<vmem>>, vector<375x64xbf16>,
    %c0_35 = arith.constant 0 : index
    %c0_36 = arith.constant 0 : index
    %42 = vector.load %arg15[%c0_35, %c0_36] : memref<375x64xbf16, #tpu.memory_space<vmem>>, vector<374x64xbf16>
    %c1_37 = arith.constant 1 : index
    %c0_38 = arith.constant 0 : index
    %43 = vector.load %arg15[%c1_37, %c0_38] : memref<375x64xbf16, #tpu.memory_space<vmem>>, vector<374x64xbf16>
    %44 = tpu.concatenate %42, %43 in 1 : vector<374x64xbf16>, vector<374x64xbf16> -> vector<374x128xbf16>
    %c0_39 = arith.constant 0 : index
    %c0_40 = arith.constant 0 : index
    %45 = vector.load %arg8[%c0_39, %c0_40] : memref<128x128xbf16, #tpu.memory_space<vmem>>, vector<128x128xbf16>
    %cst_41 = arith.constant dense<0.000000e+00> : vector<374x128xf32>
    %46 = tpu.matmul %44, %45, %cst_41 {dimension_numbers = #tpu.dot_dimension_numbers<[1], [0], [0], [1], [0, 0, 1, 1], [], []>} : vector<374x128xbf16>, vector<128x128xbf16>, vector<374x128xf32> -> vector<374x128xf32>
    %c0_42 = arith.constant 0 : index
    %c0_43 = arith.constant 0 : index
    %47 = vector.load %arg9[%c0_42, %c0_43] : memref<1x128xf32, #tpu.memory_space<vmem>>, vector<1x128xf32>
    %48 = vector.broadcast %47 : vector<1x128xf32> to vector<374x128xf32>
    %49 = arith.mulf %46, %48 : vector<374x128xf32>
    %c0_44 = arith.constant 0 : index
    %c0_45 = arith.constant 0 : index
    %50 = vector.load %arg10[%c0_44, %c0_45] : memref<1x128xf32, #tpu.memory_space<vmem>>, vector<1x128xf32>
    %51 = vector.broadcast %50 : vector<1x128xf32> to vector<374x128xf32>
    %52 = arith.addf %49, %51 : vector<374x128xf32>
    %cst_46 = arith.constant 0.000000e+00 : f32
    %53 = vector.broadcast %cst_46 : f32 to vector<374x128xf32>
    %54 = arith.maximumf %52, %53 : vector<374x128xf32>
    %55 = arith.truncf %54 : vector<374x128xf32> to vector<374x128xbf16>
    %c0_47 = arith.constant 0 : index
    %c0_48 = arith.constant 0 : index
    %56 = vector.load %arg16[%c0_47, %c0_48] : memref<374x128xbf16, #tpu.memory_space<vmem>>, vector<374x128xbf16>
    tpu.vector_store %arg16[%c0_47, %c0_48], %55 {strides = array<i32>} : memref<374x128xbf16, #tpu.memory_space<vmem>>, vector<374x128xbf16>,
    %c0_49 = arith.constant 0 : index
    %c0_50 = arith.constant 0 : index
    %57 = vector.load %arg16[%c0_49, %c0_50] : memref<374x128xbf16, #tpu.memory_space<vmem>>, vector<374x128xbf16>
    %58 = vector.extract_strided_slice %57 {offsets = [0, 0], sizes = [374, 64], strides = [1, 1]} : vector<374x128xbf16> to vector<374x64xbf16>
    %59 = vector.extract_strided_slice %57 {offsets = [0, 64], sizes = [374, 64], strides = [1, 1]} : vector<374x128xbf16> to vector<374x64xbf16>
    %60 = arith.maximumf %58, %59 : vector<374x64xbf16>
    %c0_51 = arith.constant 0 : index
    %c0_52 = arith.constant 0 : index
    %61 = vector.load %arg17[%c0_51, %c0_52] : memref<374x64xbf16, #tpu.memory_space<vmem>>, vector<374x64xbf16>
    tpu.vector_store %arg17[%c0_51, %c0_52], %60 {strides = array<i32>} : memref<374x64xbf16, #tpu.memory_space<vmem>>, vector<374x64xbf16>,
    %c0_53 = arith.constant 0 : index
    %c0_54 = arith.constant 0 : index
    %62 = vector.load %arg17[%c0_53, %c0_54] : memref<374x64xbf16, #tpu.memory_space<vmem>>, vector<373x64xbf16>
    %63 = arith.extf %62 : vector<373x64xbf16> to vector<373x64xf32>
    %cst_55 = arith.constant dense<0.000000e+00> : vector<64xf32>
    %64 = vector.multi_reduction <add>, %63, %cst_55 [0] : vector<373x64xf32> to vector<64xf32>
    %65 = vector.shape_cast %64 : vector<64xf32> to vector<1x64xf32>
    %66 = vector.extract_strided_slice %65 {offsets = [0, 0], sizes = [1, 32], strides = [1, 1]} : vector<1x64xf32> to vector<1x32xf32>
    %67 = vector.extract_strided_slice %65 {offsets = [0, 32], sizes = [1, 32], strides = [1, 1]} : vector<1x64xf32> to vector<1x32xf32>
    %68 = arith.addf %66, %67 : vector<1x32xf32>
    %c373 = arith.constant 373 : index
    %c0_56 = arith.constant 0 : index
    %69 = vector.load %arg17[%c373, %c0_56] : memref<374x64xbf16, #tpu.memory_space<vmem>>, vector<1x64xbf16>
    %70 = arith.extf %69 : vector<1x64xbf16> to vector<1x64xf32>
    %71 = vector.extract_strided_slice %70 {offsets = [0, 0], sizes = [1, 32], strides = [1, 1]} : vector<1x64xf32> to vector<1x32xf32>
    %72 = arith.addf %68, %71 : vector<1x32xf32>
    %cst_57 = arith.constant 0.00133868807 : f32
    %73 = vector.broadcast %cst_57 : f32 to vector<1x32xf32>
    %74 = arith.mulf %72, %73 : vector<1x32xf32>
    %c1_58 = arith.constant 1 : index
    %c0_59 = arith.constant 0 : index
    %c0_60 = arith.constant 0 : index
    %75 = vector.load %arg1[%c1_58, %c0_59, %c0_60] : memref<2x377x32xbf16, #tpu.memory_space<vmem>>, vector<1x376x32xbf16>
    %76 = vector.shape_cast %75 : vector<1x376x32xbf16> to vector<376x32xbf16>
    %c1_61 = arith.constant 1 : index
    %c1_62 = arith.constant 1 : index
    %c0_63 = arith.constant 0 : index
    %77 = vector.load %arg1[%c1_61, %c1_62, %c0_63] : memref<2x377x32xbf16, #tpu.memory_space<vmem>>, vector<1x376x32xbf16>
    %78 = vector.shape_cast %77 : vector<1x376x32xbf16> to vector<376x32xbf16>
    %79 = tpu.concatenate %76, %78 in 1 : vector<376x32xbf16>, vector<376x32xbf16> -> vector<376x64xbf16>
    %c0_64 = arith.constant 0 : index
    %c0_65 = arith.constant 0 : index
    %80 = vector.load %arg2[%c0_64, %c0_65] : memref<64x128xbf16, #tpu.memory_space<vmem>>, vector<64x128xbf16>
    %cst_66 = arith.constant dense<0.000000e+00> : vector<376x128xf32>
    %81 = tpu.matmul %79, %80, %cst_66 {dimension_numbers = #tpu.dot_dimension_numbers<[1], [0], [0], [1], [0, 0, 1, 1], [], []>} : vector<376x64xbf16>, vector<64x128xbf16>, vector<376x128xf32> -> vector<376x128xf32>
    %c0_67 = arith.constant 0 : index
    %c0_68 = arith.constant 0 : index
    %82 = vector.load %arg3[%c0_67, %c0_68] : memref<1x128xf32, #tpu.memory_space<vmem>>, vector<1x128xf32>
    %83 = vector.broadcast %82 : vector<1x128xf32> to vector<376x128xf32>
    %84 = arith.mulf %81, %83 : vector<376x128xf32>
    %c0_69 = arith.constant 0 : index
    %c0_70 = arith.constant 0 : index
    %85 = vector.load %arg4[%c0_69, %c0_70] : memref<1x128xf32, #tpu.memory_space<vmem>>, vector<1x128xf32>
    %86 = vector.broadcast %85 : vector<1x128xf32> to vector<376x128xf32>
    %87 = arith.addf %84, %86 : vector<376x128xf32>
    %cst_71 = arith.constant 0.000000e+00 : f32
    %88 = vector.broadcast %cst_71 : f32 to vector<376x128xf32>
    %89 = arith.maximumf %87, %88 : vector<376x128xf32>
    %90 = arith.truncf %89 : vector<376x128xf32> to vector<376x128xbf16>
    %c0_72 = arith.constant 0 : index
    %c0_73 = arith.constant 0 : index
    %91 = vector.load %arg12[%c0_72, %c0_73] : memref<376x128xbf16, #tpu.memory_space<vmem>>, vector<376x128xbf16>
    tpu.vector_store %arg12[%c0_72, %c0_73], %90 {strides = array<i32>} : memref<376x128xbf16, #tpu.memory_space<vmem>>, vector<376x128xbf16>,
    %c0_74 = arith.constant 0 : index
    %c0_75 = arith.constant 0 : index
    %92 = vector.load %arg12[%c0_74, %c0_75] : memref<376x128xbf16, #tpu.memory_space<vmem>>, vector<376x128xbf16>
    %93 = vector.extract_strided_slice %92 {offsets = [0, 0], sizes = [376, 64], strides = [1, 1]} : vector<376x128xbf16> to vector<376x64xbf16>
    %94 = vector.extract_strided_slice %92 {offsets = [0, 64], sizes = [376, 64], strides = [1, 1]} : vector<376x128xbf16> to vector<376x64xbf16>
    %95 = arith.maximumf %93, %94 : vector<376x64xbf16>
    %c0_76 = arith.constant 0 : index
    %c0_77 = arith.constant 0 : index
    %96 = vector.load %arg13[%c0_76, %c0_77] : memref<376x64xbf16, #tpu.memory_space<vmem>>, vector<376x64xbf16>
    tpu.vector_store %arg13[%c0_76, %c0_77], %95 {strides = array<i32>} : memref<376x64xbf16, #tpu.memory_space<vmem>>, vector<376x64xbf16>,
    %c0_78 = arith.constant 0 : index
    %c0_79 = arith.constant 0 : index
    %97 = vector.load %arg13[%c0_78, %c0_79] : memref<376x64xbf16, #tpu.memory_space<vmem>>, vector<375x64xbf16>
    %c1_80 = arith.constant 1 : index
    %c0_81 = arith.constant 0 : index
    %98 = vector.load %arg13[%c1_80, %c0_81] : memref<376x64xbf16, #tpu.memory_space<vmem>>, vector<375x64xbf16>
    %99 = tpu.concatenate %97, %98 in 1 : vector<375x64xbf16>, vector<375x64xbf16> -> vector<375x128xbf16>
    %c0_82 = arith.constant 0 : index
    %c0_83 = arith.constant 0 : index
    %100 = vector.load %arg5[%c0_82, %c0_83] : memref<128x128xbf16, #tpu.memory_space<vmem>>, vector<128x128xbf16>
    %cst_84 = arith.constant dense<0.000000e+00> : vector<375x128xf32>
    %101 = tpu.matmul %99, %100, %cst_84 {dimension_numbers = #tpu.dot_dimension_numbers<[1], [0], [0], [1], [0, 0, 1, 1], [], []>} : vector<375x128xbf16>, vector<128x128xbf16>, vector<375x128xf32> -> vector<375x128xf32>
    %c0_85 = arith.constant 0 : index
    %c0_86 = arith.constant 0 : index
    %102 = vector.load %arg6[%c0_85, %c0_86] : memref<1x128xf32, #tpu.memory_space<vmem>>, vector<1x128xf32>
    %103 = vector.broadcast %102 : vector<1x128xf32> to vector<375x128xf32>
    %104 = arith.mulf %101, %103 : vector<375x128xf32>
    %c0_87 = arith.constant 0 : index
    %c0_88 = arith.constant 0 : index
    %105 = vector.load %arg7[%c0_87, %c0_88] : memref<1x128xf32, #tpu.memory_space<vmem>>, vector<1x128xf32>
    %106 = vector.broadcast %105 : vector<1x128xf32> to vector<375x128xf32>
    %107 = arith.addf %104, %106 : vector<375x128xf32>
    %cst_89 = arith.constant 0.000000e+00 : f32
    %108 = vector.broadcast %cst_89 : f32 to vector<375x128xf32>
    %109 = arith.maximumf %107, %108 : vector<375x128xf32>
    %110 = arith.truncf %109 : vector<375x128xf32> to vector<375x128xbf16>
    %c0_90 = arith.constant 0 : index
    %c0_91 = arith.constant 0 : index
    %111 = vector.load %arg14[%c0_90, %c0_91] : memref<375x128xbf16, #tpu.memory_space<vmem>>, vector<375x128xbf16>
    tpu.vector_store %arg14[%c0_90, %c0_91], %110 {strides = array<i32>} : memref<375x128xbf16, #tpu.memory_space<vmem>>, vector<375x128xbf16>,
    %c0_92 = arith.constant 0 : index
    %c0_93 = arith.constant 0 : index
    %112 = vector.load %arg14[%c0_92, %c0_93] : memref<375x128xbf16, #tpu.memory_space<vmem>>, vector<375x128xbf16>
    %113 = vector.extract_strided_slice %112 {offsets = [0, 0], sizes = [375, 64], strides = [1, 1]} : vector<375x128xbf16> to vector<375x64xbf16>
    %114 = vector.extract_strided_slice %112 {offsets = [0, 64], sizes = [375, 64], strides = [1, 1]} : vector<375x128xbf16> to vector<375x64xbf16>
    %115 = arith.maximumf %113, %114 : vector<375x64xbf16>
    %c0_94 = arith.constant 0 : index
    %c0_95 = arith.constant 0 : index
    %116 = vector.load %arg15[%c0_94, %c0_95] : memref<375x64xbf16, #tpu.memory_space<vmem>>, vector<375x64xbf16>
    tpu.vector_store %arg15[%c0_94, %c0_95], %115 {strides = array<i32>} : memref<375x64xbf16, #tpu.memory_space<vmem>>, vector<375x64xbf16>,
    %c0_96 = arith.constant 0 : index
    %c0_97 = arith.constant 0 : index
    %117 = vector.load %arg15[%c0_96, %c0_97] : memref<375x64xbf16, #tpu.memory_space<vmem>>, vector<374x64xbf16>
    %c1_98 = arith.constant 1 : index
    %c0_99 = arith.constant 0 : index
    %118 = vector.load %arg15[%c1_98, %c0_99] : memref<375x64xbf16, #tpu.memory_space<vmem>>, vector<374x64xbf16>
    %119 = tpu.concatenate %117, %118 in 1 : vector<374x64xbf16>, vector<374x64xbf16> -> vector<374x128xbf16>
    %c0_100 = arith.constant 0 : index
    %c0_101 = arith.constant 0 : index
    %120 = vector.load %arg8[%c0_100, %c0_101] : memref<128x128xbf16, #tpu.memory_space<vmem>>, vector<128x128xbf16>
    %cst_102 = arith.constant dense<0.000000e+00> : vector<374x128xf32>
    %121 = tpu.matmul %119, %120, %cst_102 {dimension_numbers = #tpu.dot_dimension_numbers<[1], [0], [0], [1], [0, 0, 1, 1], [], []>} : vector<374x128xbf16>, vector<128x128xbf16>, vector<374x128xf32> -> vector<374x128xf32>
    %c0_103 = arith.constant 0 : index
    %c0_104 = arith.constant 0 : index
    %122 = vector.load %arg9[%c0_103, %c0_104] : memref<1x128xf32, #tpu.memory_space<vmem>>, vector<1x128xf32>
    %123 = vector.broadcast %122 : vector<1x128xf32> to vector<374x128xf32>
    %124 = arith.mulf %121, %123 : vector<374x128xf32>
    %c0_105 = arith.constant 0 : index
    %c0_106 = arith.constant 0 : index
    %125 = vector.load %arg10[%c0_105, %c0_106] : memref<1x128xf32, #tpu.memory_space<vmem>>, vector<1x128xf32>
    %126 = vector.broadcast %125 : vector<1x128xf32> to vector<374x128xf32>
    %127 = arith.addf %124, %126 : vector<374x128xf32>
    %cst_107 = arith.constant 0.000000e+00 : f32
    %128 = vector.broadcast %cst_107 : f32 to vector<374x128xf32>
    %129 = arith.maximumf %127, %128 : vector<374x128xf32>
    %130 = arith.truncf %129 : vector<374x128xf32> to vector<374x128xbf16>
    %c0_108 = arith.constant 0 : index
    %c0_109 = arith.constant 0 : index
    %131 = vector.load %arg16[%c0_108, %c0_109] : memref<374x128xbf16, #tpu.memory_space<vmem>>, vector<374x128xbf16>
    tpu.vector_store %arg16[%c0_108, %c0_109], %130 {strides = array<i32>} : memref<374x128xbf16, #tpu.memory_space<vmem>>, vector<374x128xbf16>,
    %c0_110 = arith.constant 0 : index
    %c0_111 = arith.constant 0 : index
    %132 = vector.load %arg16[%c0_110, %c0_111] : memref<374x128xbf16, #tpu.memory_space<vmem>>, vector<374x128xbf16>
    %133 = vector.extract_strided_slice %132 {offsets = [0, 0], sizes = [374, 64], strides = [1, 1]} : vector<374x128xbf16> to vector<374x64xbf16>
    %134 = vector.extract_strided_slice %132 {offsets = [0, 64], sizes = [374, 64], strides = [1, 1]} : vector<374x128xbf16> to vector<374x64xbf16>
    %135 = arith.maximumf %133, %134 : vector<374x64xbf16>
    %c0_112 = arith.constant 0 : index
    %c0_113 = arith.constant 0 : index
    %136 = vector.load %arg17[%c0_112, %c0_113] : memref<374x64xbf16, #tpu.memory_space<vmem>>, vector<374x64xbf16>
    tpu.vector_store %arg17[%c0_112, %c0_113], %135 {strides = array<i32>} : memref<374x64xbf16, #tpu.memory_space<vmem>>, vector<374x64xbf16>,
    %c0_114 = arith.constant 0 : index
    %c0_115 = arith.constant 0 : index
    %137 = vector.load %arg17[%c0_114, %c0_115] : memref<374x64xbf16, #tpu.memory_space<vmem>>, vector<373x64xbf16>
    %138 = arith.extf %137 : vector<373x64xbf16> to vector<373x64xf32>
    %cst_116 = arith.constant dense<0.000000e+00> : vector<64xf32>
    %139 = vector.multi_reduction <add>, %138, %cst_116 [0] : vector<373x64xf32> to vector<64xf32>
    %140 = vector.shape_cast %139 : vector<64xf32> to vector<1x64xf32>
    %141 = vector.extract_strided_slice %140 {offsets = [0, 0], sizes = [1, 32], strides = [1, 1]} : vector<1x64xf32> to vector<1x32xf32>
    %142 = vector.extract_strided_slice %140 {offsets = [0, 32], sizes = [1, 32], strides = [1, 1]} : vector<1x64xf32> to vector<1x32xf32>
    %143 = arith.addf %141, %142 : vector<1x32xf32>
    %c373_117 = arith.constant 373 : index
    %c0_118 = arith.constant 0 : index
    %144 = vector.load %arg17[%c373_117, %c0_118] : memref<374x64xbf16, #tpu.memory_space<vmem>>, vector<1x64xbf16>
    %145 = arith.extf %144 : vector<1x64xbf16> to vector<1x64xf32>
    %146 = vector.extract_strided_slice %145 {offsets = [0, 0], sizes = [1, 32], strides = [1, 1]} : vector<1x64xf32> to vector<1x32xf32>
    %147 = arith.addf %143, %146 : vector<1x32xf32>
    %cst_119 = arith.constant 0.00133868807 : f32
    %148 = vector.broadcast %cst_119 : f32 to vector<1x32xf32>
    %149 = arith.mulf %147, %148 : vector<1x32xf32>
    %150 = vector.shape_cast %74 : vector<1x32xf32> to vector<1x1x32xf32>
    %151 = vector.shape_cast %149 : vector<1x32xf32> to vector<1x1x32xf32>
    %152 = tpu.concatenate %150, %151 in 0 : vector<1x1x32xf32>, vector<1x1x32xf32> -> vector<2x1x32xf32>
    %c0_120 = arith.constant 0 : index
    %c0_121 = arith.constant 0 : index
    %c0_122 = arith.constant 0 : index
    %153 = vector.load %arg11[%c0_120, %c0_121, %c0_122] : memref<2x1x32xf32, #tpu.memory_space<vmem>>, vector<2x1x32xf32>
    tpu.vector_store %arg11[%c0_120, %c0_121, %c0_122], %152 {strides = array<i32>} : memref<2x1x32xf32, #tpu.memory_space<vmem>>, vector<2x1x32xf32>,
    return
  }
  func.func @transform_0(%arg0: i32) -> (i32, i32, i32) {
    %c0_i32 = arith.constant 0 : i32
    %c0_i32_0 = arith.constant 0 : i32
    %c0_i32_1 = arith.constant 0 : i32
    return %arg0, %c0_i32, %c0_i32_0 : i32, i32, i32
  }
  func.func @transform_1(%arg0: i32) -> (i32, i32) {
    %c0_i32 = arith.constant 0 : i32
    %c0_i32_0 = arith.constant 0 : i32
    %c0_i32_1 = arith.constant 0 : i32
    return %c0_i32, %c0_i32_0 : i32, i32
  }
  func.func @transform_2(%arg0: i32) -> (i32, i32) {
    %c0_i32 = arith.constant 0 : i32
    %c0_i32_0 = arith.constant 0 : i32
    %c0_i32_1 = arith.constant 0 : i32
    return %c0_i32, %c0_i32_0 : i32, i32
  }
  func.func @transform_3(%arg0: i32) -> (i32, i32) {
    %c0_i32 = arith.constant 0 : i32
    %c0_i32_0 = arith.constant 0 : i32
    %c0_i32_1 = arith.constant 0 : i32
    return %c0_i32, %c0_i32_0 : i32, i32
  }
  func.func @transform_4(%arg0: i32) -> (i32, i32) {
    %c0_i32 = arith.constant 0 : i32
    %c0_i32_0 = arith.constant 0 : i32
    %c0_i32_1 = arith.constant 0 : i32
    return %c0_i32, %c0_i32_0 : i32, i32
  }
  func.func @transform_5(%arg0: i32) -> (i32, i32) {
    %c0_i32 = arith.constant 0 : i32
    %c0_i32_0 = arith.constant 0 : i32
    %c0_i32_1 = arith.constant 0 : i32
    return %c0_i32, %c0_i32_0 : i32, i32
  }
  func.func @transform_6(%arg0: i32) -> (i32, i32) {
    %c0_i32 = arith.constant 0 : i32
    %c0_i32_0 = arith.constant 0 : i32
    %c0_i32_1 = arith.constant 0 : i32
    return %c0_i32, %c0_i32_0 : i32, i32
  }
  func.func @transform_7(%arg0: i32) -> (i32, i32) {
    %c0_i32 = arith.constant 0 : i32
    %c0_i32_0 = arith.constant 0 : i32
    %c0_i32_1 = arith.constant 0 : i32
    return %c0_i32, %c0_i32_0 : i32, i32
  }
  func.func @transform_8(%arg0: i32) -> (i32, i32) {
    %c0_i32 = arith.constant 0 : i32
    %c0_i32_0 = arith.constant 0 : i32
    %c0_i32_1 = arith.constant 0 : i32
    return %c0_i32, %c0_i32_0 : i32, i32
  }
  func.func @transform_9(%arg0: i32) -> (i32, i32) {
    %c0_i32 = arith.constant 0 : i32
    %c0_i32_0 = arith.constant 0 : i32
    %c0_i32_1 = arith.constant 0 : i32
    return %c0_i32, %c0_i32_0 : i32, i32
  }
  func.func @transform_10(%arg0: i32) -> (i32, i32, i32) {
    %c0_i32 = arith.constant 0 : i32
    %c0_i32_0 = arith.constant 0 : i32
    %c0_i32_1 = arith.constant 0 : i32
    return %arg0, %c0_i32, %c0_i32_0 : i32, i32, i32
  }
}

</mosaic_0001>

<bundles_post_ra>
// kernel: tpu_custom_call.1
= control target key start
LH: loop header
LB: loop body
LE: loop exit
PB: predicated region body
PF: predicated region fallthrough
CT: control target
= control target key end

     0   :  { %15 = vsyncpa [#allocation9], 0  ;;  %s16486_s0 = inlined_call_operand.vmem [shape: bf16[4,377,32], index: 0, kind: input, shape index: {}]   ;;  %s16487_s1 = inlined_call_operand.vmem [shape: bf16[64,128], index: 1, kind: input, shape index: {}]   ;;  %s16488_s2 = inlined_call_operand.vmem [shape: f32[1,128], index: 2, kind: input, shape index: {}]   ;;  %s16489_s3 = inlined_call_operand.vmem [shape: f32[1,128], index: 3, kind: input, shape index: {}]   ;;  %s16490_s4 = inlined_call_operand.vmem [shape: bf16[128,128], index: 4, kind: input, shape index: {}]   ;;  %s16491_s5 = inlined_call_operand.vmem [shape: f32[1,128], index: 5, kind: input, shape index: {}]   ;;  %s16492_s6 = inlined_call_operand.vmem [shape: f32[1,128], index: 6, kind: input, shape index: {}]   ;;  %s16493_s7 = inlined_call_operand.vmem [shape: bf16[128,128], index: 7, kind: input, shape index: {}]   ;;  %s16494_s8 = inlined_call_operand.vmem [shape: f32[1,128], index: 8, kind: input, shape index: {}]   ;;  %s16495_s9 = inlined_call_operand.vmem [shape: f32[1,128], index: 9, kind: input, shape index: {}]   ;;  %s16496_s10 = inlined_call_operand.hbm [shape: f32[4,1,32], index: 10, kind: output, shape index: {}]  }
   0x1   :  { %17 = vsyncpa [#allocation9 + $0x1], 0  ;;  %s12654_s13 = smov 0   ;;  %s12656_s14 = smov 0  }
   0x2   :  { %s12658_s15 = smov 0   ;;  %s12660_s16 = smov 0  }
   0x3 LB: > { %s12675_s17 = sadd.s32 4294967295, %s12591_s16   ;;  %s9782_s18 = sadd.s32 4294967294, %s12591_s16   ;;  %s12591_s16 = sphi %s12660_s16, %s16539_s16   ;;  %s12587_s15 = sphi %s12658_s15, %s16538_s15   ;;  %s12583_s14 = sphi %s12656_s14, %s16537_s14   ;;  %s12579_s13 = sphi %s12654_s13, %s16536_s13  }
   0x4   : > { %s12679_s19 = sadd.s32 1, %s12591_s16   ;;  %s245_s20 = sadd.s32 1, %s12587_s15 }
   0x5   : > { %s242_s21 = ssub.s32 %s12591_s16, %s12679_s19  ;;  %p255_p0 = scmp.ne.s32.totalorder %s12587_s15, %s12583_s14 }
   0x6   : > { %p243_p1 = scmp.eq.s32.totalorder %s242_s21, 0  ;;  %p256_p2 = scmp.eq.s32.totalorder %s12675_s17, 1 }
   0x7   : > { %p261_p3 = scmp.ne.s32.totalorder %s12583_s14, %s12579_s13  ;;  %p262_p4 = scmp.eq.s32.totalorder %s9782_s18, 1 }
   0x8   : > { %s12690_s22 = scalar_select %p243_p1, %s12587_s15, %s245_s20  }
   0x9   : > { %p12692_p5 = por %p256_p2, %p255_p0  ;;  %p12696_p6 = por %p262_p4, %p261_p3 }
   0xa   : > { %p9785_p7 = scmp.ge.s32.totalorder %s12591_s16, 1  ;;  %p317_p8 = scmp.lt.s32.totalorder %s12591_s16, 3 }
   0xc   : > { %p318_p9 = pnand %p9785_p7, %p317_p8 }
   0xe   : > { %321 = sbr.rel (%p318_p9) target bundleno = 2365 (0x93d), region = 60 }
  0x13   : > { %s9787_s25 = sshll.u32 %s12675_s17, 1  ;;  %v12341_v0 = vld [vmem:[%s16487_s1 + $0x18] sm:$0xff]   ;;  %v12342_v1 = vld [vmem:[%s16487_s1 + $0x10] sm:$0xff]   ;;  %v12343_v2 = vld [vmem:[%s16487_s1 + $0x8] sm:$0xff]   ;;  %vm534_vm0 = vsmask.f32 7424 }
  0x14   : > { %p357_p10 = scmp.lt.s32.totalorder %s9787_s25, 3  ;;  %11889 = vmatprep.subr.bf16.mxu0 %v12341_v0  ;;  %v12344_v3 = vld [vmem:[%s16487_s1] sm:$0xff]   ;;  %vm774_vm1 = vcmask 261120   ;;  %vm856_vm2 = vcmask 523264   ;;  %s12594_s12 = smov 64   ;;  %vm1802_vm3 = vcmask 519168  }
  0x15   : > { %11890 = vmatpush3.bf16.msra.mxu0 %v12341_v0  ;;  %vm3004_vm4 = vcmask 1043456   ;;  %vm3005_vm5 = vsmask.f32 3328  ;;  %vm4831_vm8 = vcmask 518144   ;;  %vm5018_vm9 = vcmask 520192   ;;  %s353_s18 = sand.u32 1, %s12583_s14  }
  0x16   : > { %s16541_s25 = smov (!%p357_p10, %s9787_s25), 3  ;;  %11891 = vmatprep.subr.bf16.mxu0 %v12342_v1  ;;  %vm14103_vm6 = vmand %vm3004_vm4, %vm3005_vm5  ;;  %s9786_s20 = sshll.u32 %s353_s18, 1  ;;  %vm9703_vm10 = vcmask 253952  }
  0x17   : > { %s12273_s30 = smul.u32 192, %s16541_s25  ;;  %s12593_s25 = smov 32   ;;  %vm14547_vm7 = vmand %vm1802_vm3, %vm3005_vm5 }
  0x18   : > { %s355_s26 = scalar_lea.vmem [#allocation8], %s9786_s20  ;;  %s10654_s27 = sshll.u32 %s12675_s17, 5 }
  0x19   : > { %s12715_s21 = scalar_lea.vmem %s16486_s0, %s12273_s30  ;;  %11892 = vmatpush3.bf16.msra.mxu0 %v12342_v1  ;;  %s9720_s28 = sshll.u32 %s355_s26, 4  ;;  %s16444_s28 = int_to_ptr.vmem [resolvable:$true] %s9720_s28 }
  0x1a   : > { %v12721_v4 = vld [vmem:[%s12715_s21] sm:$0xff]   ;;  %v12724_v5 = vld [vmem:[%s12715_s21 + $0x8] sm:$0xff]   ;;  %11893 = vmatprep.subr.bf16.mxu0 %v12343_v2  ;;  %v12727_v6 = vld [vmem:[%s12715_s21 + $0x10] sm:$0xff]   ;;  %s16442_s11 = scalar_lea.hbm %s16496_s10, %s10654_s27  ;;  %s12596_s17 = smov [#allocation8]  }
  0x1b   : > { %v536_v7 = vshrl.u32 %v12721_v4, 16  ;;  %v538_v8 = vshll.u32 %v12721_v4, 16  ;;  %v543_v9 = vshll.u32 %v12724_v5, 16  ;;  %v547_v10 = vshrl.u32 %v12724_v5, 16  ;;  %v12735_v12 = vld [vmem:[%s12715_s21 + $0x18] sm:$0xff]   ;;  %v12739_v14 = vld [vmem:[%s12715_s21 + $0x20] sm:$0xff]  }
  0x1c   : > { %v551_v11 = vshll.u32 %v12727_v6, 16  ;;  %v555_v13 = vshrl.u32 %v12727_v6, 16  ;;  %v559_v18 = vshll.u32 %v12735_v12, 16  ;;  %v563_v19 = vshrl.u32 %v12735_v12, 16  ;;  %v12745_v23 = vld [vmem:[%s12715_s21 + $0x28] sm:$0xff]   ;;  %v12749_v28 = vld [vmem:[%s12715_s21 + $0x30] sm:$0xff]  }
  0x1d   : > { %11894 = vmatpush3.bf16.msra.mxu0 %v12343_v2  ;;  %v540_v15 = vrot.slane %v538_v8, 1  ;;  %v545_v16 = vrot.slane %v543_v9, 1  ;;  %v567_v20 = vshll.u32 %v12739_v14, 16  ;;  %v571_v24 = vshrl.u32 %v12739_v14, 16  ;;  %v12752_v29 = vld [vmem:[%s12715_s21 + $0x38] sm:$0xff]   ;;  %v12762_v37 = vld [vmem:[%s12715_s21 + $0x40] sm:$0xff]  }
  0x1e   : > { %11895 = vmatprep.subr.bf16.mxu0 %v12344_v3  ;;  %v553_v17 = vrot.slane %v551_v11, 1  ;;  %v561_v26 = vrot.slane %v559_v18, 1  ;;  %v575_v31 = vshll.u32 %v12745_v23, 16  ;;  %v579_v32 = vshrl.u32 %v12745_v23, 16  ;;  %v12771_v46 = vld [vmem:[%s12715_s21 + $0x48] sm:$0xff]   ;;  %v12774_v49 = vld [vmem:[%s12715_s21 + $0x50] sm:$0xff]  }
  0x1f   : > { %v541_v21 = vor.u32 %v540_v15, %v536_v7  ;;  %v549_v22 = vor.u32 %v547_v10, %v545_v16  ;;  %v569_v27 = vrot.slane %v567_v20, 1  ;;  %v583_v36 = vshll.u32 %v12749_v28, 16  ;;  %v12780_v53 = vld [vmem:[%s12715_s21 + $0x58] sm:$0xff]   ;;  %v12789_v62 = vld [vmem:[%s12715_s21 + $0x60] sm:$0xff]   ;;  %v12792_v63 = vld [vmem:[%s12715_s21 + $0x68] sm:$0xff]  }
  0x20   : > { %v557_v25 = vor.u32 %v555_v13, %v553_v17  ;;  %v565_v35 = vor.u32 %v563_v19, %v561_v26  ;;  %v577_v39 = vrot.slane %v575_v31, 1  ;;  %v587_v40 = vshrl.u32 %v12749_v28, 16  ;;  %v12802_v10 = vld [vmem:[%s12715_s21 + $0x70] sm:$0xff]   ;;  %v12811_v19 = vld [vmem:[%s12715_s21 + $0x80] sm:$0xff]  }
  0x21   : > { %11896 = vmatpush3.bf16.msra.mxu0 %v12344_v3  ;;  %v546_v30 = vsel %vm534_vm0, %v541_v21, %v545_v16  ;;  %v554_v33 = vsel %vm534_vm0, %v549_v22, %v553_v17  ;;  %v573_v38 = vor.u32 %v571_v24, %v569_v27  ;;  %v591_v41 = vshll.u32 %v12752_v29, 16  ;;  %v12806_v16 = vld [vmem:[%s12715_s21 + $0x78] sm:$0xff]  }
  0x22   : > { %726 = vrot.lane.b32.xlu0 %v546_v30, %s12593_s25  ;;  %v562_v34 = vsel %vm534_vm0, %v557_v25, %v561_v26  ;;  %v570_v42 = vsel %vm534_vm0, %v565_v35, %v569_v27  ;;  %v585_v43 = vrot.slane %v583_v36, 1  ;;  %v595_v44 = vshrl.u32 %v12752_v29, 16  ;;  %v12820_v30 = vld [vmem:[%s12715_s21 + $0x88] sm:$0xff]  }
  0x23   : > { %730 = vrot.lane.b32.xlu1 %v562_v34, %s12593_s25  ;;  %v599_v45 = vshll.u32 %v12762_v37, 16  ;;  %v581_v47 = vor.u32 %v579_v32, %v577_v39  ;;  %v593_v48 = vrot.slane %v591_v41, 1  ;;  %v603_v51 = vshrl.u32 %v12762_v37, 16  ;;  %v12825_v34 = vld [vmem:[%s12715_s21 + $0x90] sm:$0xff]  }
  0x24   : > { %v607_v52 = vshll.u32 %v12771_v46, 16  ;;  %v578_v54 = vsel %vm534_vm0, %v573_v38, %v577_v39  ;;  %v589_v55 = vor.u32 %v587_v40, %v585_v43  ;;  %v611_v56 = vshrl.u32 %v12771_v46, 16  ;;  %v12830_v39 = vld [vmem:[%s12715_s21 + $0x98] sm:$0xff]   ;;  %v12833_v40 = vld [vmem:[%s12715_s21 + $0xa0] sm:$0xff]  }
  0x25   : > { %v601_v50 = vrot.slane %v599_v45, 1  ;;  %v615_v57 = vshll.u32 %v12774_v49, 16  ;;  %v586_v58 = vsel %vm534_vm0, %v581_v47, %v585_v43  ;;  %v597_v59 = vor.u32 %v595_v44, %v593_v48  ;;  %v12839_v44 = vld [vmem:[%s12715_s21 + $0xa8] sm:$0xff]  }
  0x26   : > { %728 = vrot.lane.b32.xlu0 %v554_v33, %s12593_s25  ;;  %v609_v60 = vrot.slane %v607_v52, 1  ;;  %v623_v61 = vshll.u32 %v12780_v53, 16  ;;  %v619_v1 = vshrl.u32 %v12774_v49, 16  ;;  %v631_v2 = vshll.u32 %v12789_v62, 16 }
  0x27   : > { %732 = vrot.lane.b32.xlu1 %v570_v42, %s12593_s25  ;;  %v605_v0 = vor.u32 %v603_v51, %v601_v50  ;;  %v594_v3 = vsel %vm534_vm0, %v589_v55, %v593_v48  ;;  %v617_v7 = vrot.slane %v615_v57, 1  ;;  %v627_v8 = vshrl.u32 %v12780_v53, 16 }
  0x28   : > { %v639_v9 = vshll.u32 %v12792_v63, 16  ;;  %v602_v11 = vsel %vm534_vm0, %v597_v59, %v601_v50  ;;  %v613_v13 = vor.u32 %v611_v56, %v609_v60  ;;  %v625_v15 = vrot.slane %v623_v61, 1  ;;  %v12848_v56 = vld [vmem:[%s12715_s21 + $0xb0] sm:$0xff]  }
  0x29   : > { %v635_v17 = vshrl.u32 %v12789_v62, 16  ;;  %v643_v18 = vshrl.u32 %v12792_v63, 16  ;;  %v610_v20 = vsel %vm534_vm0, %v605_v0, %v609_v60  ;;  %v633_v21 = vrot.slane %v631_v2, 1  ;;  %v12856_v2 = vld [vmem:[%s12715_s21 + $0xb8] sm:$0xf] }
  0x2a   : > { %734 = vrot.lane.b32.xlu0 %v578_v54, %s12593_s25  ;;  %v647_v22 = vshll.u32 %v12802_v10, 16  ;;  %v621_v24 = vor.u32 %v619_v1, %v617_v7  ;;  %v641_v25 = vrot.slane %v639_v9, 1  ;;  %v651_v26 = vshrl.u32 %v12802_v10, 16 }
  0x2b   : > { %736 = vrot.lane.b32.xlu1 %v586_v58, %s12593_s25  ;;  %v655_v27 = vshll.u32 %v12806_v16, 16  ;;  %v618_v31 = vsel %vm534_vm0, %v613_v13, %v617_v7  ;;  %v629_v32 = vor.u32 %v627_v8, %v625_v15  ;;  %v663_v33 = vshll.u32 %v12811_v19, 16 }
  0x2c   : > { %v637_v35 = vor.u32 %v635_v17, %v633_v21  ;;  %v659_v36 = vshrl.u32 %v12806_v16, 16  ;;  %v671_v38 = vshll.u32 %v12820_v30, 16  ;;  %v649_v41 = vrot.slane %v647_v22, 1 }
  0x2d   : > { %v667_v42 = vshrl.u32 %v12811_v19, 16  ;;  %v679_v43 = vshll.u32 %v12825_v34, 16  ;;  %v626_v45 = vsel %vm534_vm0, %v621_v24, %v625_v15  ;;  %v645_v47 = vor.u32 %v643_v18, %v641_v25 }
  0x2e   : > { %738 = vrot.lane.b32.xlu0 %v594_v3, %s12593_s25  ;;  %v657_v48 = vrot.slane %v655_v27, 1  ;;  %v687_v50 = vshll.u32 %v12830_v39, 16  ;;  %v634_v51 = vsel %vm534_vm0, %v629_v32, %v633_v21  ;;  %v665_v52 = vrot.slane %v663_v33, 1 }
  0x2f   : > { %740 = vrot.lane.b32.xlu1 %v602_v11, %s12593_s25  ;;  %v675_v54 = vshrl.u32 %v12820_v30, 16  ;;  %v695_v55 = vshll.u32 %v12833_v40, 16  ;;  %v642_v57 = vsel %vm534_vm0, %v637_v35, %v641_v25  ;;  %v673_v58 = vrot.slane %v671_v38, 1  ;;  %v412_v11 = vld [vmem:[%s12715_s21 + $0xbc] sm:$0x1] }
  0x30   : > { %v683_v59 = vshrl.u32 %v12825_v34, 16  ;;  %v681_v60 = vrot.slane %v679_v43, 1  ;;  %v689_v61 = vrot.slane %v687_v50, 1  ;;  %v691_v0 = vshrl.u32 %v12830_v39, 16 }
  0x31   : > { %v703_v1 = vshll.u32 %v12839_v44, 16  ;;  %v650_v3 = vsel %vm534_vm0, %v645_v47, %v649_v41  ;;  %v653_v7 = vor.u32 %v651_v26, %v649_v41  ;;  %v699_v8 = vshrl.u32 %v12833_v40, 16 }
  0x32   : > { %742 = vrot.lane.b32.xlu0 %v610_v20, %s12593_s25  ;;  %v711_v9 = vshll.u32 %v12848_v56, 16  ;;  %v661_v13 = vor.u32 %v659_v36, %v657_v48  ;;  %v697_v15 = vrot.slane %v695_v55, 1  ;;  %v707_v17 = vshrl.u32 %v12839_v44, 16 }
  0x33   : > { %744 = vrot.lane.b32.xlu1 %v618_v31, %s12593_s25  ;;  %v9813_v18 = vcombine.low %v12856_v2, %v412_v11  ;;  %v705_v20 = vrot.slane %v703_v1, 1  ;;  %v715_v21 = vshrl.u32 %v12848_v56, 16  ;;  %v658_v25 = vsel %vm534_vm0, %v653_v7, %v657_v48 }
  0x34   : > { %v713_v22 = vrot.slane %v711_v9, 1  ;;  %v669_v26 = vor.u32 %v667_v42, %v665_v52  ;;  %v666_v27 = vsel %vm534_vm0, %v661_v13, %v665_v52  ;;  %v677_v31 = vor.u32 %v675_v54, %v673_v58 }
  0x35   : > { %v719_v24 = vshll.u32 %v9813_v18, 16  ;;  %v723_v33 = vshrl.u32 %v9813_v18, 16  ;;  %v685_v36 = vor.u32 %v683_v59, %v681_v60  ;;  %v693_v41 = vor.u32 %v691_v0, %v689_v61 }
  0x36   : > { %746 = vrot.lane.b32.xlu0 %v626_v45, %s12593_s25  ;;  %v674_v35 = vsel %vm534_vm0, %v669_v26, %v673_v58  ;;  %v682_v38 = vsel %vm534_vm0, %v677_v31, %v681_v60  ;;  %v701_v43 = vor.u32 %v699_v8, %v697_v15  ;;  %v709_v47 = vor.u32 %v707_v17, %v705_v20 }
  0x37   : > { %748 = vrot.lane.b32.xlu1 %v634_v51, %s12593_s25  ;;  %v721_v32 = vrot.slane %v719_v24, 1  ;;  %v690_v42 = vsel %vm534_vm0, %v685_v36, %v689_v61  ;;  %v698_v45 = vsel %vm534_vm0, %v693_v41, %v697_v15  ;;  %v717_v50 = vor.u32 %v715_v21, %v713_v22  ;;  %v12963_v36 = vld [vmem:[%s16488_s2] ss:$0 sm:$0xff] }
  0x38   : > { %v706_v48 = vsel %vm534_vm0, %v701_v43, %v705_v20  ;;  %v714_v51 = vsel %vm534_vm0, %v709_v47, %v713_v22 }
  0x39   : > { %v722_v52 = vsel %vm534_vm0, %v717_v50, %v721_v32  ;;  %v725_v54 = vor.u32 %v723_v33, %v721_v32 }
  0x3a   : > { %750 = vrot.lane.b32.xlu0 %v642_v57, %s12593_s25 }
  0x3b   : > { %752 = vrot.lane.b32.xlu1 %v650_v3, %s12593_s25 }
  0x3e   : > { %754 = vrot.lane.b32.xlu0 %v658_v25, %s12593_s25 }
  0x3f   : > { %756 = vrot.lane.b32.xlu1 %v666_v27, %s12593_s25 }
  0x42   : > { %758 = vrot.lane.b32.xlu0 %v674_v35, %s12593_s25 }
  0x43   : > { %760 = vrot.lane.b32.xlu1 %v682_v38, %s12593_s25  ;;  %v12969_v38 = vld [vmem:[%s16489_s3] ss:$0 sm:$0xff] }
  0x46   : > { %762 = vrot.lane.b32.xlu0 %v690_v42, %s12593_s25 }
  0x47   : > { %764 = vrot.lane.b32.xlu1 %v698_v45, %s12593_s25 }
  0x4a   : > { %766 = vrot.lane.b32.xlu0 %v706_v48, %s12593_s25 }
  0x4b   : > { %768 = vrot.lane.b32.xlu1 %v714_v51, %s12593_s25 }
  0x4e   : > { %770 = vrot.lane.b32.xlu0 %v722_v52, %s12593_s25 }
  0x4f   : > { %772 = vrot.lane.b32.xlu1 %v725_v54, %s12593_s25 }
  0x94   : > { %v727_v55 = vpop.permute.xlu0 %726 }
  0x95   : > { %v776_v57 = vsel %vm774_vm1, %v12721_v4, %v727_v55  ;;  %v731_v58 = vpop.permute.xlu1 %730 }
  0x96   : > { %11897 = vmatprep.mubr.msk.bf16.mxu0 %vm856_vm2, %v776_v57  ;;  %v780_v60 = vsel %vm774_vm1, %v12727_v6, %v731_v58 }
  0x98   : > { %v729_v59 = vpop.permute.xlu0 %728 }
  0x99   : > { %v778_v61 = vsel %vm774_vm1, %v12724_v5, %v729_v59  ;;  %v733_v0 = vpop.permute.xlu1 %732 }
  0x9a   : > { %11898 = vmatmul.mubr.msk.bf16.vlgmr.msra.gmra.mxu0 %vm856_vm2, %v778_v61  ;;  %v782_v3 = vsel %vm774_vm1, %v12735_v12, %v733_v0 }
  0x9b   : > { %11901 = vmatprep.mubr.msk.bf16.mxu0 %vm856_vm2, %v780_v60 }
  0x9c   : > { %v735_v1 = vpop.permute.xlu0 %734 }
  0x9d   : > { %v784_v4 = vsel %vm774_vm1, %v12739_v14, %v735_v1  ;;  %v737_v6 = vpop.permute.xlu1 %736 }
  0x9e   : > { %v786_v5 = vsel %vm774_vm1, %v12745_v23, %v737_v6 }
  0xa0   : > { %v739_v7 = vpop.permute.xlu0 %738 }
  0xa1   : > { %v788_v8 = vsel %vm774_vm1, %v12749_v28, %v739_v7  ;;  %v741_v12 = vpop.permute.xlu1 %740 }
  0xa2   : > { %11902 = vmatmul.mubr.msk.bf16.gmra.mxu0 %vm856_vm2, %v782_v3  ;;  %v790_v14 = vsel %vm774_vm1, %v12752_v29, %v741_v12 }
  0xa3   : > { %11905 = vmatprep.mubr.msk.bf16.mxu0 %vm856_vm2, %v784_v4 }
  0xa4   : > { %v743_v9 = vpop.permute.xlu0 %742 }
  0xa5   : > { %v792_v11 = vsel %vm774_vm1, %v12762_v37, %v743_v9  ;;  %v745_v23 = vpop.permute.xlu1 %744 }
  0xa6   : > { %v794_v28 = vsel %vm774_vm1, %v12771_v46, %v745_v23 }
  0xa8   : > { %v747_v13 = vpop.permute.xlu0 %746 }
  0xa9   : > { %v796_v15 = vsel %vm774_vm1, %v12774_v49, %v747_v13  ;;  %v749_v29 = vpop.permute.xlu1 %748 }
  0xaa   : > { %11906 = vmatmul.mubr.msk.bf16.gmra.mxu0 %vm856_vm2, %v786_v5  ;;  %v798_v37 = vsel %vm774_vm1, %v12780_v53, %v749_v29 }
  0xab   : > { %11909 = vmatprep.mubr.msk.bf16.mxu0 %vm856_vm2, %v788_v8 }
  0xac   : > { %v751_v17 = vpop.permute.xlu0 %750 }
  0xad   : > { %v800_v18 = vsel %vm774_vm1, %v12789_v62, %v751_v17  ;;  %v753_v46 = vpop.permute.xlu1 %752 }
  0xae   : > { %v802_v49 = vsel %vm774_vm1, %v12792_v63, %v753_v46 }
  0xb0   : > { %v755_v20 = vpop.permute.xlu0 %754 }
  0xb1   : > { %v804_v21 = vsel %vm774_vm1, %v12802_v10, %v755_v20  ;;  %v757_v53 = vpop.permute.xlu1 %756 }
  0xb2   : > { %11910 = vmatmul.mubr.msk.bf16.gmra.mxu0 %vm856_vm2, %v790_v14  ;;  %v806_v62 = vsel %vm774_vm1, %v12806_v16, %v757_v53 }
  0xb3   : > { %11913 = vmatprep.mubr.msk.bf16.mxu0 %vm856_vm2, %v792_v11 }
  0xb4   : > { %v759_v22 = vpop.permute.xlu0 %758 }
  0xb5   : > { %v808_v24 = vsel %vm774_vm1, %v12811_v19, %v759_v22  ;;  %v761_v63 = vpop.permute.xlu1 %760 }
  0xb6   : > { %v810_v10 = vsel %vm774_vm1, %v12820_v30, %v761_v63 }
  0xb8   : > { %v763_v25 = vpop.permute.xlu0 %762 }
  0xb9   : > { %v812_v26 = vsel %vm774_vm1, %v12825_v34, %v763_v25  ;;  %v765_v16 = vpop.permute.xlu1 %764 }
  0xba   : > { %11914 = vmatmul.mubr.msk.bf16.gmra.mxu0 %vm856_vm2, %v794_v28  ;;  %v814_v19 = vsel %vm774_vm1, %v12830_v39, %v765_v16  ;;  %v9812_v39 = vcombine.low %v12856_v2, %v12856_v2 }
  0xbb   : > { %11917 = vmatprep.mubr.msk.bf16.mxu0 %vm856_vm2, %v796_v15 }
  0xbc   : > { %v767_v27 = vpop.permute.xlu0 %766 }
  0xbd   : > { %v816_v31 = vsel %vm774_vm1, %v12833_v40, %v767_v27  ;;  %v769_v30 = vpop.permute.xlu1 %768 }
  0xbe   : > { %v818_v34 = vsel %vm774_vm1, %v12839_v44, %v769_v30 }
  0xc0   : > { %v771_v32 = vpop.permute.xlu0 %770 }
  0xc1   : > { %v820_v33 = vsel %vm774_vm1, %v12848_v56, %v771_v32  ;;  %v773_v40 = vpop.permute.xlu1 %772 }
  0xc2   : > { %11918 = vmatmul.mubr.msk.bf16.gmra.mxu0 %vm856_vm2, %v798_v37  ;;  %v823_v35 = vsel %vm774_vm1, %v9812_v39, %v773_v40 }
  0xc3   : > { %11921 = vmatprep.mubr.msk.bf16.mxu0 %vm856_vm2, %v800_v18 }
  0xca   : > { %11922 = vmatmul.mubr.msk.bf16.gmra.mxu0 %vm856_vm2, %v802_v49 }
  0xcb   : > { %11925 = vmatprep.mubr.msk.bf16.mxu0 %vm856_vm2, %v804_v21 }
  0xd2   : > { %11926 = vmatmul.mubr.msk.bf16.gmra.mxu0 %vm856_vm2, %v806_v62 }
  0xd3   : > { %11929 = vmatprep.mubr.msk.bf16.mxu0 %vm856_vm2, %v808_v24 }
  0xda   : > { %11930 = vmatmul.mubr.msk.bf16.gmra.mxu0 %vm856_vm2, %v810_v10 }
  0xdb   : > { %11933 = vmatprep.mubr.msk.bf16.mxu0 %vm856_vm2, %v812_v26 }
  0xe2   : > { %11934 = vmatmul.mubr.msk.bf16.gmra.mxu0 %vm856_vm2, %v814_v19 }
  0xe3   : > { %11937 = vmatprep.mubr.msk.bf16.mxu0 %vm856_vm2, %v816_v31 }
  0xea   : > { %11938 = vmatmul.mubr.msk.bf16.gmra.mxu0 %vm856_vm2, %v818_v34 }
  0xeb   : > { %11941 = vmatprep.mubr.msk.bf16.mxu0 %vm856_vm2, %v820_v33 }
  0xf2   : > { %11942 = vmatmul.mubr.msk.bf16.gmra.mxu0 %vm856_vm2, %v823_v35 }
 0x15a   : > { %v11899_v44 = vpop.f32.mrf.mxu0 }
 0x15b   : > { %v1138_v56 = vmul.f32 %v11899_v44, %v12963_v36 }
 0x15c   : > { %v939_v2 = vpop.f32.mrf.mxu0 }
 0x15d   : > { %v1136_v41 = vmul.f32 %v12963_v36, %v939_v2  ;;  %v1192_v43 = vadd.f32 %v12969_v38, %v1138_v56 }
 0x15e   : > { %v11900_v42 = vpop.f32.mrf.mxu0 }
 0x15f   : > { %v1139_v45 = vmul.f32 %v11900_v42, %v12963_v36  ;;  %v1190_v48 = vadd.f32 %v12969_v38, %v1136_v41  ;;  %v1239_v54 = vmax.f32 %v1192_v43, 0.0 }
 0x160   : > { %v942_v47 = vpop.f32.mrf.mxu0 }
 0x161   : > { %v1193_v50 = vadd.f32 %v12969_v38, %v1139_v45  ;;  %v1137_v51 = vmul.f32 %v12963_v36, %v942_v47  ;;  %v1237_v60 = vmax.f32 %v1190_v48, 0.0 }
 0x162   : > { %v11903_v52 = vpop.f32.mrf.mxu0 }
 0x163   : > { %v1240_v55 = vmax.f32 %v1193_v50, 0.0  ;;  %v1191_v57 = vadd.f32 %v12969_v38, %v1137_v51  ;;  %v1142_v58 = vmul.f32 %v11903_v52, %v12963_v36 }
 0x164   : > { %v955_v59 = vpop.f32.mrf.mxu0 }
 0x165   : > { %v10663_v61 = vpack.c.bf16 %v1240_v55, %v1239_v54  ;;  %v1238_v0 = vmax.f32 %v1191_v57, 0.0  ;;  %v1140_v1 = vmul.f32 %v12963_v36, %v955_v59  ;;  %v1196_v6 = vadd.f32 %v12969_v38, %v1142_v58 }
 0x166   : > { %v11904_v3 = vpop.f32.mrf.mxu0 }
 0x167   : > { %11529 = vst [vmem:[#allocation2 + $0x8] sm:$0xff] %v10663_v61   ;;  %v10658_v4 = vpack.c.bf16 %v1238_v0, %v1237_v60  ;;  %v1143_v7 = vmul.f32 %v11904_v3, %v12963_v36  ;;  %v1194_v5 = vadd.f32 %v12969_v38, %v1140_v1  ;;  %v1243_v11 = vmax.f32 %v1196_v6, 0.0 }
 0x168   : > { %v958_v8 = vpop.f32.mrf.mxu0 }
 0x169   : > { %10659 = vst [vmem:[#allocation2] sm:$0xff] %v10658_v4   ;;  %v1197_v12 = vadd.f32 %v12969_v38, %v1143_v7  ;;  %v1141_v9 = vmul.f32 %v12963_v36, %v958_v8  ;;  %v1241_v15 = vmax.f32 %v1194_v5, 0.0 }
 0x16a   : > { %v11907_v14 = vpop.f32.mrf.mxu0 }
 0x16b   : > { %v1244_v23 = vmax.f32 %v1197_v12, 0.0  ;;  %v1195_v13 = vadd.f32 %v12969_v38, %v1141_v9  ;;  %v1146_v28 = vmul.f32 %v11907_v14, %v12963_v36 }
 0x16c   : > { %v971_v29 = vpop.f32.mrf.mxu0 }
 0x16d   : > { %v10673_v17 = vpack.c.bf16 %v1244_v23, %v1243_v11  ;;  %v1242_v37 = vmax.f32 %v1195_v13, 0.0  ;;  %v1200_v18 = vadd.f32 %v12969_v38, %v1146_v28  ;;  %v1144_v46 = vmul.f32 %v12963_v36, %v971_v29 }
 0x16e   : > { %v11908_v20 = vpop.f32.mrf.mxu0  ;;  %v12989_v49 = vld [vmem:[#allocation2 + $0xc] sm:$0xf]  ;;  %v12991_v21 = vld [vmem:[#allocation2 + $0x8] sm:$0xf] }
 0x16f   : > { %11531 = vst [vmem:[#allocation2 + $0x18] sm:$0xff] %v10673_v17   ;;  %v10668_v53 = vpack.c.bf16 %v1242_v37, %v1241_v15  ;;  %v1198_v22 = vadd.f32 %v12969_v38, %v1144_v46  ;;  %v1147_v62 = vmul.f32 %v11908_v20, %v12963_v36  ;;  %1620 = vrot.lane.b32.xlu1 %v12989_v49, %s12594_s12  ;;  %v1247_v63 = vmax.f32 %v1200_v18, 0.0 }
 0x170   : > { %1618 = vrot.lane.b32.xlu0 %v12991_v21, %s12594_s12  ;;  %v974_v24 = vpop.f32.mrf.mxu0  ;;  %v13001_v16 = vld [vmem:[#allocation2 + $0x4] sm:$0xf]  ;;  %v13003_v27 = vld [vmem:[#allocation2] sm:$0xf] }
 0x171   : > { %11530 = vst [vmem:[#allocation2 + $0x10] sm:$0xff] %v10668_v53   ;;  %v1201_v25 = vadd.f32 %v12969_v38, %v1147_v62  ;;  %v1145_v10 = vmul.f32 %v12963_v36, %v974_v24  ;;  %v1245_v19 = vmax.f32 %v1198_v22, 0.0 }
 0x172   : > { %v11911_v26 = vpop.f32.mrf.mxu0 }
 0x173   : > { %v1248_v31 = vmax.f32 %v1201_v25, 0.0  ;;  %v1199_v30 = vadd.f32 %v12969_v38, %v1145_v10  ;;  %v1150_v32 = vmul.f32 %v11911_v26, %v12963_v36  ;;  %1616 = vrot.lane.b32.xlu1 %v13001_v16, %s12594_s12 }
 0x174   : > { %1614 = vrot.lane.b32.xlu0 %v13003_v27, %s12594_s12  ;;  %v987_v34 = vpop.f32.mrf.mxu0 }
 0x175   : > { %v10683_v33 = vpack.c.bf16 %v1248_v31, %v1247_v63  ;;  %v1246_v39 = vmax.f32 %v1199_v30, 0.0  ;;  %v1204_v40 = vadd.f32 %v12969_v38, %v1150_v32  ;;  %v1148_v35 = vmul.f32 %v12963_v36, %v987_v34 }
 0x176   : > { %v11912_v44 = vpop.f32.mrf.mxu0  ;;  %v13013_v56 = vld [vmem:[#allocation2 + $0x1c] sm:$0xf]  ;;  %v13015_v2 = vld [vmem:[#allocation2 + $0x18] sm:$0xf] }
 0x177   : > { %11533 = vst [vmem:[#allocation2 + $0x28] sm:$0xff] %v10683_v33   ;;  %v10678_v41 = vpack.c.bf16 %v1246_v39, %v1245_v19  ;;  %v1202_v42 = vadd.f32 %v12969_v38, %v1148_v35  ;;  %v1151_v43 = vmul.f32 %v11912_v44, %v12963_v36  ;;  %1628 = vrot.lane.b32.xlu1 %v13013_v56, %s12594_s12  ;;  %v1251_v47 = vmax.f32 %v1204_v40, 0.0 }
 0x178   : > { %1626 = vrot.lane.b32.xlu0 %v13015_v2, %s12594_s12  ;;  %v990_v45 = vpop.f32.mrf.mxu0  ;;  %v13025_v52 = vld [vmem:[#allocation2 + $0x14] sm:$0xf]  ;;  %v13027_v54 = vld [vmem:[#allocation2 + $0x10] sm:$0xf] }
 0x179   : > { %11532 = vst [vmem:[#allocation2 + $0x20] sm:$0xff] %v10678_v41   ;;  %v1205_v48 = vadd.f32 %v12969_v38, %v1151_v43  ;;  %v1149_v50 = vmul.f32 %v12963_v36, %v990_v45  ;;  %v1249_v55 = vmax.f32 %v1202_v42, 0.0 }
 0x17a   : > { %v11915_v51 = vpop.f32.mrf.mxu0 }
 0x17b   : > { %v1252_v57 = vmax.f32 %v1205_v48, 0.0  ;;  %v1203_v58 = vadd.f32 %v12969_v38, %v1149_v50  ;;  %v1154_v59 = vmul.f32 %v11915_v51, %v12963_v36  ;;  %1624 = vrot.lane.b32.xlu1 %v13025_v52, %s12594_s12 }
 0x17c   : > { %1622 = vrot.lane.b32.xlu0 %v13027_v54, %s12594_s12  ;;  %v1003_v60 = vpop.f32.mrf.mxu0 }
 0x17d   : > { %v10693_v61 = vpack.c.bf16 %v1252_v57, %v1251_v47  ;;  %v1250_v0 = vmax.f32 %v1203_v58, 0.0  ;;  %v1208_v1 = vadd.f32 %v12969_v38, %v1154_v59  ;;  %v1152_v3 = vmul.f32 %v12963_v36, %v1003_v60 }
 0x17e   : > { %v11916_v4 = vpop.f32.mrf.mxu0  ;;  %v13037_v6 = vld [vmem:[#allocation2 + $0x2c] sm:$0xf]  ;;  %v13039_v7 = vld [vmem:[#allocation2 + $0x28] sm:$0xf] }
 0x17f   : > { %11535 = vst [vmem:[#allocation2 + $0x38] sm:$0xff] %v10693_v61   ;;  %v10688_v5 = vpack.c.bf16 %v1250_v0, %v1249_v55  ;;  %v1206_v8 = vadd.f32 %v12969_v38, %v1152_v3  ;;  %v1155_v12 = vmul.f32 %v11916_v4, %v12963_v36  ;;  %1636 = vrot.lane.b32.xlu1 %v13037_v6, %s12594_s12  ;;  %v1255_v23 = vmax.f32 %v1208_v1, 0.0 }
 0x180   : > { %1634 = vrot.lane.b32.xlu0 %v13039_v7, %s12594_s12  ;;  %v1006_v9 = vpop.f32.mrf.mxu0  ;;  %v13047_v14 = vld [vmem:[#allocation2 + $0x24] sm:$0xf]  ;;  %v13049_v11 = vld [vmem:[#allocation2 + $0x20] sm:$0xf] }
 0x181   : > { %11534 = vst [vmem:[#allocation2 + $0x30] sm:$0xff] %v10688_v5   ;;  %v1209_v13 = vadd.f32 %v12969_v38, %v1155_v12  ;;  %v1153_v28 = vmul.f32 %v12963_v36, %v1006_v9  ;;  %v1253_v29 = vmax.f32 %v1206_v8, 0.0 }
 0x182   : > { %v11919_v15 = vpop.f32.mrf.mxu0 }
 0x183   : > { %v1256_v17 = vmax.f32 %v1209_v13, 0.0  ;;  %v1207_v37 = vadd.f32 %v12969_v38, %v1153_v28  ;;  %v1158_v18 = vmul.f32 %v11919_v15, %v12963_v36  ;;  %1632 = vrot.lane.b32.xlu1 %v13047_v14, %s12594_s12 }
 0x184   : > { %1630 = vrot.lane.b32.xlu0 %v13049_v11, %s12594_s12  ;;  %v1019_v46 = vpop.f32.mrf.mxu0 }
 0x185   : > { %v10703_v20 = vpack.c.bf16 %v1256_v17, %v1255_v23  ;;  %v1254_v53 = vmax.f32 %v1207_v37, 0.0  ;;  %v1212_v22 = vadd.f32 %v12969_v38, %v1158_v18  ;;  %v1156_v62 = vmul.f32 %v12963_v36, %v1019_v46 }
 0x186   : > { %v11920_v24 = vpop.f32.mrf.mxu0  ;;  %v13061_v63 = vld [vmem:[#allocation2 + $0x3c] sm:$0xf]  ;;  %v13063_v25 = vld [vmem:[#allocation2 + $0x38] sm:$0xf] }
 0x187   : > { %11537 = vst [vmem:[#allocation2 + $0x48] sm:$0xff] %v10703_v20   ;;  %v10698_v10 = vpack.c.bf16 %v1254_v53, %v1253_v29  ;;  %v1210_v26 = vadd.f32 %v12969_v38, %v1156_v62  ;;  %v1159_v19 = vmul.f32 %v11920_v24, %v12963_v36  ;;  %1644 = vrot.lane.b32.xlu1 %v13061_v63, %s12594_s12  ;;  %v1259_v34 = vmax.f32 %v1212_v22, 0.0 }
 0x188   : > { %1642 = vrot.lane.b32.xlu0 %v13063_v25, %s12594_s12  ;;  %v1022_v31 = vpop.f32.mrf.mxu0  ;;  %v13071_v30 = vld [vmem:[#allocation2 + $0x34] sm:$0xf]  ;;  %v13073_v32 = vld [vmem:[#allocation2 + $0x30] sm:$0xf] }
 0x189   : > { %11536 = vst [vmem:[#allocation2 + $0x40] sm:$0xff] %v10698_v10   ;;  %v1213_v33 = vadd.f32 %v12969_v38, %v1159_v19  ;;  %v1157_v39 = vmul.f32 %v12963_v36, %v1022_v31  ;;  %v1257_v35 = vmax.f32 %v1210_v26, 0.0 }
 0x18a   : > { %v11923_v40 = vpop.f32.mrf.mxu0 }
 0x18b   : > { %v1260_v44 = vmax.f32 %v1213_v33, 0.0  ;;  %v1211_v41 = vadd.f32 %v12969_v38, %v1157_v39  ;;  %v1162_v42 = vmul.f32 %v11923_v40, %v12963_v36  ;;  %1640 = vrot.lane.b32.xlu1 %v13071_v30, %s12594_s12 }
 0x18c   : > { %1638 = vrot.lane.b32.xlu0 %v13073_v32, %s12594_s12  ;;  %v1035_v43 = vpop.f32.mrf.mxu0 }
 0x18d   : > { %v10713_v45 = vpack.c.bf16 %v1260_v44, %v1259_v34  ;;  %v1258_v47 = vmax.f32 %v1211_v41, 0.0  ;;  %v1216_v48 = vadd.f32 %v12969_v38, %v1162_v42  ;;  %v1160_v50 = vmul.f32 %v12963_v36, %v1035_v43 }
 0x18e   : > { %v11924_v51 = vpop.f32.mrf.mxu0  ;;  %v13085_v55 = vld [vmem:[#allocation2 + $0x4c] sm:$0xf]  ;;  %v13087_v57 = vld [vmem:[#allocation2 + $0x48] sm:$0xf] }
 0x18f   : > { %11539 = vst [vmem:[#allocation2 + $0x58] sm:$0xff] %v10713_v45   ;;  %v10708_v58 = vpack.c.bf16 %v1258_v47, %v1257_v35  ;;  %v1214_v59 = vadd.f32 %v12969_v38, %v1160_v50  ;;  %v1163_v60 = vmul.f32 %v11924_v51, %v12963_v36  ;;  %1652 = vrot.lane.b32.xlu1 %v13085_v55, %s12594_s12  ;;  %v1263_v3 = vmax.f32 %v1216_v48, 0.0 }
 0x190   : > { %1650 = vrot.lane.b32.xlu0 %v13087_v57, %s12594_s12  ;;  %v1038_v61 = vpop.f32.mrf.mxu0  ;;  %v13095_v0 = vld [vmem:[#allocation2 + $0x44] sm:$0xf]  ;;  %v13097_v1 = vld [vmem:[#allocation2 + $0x40] sm:$0xf] }
 0x191   : > { %11538 = vst [vmem:[#allocation2 + $0x50] sm:$0xff] %v10708_v58   ;;  %v1217_v4 = vadd.f32 %v12969_v38, %v1163_v60  ;;  %v1161_v5 = vmul.f32 %v12963_v36, %v1038_v61  ;;  %v1261_v12 = vmax.f32 %v1214_v59, 0.0 }
 0x192   : > { %v11927_v8 = vpop.f32.mrf.mxu0 }
 0x193   : > { %v1264_v9 = vmax.f32 %v1217_v4, 0.0  ;;  %v1215_v23 = vadd.f32 %v12969_v38, %v1161_v5  ;;  %v1166_v13 = vmul.f32 %v11927_v8, %v12963_v36  ;;  %1648 = vrot.lane.b32.xlu1 %v13095_v0, %s12594_s12 }
 0x194   : > { %1646 = vrot.lane.b32.xlu0 %v13097_v1, %s12594_s12  ;;  %v1051_v28 = vpop.f32.mrf.mxu0 }
 0x195   : > { %v10723_v15 = vpack.c.bf16 %v1264_v9, %v1263_v3  ;;  %v1262_v29 = vmax.f32 %v1215_v23, 0.0  ;;  %v1220_v17 = vadd.f32 %v12969_v38, %v1166_v13  ;;  %v1164_v37 = vmul.f32 %v12963_v36, %v1051_v28 }
 0x196   : > { %v11928_v18 = vpop.f32.mrf.mxu0  ;;  %v13109_v46 = vld [vmem:[#allocation2 + $0x5c] sm:$0xf]  ;;  %v13111_v20 = vld [vmem:[#allocation2 + $0x58] sm:$0xf] }
 0x197   : > { %11541 = vst [vmem:[#allocation2 + $0x68] sm:$0xff] %v10723_v15   ;;  %v10718_v53 = vpack.c.bf16 %v1262_v29, %v1261_v12  ;;  %v1218_v22 = vadd.f32 %v12969_v38, %v1164_v37  ;;  %v1167_v62 = vmul.f32 %v11928_v18, %v12963_v36  ;;  %1660 = vrot.lane.b32.xlu1 %v13109_v46, %s12594_s12  ;;  %v1267_v19 = vmax.f32 %v1220_v17, 0.0 }
 0x198   : > { %1658 = vrot.lane.b32.xlu0 %v13111_v20, %s12594_s12  ;;  %v1054_v24 = vpop.f32.mrf.mxu0  ;;  %v13119_v10 = vld [vmem:[#allocation2 + $0x54] sm:$0xf]  ;;  %v13121_v26 = vld [vmem:[#allocation2 + $0x50] sm:$0xf] }
 0x199   : > { %11540 = vst [vmem:[#allocation2 + $0x60] sm:$0xff] %v10718_v53   ;;  %v1221_v31 = vadd.f32 %v12969_v38, %v1167_v62  ;;  %v1165_v34 = vmul.f32 %v12963_v36, %v1054_v24  ;;  %v1265_v39 = vmax.f32 %v1218_v22, 0.0 }
 0x19a   : > { %v11931_v33 = vpop.f32.mrf.mxu0 }
 0x19b   : > { %v1268_v40 = vmax.f32 %v1221_v31, 0.0  ;;  %v1219_v35 = vadd.f32 %v12969_v38, %v1165_v34  ;;  %v1170_v44 = vmul.f32 %v11931_v33, %v12963_v36  ;;  %1656 = vrot.lane.b32.xlu1 %v13119_v10, %s12594_s12 }
 0x19c   : > { %1654 = vrot.lane.b32.xlu0 %v13121_v26, %s12594_s12  ;;  %v1067_v41 = vpop.f32.mrf.mxu0 }
 0x19d   : > { %v10733_v42 = vpack.c.bf16 %v1268_v40, %v1267_v19  ;;  %v1266_v43 = vmax.f32 %v1219_v35, 0.0  ;;  %v1224_v45 = vadd.f32 %v12969_v38, %v1170_v44  ;;  %v1168_v47 = vmul.f32 %v12963_v36, %v1067_v41 }
 0x19e   : > { %v11932_v48 = vpop.f32.mrf.mxu0  ;;  %v13133_v50 = vld [vmem:[#allocation2 + $0x6c] sm:$0xf]  ;;  %v13135_v51 = vld [vmem:[#allocation2 + $0x68] sm:$0xf] }
 0x19f   : > { %11543 = vst [vmem:[#allocation2 + $0x78] sm:$0xff] %v10733_v42   ;;  %v10728_v58 = vpack.c.bf16 %v1266_v43, %v1265_v39  ;;  %v1222_v59 = vadd.f32 %v12969_v38, %v1168_v47  ;;  %v1171_v60 = vmul.f32 %v11932_v48, %v12963_v36  ;;  %1668 = vrot.lane.b32.xlu1 %v13133_v50, %s12594_s12  ;;  %v1271_v5 = vmax.f32 %v1224_v45, 0.0 }
 0x1a0   : > { %1666 = vrot.lane.b32.xlu0 %v13135_v51, %s12594_s12  ;;  %v1070_v61 = vpop.f32.mrf.mxu0  ;;  %v13143_v3 = vld [vmem:[#allocation2 + $0x64] sm:$0xf]  ;;  %v13145_v4 = vld [vmem:[#allocation2 + $0x60] sm:$0xf] }
 0x1a1   : > { %11542 = vst [vmem:[#allocation2 + $0x70] sm:$0xff] %v10728_v58   ;;  %v1225_v8 = vadd.f32 %v12969_v38, %v1171_v60  ;;  %v1169_v12 = vmul.f32 %v12963_v36, %v1070_v61  ;;  %v1269_v23 = vmax.f32 %v1222_v59, 0.0 }
 0x1a2   : > { %v11935_v9 = vpop.f32.mrf.mxu0 }
 0x1a3   : > { %v1272_v13 = vmax.f32 %v1225_v8, 0.0  ;;  %v1223_v28 = vadd.f32 %v12969_v38, %v1169_v12  ;;  %v1174_v15 = vmul.f32 %v11935_v9, %v12963_v36  ;;  %1664 = vrot.lane.b32.xlu1 %v13143_v3, %s12594_s12 }
 0x1a4   : > { %1662 = vrot.lane.b32.xlu0 %v13145_v4, %s12594_s12  ;;  %v1083_v29 = vpop.f32.mrf.mxu0 }
 0x1a5   : > { %v10743_v17 = vpack.c.bf16 %v1272_v13, %v1271_v5  ;;  %v1270_v37 = vmax.f32 %v1223_v28, 0.0  ;;  %v1228_v18 = vadd.f32 %v12969_v38, %v1174_v15  ;;  %v1172_v53 = vmul.f32 %v12963_v36, %v1083_v29 }
 0x1a6   : > { %v11936_v22 = vpop.f32.mrf.mxu0  ;;  %v13157_v62 = vld [vmem:[#allocation2 + $0x7c] sm:$0xf]  ;;  %v13159_v24 = vld [vmem:[#allocation2 + $0x78] sm:$0xf] }
 0x1a7   : > { %11545 = vst [vmem:[#allocation2 + $0x88] sm:$0xff] %v10743_v17   ;;  %v10738_v19 = vpack.c.bf16 %v1270_v37, %v1269_v23  ;;  %v1226_v31 = vadd.f32 %v12969_v38, %v1172_v53  ;;  %v1175_v34 = vmul.f32 %v11936_v22, %v12963_v36  ;;  %1676 = vrot.lane.b32.xlu1 %v13157_v62, %s12594_s12  ;;  %v1275_v35 = vmax.f32 %v1228_v18, 0.0 }
 0x1a8   : > { %1674 = vrot.lane.b32.xlu0 %v13159_v24, %s12594_s12  ;;  %v1086_v33 = vpop.f32.mrf.mxu0  ;;  %v13167_v39 = vld [vmem:[#allocation2 + $0x74] sm:$0xf]  ;;  %v13169_v40 = vld [vmem:[#allocation2 + $0x70] sm:$0xf] }
 0x1a9   : > { %11544 = vst [vmem:[#allocation2 + $0x80] sm:$0xff] %v10738_v19   ;;  %v1229_v44 = vadd.f32 %v12969_v38, %v1175_v34  ;;  %v1173_v41 = vmul.f32 %v12963_v36, %v1086_v33  ;;  %v1273_v43 = vmax.f32 %v1226_v31, 0.0 }
 0x1aa   : > { %v11939_v42 = vpop.f32.mrf.mxu0 }
 0x1ab   : > { %v1276_v45 = vmax.f32 %v1229_v44, 0.0  ;;  %v1227_v47 = vadd.f32 %v12969_v38, %v1173_v41  ;;  %v1178_v48 = vmul.f32 %v11939_v42, %v12963_v36  ;;  %1672 = vrot.lane.b32.xlu1 %v13167_v39, %s12594_s12 }
 0x1ac   : > { %1670 = vrot.lane.b32.xlu0 %v13169_v40, %s12594_s12  ;;  %v1099_v58 = vpop.f32.mrf.mxu0 }
 0x1ad   : > { %v10753_v59 = vpack.c.bf16 %v1276_v45, %v1275_v35  ;;  %v1274_v60 = vmax.f32 %v1227_v47, 0.0  ;;  %v1232_v61 = vadd.f32 %v12969_v38, %v1178_v48  ;;  %v1176_v5 = vmul.f32 %v12963_v36, %v1099_v58 }
 0x1ae   : > { %v11940_v8 = vpop.f32.mrf.mxu0  ;;  %v13181_v12 = vld [vmem:[#allocation2 + $0x8c] sm:$0xf]  ;;  %v13183_v9 = vld [vmem:[#allocation2 + $0x88] sm:$0xf] }
 0x1af   : > { %11547 = vst [vmem:[#allocation2 + $0x98] sm:$0xff] %v10753_v59   ;;  %v10748_v23 = vpack.c.bf16 %v1274_v60, %v1273_v43  ;;  %v1230_v13 = vadd.f32 %v12969_v38, %v1176_v5  ;;  %v1179_v28 = vmul.f32 %v11940_v8, %v12963_v36  ;;  %1684 = vrot.lane.b32.xlu1 %v13181_v12, %s12594_s12  ;;  %v1279_v37 = vmax.f32 %v1232_v61, 0.0 }
 0x1b0   : > { %1682 = vrot.lane.b32.xlu0 %v13183_v9, %s12594_s12  ;;  %v1102_v15 = vpop.f32.mrf.mxu0  ;;  %v13191_v29 = vld [vmem:[#allocation2 + $0x84] sm:$0xf]  ;;  %v13193_v17 = vld [vmem:[#allocation2 + $0x80] sm:$0xf] }
 0x1b1   : > { %11546 = vst [vmem:[#allocation2 + $0x90] sm:$0xff] %v10748_v23   ;;  %v1233_v18 = vadd.f32 %v12969_v38, %v1179_v28  ;;  %v1177_v53 = vmul.f32 %v12963_v36, %v1102_v15  ;;  %v1277_v19 = vmax.f32 %v1230_v13, 0.0 }
 0x1b2   : > { %v11943_v22 = vpop.f32.mrf.mxu0 }
 0x1b3   : > { %v1280_v31 = vmax.f32 %v1233_v18, 0.0  ;;  %v1231_v34 = vadd.f32 %v12969_v38, %v1177_v53  ;;  %1680 = vrot.lane.b32.xlu1 %v13191_v29, %s12594_s12  ;;  %v1182_v33 = vmul.f32 %v11943_v22, %v12963_v36 }
 0x1b4   : > { %1678 = vrot.lane.b32.xlu0 %v13193_v17, %s12594_s12  ;;  %v1115_v35 = vpop.f32.mrf.mxu0 }
 0x1b5   : > { %v10763_v44 = vpack.c.bf16 %v1280_v31, %v1279_v37  ;;  %v1278_v41 = vmax.f32 %v1231_v34, 0.0  ;;  %v1236_v42 = vadd.f32 %v12969_v38, %v1182_v33  ;;  %v1180_v43 = vmul.f32 %v12963_v36, %v1115_v35  ;;  %v12370_v31 = vld [vmem:[%s16490_s4 + $0x30] sm:$0xff]   ;;  %v12371_v34 = vld [vmem:[%s16490_s4 + $0x28] sm:$0xff]   ;;  %v12372_v33 = vld [vmem:[%s16490_s4 + $0x20] sm:$0xff]  }
 0x1b6   : > { %v13205_v45 = vld [vmem:[#allocation2 + $0x9c] sm:$0xf]  ;;  %v13207_v47 = vld [vmem:[#allocation2 + $0x98] sm:$0xf]  ;;  %v11944_v48 = vpop.f32.mrf.mxu0 }
 0x1b7   : > { %11549 = vst [vmem:[#allocation2 + $0xa8] sm:$0xff] %v10763_v44   ;;  %v10758_v58 = vpack.c.bf16 %v1278_v41, %v1277_v19  ;;  %1692 = vrot.lane.b32.xlu1 %v13205_v45, %s12594_s12  ;;  %v1283_v59 = vmax.f32 %v1236_v42, 0.0  ;;  %v1234_v60 = vadd.f32 %v12969_v38, %v1180_v43  ;;  %v12373_v35 = vld [vmem:[%s16490_s4 + $0x18] sm:$0xff]   ;;  %v12374_v44 = vld [vmem:[%s16490_s4 + $0x10] sm:$0xff]   ;;  %v12375_v41 = vld [vmem:[%s16490_s4 + $0x8] sm:$0xff]  }
 0x1b8   : > { %1690 = vrot.lane.b32.xlu0 %v13207_v47, %s12594_s12  ;;  %v13214_v61 = vld [vmem:[#allocation2 + $0x94] sm:$0xf]  ;;  %v13216_v5 = vld [vmem:[#allocation2 + $0x90] sm:$0xf]  ;;  %v1118_v8 = vpop.f32.mrf.mxu0 }
 0x1b9   : > { %11548 = vst [vmem:[#allocation2 + $0xa0] sm:$0xff] %v10758_v58   ;;  %v10418_v23 = vpack.c.bf16 %v1283_v59, %v1283_v59  ;;  %v1181_v13 = vmul.f32 %v12963_v36, %v1118_v8  ;;  %v1281_v28 = vmax.f32 %v1234_v60, 0.0 }
 0x1bb   : > { %1688 = vrot.lane.b32.xlu1 %v13214_v61, %s12594_s12  ;;  %1519 = vst [vmem:[#allocation2 + $0xb8] sm:$0xf] %v10418_v23  ;;  %v1235_v15 = vadd.f32 %v12969_v38, %v1181_v13  ;;  %v12369_v38 = vld [vmem:[%s16490_s4 + $0x38] sm:$0xff]  }
 0x1bc   : > { %1686 = vrot.lane.b32.xlu0 %v13216_v5, %s12594_s12  ;;  %11945 = vmatprep.subr.bf16.mxu1 %v12369_v38 }
 0x1bd   : > { %v1282_v37 = vmax.f32 %v1235_v15, 0.0  ;;  %11946 = vmatpush3.bf16.msra.mxu1 %v12369_v38 }
 0x1be   : > { %v13224_v18 = vld [vmem:[#allocation2 + $0xac] sm:$0xf]  ;;  %v13226_v53 = vld [vmem:[#allocation2 + $0xa8] sm:$0xf]  ;;  %11947 = vmatprep.subr.bf16.mxu1 %v12370_v31 }
 0x1bf   : > { %1700 = vrot.lane.b32.xlu1 %v13224_v18, %s12594_s12  ;;  %v10768_v36 = vpack.c.bf16 %v1282_v37, %v1281_v28 }
 0x1c0   : > { %1698 = vrot.lane.b32.xlu0 %v13226_v53, %s12594_s12  ;;  %v13232_v22 = vld [vmem:[#allocation2 + $0xa4] sm:$0xf]  ;;  %v13234_v19 = vld [vmem:[#allocation2 + $0xa0] sm:$0xf] }
 0x1c1   : > { %11550 = vst [vmem:[#allocation2 + $0xb0] sm:$0xff] %v10768_v36   ;;  %11948 = vmatpush3.bf16.msra.mxu1 %v12370_v31 }
 0x1c2   : > { %11949 = vmatprep.subr.bf16.mxu1 %v12371_v34 }
 0x1c3   : > { %1696 = vrot.lane.b32.xlu1 %v13232_v22, %s12594_s12 }
 0x1c4   : > { %1694 = vrot.lane.b32.xlu0 %v13234_v19, %s12594_s12 }
 0x1c5   : > { %11950 = vmatpush3.bf16.msra.mxu1 %v12371_v34 }
 0x1c6   : > { %11951 = vmatprep.subr.bf16.mxu1 %v12372_v33 }
 0x1c9   : > { %11952 = vmatpush3.bf16.msra.mxu1 %v12372_v33 }
 0x1ca   : > { %11953 = vmatprep.subr.bf16.mxu1 %v12373_v35 }
 0x1cd   : > { %11954 = vmatpush3.bf16.msra.mxu1 %v12373_v35 }
 0x1ce   : > { %11955 = vmatprep.subr.bf16.mxu1 %v12374_v44 }
 0x1d1   : > { %11956 = vmatpush3.bf16.msra.mxu1 %v12374_v44 }
 0x1d2   : > { %11957 = vmatprep.subr.bf16.mxu1 %v12375_v41 }
 0x1d5   : > { %11958 = vmatpush3.bf16.msra.mxu1 %v12375_v41 }
 0x1e1   : > { %v1621_v42 = vpop.permute.xlu1 %1620 }
 0x1e2   : > { %v1619_v43 = vpop.permute.xlu0 %1618  ;;  %v1758_v48 = vmax.bf16 %v1621_v42, %v12989_v49 }
 0x1e3   : > { %v1757_v58 = vmax.bf16 %v1619_v43, %v12991_v21 }
 0x1e4   : > { %1806 = vst.msk [vmem:[#allocation3 + $0xc] sm:$0xf] %vm1802_vm3, %v1758_v48 }
 0x1e5   : > { %1805 = vst.msk [vmem:[#allocation3 + $0x8] sm:$0xf] %vm1802_vm3, %v1757_v58  ;;  %v1617_v59 = vpop.permute.xlu1 %1616 }
 0x1e6   : > { %v1615_v60 = vpop.permute.xlu0 %1614  ;;  %v1756_v8 = vmax.bf16 %v1617_v59, %v13001_v16  ;;  %v12376_v16 = vld [vmem:[%s16490_s4] sm:$0xff]  }
 0x1e7   : > { %v1755_v23 = vmax.bf16 %v1615_v60, %v13003_v27  ;;  %11959 = vmatprep.subr.bf16.mxu1 %v12376_v16 }
 0x1e8   : > { %1804 = vst.msk [vmem:[#allocation3 + $0x4] sm:$0xf] %vm1802_vm3, %v1756_v8  ;;  %11960 = vmatpush3.bf16.msra.mxu1 %v12376_v16 }
 0x1e9   : > { %1803 = vst.msk [vmem:[#allocation3] sm:$0xf] %vm1802_vm3, %v1755_v23  ;;  %v1629_v13 = vpop.permute.xlu1 %1628 }
 0x1ea   : > { %v1627_v28 = vpop.permute.xlu0 %1626  ;;  %v1762_v49 = vmax.bf16 %v1629_v13, %v13013_v56  ;;  %v13301_v13 = vld [vmem:[#allocation2 + $0xb0] sm:$0xf] }
 0x1eb   : > { %v1761_v21 = vmax.bf16 %v1627_v28, %v13015_v2 }
 0x1ec   : > { %1810 = vst.msk [vmem:[#allocation3 + $0x1c] sm:$0xf] %vm1802_vm3, %v1762_v49  ;;  %v13276_v37 = vld [vmem:[#allocation3 + $0x8] sm:$0xff]  }
 0x1ed   : > { %1809 = vst.msk [vmem:[#allocation3 + $0x18] sm:$0xf] %vm1802_vm3, %v1761_v21  ;;  %v1625_v15 = vpop.permute.xlu1 %1624  ;;  %v2023_v33 = vshll.u32 %v13276_v37, 16  ;;  %v2027_v28 = vshrl.u32 %v13276_v37, 16 }
 0x1ee   : > { %v1623_v27 = vpop.permute.xlu0 %1622  ;;  %v1760_v36 = vmax.bf16 %v1625_v15, %v13025_v52 }
 0x1ef   : > { %v1759_v38 = vmax.bf16 %v1623_v27, %v13027_v54  ;;  %v2025_v48 = vrot.slane %v2023_v33, 1 }
 0x1f0   : > { %v13280_v56 = vld [vmem:[#allocation3] sm:$0xff]   ;;  %1808 = vst.msk [vmem:[#allocation3 + $0x14] sm:$0xf] %vm1802_vm3, %v1760_v36 }
 0x1f1   : > { %1807 = vst.msk [vmem:[#allocation3 + $0x10] sm:$0xf] %vm1802_vm3, %v1759_v38  ;;  %v1637_v2 = vpop.permute.xlu1 %1636  ;;  %v2018_v34 = vshll.u32 %v13280_v56, 16  ;;  %v2016_v54 = vshrl.u32 %v13280_v56, 16  ;;  %v2029_v16 = vor.u32 %v2027_v28, %v2025_v48 }
 0x1f2   : > { %v1635_v31 = vpop.permute.xlu0 %1634  ;;  %v1766_v35 = vmax.bf16 %v1637_v2, %v13037_v6 }
 0x1f3   : > { %v1765_v52 = vmax.bf16 %v1635_v31, %v13039_v7  ;;  %v2020_v44 = vrot.slane %v2018_v34, 1 }
 0x1f4   : > { %1814 = vst.msk [vmem:[#allocation3 + $0x2c] sm:$0xf] %vm1802_vm3, %v1766_v35  ;;  %v13291_v58 = vld [vmem:[#allocation3 + $0x18] sm:$0xff]  }
 0x1f5   : > { %1813 = vst.msk [vmem:[#allocation3 + $0x28] sm:$0xf] %vm1802_vm3, %v1765_v52  ;;  %v1633_v41 = vpop.permute.xlu1 %1632  ;;  %v2021_v43 = vor.u32 %v2020_v44, %v2016_v54 }
 0x1f6   : > { %v1631_v42 = vpop.permute.xlu0 %1630  ;;  %v1764_v59 = vmax.bf16 %v1633_v41, %v13047_v14  ;;  %v13325_v41 = vld [vmem:[#allocation2 + $0xb4] sm:$0xf] }
 0x1f7   : > { %v1763_v60 = vmax.bf16 %v1631_v42, %v13049_v11  ;;  %v2026_v6 = vsel %vm534_vm0, %v2021_v43, %v2025_v48  ;;  %v2039_v11 = vshll.u32 %v13291_v58, 16  ;;  %v13333_v48 = vld [vmem:[#allocation2 + $0xb8] sm:$0xf] }
 0x1f8   : > { %v13296_v7 = vld [vmem:[#allocation3 + $0x10] sm:$0xff]   ;;  %1812 = vst.msk [vmem:[#allocation3 + $0x24] sm:$0xf] %vm1802_vm3, %v1764_v59  ;;  %2206 = vrot.lane.b32.xlu0 %v2026_v6, %s12594_s12 }
 0x1f9   : > { %1811 = vst.msk [vmem:[#allocation3 + $0x20] sm:$0xf] %vm1802_vm3, %v1763_v60  ;;  %v1645_v8 = vpop.permute.xlu1 %1644  ;;  %v2031_v14 = vshll.u32 %v13296_v7, 16  ;;  %v2035_v27 = vshrl.u32 %v13296_v7, 16  ;;  %v2041_v34 = vrot.slane %v2039_v11, 1 }
 0x1fa   : > { %v1643_v23 = vpop.permute.xlu0 %1642  ;;  %v1770_v49 = vmax.bf16 %v1645_v8, %v13061_v63 }
 0x1fb   : > { %v1769_v21 = vmax.bf16 %v1643_v23, %v13063_v25  ;;  %v2033_v15 = vrot.slane %v2031_v14, 1 }
 0x1fc   : > { %1818 = vst.msk [vmem:[#allocation3 + $0x3c] sm:$0xf] %vm1802_vm3, %v1770_v49  ;;  %1702 = vrot.lane.b32.xlu0 %v13301_v13, %s12594_s12  ;;  %v13317_v33 = vld [vmem:[#allocation3 + $0x28] sm:$0xff]  }
 0x1fd   : > { %1817 = vst.msk [vmem:[#allocation3 + $0x38] sm:$0xf] %vm1802_vm3, %v1769_v21  ;;  %v1641_v36 = vpop.permute.xlu1 %1640  ;;  %v2034_v2 = vsel %vm534_vm0, %v2029_v16, %v2033_v15  ;;  %v2037_v31 = vor.u32 %v2035_v27, %v2033_v15  ;;  %v2055_v59 = vshll.u32 %v13317_v33, 16 }
 0x1fe   : > { %v1639_v38 = vpop.permute.xlu0 %1638  ;;  %v1768_v63 = vmax.bf16 %v1641_v36, %v13071_v30  ;;  %2208 = vrot.lane.b32.xlu1 %v2034_v2, %s12594_s12  ;;  %v2043_v30 = vshrl.u32 %v13291_v58, 16 }
 0x1ff   : > { %v1767_v25 = vmax.bf16 %v1639_v38, %v13073_v32  ;;  %v2042_v35 = vsel %vm534_vm0, %v2037_v31, %v2041_v34  ;;  %v2057_v21 = vrot.slane %v2055_v59, 1  ;;  %v2059_v38 = vshrl.u32 %v13317_v33, 16 }
 0x200   : > { %v13320_v52 = vld [vmem:[#allocation3 + $0x20] sm:$0xff]   ;;  %1816 = vst.msk [vmem:[#allocation3 + $0x34] sm:$0xf] %vm1802_vm3, %v1768_v63  ;;  %2210 = vrot.lane.b32.xlu0 %v2042_v35, %s12594_s12  ;;  %v2045_v60 = vor.u32 %v2043_v30, %v2041_v34 }
 0x201   : > { %1815 = vst.msk [vmem:[#allocation3 + $0x30] sm:$0xf] %vm1802_vm3, %v1767_v25  ;;  %v1653_v54 = vpop.permute.xlu1 %1652  ;;  %v2047_v32 = vshll.u32 %v13320_v52, 16  ;;  %v2051_v8 = vshrl.u32 %v13320_v52, 16  ;;  %v2061_v34 = vor.u32 %v2059_v38, %v2057_v21 }
 0x202   : > { %v1651_v44 = vpop.permute.xlu0 %1650  ;;  %v1774_v42 = vmax.bf16 %v1653_v54, %v13085_v55  ;;  %1704 = vrot.lane.b32.xlu1 %v13325_v41, %s12594_s12 }
 0x203   : > { %v1773_v43 = vmax.bf16 %v1651_v44, %v13087_v57  ;;  %v2049_v6 = vrot.slane %v2047_v32, 1 }
 0x204   : > { %1822 = vst.msk [vmem:[#allocation3 + $0x4c] sm:$0xf] %vm1802_vm3, %v1774_v42  ;;  %1706 = vrot.lane.b32.xlu0 %v13333_v48, %s12594_s12  ;;  %v13342_v14 = vld [vmem:[#allocation3 + $0x38] sm:$0xff]  }
 0x205   : > { %1821 = vst.msk [vmem:[#allocation3 + $0x48] sm:$0xf] %vm1802_vm3, %v1773_v43  ;;  %v1649_v55 = vpop.permute.xlu1 %1648  ;;  %v2050_v23 = vsel %vm534_vm0, %v2045_v60, %v2049_v6  ;;  %v2053_v28 = vor.u32 %v2051_v8, %v2049_v6  ;;  %v2075_v8 = vshrl.u32 %v13342_v14, 16 }
 0x206   : > { %v1647_v57 = vpop.permute.xlu0 %1646  ;;  %v1772_v11 = vmax.bf16 %v1649_v55, %v13095_v0  ;;  %2212 = vrot.lane.b32.xlu1 %v2050_v23, %s12594_s12  ;;  %v2071_v0 = vshll.u32 %v13342_v14, 16 }
 0x207   : > { %v1771_v49 = vmax.bf16 %v1647_v57, %v13097_v1  ;;  %v2058_v36 = vsel %vm534_vm0, %v2053_v28, %v2057_v21 }
 0x208   : > { %v13347_v16 = vld [vmem:[#allocation3 + $0x30] sm:$0xff]   ;;  %1820 = vst.msk [vmem:[#allocation3 + $0x44] sm:$0xf] %vm1802_vm3, %v1772_v11  ;;  %v2073_v32 = vrot.slane %v2071_v0, 1 }
 0x209   : > { %1819 = vst.msk [vmem:[#allocation3 + $0x40] sm:$0xf] %vm1802_vm3, %v1771_v49  ;;  %v1661_v15 = vpop.permute.xlu1 %1660  ;;  %v2063_v2 = vshll.u32 %v13347_v16, 16  ;;  %v2067_v25 = vshrl.u32 %v13347_v16, 16 }
 0x20a   : > { %v1659_v27 = vpop.permute.xlu0 %1658  ;;  %v1778_v1 = vmax.bf16 %v1661_v15, %v13109_v46  ;;  %2214 = vrot.lane.b32.xlu1 %v2058_v36, %s12594_s12  ;;  %v2077_v23 = vor.u32 %v2075_v8, %v2073_v32 }
 0x20b   : > { %v1777_v31 = vmax.bf16 %v1659_v27, %v13111_v20  ;;  %v2065_v63 = vrot.slane %v2063_v2, 1 }
 0x20c   : > { %1826 = vst.msk [vmem:[#allocation3 + $0x5c] sm:$0xf] %vm1802_vm3, %v1778_v1  ;;  %v13362_v42 = vld [vmem:[#allocation3 + $0x48] sm:$0xff]  }
 0x20d   : > { %1825 = vst.msk [vmem:[#allocation3 + $0x58] sm:$0xf] %vm1802_vm3, %v1777_v31  ;;  %v1657_v35 = vpop.permute.xlu1 %1656  ;;  %v2066_v44 = vsel %vm534_vm0, %v2061_v34, %v2065_v63  ;;  %v2069_v30 = vor.u32 %v2067_v25, %v2065_v63  ;;  %v2091_v34 = vshrl.u32 %v13362_v42, 16 }
 0x20e   : > { %v1655_v54 = vpop.permute.xlu0 %1654  ;;  %v1776_v46 = vmax.bf16 %v1657_v35, %v13119_v10  ;;  %2216 = vrot.lane.b32.xlu0 %v2066_v44, %s12594_s12 }
 0x20f   : > { %v1775_v20 = vmax.bf16 %v1655_v54, %v13121_v26  ;;  %v2074_v43 = vsel %vm534_vm0, %v2069_v30, %v2073_v32  ;;  %v2087_v26 = vshll.u32 %v13362_v42, 16 }
 0x210   : > { %v13368_v59 = vld [vmem:[#allocation3 + $0x40] sm:$0xff]   ;;  %1824 = vst.msk [vmem:[#allocation3 + $0x54] sm:$0xf] %vm1802_vm3, %v1776_v46  ;;  %2218 = vrot.lane.b32.xlu1 %v2074_v43, %s12594_s12 }
 0x211   : > { %1823 = vst.msk [vmem:[#allocation3 + $0x50] sm:$0xf] %vm1802_vm3, %v1775_v20  ;;  %v1669_v60 = vpop.permute.xlu1 %1668  ;;  %v2079_v10 = vshll.u32 %v13368_v59, 16  ;;  %v2083_v11 = vshrl.u32 %v13368_v59, 16  ;;  %v2089_v36 = vrot.slane %v2087_v26, 1 }
 0x212   : > { %v1667_v6 = vpop.permute.xlu0 %1666  ;;  %v1782_v55 = vmax.bf16 %v1669_v60, %v13133_v50 }
 0x213   : > { %v1781_v57 = vmax.bf16 %v1667_v6, %v13135_v51  ;;  %v2081_v28 = vrot.slane %v2079_v10, 1  ;;  %v2093_v35 = vor.u32 %v2091_v34, %v2089_v36 }
 0x214   : > { %1830 = vst.msk [vmem:[#allocation3 + $0x6c] sm:$0xf] %vm1802_vm3, %v1782_v55  ;;  %v13382_v38 = vld [vmem:[#allocation3 + $0x58] sm:$0xff]  }
 0x215   : > { %1829 = vst.msk [vmem:[#allocation3 + $0x68] sm:$0xf] %vm1802_vm3, %v1781_v57  ;;  %v1665_v49 = vpop.permute.xlu1 %1664  ;;  %v2082_v15 = vsel %vm534_vm0, %v2077_v23, %v2081_v28  ;;  %v2085_v27 = vor.u32 %v2083_v11, %v2081_v28  ;;  %v2107_v55 = vshrl.u32 %v13382_v38, 16 }
 0x216   : > { %v1663_v21 = vpop.permute.xlu0 %1662  ;;  %v1780_v50 = vmax.bf16 %v1665_v49, %v13143_v3  ;;  %2220 = vrot.lane.b32.xlu0 %v2082_v15, %s12594_s12 }
 0x217   : > { %v1779_v51 = vmax.bf16 %v1663_v21, %v13145_v4  ;;  %v2090_v2 = vsel %vm534_vm0, %v2085_v27, %v2089_v36  ;;  %v2103_v4 = vshll.u32 %v13382_v38, 16 }
 0x218   : > { %v13388_v0 = vld [vmem:[#allocation3 + $0x50] sm:$0xff]   ;;  %1828 = vst.msk [vmem:[#allocation3 + $0x64] sm:$0xf] %vm1802_vm3, %v1780_v50  ;;  %2222 = vrot.lane.b32.xlu1 %v2090_v2, %s12594_s12 }
 0x219   : > { %1827 = vst.msk [vmem:[#allocation3 + $0x60] sm:$0xf] %vm1802_vm3, %v1779_v51  ;;  %v1677_v1 = vpop.permute.xlu1 %1676  ;;  %v2095_v3 = vshll.u32 %v13388_v0, 16  ;;  %v2099_v44 = vshrl.u32 %v13388_v0, 16  ;;  %v2105_v43 = vrot.slane %v2103_v4, 1 }
 0x21a   : > { %v1675_v31 = vpop.permute.xlu0 %1674  ;;  %v1786_v63 = vmax.bf16 %v1677_v1, %v13157_v62 }
 0x21b   : > { %v1785_v25 = vmax.bf16 %v1675_v31, %v13159_v24  ;;  %v2097_v54 = vrot.slane %v2095_v3, 1  ;;  %v2109_v28 = vor.u32 %v2107_v55, %v2105_v43 }
 0x21c   : > { %1834 = vst.msk [vmem:[#allocation3 + $0x7c] sm:$0xf] %vm1802_vm3, %v1786_v63  ;;  %v13402_v60 = vld [vmem:[#allocation3 + $0x68] sm:$0xff]  }
 0x21d   : > { %1833 = vst.msk [vmem:[#allocation3 + $0x78] sm:$0xf] %vm1802_vm3, %v1785_v25  ;;  %v1673_v30 = vpop.permute.xlu1 %1672  ;;  %v2098_v46 = vsel %vm534_vm0, %v2093_v35, %v2097_v54  ;;  %v2101_v20 = vor.u32 %v2099_v44, %v2097_v54  ;;  %v2123_v3 = vshrl.u32 %v13402_v60, 16  ;;  %v13441_v25 = vld [vmem:[%s16487_s1 + $0x18] sm:$0xff]  }
 0x21e   : > { %v1671_v32 = vpop.permute.xlu0 %1670  ;;  %v1784_v62 = vmax.bf16 %v1673_v30, %v13167_v39  ;;  %2224 = vrot.lane.b32.xlu0 %v2098_v46, %s12594_s12  ;;  %12073 = vmatprep.subr.bf16.mxu1 %v13441_v25 }
 0x21f   : > { %v1783_v24 = vmax.bf16 %v1671_v32, %v13169_v40  ;;  %v2106_v6 = vsel %vm534_vm0, %v2101_v20, %v2105_v43  ;;  %v2119_v40 = vshll.u32 %v13402_v60, 16 }
 0x220   : > { %v13408_v8 = vld [vmem:[#allocation3 + $0x60] sm:$0xff]   ;;  %1832 = vst.msk [vmem:[#allocation3 + $0x74] sm:$0xf] %vm1802_vm3, %v1784_v62  ;;  %2226 = vrot.lane.b32.xlu1 %v2106_v6, %s12594_s12 }
 0x221   : > { %1831 = vst.msk [vmem:[#allocation3 + $0x70] sm:$0xf] %vm1802_vm3, %v1783_v24  ;;  %v1685_v10 = vpop.permute.xlu1 %1684  ;;  %v2111_v39 = vshll.u32 %v13408_v8, 16  ;;  %v2115_v49 = vshrl.u32 %v13408_v8, 16  ;;  %v2121_v50 = vrot.slane %v2119_v40, 1 }
 0x222   : > { %v1683_v26 = vpop.permute.xlu0 %1682  ;;  %v1790_v57 = vmax.bf16 %v1685_v10, %v13181_v12 }
 0x223   : > { %v1789_v23 = vmax.bf16 %v1683_v26, %v13183_v9  ;;  %v2113_v11 = vrot.slane %v2111_v39, 1  ;;  %v2125_v35 = vor.u32 %v2123_v3, %v2121_v50 }
 0x224   : > { %1838 = vst.msk [vmem:[#allocation3 + $0x8c] sm:$0xf] %vm1802_vm3, %v1790_v57  ;;  %v13422_v51 = vld [vmem:[#allocation3 + $0x78] sm:$0xff]  }
 0x225   : > { %1837 = vst.msk [vmem:[#allocation3 + $0x88] sm:$0xf] %vm1802_vm3, %v1789_v23  ;;  %v1681_v21 = vpop.permute.xlu1 %1680  ;;  %v2114_v27 = vsel %vm534_vm0, %v2109_v28, %v2113_v11  ;;  %v2117_v36 = vor.u32 %v2115_v49, %v2113_v11  ;;  %v2139_v55 = vshrl.u32 %v13422_v51, 16 }
 0x226   : > { %v1679_v15 = vpop.permute.xlu0 %1678  ;;  %v1788_v12 = vmax.bf16 %v1681_v21, %v13191_v29  ;;  %2228 = vrot.lane.b32.xlu0 %v2114_v27, %s12594_s12 }
 0x227   : > { %v1787_v9 = vmax.bf16 %v1679_v15, %v13193_v17  ;;  %v2122_v2 = vsel %vm534_vm0, %v2117_v36, %v2121_v50  ;;  %v2135_v17 = vshll.u32 %v13422_v51, 16 }
 0x228   : > { %v13428_v1 = vld [vmem:[#allocation3 + $0x70] sm:$0xff]   ;;  %1836 = vst.msk [vmem:[#allocation3 + $0x84] sm:$0xf] %vm1802_vm3, %v1788_v12  ;;  %2230 = vrot.lane.b32.xlu1 %v2122_v2, %s12594_s12 }
 0x229   : > { %1835 = vst.msk [vmem:[#allocation3 + $0x80] sm:$0xf] %vm1802_vm3, %v1787_v9  ;;  %v1693_v31 = vpop.permute.xlu1 %1692  ;;  %v2127_v29 = vshll.u32 %v13428_v1, 16  ;;  %v2131_v44 = vshrl.u32 %v13428_v1, 16  ;;  %v2137_v46 = vrot.slane %v2135_v17, 1 }
 0x22a   : > { %v1691_v34 = vpop.permute.xlu0 %1690  ;;  %v1794_v4 = vmax.bf16 %v1693_v31, %v13205_v45 }
 0x22b   : > { %v1793_v63 = vmax.bf16 %v1691_v34, %v13207_v47  ;;  %v2129_v54 = vrot.slane %v2127_v29, 1  ;;  %v2141_v57 = vor.u32 %v2139_v55, %v2137_v46 }
 0x22c   : > { %1842 = vst.msk [vmem:[#allocation3 + $0x9c] sm:$0xf] %vm1802_vm3, %v1794_v4  ;;  %v13448_v20 = vld [vmem:[#allocation3 + $0x88] sm:$0xff]  }
 0x22d   : > { %1841 = vst.msk [vmem:[#allocation3 + $0x98] sm:$0xf] %vm1802_vm3, %v1793_v63  ;;  %v1689_v30 = vpop.permute.xlu1 %1688  ;;  %v2130_v45 = vsel %vm534_vm0, %v2125_v35, %v2129_v54  ;;  %v2133_v47 = vor.u32 %v2131_v44, %v2129_v54  ;;  %v2155_v9 = vshrl.u32 %v13448_v20, 16 }
 0x22e   : > { %v1687_v32 = vpop.permute.xlu0 %1686  ;;  %v1792_v43 = vmax.bf16 %v1689_v30, %v13214_v61  ;;  %2232 = vrot.lane.b32.xlu0 %v2130_v45, %s12594_s12 }
 0x22f   : > { %v1791_v62 = vmax.bf16 %v1687_v32, %v13216_v5  ;;  %v2138_v24 = vsel %vm534_vm0, %v2133_v47, %v2137_v46  ;;  %v2151_v5 = vshll.u32 %v13448_v20, 16 }
 0x230   : > { %v13454_v6 = vld [vmem:[#allocation3 + $0x80] sm:$0xff]   ;;  %1840 = vst.msk [vmem:[#allocation3 + $0x94] sm:$0xf] %vm1802_vm3, %v1792_v43  ;;  %2234 = vrot.lane.b32.xlu1 %v2138_v24, %s12594_s12 }
 0x231   : > { %1839 = vst.msk [vmem:[#allocation3 + $0x90] sm:$0xf] %vm1802_vm3, %v1791_v62  ;;  %v1701_v10 = vpop.permute.xlu1 %1700  ;;  %v2143_v61 = vshll.u32 %v13454_v6, 16  ;;  %v2147_v28 = vshrl.u32 %v13454_v6, 16  ;;  %v2153_v27 = vrot.slane %v2151_v5, 1 }
 0x232   : > { %v1699_v26 = vpop.permute.xlu0 %1698  ;;  %v1798_v39 = vmax.bf16 %v1701_v10, %v13224_v18 }
 0x233   : > { %v1797_v40 = vmax.bf16 %v1699_v26, %v13226_v53  ;;  %v2145_v23 = vrot.slane %v2143_v61, 1  ;;  %v2157_v31 = vor.u32 %v2155_v9, %v2153_v27 }
 0x234   : > { %1846 = vst.msk [vmem:[#allocation3 + $0xac] sm:$0xf] %vm1802_vm3, %v1798_v39  ;;  %v13468_v36 = vld [vmem:[#allocation3 + $0x98] sm:$0xff]  }
 0x235   : > { %1845 = vst.msk [vmem:[#allocation3 + $0xa8] sm:$0xf] %vm1802_vm3, %v1797_v40  ;;  %v1697_v11 = vpop.permute.xlu1 %1696  ;;  %v2146_v21 = vsel %vm534_vm0, %v2141_v57, %v2145_v23  ;;  %v2149_v15 = vor.u32 %v2147_v28, %v2145_v23  ;;  %v2171_v54 = vshrl.u32 %v13468_v36, 16  ;;  %v12393_v39 = vld [vmem:[%s16487_s1 + $0x10] sm:$0xff]   ;;  %v12396_v23 = vld [vmem:[%s16487_s1 + $0x8] sm:$0xff]  }
 0x236   : > { %v1695_v49 = vpop.permute.xlu0 %1694  ;;  %v1796_v18 = vmax.bf16 %v1697_v11, %v13232_v22  ;;  %2236 = vrot.lane.b32.xlu0 %v2146_v21, %s12594_s12  ;;  %v2167_v22 = vshll.u32 %v13468_v36, 16  ;;  %v12401_v21 = vld [vmem:[%s16487_s1] sm:$0xff]  }
 0x237   : > { %v1795_v53 = vmax.bf16 %v1695_v49, %v13234_v19  ;;  %v2154_v50 = vsel %vm534_vm0, %v2149_v15, %v2153_v27  ;;  %v13518_v49 = vld [vmem:[%s12715_s21 + $0xc0] sm:$0xff]  }
 0x238   : > { %v13474_v12 = vld [vmem:[#allocation3 + $0x90] sm:$0xff]   ;;  %1844 = vst.msk [vmem:[#allocation3 + $0xa4] sm:$0xf] %vm1802_vm3, %v1796_v18  ;;  %2238 = vrot.lane.b32.xlu1 %v2154_v50, %s12594_s12  ;;  %v2169_v17 = vrot.slane %v2167_v22, 1  ;;  %v13537_v50 = vld [vmem:[%s12715_s21 + $0xd8] sm:$0xff]  }
 0x239   : > { %1843 = vst.msk [vmem:[#allocation3 + $0xa0] sm:$0xf] %vm1802_vm3, %v1795_v53  ;;  %v2159_v2 = vshll.u32 %v13474_v12, 16  ;;  %v2163_v34 = vshrl.u32 %v13474_v12, 16  ;;  %v13534_v53 = vld [vmem:[%s12715_s21 + $0xd0] sm:$0xff]  }
 0x23a   : > { %v2173_v32 = vor.u32 %v2171_v54, %v2169_v17  ;;  %v5233_v54 = vshll.u32 %v13537_v50, 16 }
 0x23b   : > { %v2161_v19 = vrot.slane %v2159_v2, 1 }
 0x23c   : > { %v13484_v4 = vld [vmem:[#allocation3 + $0xa8] sm:$0xff]  }
 0x23d   : > { %v2162_v3 = vsel %vm534_vm0, %v2157_v31, %v2161_v19  ;;  %v2165_v29 = vor.u32 %v2163_v34, %v2161_v19  ;;  %v2183_v30 = vshll.u32 %v13484_v4, 16  ;;  %v13543_v31 = vld [vmem:[%s12715_s21 + $0xe8] sm:$0xff]   ;;  %v2187_v34 = vshrl.u32 %v13484_v4, 16 }
 0x23e   : > { %2240 = vrot.lane.b32.xlu0 %v2162_v3, %s12594_s12 }
 0x23f   : > { %v2170_v63 = vsel %vm534_vm0, %v2165_v29, %v2169_v17  ;;  %v2185_v62 = vrot.slane %v2183_v30, 1 }
 0x240   : > { %v13488_v35 = vld [vmem:[#allocation3 + $0xa0] sm:$0xff]   ;;  %2242 = vrot.lane.b32.xlu1 %v2170_v63, %s12594_s12  ;;  %v5225_v63 = vshll.u32 %v13534_v53, 16 }
 0x241   : > { %v2175_v44 = vshll.u32 %v13488_v35, 16  ;;  %v2179_v47 = vshrl.u32 %v13488_v35, 16  ;;  %v2189_v30 = vor.u32 %v2187_v34, %v2185_v62  ;;  %v13586_v34 = vld [vmem:[%s12715_s21 + $0x100] sm:$0xff]  }
 0x243   : > { %v2177_v45 = vrot.slane %v2175_v44, 1 }
 0x245   : > { %v2178_v46 = vsel %vm534_vm0, %v2173_v32, %v2177_v45  ;;  %v2181_v43 = vor.u32 %v2179_v47, %v2177_v45 }
 0x246   : > { %2244 = vrot.lane.b32.xlu0 %v2178_v46, %s12594_s12  ;;  %v13557_v46 = vld [vmem:[%s12715_s21 + $0xe0] sm:$0xff]  }
 0x247   : > { %v2186_v24 = vsel %vm534_vm0, %v2181_v43, %v2185_v62 }
 0x248   : > { %2246 = vrot.lane.b32.xlu1 %v2186_v24, %s12594_s12  ;;  %v5229_v24 = vshrl.u32 %v13534_v53, 16 }
 0x26a   : > { %v2207_v10 = vpop.permute.xlu0 %2206 }
 0x26b   : > { %v2255_v26 = vsel %vm856_vm2, %v13280_v56, %v2207_v10  ;;  %v5249_v10 = vshll.u32 %v13543_v31, 16 }
 0x26c   : > { %11961 = vmatprep.mubr.bf16.mxu1 %v2255_v26 }
 0x26e   : > { %v1703_v55 = vpop.permute.xlu0 %1702 }
 0x26f   : > { %v1799_v61 = vmax.bf16 %v1703_v55, %v13301_v13 }
 0x270   : > { %v2209_v5 = vpop.permute.xlu1 %2208 }
 0x271   : > { %1847 = vst.msk [vmem:[#allocation3 + $0xb0] sm:$0xf] %vm1802_vm3, %v1799_v61  ;;  %v2258_v40 = vsel %vm856_vm2, %v13276_v37, %v2209_v5 }
 0x272   : > { %11962 = vmatmul.mubr.bf16.vlgmr.msra.gmra.mxu1 %v2258_v40  ;;  %v2211_v57 = vpop.permute.xlu0 %2210  ;;  %v5235_v40 = vrot.slane %v5233_v54, 1  ;;  %v13597_v54 = vld [vmem:[%s12715_s21 + $0x118] sm:$0xff]  }
 0x273   : > { %v2261_v56 = vsel %vm856_vm2, %v13296_v7, %v2211_v57  ;;  %12074 = vmatpush3.bf16.msra.mxu1 %v13441_v25  ;;  %v13521_v7 = vld [vmem:[%s12715_s21 + $0xc8] sm:$0xff]   ;;  %v13567_v57 = vld [vmem:[%s12715_s21 + $0xf0] sm:$0xff]  }
 0x274   : > { %v1705_v13 = vpop.permute.xlu1 %1704  ;;  %11965 = vmatprep.mubr.bf16.mxu1 %v2261_v56  ;;  %12075 = vmatprep.subr.bf16.mxu1 %v12393_v39  ;;  %v5217_v15 = vshll.u32 %v13521_v7, 16  ;;  %v5221_v17 = vshrl.u32 %v13521_v7, 16 }
 0x275   : > { %v1800_v28 = vmax.bf16 %v1705_v13, %v13325_v41 }
 0x276   : > { %v1707_v11 = vpop.permute.xlu0 %1706  ;;  %v5219_v22 = vrot.slane %v5217_v15, 1  ;;  %v5253_v15 = vshrl.u32 %v13543_v31, 16 }
 0x277   : > { %1848 = vst.msk [vmem:[#allocation3 + $0xb4] sm:$0xf] %vm1802_vm3, %v1800_v28  ;;  %v1801_v37 = vmax.bf16 %v1707_v11, %v13333_v48  ;;  %12076 = vmatpush3.bf16.msra.mxu1 %v12393_v39  ;;  %v5212_v48 = vshll.u32 %v13518_v49, 16  ;;  %v5227_v39 = vrot.slane %v5225_v63, 1  ;;  %v5241_v28 = vshll.u32 %v13557_v46, 16 }
 0x278   : > { %v2213_v25 = vpop.permute.xlu1 %2212  ;;  %12077 = vmatprep.subr.bf16.mxu1 %v12396_v23  ;;  %v5223_v5 = vor.u32 %v5221_v17, %v5219_v22 }
 0x279   : > { %1849 = vst.msk [vmem:[#allocation3 + $0xb8] sm:$0xf] %vm1802_vm3, %v1801_v37  ;;  %v2264_v41 = vsel %vm856_vm2, %v13291_v58, %v2213_v25  ;;  %v5210_v58 = vshrl.u32 %v13518_v49, 16  ;;  %v5214_v2 = vrot.slane %v5212_v48, 1  ;;  %v5231_v25 = vor.u32 %v5229_v24, %v5227_v39 }
 0x27a   : > { %11966 = vmatmul.mubr.bf16.gmra.mxu1 %v2264_v41  ;;  %v5251_v41 = vrot.slane %v5249_v10, 1 }
 0x27b   : > { %12078 = vmatpush3.bf16.msra.mxu1 %v12396_v23  ;;  %v5215_v43 = vor.u32 %v5214_v2, %v5210_v58  ;;  %v5237_v23 = vshrl.u32 %v13537_v50, 16  ;;  %v5228_v2 = vsel %vm534_vm0, %v5223_v5, %v5227_v39  ;;  %v5236_v17 = vsel %vm534_vm0, %v5231_v25, %v5235_v40 }
 0x27c   : > { %v2215_v27 = vpop.permute.xlu1 %2214  ;;  %12079 = vmatprep.subr.bf16.mxu1 %v12401_v21 }
 0x27d   : > { %v2267_v18 = vsel %vm856_vm2, %v13320_v52, %v2215_v27  ;;  %v5220_v37 = vsel %vm534_vm0, %v5215_v43, %v5219_v22  ;;  %v5257_v27 = vshll.u32 %v13567_v57, 16  ;;  %v5239_v22 = vor.u32 %v5237_v23, %v5235_v40  ;;  %v13605_v43 = vld [vmem:[%s12715_s21 + $0x110] sm:$0xff]   ;;  %v13616_v40 = vld [vmem:[%s12715_s21 + $0x120] sm:$0xff]  }
 0x27e   : > { %11969 = vmatprep.mubr.bf16.mxu1 %v2267_v18  ;;  %v13539_v9 = vld [vmem:[#allocation3 + $0xb0] sm:$0xff]  }
 0x27f   : > { %12080 = vmatpush3.bf16.msra.mxu1 %v12401_v21  ;;  %v2191_v52 = vshll.u32 %v13539_v9, 16  ;;  %v2195_v45 = vshrl.u32 %v13539_v9, 16  ;;  %v5245_v21 = vshrl.u32 %v13557_v46, 16 }
 0x280   : > { %v2217_v19 = vpop.permute.xlu0 %2216  ;;  %v13547_v3 = vld [vmem:[#allocation3 + $0xb8] ss:$0 sps:$4 sm:$0xff]  }
 0x281   : > { %v2270_v29 = vsel %vm856_vm2, %v13317_v33, %v2217_v19  ;;  %v2193_v32 = vrot.slane %v2191_v52, 1  ;;  %v2199_v47 = vshll.u32 %v13547_v3, 16  ;;  %v2203_v61 = vshrl.u32 %v13547_v3, 16  ;;  %v13589_v52 = vld [vmem:[%s12715_s21 + $0x108] sm:$0xff]  }
 0x282   : > { %v2219_v44 = vpop.permute.xlu1 %2218  ;;  %11970 = vmatmul.mubr.bf16.gmra.mxu1 %v2270_v29  ;;  %v5243_v19 = vrot.slane %v5241_v28, 1  ;;  %v5261_v29 = vshrl.u32 %v13567_v57, 16 }
 0x283   : > { %v2273_v33 = vsel %vm856_vm2, %v13347_v16, %v2219_v44  ;;  %v2194_v62 = vsel %vm534_vm0, %v2189_v30, %v2193_v32  ;;  %v2197_v26 = vor.u32 %v2195_v45, %v2193_v32  ;;  %v2201_v55 = vrot.slane %v2199_v47, 1  ;;  %v13570_v16 = vld [vmem:[%s12715_s21 + $0xf8] sm:$0xff]  }
 0x284   : > { %11973 = vmatprep.mubr.bf16.mxu1 %v2273_v33  ;;  %2248 = vrot.lane.b32.xlu0 %v2194_v62, %s12594_s12  ;;  %v5265_v18 = vshll.u32 %v13570_v16, 16  ;;  %v5247_v63 = vor.u32 %v5245_v21, %v5243_v19  ;;  %v5255_v44 = vor.u32 %v5253_v15, %v5251_v41  ;;  %v5259_v30 = vrot.slane %v5257_v27, 1 }
 0x285   : > { %v2202_v56 = vsel %vm534_vm0, %v2197_v26, %v2201_v55  ;;  %v2205_v13 = vor.u32 %v2203_v61, %v2201_v55  ;;  %v5269_v45 = vshrl.u32 %v13570_v16, 16  ;;  %v5273_v47 = vshll.u32 %v13586_v34, 16 }
 0x286   : > { %2250 = vrot.lane.b32.xlu1 %v2202_v56, %s12594_s12  ;;  %v5267_v32 = vrot.slane %v5265_v18, 1  ;;  %v5281_v33 = vshll.u32 %v13589_v52, 16  ;;  %v5263_v24 = vor.u32 %v5261_v29, %v5259_v30  ;;  %v5252_v62 = vsel %vm534_vm0, %v5247_v63, %v5251_v41  ;;  %v13619_v56 = vld [vmem:[%s12715_s21 + $0x128] sm:$0xff]  }
 0x287   : > { %v5277_v26 = vshrl.u32 %v13586_v34, 16  ;;  %v5297_v55 = vshll.u32 %v13597_v54, 16  ;;  %v5260_v5 = vsel %vm534_vm0, %v5255_v44, %v5259_v30  ;;  %v5275_v23 = vrot.slane %v5273_v47, 1  ;;  %v13647_v47 = vld [vmem:[%s12715_s21 + $0x148] sm:$0xff]  }
 0x288   : > { %v2221_v11 = vpop.permute.xlu0 %2220  ;;  %2252 = vrot.lane.b32.xlu0 %v2205_v13, %s12594_s12  ;;  %v5271_v39 = vor.u32 %v5269_v45, %v5267_v32  ;;  %v5283_v28 = vrot.slane %v5281_v33, 1  ;;  %v5268_v25 = vsel %vm534_vm0, %v5263_v24, %v5267_v32  ;;  %v5293_v41 = vshrl.u32 %v13605_v43, 16 }
 0x289   : > { %v2276_v48 = vsel %vm856_vm2, %v13342_v14, %v2221_v11  ;;  %v5285_v11 = vshrl.u32 %v13589_v52, 16  ;;  %v5279_v21 = vor.u32 %v5277_v26, %v5275_v23  ;;  %v5301_v15 = vshrl.u32 %v13597_v54, 16  ;;  %v13653_v26 = vld [vmem:[%s12715_s21 + $0x140] sm:$0xff]  }
 0x28a   : > { %v2223_v58 = vpop.permute.xlu1 %2222  ;;  %11974 = vmatmul.mubr.bf16.gmra.mxu1 %v2276_v48  ;;  %5400 = vrot.lane.b32.xlu1 %v5220_v37, %s12593_s25  ;;  %v5289_v37 = vshll.u32 %v13605_v43, 16  ;;  %v5299_v48 = vrot.slane %v5297_v55, 1  ;;  %v5305_v27 = vshll.u32 %v13616_v40, 16  ;;  %v5313_v18 = vshll.u32 %v13619_v56, 16 }
 0x28b   : > { %v2279_v14 = vsel %vm856_vm2, %v13368_v59, %v2223_v58  ;;  %v5244_v59 = vsel %vm534_vm0, %v5239_v22, %v5243_v19  ;;  %v5276_v58 = vsel %vm534_vm0, %v5271_v39, %v5275_v23  ;;  %v13634_v22 = vld [vmem:[%s12715_s21 + $0x130] sm:$0xff]   ;;  %v13637_v19 = vld [vmem:[%s12715_s21 + $0x138] sm:$0xff]   ;;  %v5284_v29 = vsel %vm534_vm0, %v5279_v21, %v5283_v28 }
 0x28c   : > { %11977 = vmatprep.mubr.bf16.mxu1 %v2279_v14  ;;  %5402 = vrot.lane.b32.xlu0 %v5228_v2, %s12593_s25  ;;  %v5291_v2 = vrot.slane %v5289_v37, 1  ;;  %v5303_v63 = vor.u32 %v5301_v15, %v5299_v48  ;;  %v5309_v44 = vshrl.u32 %v13616_v40, 16  ;;  %v5307_v32 = vrot.slane %v5305_v27, 1  ;;  %v13661_v39 = vld [vmem:[%s12715_s21 + $0x150] sm:$0xff]  }
 0x28d   : > { %v5315_v45 = vrot.slane %v5313_v18, 1  ;;  %v5341_v15 = vshrl.u32 %v13653_v26, 16  ;;  %v5353_v27 = vshll.u32 %v13661_v39, 16 }
 0x28e   : > { %5404 = vrot.lane.b32.xlu1 %v5236_v17, %s12593_s25  ;;  %v5295_v17 = vor.u32 %v5293_v41, %v5291_v2 }
 0x290   : > { %v2225_v10 = vpop.permute.xlu0 %2224  ;;  %5406 = vrot.lane.b32.xlu0 %v5244_v59, %s12593_s25  ;;  %v5317_v59 = vshrl.u32 %v13619_v56, 16  ;;  %v5300_v55 = vsel %vm534_vm0, %v5295_v17, %v5299_v48 }
 0x291   : > { %v2282_v61 = vsel %vm856_vm2, %v13362_v42, %v2225_v10  ;;  %v5321_v10 = vshll.u32 %v13634_v22, 16 }
 0x292   : > { %v2227_v13 = vpop.permute.xlu1 %2226  ;;  %11978 = vmatmul.mubr.bf16.gmra.mxu1 %v2282_v61  ;;  %5408 = vrot.lane.b32.xlu1 %v5252_v62, %s12593_s25  ;;  %v5329_v62 = vshll.u32 %v13637_v19, 16  ;;  %v5311_v61 = vor.u32 %v5309_v44, %v5307_v32  ;;  %v5319_v23 = vor.u32 %v5317_v59, %v5315_v45  ;;  %v13682_v44 = vld [vmem:[%s12715_s21 + $0x160] sm:$0xff]   ;;  %v5355_v59 = vrot.slane %v5353_v27, 1 }
 0x293   : > { %v2285_v42 = vsel %vm856_vm2, %v13388_v0, %v2227_v13  ;;  %v5287_v0 = vor.u32 %v5285_v11, %v5283_v28  ;;  %v5308_v13 = vsel %vm534_vm0, %v5303_v63, %v5307_v32  ;;  %v5345_v28 = vshll.u32 %v13647_v47, 16  ;;  %v13667_v11 = vld [vmem:[%s12715_s21 + $0x158] sm:$0xff]  }
 0x294   : > { %11981 = vmatprep.mubr.bf16.mxu1 %v2285_v42  ;;  %5410 = vrot.lane.b32.xlu0 %v5260_v5, %s12593_s25  ;;  %v5325_v5 = vshrl.u32 %v13634_v22, 16  ;;  %v5331_v37 = vrot.slane %v5329_v62, 1  ;;  %v5333_v42 = vshrl.u32 %v13637_v19, 16  ;;  %v5316_v41 = vsel %vm534_vm0, %v5311_v61, %v5315_v45 }
 0x295   : > { %v5292_v24 = vsel %vm534_vm0, %v5287_v0, %v5291_v2  ;;  %v5349_v0 = vshrl.u32 %v13647_v47, 16  ;;  %v5361_v2 = vshll.u32 %v13667_v11, 16  ;;  %v5365_v62 = vshrl.u32 %v13667_v11, 16 }
 0x296   : > { %5412 = vrot.lane.b32.xlu1 %v5268_v25, %s12593_s25  ;;  %v5337_v25 = vshll.u32 %v13653_v26, 16  ;;  %v5335_v17 = vor.u32 %v5333_v42, %v5331_v37  ;;  %v5369_v61 = vshll.u32 %v13682_v44, 16 }
 0x298   : > { %v2229_v14 = vpop.permute.xlu0 %2228  ;;  %5414 = vrot.lane.b32.xlu0 %v5276_v58, %s12593_s25  ;;  %v5347_v58 = vrot.slane %v5345_v28, 1  ;;  %v5339_v63 = vrot.slane %v5337_v25, 1 }
 0x299   : > { %v2288_v30 = vsel %vm856_vm2, %v13382_v38, %v2229_v14 }
 0x29a   : > { %v2231_v33 = vpop.permute.xlu1 %2230  ;;  %11982 = vmatmul.mubr.bf16.gmra.mxu1 %v2288_v30  ;;  %5416 = vrot.lane.b32.xlu1 %v5284_v29, %s12593_s25  ;;  %v13685_v30 = vld [vmem:[%s12715_s21 + $0x168] sm:$0xff]   ;;  %v5343_v45 = vor.u32 %v5341_v15, %v5339_v63  ;;  %v5371_v15 = vrot.slane %v5369_v61, 1 }
 0x29b   : > { %v2291_v38 = vsel %vm856_vm2, %v13408_v8, %v2231_v33  ;;  %v5323_v8 = vrot.slane %v5321_v10, 1  ;;  %v5357_v33 = vshrl.u32 %v13661_v39, 16  ;;  %v5363_v10 = vrot.slane %v5361_v2, 1 }
 0x29c   : > { %11985 = vmatprep.mubr.bf16.mxu1 %v2291_v38  ;;  %5418 = vrot.lane.b32.xlu0 %v5292_v24, %s12593_s25  ;;  %v5351_v24 = vor.u32 %v5349_v0, %v5347_v58  ;;  %v13695_v38 = vld [vmem:[%s12715_s21 + $0x178] sm:$0xf]  ;;  %v5348_v28 = vsel %vm534_vm0, %v5343_v45, %v5347_v58 }
 0x29d   : > { %v5327_v48 = vor.u32 %v5325_v5, %v5323_v8  ;;  %v5324_v29 = vsel %vm534_vm0, %v5319_v23, %v5323_v8  ;;  %v5377_v5 = vshll.u32 %v13685_v30, 16  ;;  %v5359_v8 = vor.u32 %v5357_v33, %v5355_v59 }
 0x29e   : > { %5420 = vrot.lane.b32.xlu1 %v5300_v55, %s12593_s25  ;;  %v10101_v55 = vld [vmem:[%s12715_s21 + $0x17c] sm:$0x1] }
 0x29f   : > { %v5332_v32 = vsel %vm534_vm0, %v5327_v48, %v5331_v37  ;;  %v5373_v37 = vshrl.u32 %v13682_v44, 16  ;;  %v10126_v42 = vcombine.low %v13695_v38, %v10101_v55  ;;  %v5379_v27 = vrot.slane %v5377_v5, 1 }
 0x2a0   : > { %v2233_v21 = vpop.permute.xlu0 %2232  ;;  %5422 = vrot.lane.b32.xlu0 %v5308_v13, %s12593_s25  ;;  %v13702_v13 = vld [vmem:[%s12715_s21 + $0x170] sm:$0xff]   ;;  %s16446_s21 = scalar_lea.sflag [#allocation9], %s353_s18 }
 0x2a1   : > { %v2294_v18 = vsel %vm856_vm2, %v13402_v60, %v2233_v21  ;;  %v5356_v21 = vsel %vm534_vm0, %v5351_v24, %v5355_v59  ;;  %v5385_v58 = vshll.u32 %v13702_v13, 16  ;;  %v5375_v2 = vor.u32 %v5373_v37, %v5371_v15 }
 0x2a2   : > { %v2235_v14 = vpop.permute.xlu1 %2234  ;;  %11986 = vmatmul.mubr.bf16.gmra.mxu1 %v2294_v18  ;;  %5424 = vrot.lane.b32.xlu1 %v5316_v41, %s12593_s25  ;;  %v5367_v41 = vor.u32 %v5365_v62, %v5363_v10  ;;  %v5381_v18 = vshrl.u32 %v13685_v30, 16  ;;  %v5397_v24 = vshrl.u32 %v10126_v42, 16 }
 0x2a3   : > { %v2297_v60 = vsel %vm856_vm2, %v13428_v1, %v2235_v14  ;;  %v5340_v1 = vsel %vm534_vm0, %v5335_v17, %v5339_v63  ;;  %v5389_v14 = vshrl.u32 %v13702_v13, 16 }
 0x2a4   : > { %11989 = vmatprep.mubr.bf16.mxu1 %v2297_v60  ;;  %5426 = vrot.lane.b32.xlu0 %v5324_v29, %s12593_s25  ;;  %v5393_v29 = vshll.u32 %v10126_v42, 16  ;;  %v5372_v17 = vsel %vm534_vm0, %v5367_v41, %v5371_v15  ;;  %v5383_v63 = vor.u32 %v5381_v18, %v5379_v27  ;;  %v5387_v60 = vrot.slane %v5385_v58, 1 }
 0x2a6   : > { %5428 = vrot.lane.b32.xlu1 %v5332_v32, %s12593_s25  ;;  %v5391_v45 = vor.u32 %v5389_v14, %v5387_v60  ;;  %v5395_v59 = vrot.slane %v5393_v29, 1  ;;  %v5388_v62 = vsel %vm534_vm0, %v5383_v63, %v5387_v60  ;;  %v13784_v63 = vld [vmem:[%s16491_s5] ss:$0 sm:$0xff] }
 0x2a8   : > { %v2237_v23 = vpop.permute.xlu0 %2236  ;;  %5430 = vrot.lane.b32.xlu0 %v5340_v1, %s12593_s25  ;;  %v5396_v1 = vsel %vm534_vm0, %v5391_v45, %v5395_v59  ;;  %v5399_v61 = vor.u32 %v5397_v24, %v5395_v59 }
 0x2a9   : > { %v2300_v25 = vsel %vm856_vm2, %v13422_v51, %v2237_v23  ;;  %v5364_v51 = vsel %vm534_vm0, %v5359_v8, %v5363_v10 }
 0x2aa   : > { %v2239_v48 = vpop.permute.xlu1 %2238  ;;  %11990 = vmatmul.mubr.bf16.gmra.mxu1 %v2300_v25  ;;  %5432 = vrot.lane.b32.xlu1 %v5348_v28, %s12593_s25 }
 0x2ab   : > { %v2303_v0 = vsel %vm856_vm2, %v13454_v6, %v2239_v48  ;;  %v5380_v6 = vsel %vm534_vm0, %v5375_v2, %v5379_v27 }
 0x2ac   : > { %11993 = vmatprep.mubr.bf16.mxu1 %v2303_v0  ;;  %5434 = vrot.lane.b32.xlu0 %v5356_v21, %s12593_s25 }
 0x2ae   : > { %5436 = vrot.lane.b32.xlu1 %v5364_v51, %s12593_s25 }
 0x2b0   : > { %v2241_v32 = vpop.permute.xlu0 %2240  ;;  %5438 = vrot.lane.b32.xlu0 %v5372_v17, %s12593_s25 }
 0x2b1   : > { %v2306_v33 = vsel %vm856_vm2, %v13448_v20, %v2241_v32 }
 0x2b2   : > { %v2243_v10 = vpop.permute.xlu1 %2242  ;;  %11994 = vmatmul.mubr.bf16.gmra.mxu1 %v2306_v33  ;;  %5440 = vrot.lane.b32.xlu1 %v5380_v6, %s12593_s25 }
 0x2b3   : > { %v2309_v55 = vsel %vm856_vm2, %v13474_v12, %v2243_v10 }
 0x2b4   : > { %11997 = vmatprep.mubr.bf16.mxu1 %v2309_v55  ;;  %5442 = vrot.lane.b32.xlu0 %v5388_v62, %s12593_s25 }
 0x2b6   : > { %5444 = vrot.lane.b32.xlu1 %v5396_v1, %s12593_s25 }
 0x2b8   : > { %v2245_v20 = vpop.permute.xlu0 %2244  ;;  %5446 = vrot.lane.b32.xlu0 %v5399_v61, %s12593_s25  ;;  %s12531_s25 = scalar_lea.vmem %s16444_s28, 32 }
 0x2b9   : > { %v2312_v5 = vsel %vm856_vm2, %v13468_v36, %v2245_v20  ;;  %p12532_p11 = scmp.ne.s32.totalorder %s16444_s28, %s12531_s25 }
 0x2ba   : > { %v2247_v23 = vpop.permute.xlu1 %2246  ;;  %11998 = vmatmul.mubr.bf16.gmra.mxu1 %v2312_v5 }
 0x2bb   : > { %v2315_v12 = vsel %vm856_vm2, %v13488_v35, %v2247_v23  ;;  %p12533_p12 = pnand %p12532_p11, %p12692_p5 }
 0x2bc   : > { %12001 = vmatprep.mubr.bf16.mxu1 %v2315_v12 }
 0x2bd   : > { %p12534_p13 = pneg %p12533_p12 }
 0x2f6   : > { %v2249_v28 = vpop.permute.xlu0 %2248 }
 0x2f7   : > { %v2318_v8 = vsel %vm856_vm2, %v13484_v4, %v2249_v28 }
 0x2f8   : > { %v2251_v37 = vpop.permute.xlu1 %2250  ;;  %12002 = vmatmul.mubr.bf16.gmra.mxu1 %v2318_v8 }
 0x2f9   : > { %v2321_v42 = vsel %vm856_vm2, %v13539_v9, %v2251_v37 }
 0x2fa   : > { %12005 = vmatprep.mubr.bf16.mxu1 %v2321_v42  ;;  %v2253_v25 = vpop.permute.xlu0 %2252 }
 0x2fb   : > { %v2324_v41 = vsel %vm856_vm2, %v13547_v3, %v2253_v25 }
 0x2fc   : > { %v5401_v36 = vpop.permute.xlu1 %5400 }
 0x2fd   : > { %v5449_v21 = vsel %vm774_vm1, %v13518_v49, %v5401_v36 }
 0x2fe   : > { %v5403_v35 = vpop.permute.xlu0 %5402 }
 0x2ff   : > { %v5451_v4 = vsel %vm774_vm1, %v13521_v7, %v5403_v35 }
 0x300   : > { %12006 = vmatmul.mubr.bf16.gmra.mxu1 %v2324_v41  ;;  %v5405_v48 = vpop.permute.xlu1 %5404 }
 0x301   : > { %12081 = vmatprep.mubr.msk.bf16.mxu1 %vm856_vm2, %v5449_v21  ;;  %v5453_v9 = vsel %vm774_vm1, %v13534_v53, %v5405_v48 }
 0x302   : > { %v5407_v15 = vpop.permute.xlu0 %5406 }
 0x303   : > { %v5455_v3 = vsel %vm774_vm1, %v13537_v50, %v5407_v15 }
 0x304   : > { %v5409_v49 = vpop.permute.xlu1 %5408 }
 0x305   : > { %v5457_v27 = vsel %vm774_vm1, %v13557_v46, %v5409_v49 }
 0x306   : > { %v5411_v7 = vpop.permute.xlu0 %5410 }
 0x307   : > { %v5459_v53 = vsel %vm774_vm1, %v13543_v31, %v5411_v7 }
 0x308   : > { %12082 = vmatmul.mubr.msk.bf16.vlgmr.msra.gmra.mxu1 %vm856_vm2, %v5451_v4  ;;  %v5413_v18 = vpop.permute.xlu1 %5412 }
 0x309   : > { %12085 = vmatprep.mubr.msk.bf16.mxu1 %vm856_vm2, %v5453_v9  ;;  %v5461_v58 = vsel %vm774_vm1, %v13567_v57, %v5413_v18 }
 0x30a   : > { %v5415_v50 = vpop.permute.xlu0 %5414 }
 0x30b   : > { %v5463_v46 = vsel %vm774_vm1, %v13570_v16, %v5415_v50 }
 0x30c   : > { %v5417_v0 = vpop.permute.xlu1 %5416 }
 0x30d   : > { %v5465_v51 = vsel %vm774_vm1, %v13586_v34, %v5417_v0 }
 0x30e   : > { %v5419_v31 = vpop.permute.xlu0 %5418 }
 0x30f   : > { %v5467_v57 = vsel %vm774_vm1, %v13589_v52, %v5419_v31 }
 0x310   : > { %12086 = vmatmul.mubr.msk.bf16.gmra.mxu1 %vm856_vm2, %v5455_v3  ;;  %v5421_v2 = vpop.permute.xlu1 %5420 }
 0x311   : > { %12089 = vmatprep.mubr.msk.bf16.mxu1 %vm856_vm2, %v5457_v27  ;;  %v5469_v14 = vsel %vm774_vm1, %v13605_v43, %v5421_v2 }
 0x312   : > { %v5423_v16 = vpop.permute.xlu0 %5422 }
 0x313   : > { %v5471_v34 = vsel %vm774_vm1, %v13597_v54, %v5423_v16  ;;  %v13792_v54 = vld [vmem:[%s16492_s6] ss:$0 sm:$0xff] }
 0x314   : > { %v5425_v29 = vpop.permute.xlu1 %5424 }
 0x315   : > { %v5473_v17 = vsel %vm774_vm1, %v13616_v40, %v5425_v29 }
 0x316   : > { %v5427_v60 = vpop.permute.xlu0 %5426 }
 0x317   : > { %v5475_v59 = vsel %vm774_vm1, %v13619_v56, %v5427_v60 }
 0x318   : > { %12090 = vmatmul.mubr.msk.bf16.gmra.mxu1 %vm856_vm2, %v5459_v53  ;;  %v5429_v40 = vpop.permute.xlu1 %5428 }
 0x319   : > { %12093 = vmatprep.mubr.msk.bf16.mxu1 %vm856_vm2, %v5461_v58  ;;  %v5477_v10 = vsel %vm774_vm1, %v13634_v22, %v5429_v40 }
 0x31a   : > { %v5431_v28 = vpop.permute.xlu0 %5430 }
 0x31b   : > { %v5479_v41 = vsel %vm774_vm1, %v13637_v19, %v5431_v28 }
 0x31c   : > { %v5433_v8 = vpop.permute.xlu1 %5432 }
 0x31d   : > { %v5481_v9 = vsel %vm774_vm1, %v13653_v26, %v5433_v8 }
 0x31e   : > { %v5435_v26 = vpop.permute.xlu0 %5434 }
 0x31f   : > { %v5483_v29 = vsel %vm774_vm1, %v13647_v47, %v5435_v26 }
 0x320   : > { %12094 = vmatmul.mubr.msk.bf16.gmra.mxu1 %vm856_vm2, %v5463_v46  ;;  %v5437_v50 = vpop.permute.xlu1 %5436 }
 0x321   : > { %12097 = vmatprep.mubr.msk.bf16.mxu1 %vm856_vm2, %v5465_v51 }
 0x328   : > { %12098 = vmatmul.mubr.msk.bf16.gmra.mxu1 %vm856_vm2, %v5467_v57 }
 0x329   : > { %12101 = vmatprep.mubr.msk.bf16.mxu1 %vm856_vm2, %v5469_v14 }
 0x330   : > { %12102 = vmatmul.mubr.msk.bf16.gmra.mxu1 %vm856_vm2, %v5471_v34  ;;  %v5485_v34 = vsel %vm774_vm1, %v13661_v39, %v5437_v50 }
 0x331   : > { %12105 = vmatprep.mubr.msk.bf16.mxu1 %vm856_vm2, %v5473_v17 }
 0x332   : > { %v11963_v52 = vpop.f32.mrf.mxu1 }
 0x333   : > { %v2623_v43 = vmul.f32 %v11963_v52, %v13784_v63 }
 0x334   : > { %v2424_v32 = vpop.f32.mrf.mxu1 }
 0x335   : > { %v2621_v6 = vmul.f32 %v13784_v63, %v2424_v32  ;;  %v2677_v33 = vadd.f32 %v13792_v54, %v2623_v43 }
 0x336   : > { %v11964_v45 = vpop.f32.mrf.mxu1 }
 0x337   : > { %v2624_v24 = vmul.f32 %v11964_v45, %v13784_v63  ;;  %v2675_v55 = vadd.f32 %v13792_v54, %v2621_v6  ;;  %v2724_v56 = vmax.f32 %v2677_v33, 0.0 }
 0x338   : > { %v2427_v62 = vpop.f32.mrf.mxu1  ;;  %12106 = vmatmul.mubr.msk.bf16.gmra.mxu1 %vm856_vm2, %v5475_v59 }
 0x339   : > { %v2678_v1 = vadd.f32 %v13792_v54, %v2624_v24  ;;  %v2622_v61 = vmul.f32 %v13784_v63, %v2427_v62  ;;  %12109 = vmatprep.mubr.msk.bf16.mxu1 %vm856_vm2, %v5477_v10  ;;  %v2722_v37 = vmax.f32 %v2675_v55, 0.0  ;;  %v5439_v62 = vpop.permute.xlu0 %5438  ;;  %v5441_v55 = vpop.permute.xlu1 %5440 }
 0x33a   : > { %v11967_v20 = vpop.f32.mrf.mxu1  ;;  %v5489_v8 = vsel %vm774_vm1, %v13682_v44, %v5441_v55 }
 0x33b   : > { %v2725_v5 = vmax.f32 %v2678_v1, 0.0  ;;  %v2676_v23 = vadd.f32 %v13792_v54, %v2622_v61  ;;  %v2627_v12 = vmul.f32 %v11967_v20, %v13784_v63 }
 0x33c   : > { %v2440_v22 = vpop.f32.mrf.mxu1 }
 0x33d   : > { %v10778_v42 = vpack.c.bf16 %v2725_v5, %v2724_v56  ;;  %v2723_v25 = vmax.f32 %v2676_v23, 0.0  ;;  %v2625_v36 = vmul.f32 %v13784_v63, %v2440_v22  ;;  %v2681_v48 = vadd.f32 %v13792_v54, %v2627_v12 }
 0x33e   : > { %v11968_v21 = vpop.f32.mrf.mxu1  ;;  %v5487_v22 = vsel %vm774_vm1, %v13667_v11, %v5439_v62 }
 0x33f   : > { %11551 = vst [vmem:[#allocation4 + $0x8] sm:$0xff] %v10778_v42   ;;  %v10773_v35 = vpack.c.bf16 %v2723_v25, %v2722_v37  ;;  %v2628_v4 = vmul.f32 %v11968_v21, %v13784_v63  ;;  %v2679_v49 = vadd.f32 %v13792_v54, %v2625_v36  ;;  %v2728_v7 = vmax.f32 %v2681_v48, 0.0 }
 0x340   : > { %v2443_v15 = vpop.f32.mrf.mxu1  ;;  %12110 = vmatmul.mubr.msk.bf16.gmra.mxu1 %vm856_vm2, %v5479_v41 }
 0x341   : > { %10774 = vst [vmem:[#allocation4] sm:$0xff] %v10773_v35   ;;  %v2682_v3 = vadd.f32 %v13792_v54, %v2628_v4  ;;  %v2626_v27 = vmul.f32 %v13784_v63, %v2443_v15  ;;  %12113 = vmatprep.mubr.msk.bf16.mxu1 %vm856_vm2, %v5481_v9  ;;  %v2726_v46 = vmax.f32 %v2679_v49, 0.0 }
 0x342   : > { %v11971_v19 = vpop.f32.mrf.mxu1 }
 0x343   : > { %v2729_v18 = vmax.f32 %v2682_v3, 0.0  ;;  %v2680_v53 = vadd.f32 %v13792_v54, %v2626_v27  ;;  %v2631_v58 = vmul.f32 %v11971_v19, %v13784_v63  ;;  %v5443_v3 = vpop.permute.xlu0 %5442  ;;  %v5445_v27 = vpop.permute.xlu1 %5444 }
 0x344   : > { %v2456_v0 = vpop.f32.mrf.mxu1 }
 0x345   : > { %v10788_v51 = vpack.c.bf16 %v2729_v18, %v2728_v7  ;;  %v2727_v31 = vmax.f32 %v2680_v53, 0.0  ;;  %v2629_v2 = vmul.f32 %v13784_v63, %v2456_v0  ;;  %v2685_v52 = vadd.f32 %v13792_v54, %v2631_v58 }
 0x346   : > { %v11972_v57 = vpop.f32.mrf.mxu1  ;;  %v13823_v14 = vld [vmem:[#allocation4 + $0xc] sm:$0xf]  ;;  %v13825_v16 = vld [vmem:[#allocation4 + $0x8] sm:$0xf] }
 0x347   : > { %11553 = vst [vmem:[#allocation4 + $0x18] sm:$0xff] %v10788_v51   ;;  %v10783_v17 = vpack.c.bf16 %v2727_v31, %v2726_v46  ;;  %v2632_v43 = vmul.f32 %v11972_v57, %v13784_v63  ;;  %3110 = vrot.lane.b32.xlu0 %v13823_v14, %s12594_s12  ;;  %3108 = vrot.lane.b32.xlu1 %v13825_v16, %s12594_s12  ;;  %v2732_v59 = vmax.f32 %v2685_v52, 0.0 }
 0x348   : > { %v2459_v60 = vpop.f32.mrf.mxu1  ;;  %v2683_v32 = vadd.f32 %v13792_v54, %v2629_v2  ;;  %12114 = vmatmul.mubr.msk.bf16.gmra.mxu1 %vm856_vm2, %v5483_v29  ;;  %v13841_v6 = vld [vmem:[#allocation4 + $0x4] sm:$0xf]  ;;  %v13843_v45 = vld [vmem:[#allocation4] sm:$0xf]  ;;  %v5491_v46 = vsel %vm774_vm1, %v13685_v30, %v5443_v3  ;;  %v5493_v51 = vsel %vm774_vm1, %v13702_v13, %v5445_v27 }
 0x349   : > { %11552 = vst [vmem:[#allocation4 + $0x10] sm:$0xff] %v10783_v17   ;;  %v2686_v47 = vadd.f32 %v13792_v54, %v2632_v43  ;;  %v2630_v39 = vmul.f32 %v13784_v63, %v2459_v60  ;;  %12117 = vmatprep.mubr.msk.bf16.mxu1 %vm856_vm2, %v5485_v34  ;;  %v10125_v60 = vcombine.low %v13695_v38, %v13695_v38 }
 0x34a   : > { %v11975_v40 = vpop.f32.mrf.mxu1  ;;  %v2730_v61 = vmax.f32 %v2683_v32, 0.0 }
 0x34b   : > { %v2733_v33 = vmax.f32 %v2686_v47, 0.0  ;;  %v2684_v24 = vadd.f32 %v13792_v54, %v2630_v39  ;;  %v2635_v10 = vmul.f32 %v11975_v40, %v13784_v63  ;;  %3106 = vrot.lane.b32.xlu0 %v13841_v6, %s12594_s12  ;;  %3104 = vrot.lane.b32.xlu1 %v13843_v45, %s12594_s12 }
 0x34c   : > { %v2472_v1 = vpop.f32.mrf.mxu1 }
 0x34d   : > { %v10798_v20 = vpack.c.bf16 %v2733_v33, %v2732_v59  ;;  %v2731_v56 = vmax.f32 %v2684_v24, 0.0  ;;  %v2633_v5 = vmul.f32 %v13784_v63, %v2472_v1  ;;  %v2689_v42 = vadd.f32 %v13792_v54, %v2635_v10  ;;  %v5447_v59 = vpop.permute.xlu0 %5446 }
 0x34e   : > { %v11976_v23 = vpop.f32.mrf.mxu1  ;;  %v13853_v12 = vld [vmem:[#allocation4 + $0x1c] sm:$0xf]  ;;  %v13855_v28 = vld [vmem:[#allocation4 + $0x18] sm:$0xf] }
 0x34f   : > { %11555 = vst [vmem:[#allocation4 + $0x28] sm:$0xff] %v10798_v20   ;;  %v10793_v37 = vpack.c.bf16 %v2731_v56, %v2730_v61  ;;  %v2636_v25 = vmul.f32 %v11976_v23, %v13784_v63  ;;  %3118 = vrot.lane.b32.xlu0 %v13853_v12, %s12594_s12  ;;  %3116 = vrot.lane.b32.xlu1 %v13855_v28, %s12594_s12  ;;  %v2736_v4 = vmax.f32 %v2689_v42, 0.0 }
 0x350   : > { %v2475_v36 = vpop.f32.mrf.mxu1  ;;  %v2687_v21 = vadd.f32 %v13792_v54, %v2633_v5  ;;  %12118 = vmatmul.mubr.msk.bf16.gmra.mxu1 %vm856_vm2, %v5487_v22  ;;  %v13871_v35 = vld [vmem:[#allocation4 + $0x14] sm:$0xf]  ;;  %v13873_v48 = vld [vmem:[#allocation4 + $0x10] sm:$0xf]  ;;  %v5496_v20 = vsel %vm774_vm1, %v10125_v60, %v5447_v59 }
 0x351   : > { %11554 = vst [vmem:[#allocation4 + $0x20] sm:$0xff] %v10793_v37   ;;  %v2690_v11 = vadd.f32 %v13792_v54, %v2636_v25  ;;  %v2634_v44 = vmul.f32 %v13784_v63, %v2475_v36  ;;  %12121 = vmatprep.mubr.msk.bf16.mxu1 %vm856_vm2, %v5489_v8 }
 0x352   : > { %v11979_v41 = vpop.f32.mrf.mxu1  ;;  %v2734_v7 = vmax.f32 %v2687_v21, 0.0 }
 0x353   : > { %v2737_v9 = vmax.f32 %v2690_v11, 0.0  ;;  %v2688_v15 = vadd.f32 %v13792_v54, %v2634_v44  ;;  %v2639_v49 = vmul.f32 %v11979_v41, %v13784_v63  ;;  %3114 = vrot.lane.b32.xlu0 %v13871_v35, %s12594_s12  ;;  %3112 = vrot.lane.b32.xlu1 %v13873_v48, %s12594_s12 }
 0x354   : > { %v2488_v19 = vpop.f32.mrf.mxu1 }
 0x355   : > { %v10808_v18 = vpack.c.bf16 %v2737_v9, %v2736_v4  ;;  %v2735_v53 = vmax.f32 %v2688_v15, 0.0  ;;  %v2637_v58 = vmul.f32 %v13784_v63, %v2488_v19  ;;  %v2693_v2 = vadd.f32 %v13792_v54, %v2639_v49 }
 0x356   : > { %v11980_v26 = vpop.f32.mrf.mxu1  ;;  %v13883_v50 = vld [vmem:[#allocation4 + $0x2c] sm:$0xf]  ;;  %v13885_v0 = vld [vmem:[#allocation4 + $0x28] sm:$0xf] }
 0x357   : > { %11557 = vst [vmem:[#allocation4 + $0x38] sm:$0xff] %v10808_v18   ;;  %v10803_v31 = vpack.c.bf16 %v2735_v53, %v2734_v7  ;;  %v2640_v57 = vmul.f32 %v11980_v26, %v13784_v63  ;;  %3126 = vrot.lane.b32.xlu0 %v13883_v50, %s12594_s12  ;;  %3124 = vrot.lane.b32.xlu1 %v13885_v0, %s12594_s12  ;;  %v2740_v32 = vmax.f32 %v2693_v2, 0.0 }
 0x358   : > { %v2491_v29 = vpop.f32.mrf.mxu1  ;;  %v2691_v34 = vadd.f32 %v13792_v54, %v2637_v58  ;;  %12122 = vmatmul.mubr.msk.bf16.gmra.mxu1 %vm856_vm2, %v5491_v46  ;;  %v13901_v52 = vld [vmem:[#allocation4 + $0x24] sm:$0xf]  ;;  %v13903_v43 = vld [vmem:[#allocation4 + $0x20] sm:$0xf] }
 0x359   : > { %11556 = vst [vmem:[#allocation4 + $0x30] sm:$0xff] %v10803_v31   ;;  %v2694_v30 = vadd.f32 %v13792_v54, %v2640_v57  ;;  %v2638_v13 = vmul.f32 %v13784_v63, %v2491_v29  ;;  %12125 = vmatprep.mubr.msk.bf16.mxu1 %vm856_vm2, %v5493_v51 }
 0x35a   : > { %v11983_v17 = vpop.f32.mrf.mxu1  ;;  %v2738_v24 = vmax.f32 %v2691_v34, 0.0 }
 0x35b   : > { %v2741_v47 = vmax.f32 %v2694_v30, 0.0  ;;  %v2692_v39 = vadd.f32 %v13792_v54, %v2638_v13  ;;  %v2643_v40 = vmul.f32 %v11983_v17, %v13784_v63  ;;  %3122 = vrot.lane.b32.xlu0 %v13901_v52, %s12594_s12  ;;  %3120 = vrot.lane.b32.xlu1 %v13903_v43, %s12594_s12 }
 0x35c   : > { %v2504_v33 = vpop.f32.mrf.mxu1 }
 0x35d   : > { %v10818_v10 = vpack.c.bf16 %v2741_v47, %v2740_v32  ;;  %v2739_v62 = vmax.f32 %v2692_v39, 0.0  ;;  %v2641_v38 = vmul.f32 %v13784_v63, %v2504_v33  ;;  %v2697_v5 = vadd.f32 %v13792_v54, %v2643_v40 }
 0x35e   : > { %v11984_v55 = vpop.f32.mrf.mxu1  ;;  %v13915_v1 = vld [vmem:[#allocation4 + $0x3c] sm:$0xf]  ;;  %v13917_v61 = vld [vmem:[#allocation4 + $0x38] sm:$0xf] }
 0x35f   : > { %11559 = vst [vmem:[#allocation4 + $0x48] sm:$0xff] %v10818_v10   ;;  %v10813_v56 = vpack.c.bf16 %v2739_v62, %v2738_v24  ;;  %v2644_v23 = vmul.f32 %v11984_v55, %v13784_v63  ;;  %3134 = vrot.lane.b32.xlu0 %v13915_v1, %s12594_s12  ;;  %3132 = vrot.lane.b32.xlu1 %v13917_v61, %s12594_s12  ;;  %v2744_v11 = vmax.f32 %v2697_v5, 0.0 }
 0x360   : > { %v2507_v22 = vpop.f32.mrf.mxu1  ;;  %v2695_v8 = vadd.f32 %v13792_v54, %v2641_v38  ;;  %12126 = vmatmul.mubr.msk.bf16.gmra.mxu1 %vm856_vm2, %v5496_v20  ;;  %v13930_v36 = vld [vmem:[#allocation4 + $0x34] sm:$0xf]  ;;  %v13932_v21 = vld [vmem:[#allocation4 + $0x30] sm:$0xf] }
 0x361   : > { %11558 = vst [vmem:[#allocation4 + $0x40] sm:$0xff] %v10813_v56   ;;  %v2698_v37 = vadd.f32 %v13792_v54, %v2644_v23  ;;  %v2642_v42 = vmul.f32 %v13784_v63, %v2507_v22 }
 0x362   : > { %v11987_v25 = vpop.f32.mrf.mxu1  ;;  %v2742_v15 = vmax.f32 %v2695_v8, 0.0 }
 0x363   : > { %v2745_v44 = vmax.f32 %v2698_v37, 0.0  ;;  %v2696_v41 = vadd.f32 %v13792_v54, %v2642_v42  ;;  %v2647_v4 = vmul.f32 %v11987_v25, %v13784_v63  ;;  %3130 = vrot.lane.b32.xlu0 %v13930_v36, %s12594_s12  ;;  %3128 = vrot.lane.b32.xlu1 %v13932_v21, %s12594_s12 }
 0x364   : > { %v2520_v9 = vpop.f32.mrf.mxu1 }
 0x365   : > { %v10828_v49 = vpack.c.bf16 %v2745_v44, %v2744_v11  ;;  %v2743_v3 = vmax.f32 %v2696_v41, 0.0  ;;  %v2645_v27 = vmul.f32 %v13784_v63, %v2520_v9  ;;  %v2701_v58 = vadd.f32 %v13792_v54, %v2647_v4 }
 0x366   : > { %v11988_v19 = vpop.f32.mrf.mxu1  ;;  %v13941_v7 = vld [vmem:[#allocation4 + $0x4c] sm:$0xf]  ;;  %v13943_v18 = vld [vmem:[#allocation4 + $0x48] sm:$0xf] }
 0x367   : > { %11561 = vst [vmem:[#allocation4 + $0x58] sm:$0xff] %v10828_v49   ;;  %v10823_v53 = vpack.c.bf16 %v2743_v3, %v2742_v15  ;;  %v2648_v26 = vmul.f32 %v11988_v19, %v13784_v63  ;;  %3142 = vrot.lane.b32.xlu0 %v13941_v7, %s12594_s12  ;;  %3140 = vrot.lane.b32.xlu1 %v13943_v18, %s12594_s12  ;;  %v2748_v30 = vmax.f32 %v2701_v58, 0.0 }
 0x368   : > { %v2523_v46 = vpop.f32.mrf.mxu1  ;;  %v2699_v51 = vadd.f32 %v13792_v54, %v2645_v27  ;;  %v13954_v29 = vld [vmem:[#allocation4 + $0x44] sm:$0xf]  ;;  %v13956_v34 = vld [vmem:[#allocation4 + $0x40] sm:$0xf] }
 0x369   : > { %11560 = vst [vmem:[#allocation4 + $0x50] sm:$0xff] %v10823_v53   ;;  %v2702_v31 = vadd.f32 %v13792_v54, %v2648_v26  ;;  %v2646_v2 = vmul.f32 %v13784_v63, %v2523_v46 }
 0x36a   : > { %v11991_v57 = vpop.f32.mrf.mxu1  ;;  %v2746_v47 = vmax.f32 %v2699_v51, 0.0 }
 0x36b   : > { %v2749_v13 = vmax.f32 %v2702_v31, 0.0  ;;  %v2700_v17 = vadd.f32 %v13792_v54, %v2646_v2  ;;  %v2651_v60 = vmul.f32 %v11991_v57, %v13784_v63  ;;  %3138 = vrot.lane.b32.xlu0 %v13954_v29, %s12594_s12  ;;  %3136 = vrot.lane.b32.xlu1 %v13956_v34, %s12594_s12 }
 0x36c   : > { %v2536_v32 = vpop.f32.mrf.mxu1 }
 0x36d   : > { %v10838_v39 = vpack.c.bf16 %v2749_v13, %v2748_v30  ;;  %v2747_v40 = vmax.f32 %v2700_v17, 0.0  ;;  %v2649_v59 = vmul.f32 %v13784_v63, %v2536_v32  ;;  %v2705_v38 = vadd.f32 %v13792_v54, %v2651_v60 }
 0x36e   : > { %v11992_v33 = vpop.f32.mrf.mxu1  ;;  %v13965_v24 = vld [vmem:[#allocation4 + $0x5c] sm:$0xf]  ;;  %v13967_v10 = vld [vmem:[#allocation4 + $0x58] sm:$0xf] }
 0x36f   : > { %11563 = vst [vmem:[#allocation4 + $0x68] sm:$0xff] %v10838_v39   ;;  %v10833_v62 = vpack.c.bf16 %v2747_v40, %v2746_v47  ;;  %v2652_v55 = vmul.f32 %v11992_v33, %v13784_v63  ;;  %3150 = vrot.lane.b32.xlu0 %v13965_v24, %s12594_s12  ;;  %3148 = vrot.lane.b32.xlu1 %v13967_v10, %s12594_s12  ;;  %v2752_v42 = vmax.f32 %v2705_v38, 0.0 }
 0x370   : > { %v2539_v20 = vpop.f32.mrf.mxu1  ;;  %v2703_v56 = vadd.f32 %v13792_v54, %v2649_v59  ;;  %v13978_v8 = vld [vmem:[#allocation4 + $0x54] sm:$0xf]  ;;  %v13980_v37 = vld [vmem:[#allocation4 + $0x50] sm:$0xf] }
 0x371   : > { %11562 = vst [vmem:[#allocation4 + $0x60] sm:$0xff] %v10833_v62   ;;  %v2706_v5 = vadd.f32 %v13792_v54, %v2652_v55  ;;  %v2650_v23 = vmul.f32 %v13784_v63, %v2539_v20 }
 0x372   : > { %v11995_v22 = vpop.f32.mrf.mxu1  ;;  %v2750_v4 = vmax.f32 %v2703_v56, 0.0 }
 0x373   : > { %v2753_v25 = vmax.f32 %v2706_v5, 0.0  ;;  %v2704_v11 = vadd.f32 %v13792_v54, %v2650_v23  ;;  %v2655_v44 = vmul.f32 %v11995_v22, %v13784_v63  ;;  %3146 = vrot.lane.b32.xlu0 %v13978_v8, %s12594_s12  ;;  %3144 = vrot.lane.b32.xlu1 %v13980_v37, %s12594_s12 }
 0x374   : > { %v2552_v41 = vpop.f32.mrf.mxu1 }
 0x375   : > { %v10848_v9 = vpack.c.bf16 %v2753_v25, %v2752_v42  ;;  %v2751_v15 = vmax.f32 %v2704_v11, 0.0  ;;  %v2653_v49 = vmul.f32 %v13784_v63, %v2552_v41  ;;  %v2709_v58 = vadd.f32 %v13792_v54, %v2655_v44 }
 0x376   : > { %v11996_v3 = vpop.f32.mrf.mxu1  ;;  %v13989_v27 = vld [vmem:[#allocation4 + $0x6c] sm:$0xf]  ;;  %v13991_v19 = vld [vmem:[#allocation4 + $0x68] sm:$0xf] }
 0x377   : > { %11565 = vst [vmem:[#allocation4 + $0x78] sm:$0xff] %v10848_v9   ;;  %v10843_v53 = vpack.c.bf16 %v2751_v15, %v2750_v4  ;;  %v2656_v26 = vmul.f32 %v11996_v3, %v13784_v63  ;;  %3158 = vrot.lane.b32.xlu0 %v13989_v27, %s12594_s12  ;;  %3156 = vrot.lane.b32.xlu1 %v13991_v19, %s12594_s12  ;;  %v2756_v17 = vmax.f32 %v2709_v58, 0.0 }
 0x378   : > { %v2555_v46 = vpop.f32.mrf.mxu1  ;;  %v2707_v51 = vadd.f32 %v13792_v54, %v2653_v49  ;;  %v14002_v30 = vld [vmem:[#allocation4 + $0x64] sm:$0xf]  ;;  %v14004_v13 = vld [vmem:[#allocation4 + $0x60] sm:$0xf] }
 0x379   : > { %11564 = vst [vmem:[#allocation4 + $0x70] sm:$0xff] %v10843_v53   ;;  %v2710_v31 = vadd.f32 %v13792_v54, %v2656_v26  ;;  %v2654_v2 = vmul.f32 %v13784_v63, %v2555_v46 }
 0x37a   : > { %v11999_v57 = vpop.f32.mrf.mxu1  ;;  %v2754_v40 = vmax.f32 %v2707_v51, 0.0 }
 0x37b   : > { %v2757_v60 = vmax.f32 %v2710_v31, 0.0  ;;  %v2708_v32 = vadd.f32 %v13792_v54, %v2654_v2  ;;  %v2659_v47 = vmul.f32 %v11999_v57, %v13784_v63  ;;  %3154 = vrot.lane.b32.xlu0 %v14002_v30, %s12594_s12  ;;  %3152 = vrot.lane.b32.xlu1 %v14004_v13, %s12594_s12 }
 0x37c   : > { %v2568_v39 = vpop.f32.mrf.mxu1 }
 0x37d   : > { %v10858_v59 = vpack.c.bf16 %v2757_v60, %v2756_v17  ;;  %v2755_v33 = vmax.f32 %v2708_v32, 0.0  ;;  %v2657_v62 = vmul.f32 %v13784_v63, %v2568_v39  ;;  %v2713_v5 = vadd.f32 %v13792_v54, %v2659_v47  ;;  %v12417_v32 = vld [vmem:[%s16493_s7 + $0x38] sm:$0xff]   ;;  %v12422_v47 = vld [vmem:[%s16493_s7 + $0x30] sm:$0xff]  }
 0x37e   : > { %v12000_v38 = vpop.f32.mrf.mxu1  ;;  %v14013_v55 = vld [vmem:[#allocation4 + $0x7c] sm:$0xf]  ;;  %v14015_v20 = vld [vmem:[#allocation4 + $0x78] sm:$0xf]  ;;  %12009 = vmatprep.subr.bf16.mxu0 %v12417_v32 }
 0x37f   : > { %11567 = vst [vmem:[#allocation4 + $0x88] sm:$0xff] %v10858_v59   ;;  %v10853_v56 = vpack.c.bf16 %v2755_v33, %v2754_v40  ;;  %v2660_v23 = vmul.f32 %v12000_v38, %v13784_v63  ;;  %3166 = vrot.lane.b32.xlu0 %v14013_v55, %s12594_s12  ;;  %3164 = vrot.lane.b32.xlu1 %v14015_v20, %s12594_s12  ;;  %v2760_v4 = vmax.f32 %v2713_v5, 0.0 }
 0x380   : > { %v2571_v22 = vpop.f32.mrf.mxu1  ;;  %v2711_v42 = vadd.f32 %v13792_v54, %v2657_v62  ;;  %v14026_v44 = vld [vmem:[#allocation4 + $0x74] sm:$0xf]  ;;  %v14028_v41 = vld [vmem:[#allocation4 + $0x70] sm:$0xf]  ;;  %12010 = vmatpush3.bf16.msra.mxu0 %v12417_v32 }
 0x381   : > { %11566 = vst [vmem:[#allocation4 + $0x80] sm:$0xff] %v10853_v56   ;;  %v2714_v25 = vadd.f32 %v13792_v54, %v2660_v23  ;;  %v2658_v11 = vmul.f32 %v13784_v63, %v2571_v22  ;;  %12011 = vmatprep.subr.bf16.mxu0 %v12422_v47 }
 0x382   : > { %v2758_v49 = vmax.f32 %v2711_v42, 0.0  ;;  %v12425_v42 = vld [vmem:[%s16493_s7 + $0x28] sm:$0xff]  }
 0x383   : > { %v2761_v9 = vmax.f32 %v2714_v25, 0.0  ;;  %v2712_v15 = vadd.f32 %v13792_v54, %v2658_v11  ;;  %3162 = vrot.lane.b32.xlu0 %v14026_v44, %s12594_s12  ;;  %3160 = vrot.lane.b32.xlu1 %v14028_v41, %s12594_s12 }
 0x384   : > { %12012 = vmatpush3.bf16.msra.mxu0 %v12422_v47 }
 0x385   : > { %v10868_v3 = vpack.c.bf16 %v2761_v9, %v2760_v4  ;;  %v2759_v53 = vmax.f32 %v2712_v15, 0.0  ;;  %12013 = vmatprep.subr.bf16.mxu0 %v12425_v42 }
 0x386   : > { %v14035_v58 = vld [vmem:[#allocation4 + $0x8c] sm:$0xf]  ;;  %v14037_v26 = vld [vmem:[#allocation4 + $0x88] sm:$0xf] }
 0x387   : > { %11569 = vst [vmem:[#allocation4 + $0x98] sm:$0xff] %v10868_v3   ;;  %v10863_v46 = vpack.c.bf16 %v2759_v53, %v2758_v49  ;;  %3174 = vrot.lane.b32.xlu0 %v14035_v58, %s12594_s12  ;;  %3172 = vrot.lane.b32.xlu1 %v14037_v26, %s12594_s12 }
 0x388   : > { %v14043_v51 = vld [vmem:[#allocation4 + $0x84] sm:$0xf]  ;;  %v14045_v31 = vld [vmem:[#allocation4 + $0x80] sm:$0xf]  ;;  %12014 = vmatpush3.bf16.msra.mxu0 %v12425_v42 }
 0x389   : > { %11568 = vst [vmem:[#allocation4 + $0x90] sm:$0xff] %v10863_v46  }
 0x38b   : > { %3170 = vrot.lane.b32.xlu0 %v14043_v51, %s12594_s12  ;;  %3168 = vrot.lane.b32.xlu1 %v14045_v31, %s12594_s12 }
 0x38e   : > { %v14051_v2 = vld [vmem:[#allocation4 + $0x9c] sm:$0xf]  ;;  %v14053_v57 = vld [vmem:[#allocation4 + $0x98] sm:$0xf] }
 0x38f   : > { %3182 = vrot.lane.b32.xlu0 %v14051_v2, %s12594_s12  ;;  %3180 = vrot.lane.b32.xlu1 %v14053_v57, %s12594_s12 }
 0x390   : > { %v14059_v17 = vld [vmem:[#allocation4 + $0x94] sm:$0xf]  ;;  %v14061_v60 = vld [vmem:[#allocation4 + $0x90] sm:$0xf] }
 0x393   : > { %3178 = vrot.lane.b32.xlu0 %v14059_v17, %s12594_s12  ;;  %3176 = vrot.lane.b32.xlu1 %v14061_v60, %s12594_s12 }
 0x3b8   : > { %v12003_v62 = vpop.f32.mrf.mxu1 }
 0x3b9   : > { %v3109_v39 = vpop.permute.xlu1 %3108  ;;  %v3111_v40 = vpop.permute.xlu0 %3110  ;;  %v2663_v38 = vmul.f32 %v12003_v62, %v13784_v63 }
 0x3ba   : > { %v3247_v59 = vmax.bf16 %v3109_v39, %v13825_v16  ;;  %v3248_v33 = vmax.bf16 %v3111_v40, %v13823_v14  ;;  %v2584_v56 = vpop.f32.mrf.mxu1 }
 0x3bb   : > { %v2661_v5 = vmul.f32 %v13784_v63, %v2584_v56  ;;  %v2717_v11 = vadd.f32 %v13792_v54, %v2663_v38 }
 0x3bc   : > { %3294 = vst.msk [vmem:[#allocation5 + $0x8] sm:$0xf] %vm1802_vm3, %v3247_v59  ;;  %3295 = vst.msk [vmem:[#allocation5 + $0xc] sm:$0xf] %vm1802_vm3, %v3248_v33  ;;  %v12004_v25 = vpop.f32.mrf.mxu1 }
 0x3bd   : > { %v3105_v23 = vpop.permute.xlu1 %3104  ;;  %v3107_v22 = vpop.permute.xlu0 %3106  ;;  %v2664_v4 = vmul.f32 %v12004_v25, %v13784_v63  ;;  %v2715_v9 = vadd.f32 %v13792_v54, %v2661_v5  ;;  %v2764_v47 = vmax.f32 %v2717_v11, 0.0  ;;  %v16510_v11 = vmov 0 }
 0x3be   : > { %v3245_v16 = vmax.bf16 %v3105_v23, %v13843_v45  ;;  %v3246_v14 = vmax.bf16 %v3107_v22, %v13841_v6  ;;  %v2587_v15 = vpop.f32.mrf.mxu1  ;;  %v16511_v11 = vsel %vm14103_vm6, 4294967295, %v16510_v11 }
 0x3bf   : > { %v2718_v49 = vadd.f32 %v13792_v54, %v2664_v4  ;;  %v2662_v45 = vmul.f32 %v13784_v63, %v2587_v15  ;;  %v2762_v33 = vmax.f32 %v2715_v9, 0.0  ;;  %16512 = vst [vmem:[#allocation11_spill] sm:$0xff] %v16511_v11  ;;  %v3007_v4 = vld [vmem:[#allocation4 + $0xb8] sm:$0xf] }
 0x3c0   : > { %3292 = vst.msk [vmem:[#allocation5] sm:$0xf] %vm1802_vm3, %v3245_v16  ;;  %3293 = vst.msk [vmem:[#allocation5 + $0x4] sm:$0xf] %vm1802_vm3, %v3246_v14  ;;  %v12007_v32 = vpop.f32.mrf.mxu1 }
 0x3c1   : > { %v3117_v3 = vpop.permute.xlu1 %3116  ;;  %v3119_v6 = vpop.permute.xlu0 %3118  ;;  %v2765_v39 = vmax.f32 %v2718_v49, 0.0  ;;  %v2716_v40 = vadd.f32 %v13792_v54, %v2662_v45  ;;  %v2667_v59 = vmul.f32 %v12007_v32, %v13784_v63 }
 0x3c2   : > { %v3251_v53 = vmax.bf16 %v3117_v3, %v13855_v28  ;;  %v3252_v46 = vmax.bf16 %v3119_v6, %v13853_v12  ;;  %v2600_v62 = vpop.f32.mrf.mxu1 }
 0x3c3   : > { %v10878_v38 = vpack.c.bf16 %v2765_v39, %v2764_v47  ;;  %v2763_v56 = vmax.f32 %v2716_v40, 0.0  ;;  %v2721_v28 = vadd.f32 %v13792_v54, %v2667_v59  ;;  %v2665_v12 = vmul.f32 %v13784_v63, %v2600_v62 }
 0x3c4   : > { %3298 = vst.msk [vmem:[#allocation5 + $0x18] sm:$0xf] %vm1802_vm3, %v3251_v53  ;;  %3299 = vst.msk [vmem:[#allocation5 + $0x1c] sm:$0xf] %vm1802_vm3, %v3252_v46  ;;  %v12008_v16 = vpop.f32.mrf.mxu1 }
 0x3c5   : > { %v3113_v5 = vpop.permute.xlu1 %3112  ;;  %v3115_v23 = vpop.permute.xlu0 %3114  ;;  %11571 = vst [vmem:[#allocation4 + $0xa8] sm:$0xff] %v10878_v38   ;;  %v10873_v14 = vpack.c.bf16 %v2763_v56, %v2762_v33  ;;  %v2768_v25 = vmax.f32 %v2721_v28, 0.0  ;;  %v2719_v15 = vadd.f32 %v13792_v54, %v2665_v12 }
 0x3c6   : > { %v3249_v22 = vmax.bf16 %v3113_v5, %v13873_v48  ;;  %v3250_v42 = vmax.bf16 %v3115_v23, %v13871_v35  ;;  %v2603_v9 = vpop.f32.mrf.mxu1  ;;  %v14112_v35 = vld [vmem:[%s16488_s2] ss:$0 sm:$0xff] }
 0x3c7   : > { %11570 = vst [vmem:[#allocation4 + $0xa0] sm:$0xff] %v10873_v14   ;;  %v10465_v48 = vpack.c.bf16 %v2768_v25, %v2768_v25  ;;  %v2666_v49 = vmul.f32 %v13784_v63, %v2603_v9  ;;  %v14127_v63 = vld [vmem:[%s16489_s3] ss:$0 sm:$0xff] }
 0x3c8   : > { %3296 = vst.msk [vmem:[#allocation5 + $0x10] sm:$0xf] %vm1802_vm3, %v3249_v22  ;;  %3297 = vst.msk [vmem:[#allocation5 + $0x14] sm:$0xf] %vm1802_vm3, %v3250_v42  ;;  %v12083_v46 = vpop.f32.mrf.mxu1 }
 0x3c9   : > { %v3125_v45 = vpop.permute.xlu1 %3124  ;;  %v3127_v3 = vpop.permute.xlu0 %3126  ;;  %v3008_v32 = vsel %vm14103_vm6, %v10465_v48, %v3007_v4  ;;  %v2720_v47 = vadd.f32 %v13792_v54, %v2666_v49  ;;  %v5810_v39 = vmul.f32 %v12083_v46, %v14112_v35  ;;  %v12430_v54 = vld [vmem:[%s16493_s7 + $0x20] sm:$0xff]  }
 0x3ca   : > { %v3255_v6 = vmax.bf16 %v3125_v45, %v13885_v0  ;;  %v3256_v53 = vmax.bf16 %v3127_v3, %v13883_v50  ;;  %3009 = vst [vmem:[#allocation4 + $0xb8] sm:$0xf] %v3008_v32  ;;  %v5611_v0 = vpop.f32.mrf.mxu1  ;;  %v2766_v50 = vmax.f32 %v2719_v15, 0.0  ;;  %12015 = vmatprep.subr.bf16.mxu0 %v12430_v54 }
 0x3cb   : > { %v2767_v40 = vmax.f32 %v2720_v47, 0.0  ;;  %v5808_v59 = vmul.f32 %v14112_v35, %v5611_v0  ;;  %v5864_v22 = vadd.f32 %v14127_v63, %v5810_v39  ;;  %12016 = vmatpush3.bf16.msra.mxu0 %v12430_v54 }
 0x3cc   : > { %3302 = vst.msk [vmem:[#allocation5 + $0x28] sm:$0xf] %vm1802_vm3, %v3255_v6  ;;  %3303 = vst.msk [vmem:[#allocation5 + $0x2c] sm:$0xf] %vm1802_vm3, %v3256_v53  ;;  %v12084_v28 = vpop.f32.mrf.mxu1  ;;  %v3053_v12 = vld [vmem:[#allocation4 + $0xac] sm:$0xf] }
 0x3cd   : > { %v3121_v33 = vpop.permute.xlu1 %3120  ;;  %v3123_v62 = vpop.permute.xlu0 %3122  ;;  %v3052_v5 = vld [vmem:[#allocation4 + $0xa8] sm:$0xf]  ;;  %v10883_v23 = vpack.c.bf16 %v2767_v40, %v2766_v50  ;;  %v5811_v42 = vmul.f32 %v12084_v28, %v14112_v35  ;;  %3190 = vrot.lane.b32.xlu0 %v3053_v12, %s12594_s12  ;;  %v5911_v3 = vmax.f32 %v5864_v22, 0.0 }
 0x3ce   : > { %v3253_v38 = vmax.bf16 %v3121_v33, %v13903_v43  ;;  %v3254_v56 = vmax.bf16 %v3123_v62, %v13901_v52  ;;  %3188 = vrot.lane.b32.xlu1 %v3052_v5, %s12594_s12  ;;  %v5614_v16 = vpop.f32.mrf.mxu1  ;;  %v5862_v52 = vadd.f32 %v14127_v63, %v5808_v59  ;;  %v3051_v49 = vld [vmem:[#allocation4 + $0xa4] sm:$0xf]  ;;  %v3050_v45 = vld [vmem:[#allocation4 + $0xa0] sm:$0xf] }
 0x3cf   : > { %11572 = vst [vmem:[#allocation4 + $0xb0] sm:$0xff] %v10883_v23   ;;  %v5865_v43 = vadd.f32 %v14127_v63, %v5811_v42  ;;  %v5809_v14 = vmul.f32 %v14112_v35, %v5614_v16  ;;  %v12432_v42 = vld [vmem:[%s16493_s7 + $0x18] sm:$0xff]  }
 0x3d0   : > { %3300 = vst.msk [vmem:[#allocation5 + $0x20] sm:$0xf] %vm1802_vm3, %v3253_v38  ;;  %3301 = vst.msk [vmem:[#allocation5 + $0x24] sm:$0xf] %vm1802_vm3, %v3254_v56  ;;  %v12087_v15 = vpop.f32.mrf.mxu1  ;;  %v5909_v32 = vmax.f32 %v5862_v52, 0.0  ;;  %12017 = vmatprep.subr.bf16.mxu0 %v12432_v42 }
 0x3d1   : > { %v3133_v25 = vpop.permute.xlu1 %3132  ;;  %v3135_v4 = vpop.permute.xlu0 %3134  ;;  %v5912_v6 = vmax.f32 %v5865_v43, 0.0  ;;  %v5863_v53 = vadd.f32 %v14127_v63, %v5809_v14  ;;  %v5814_v46 = vmul.f32 %v12087_v15, %v14112_v35  ;;  %3186 = vrot.lane.b32.xlu0 %v3051_v49, %s12594_s12  ;;  %v3056_v62 = vld [vmem:[#allocation4 + $0xb8] sm:$0xf]  ;;  %12018 = vmatpush3.bf16.msra.mxu0 %v12432_v42 }
 0x3d2   : > { %v3259_v9 = vmax.bf16 %v3133_v25, %v13917_v61  ;;  %v3260_v48 = vmax.bf16 %v3135_v4, %v13915_v1  ;;  %3184 = vrot.lane.b32.xlu1 %v3050_v45, %s12594_s12  ;;  %v5627_v61 = vpop.f32.mrf.mxu1 }
 0x3d3   : > { %v11100_v1 = vpack.c.bf16 %v5912_v6, %v5911_v3  ;;  %v5910_v47 = vmax.f32 %v5863_v53, 0.0  ;;  %v5812_v39 = vmul.f32 %v14112_v35, %v5627_v61  ;;  %v5868_v38 = vadd.f32 %v14127_v63, %v5814_v46 }
 0x3d4   : > { %3306 = vst.msk [vmem:[#allocation5 + $0x38] sm:$0xf] %vm1802_vm3, %v3259_v9  ;;  %3307 = vst.msk [vmem:[#allocation5 + $0x3c] sm:$0xf] %vm1802_vm3, %v3260_v48  ;;  %v12088_v33 = vpop.f32.mrf.mxu1 }
 0x3d5   : > { %v3129_v0 = vpop.permute.xlu1 %3128  ;;  %v3131_v50 = vpop.permute.xlu0 %3130  ;;  %11617 = vst [vmem:[#allocation2 + $0x8] sm:$0xff] %v11100_v1   ;;  %v11095_v54 = vpack.c.bf16 %v5910_v47, %v5909_v32  ;;  %v5815_v56 = vmul.f32 %v12088_v33, %v14112_v35  ;;  %v5866_v28 = vadd.f32 %v14127_v63, %v5812_v39  ;;  %v5915_v25 = vmax.f32 %v5868_v38, 0.0 }
 0x3d6   : > { %v3257_v40 = vmax.bf16 %v3129_v0, %v13932_v21  ;;  %v3258_v59 = vmax.bf16 %v3131_v50, %v13930_v36  ;;  %3196 = vrot.lane.b32.xlu1 %v3056_v62, %s12594_s12  ;;  %v5630_v12 = vpop.f32.mrf.mxu1  ;;  %v3055_v21 = vld [vmem:[#allocation4 + $0xb4] sm:$0xf]  ;;  %v3054_v14 = vld [vmem:[#allocation4 + $0xb0] sm:$0xf] }
 0x3d7   : > { %11096 = vst [vmem:[#allocation2] sm:$0xff] %v11095_v54   ;;  %v5869_v36 = vadd.f32 %v14127_v63, %v5815_v56  ;;  %v5813_v5 = vmul.f32 %v14112_v35, %v5630_v12  ;;  %3194 = vrot.lane.b32.xlu0 %v3055_v21, %s12594_s12  ;;  %v5913_v15 = vmax.f32 %v5866_v28, 0.0 }
 0x3d8   : > { %3304 = vst.msk [vmem:[#allocation5 + $0x30] sm:$0xf] %vm1802_vm3, %v3257_v40  ;;  %3305 = vst.msk [vmem:[#allocation5 + $0x34] sm:$0xf] %vm1802_vm3, %v3258_v59  ;;  %v12091_v43 = vpop.f32.mrf.mxu1 }
 0x3d9   : > { %v3141_v23 = vpop.permute.xlu1 %3140  ;;  %v3143_v22 = vpop.permute.xlu0 %3142  ;;  %v5916_v4 = vmax.f32 %v5869_v36, 0.0  ;;  %v5867_v9 = vadd.f32 %v14127_v63, %v5813_v5  ;;  %v5818_v48 = vmul.f32 %v12091_v43, %v14112_v35 }
 0x3da   : > { %v3263_v16 = vmax.bf16 %v3141_v23, %v13943_v18  ;;  %v3264_v52 = vmax.bf16 %v3143_v22, %v13941_v7  ;;  %3192 = vrot.lane.b32.xlu1 %v3054_v14, %s12594_s12  ;;  %v5643_v49 = vpop.f32.mrf.mxu1 }
 0x3db   : > { %v11110_v18 = vpack.c.bf16 %v5916_v4, %v5915_v25  ;;  %v5914_v7 = vmax.f32 %v5867_v9, 0.0  ;;  %v5872_v45 = vadd.f32 %v14127_v63, %v5818_v48  ;;  %v5816_v3 = vmul.f32 %v14112_v35, %v5643_v49 }
 0x3dc   : > { %3310 = vst.msk [vmem:[#allocation5 + $0x48] sm:$0xf] %vm1802_vm3, %v3263_v16  ;;  %3311 = vst.msk [vmem:[#allocation5 + $0x4c] sm:$0xf] %vm1802_vm3, %v3264_v52  ;;  %v12092_v32 = vpop.f32.mrf.mxu1  ;;  %v6195_v1 = vld [vmem:[#allocation2 + $0xc] sm:$0xf] }
 0x3dd   : > { %v3137_v6 = vpop.permute.xlu1 %3136  ;;  %v3139_v53 = vpop.permute.xlu0 %3138  ;;  %v6194_v47 = vld [vmem:[#allocation2 + $0x8] sm:$0xf]  ;;  %11619 = vst [vmem:[#allocation2 + $0x18] sm:$0xff] %v11110_v18   ;;  %v11105_v39 = vpack.c.bf16 %v5914_v7, %v5913_v15  ;;  %v5819_v0 = vmul.f32 %v12092_v32, %v14112_v35  ;;  %v5870_v50 = vadd.f32 %v14127_v63, %v5816_v3 }
 0x3de   : > { %v3261_v46 = vmax.bf16 %v3137_v6, %v13956_v34  ;;  %v3262_v61 = vmax.bf16 %v3139_v53, %v13954_v29  ;;  %6292 = vrot.lane.b32.xlu1 %v6195_v1, %s12594_s12  ;;  %6290 = vrot.lane.b32.xlu0 %v6194_v47, %s12594_s12  ;;  %v5646_v34 = vpop.f32.mrf.mxu1  ;;  %v5919_v29 = vmax.f32 %v5872_v45, 0.0  ;;  %v6193_v28 = vld [vmem:[#allocation2 + $0x4] sm:$0xf]  ;;  %v6192_v12 = vld [vmem:[#allocation2] sm:$0xf] }
 0x3df   : > { %11618 = vst [vmem:[#allocation2 + $0x10] sm:$0xff] %v11105_v39   ;;  %v5873_v40 = vadd.f32 %v14127_v63, %v5819_v0  ;;  %v5817_v59 = vmul.f32 %v14112_v35, %v5646_v34  ;;  %v5917_v23 = vmax.f32 %v5870_v50, 0.0  ;;  %v12518_v11 = vld [vmem:[#allocation2] sm:$0xf] }
 0x3e0   : > { %3308 = vst.msk [vmem:[#allocation5 + $0x40] sm:$0xf] %vm1802_vm3, %v3261_v46  ;;  %3309 = vst.msk [vmem:[#allocation5 + $0x44] sm:$0xf] %vm1802_vm3, %v3262_v61  ;;  %v12095_v56 = vpop.f32.mrf.mxu1 }
 0x3e1   : > { %v3149_v33 = vpop.permute.xlu1 %3148  ;;  %v3151_v62 = vpop.permute.xlu0 %3150  ;;  %v5920_v21 = vmax.f32 %v5873_v40, 0.0  ;;  %v5871_v36 = vadd.f32 %v14127_v63, %v5817_v59  ;;  %v5822_v5 = vmul.f32 %v12095_v56, %v14112_v35 }
 0x3e2   : > { %v3267_v54 = vmax.bf16 %v3149_v33, %v13967_v10  ;;  %v3268_v38 = vmax.bf16 %v3151_v62, %v13965_v24  ;;  %6288 = vrot.lane.b32.xlu1 %v6193_v28, %s12594_s12  ;;  %6286 = vrot.lane.b32.xlu0 %v6192_v12, %s12594_s12  ;;  %v5659_v10 = vpop.f32.mrf.mxu1  ;;  %v12437_v24 = vld [vmem:[%s16493_s7 + $0x10] sm:$0xff]  }
 0x3e3   : > { %v11120_v22 = vpack.c.bf16 %v5920_v21, %v5919_v29  ;;  %v5918_v42 = vmax.f32 %v5871_v36, 0.0  ;;  %v5876_v16 = vadd.f32 %v14127_v63, %v5822_v5  ;;  %v5820_v52 = vmul.f32 %v14112_v35, %v5659_v10  ;;  %12019 = vmatprep.subr.bf16.mxu0 %v12437_v24 }
 0x3e4   : > { %3314 = vst.msk [vmem:[#allocation5 + $0x58] sm:$0xf] %vm1802_vm3, %v3267_v54  ;;  %3315 = vst.msk [vmem:[#allocation5 + $0x5c] sm:$0xf] %vm1802_vm3, %v3268_v38  ;;  %v12096_v9 = vpop.f32.mrf.mxu1  ;;  %v6199_v48 = vld [vmem:[#allocation2 + $0x1c] sm:$0xf]  ;;  %12020 = vmatpush3.bf16.msra.mxu0 %v12437_v24 }
 0x3e5   : > { %v3145_v43 = vpop.permute.xlu1 %3144  ;;  %v3147_v14 = vpop.permute.xlu0 %3146  ;;  %v6198_v15 = vld [vmem:[#allocation2 + $0x18] sm:$0xf]  ;;  %11621 = vst [vmem:[#allocation2 + $0x28] sm:$0xff] %v11120_v22   ;;  %v11115_v49 = vpack.c.bf16 %v5918_v42, %v5917_v23  ;;  %v5874_v18 = vadd.f32 %v14127_v63, %v5820_v52  ;;  %v5823_v7 = vmul.f32 %v12096_v9, %v14112_v35  ;;  %v12440_v42 = vld [vmem:[%s16493_s7 + $0x8] sm:$0xff]  }
 0x3e6   : > { %v3265_v25 = vmax.bf16 %v3145_v43, %v13980_v37  ;;  %v3266_v4 = vmax.bf16 %v3147_v14, %v13978_v8  ;;  %6300 = vrot.lane.b32.xlu1 %v6199_v48, %s12594_s12  ;;  %6298 = vrot.lane.b32.xlu0 %v6198_v15, %s12594_s12  ;;  %v5662_v37 = vpop.f32.mrf.mxu1  ;;  %v5923_v8 = vmax.f32 %v5876_v16, 0.0  ;;  %v6197_v1 = vld [vmem:[#allocation2 + $0x14] sm:$0xf]  ;;  %v6196_v47 = vld [vmem:[#allocation2 + $0x10] sm:$0xf] }
 0x3e7   : > { %11620 = vst [vmem:[#allocation2 + $0x20] sm:$0xff] %v11115_v49   ;;  %v5877_v45 = vadd.f32 %v14127_v63, %v5823_v7  ;;  %v5821_v3 = vmul.f32 %v14112_v35, %v5662_v37  ;;  %v5921_v39 = vmax.f32 %v5874_v18, 0.0  ;;  %12021 = vmatprep.subr.bf16.mxu0 %v12440_v42 }
 0x3e8   : > { %3312 = vst.msk [vmem:[#allocation5 + $0x50] sm:$0xf] %vm1802_vm3, %v3265_v25  ;;  %3313 = vst.msk [vmem:[#allocation5 + $0x54] sm:$0xf] %vm1802_vm3, %v3266_v4  ;;  %v12099_v32 = vpop.f32.mrf.mxu1  ;;  %12022 = vmatpush3.bf16.msra.mxu0 %v12440_v42 }
 0x3e9   : > { %v3157_v6 = vpop.permute.xlu1 %3156  ;;  %v3159_v53 = vpop.permute.xlu0 %3158  ;;  %v5924_v0 = vmax.f32 %v5877_v45, 0.0  ;;  %v5875_v50 = vadd.f32 %v14127_v63, %v5821_v3  ;;  %v5826_v34 = vmul.f32 %v12099_v32, %v14112_v35 }
 0x3ea   : > { %v3271_v46 = vmax.bf16 %v3157_v6, %v13991_v19  ;;  %v3272_v61 = vmax.bf16 %v3159_v53, %v13989_v27  ;;  %6296 = vrot.lane.b32.xlu1 %v6197_v1, %s12594_s12  ;;  %6294 = vrot.lane.b32.xlu0 %v6196_v47, %s12594_s12  ;;  %v5675_v19 = vpop.f32.mrf.mxu1 }
 0x3eb   : > { %v11130_v29 = vpack.c.bf16 %v5924_v0, %v5923_v8  ;;  %v5922_v27 = vmax.f32 %v5875_v50, 0.0  ;;  %v5880_v40 = vadd.f32 %v14127_v63, %v5826_v34  ;;  %v5824_v59 = vmul.f32 %v14112_v35, %v5675_v19  ;;  %v14268_v0 = vld [vmem:[#allocation5 + $0x8] sm:$0xff]  }
 0x3ec   : > { %3318 = vst.msk [vmem:[#allocation5 + $0x68] sm:$0xf] %vm1802_vm3, %v3271_v46  ;;  %3319 = vst.msk [vmem:[#allocation5 + $0x6c] sm:$0xf] %vm1802_vm3, %v3272_v61  ;;  %v12100_v56 = vpop.f32.mrf.mxu1  ;;  %v6203_v28 = vld [vmem:[#allocation2 + $0x2c] sm:$0xf] }
 0x3ed   : > { %v3153_v33 = vpop.permute.xlu1 %3152  ;;  %v3155_v62 = vpop.permute.xlu0 %3154  ;;  %v6202_v12 = vld [vmem:[#allocation2 + $0x28] sm:$0xf]  ;;  %11623 = vst [vmem:[#allocation2 + $0x38] sm:$0xff] %v11130_v29   ;;  %v11125_v21 = vpack.c.bf16 %v5922_v27, %v5921_v39  ;;  %v5878_v36 = vadd.f32 %v14127_v63, %v5824_v59  ;;  %v5827_v5 = vmul.f32 %v12100_v56, %v14112_v35  ;;  %v12443_v59 = vld [vmem:[%s16493_s7] sm:$0xff]  }
 0x3ee   : > { %v3269_v54 = vmax.bf16 %v3153_v33, %v14004_v13  ;;  %v3270_v38 = vmax.bf16 %v3155_v62, %v14002_v30  ;;  %6308 = vrot.lane.b32.xlu1 %v6203_v28, %s12594_s12  ;;  %6306 = vrot.lane.b32.xlu0 %v6202_v12, %s12594_s12  ;;  %v5678_v13 = vpop.f32.mrf.mxu1  ;;  %v5927_v30 = vmax.f32 %v5880_v40, 0.0  ;;  %v14234_v43 = vld [vmem:[#allocation2 + $0x24] sm:$0xf]  ;;  %v14236_v14 = vld [vmem:[#allocation2 + $0x20] sm:$0xf] }
 0x3ef   : > { %11622 = vst [vmem:[#allocation2 + $0x30] sm:$0xff] %v11125_v21   ;;  %v5881_v23 = vadd.f32 %v14127_v63, %v5827_v5  ;;  %v5825_v10 = vmul.f32 %v14112_v35, %v5678_v13  ;;  %v5925_v4 = vmax.f32 %v5878_v36, 0.0  ;;  %12023 = vmatprep.subr.bf16.mxu0 %v12443_v59 }
 0x3f0   : > { %3316 = vst.msk [vmem:[#allocation5 + $0x60] sm:$0xf] %vm1802_vm3, %v3269_v54  ;;  %3317 = vst.msk [vmem:[#allocation5 + $0x64] sm:$0xf] %vm1802_vm3, %v3270_v38  ;;  %v12103_v25 = vpop.f32.mrf.mxu1  ;;  %v14278_v38 = vld [vmem:[#allocation5 + $0x10] sm:$0xff]   ;;  %12024 = vmatpush3.bf16.msra.mxu0 %v12443_v59 }
 0x3f1   : > { %v3165_v24 = vpop.permute.xlu1 %3164  ;;  %v3167_v22 = vpop.permute.xlu0 %3166  ;;  %v5928_v9 = vmax.f32 %v5881_v23, 0.0  ;;  %v5879_v48 = vadd.f32 %v14127_v63, %v5825_v10  ;;  %v5830_v15 = vmul.f32 %v12103_v25, %v14112_v35  ;;  %v3528_v25 = vshll.u32 %v14278_v38, 16 }
 0x3f2   : > { %v3275_v16 = vmax.bf16 %v3165_v24, %v14015_v20  ;;  %v3276_v52 = vmax.bf16 %v3167_v22, %v14013_v55  ;;  %6304 = vrot.lane.b32.xlu1 %v14234_v43, %s12594_s12  ;;  %6302 = vrot.lane.b32.xlu0 %v14236_v14, %s12594_s12  ;;  %v5691_v55 = vpop.f32.mrf.mxu1  ;;  %v14246_v20 = vld [vmem:[#allocation5] sm:$0xff]  }
 0x3f3   : > { %v11140_v49 = vpack.c.bf16 %v5928_v9, %v5927_v30  ;;  %v5926_v18 = vmax.f32 %v5879_v48, 0.0  ;;  %v5884_v7 = vadd.f32 %v14127_v63, %v5830_v15  ;;  %v5828_v45 = vmul.f32 %v14112_v35, %v5691_v55 }
 0x3f4   : > { %3322 = vst.msk [vmem:[#allocation5 + $0x78] sm:$0xf] %vm1802_vm3, %v3275_v16  ;;  %3323 = vst.msk [vmem:[#allocation5 + $0x7c] sm:$0xf] %vm1802_vm3, %v3276_v52  ;;  %v14252_v53 = vld [vmem:[#allocation2 + $0x3c] sm:$0xf]  ;;  %v12104_v61 = vpop.f32.mrf.mxu1 }
 0x3f5   : > { %v3161_v37 = vpop.permute.xlu1 %3160  ;;  %v3163_v8 = vpop.permute.xlu0 %3162  ;;  %v14254_v46 = vld [vmem:[#allocation2 + $0x38] sm:$0xf]  ;;  %11625 = vst [vmem:[#allocation2 + $0x48] sm:$0xff] %v11140_v49   ;;  %v11135_v32 = vpack.c.bf16 %v5926_v18, %v5925_v4  ;;  %v5882_v1 = vadd.f32 %v14127_v63, %v5828_v45  ;;  %v5831_v47 = vmul.f32 %v12104_v61, %v14112_v35  ;;  %v3515_v50 = vshll.u32 %v14246_v20, 16  ;;  %v14307_v18 = vld [vmem:[#allocation5 + $0x18] sm:$0xff]  }
 0x3f6   : > { %v3273_v3 = vmax.bf16 %v3161_v37, %v14028_v41  ;;  %v3274_v6 = vmax.bf16 %v3163_v8, %v14026_v44  ;;  %6316 = vrot.lane.b32.xlu1 %v14252_v53, %s12594_s12  ;;  %6314 = vrot.lane.b32.xlu0 %v14254_v46, %s12594_s12  ;;  %v5694_v44 = vpop.f32.mrf.mxu1  ;;  %v14264_v41 = vld [vmem:[#allocation2 + $0x34] sm:$0xf]  ;;  %v14266_v39 = vld [vmem:[#allocation2 + $0x30] sm:$0xf]  ;;  %v5931_v34 = vmax.f32 %v5884_v7, 0.0  ;;  %v3513_v52 = vshrl.u32 %v14246_v20, 16 }
 0x3f7   : > { %11624 = vst [vmem:[#allocation2 + $0x40] sm:$0xff] %v11135_v32   ;;  %v5885_v19 = vadd.f32 %v14127_v63, %v5831_v47  ;;  %v5829_v40 = vmul.f32 %v14112_v35, %v5694_v44  ;;  %v5929_v56 = vmax.f32 %v5882_v1, 0.0  ;;  %v3524_v32 = vshrl.u32 %v14268_v0, 16  ;;  %v14316_v47 = vld [vmem:[#allocation5 + $0x20] sm:$0xff]  }
 0x3f8   : > { %3320 = vst.msk [vmem:[#allocation5 + $0x70] sm:$0xf] %vm1802_vm3, %v3273_v3  ;;  %3321 = vst.msk [vmem:[#allocation5 + $0x74] sm:$0xf] %vm1802_vm3, %v3274_v6  ;;  %v12107_v54 = vpop.f32.mrf.mxu1  ;;  %v3530_v1 = vrot.slane %v3528_v25, 1  ;;  %v3540_v25 = vshrl.u32 %v14307_v18, 16 }
 0x3f9   : > { %v3173_v29 = vpop.permute.xlu1 %3172  ;;  %v3175_v27 = vpop.permute.xlu0 %3174  ;;  %v5932_v28 = vmax.f32 %v5885_v19, 0.0  ;;  %v5883_v12 = vadd.f32 %v14127_v63, %v5829_v40  ;;  %v5834_v21 = vmul.f32 %v12107_v54, %v14112_v35 }
 0x3fa   : > { %v3279_v33 = vmax.bf16 %v3173_v29, %v14037_v26  ;;  %v3280_v62 = vmax.bf16 %v3175_v27, %v14035_v58  ;;  %6312 = vrot.lane.b32.xlu1 %v14264_v41, %s12594_s12  ;;  %6310 = vrot.lane.b32.xlu0 %v14266_v39, %s12594_s12  ;;  %v3517_v58 = vrot.slane %v3515_v50, 1  ;;  %v3520_v26 = vshll.u32 %v14268_v0, 16  ;;  %v5707_v36 = vpop.f32.mrf.mxu1 }
 0x3fb   : > { %v11150_v5 = vpack.c.bf16 %v5932_v28, %v5931_v34  ;;  %v5930_v13 = vmax.f32 %v5883_v12, 0.0  ;;  %v5888_v10 = vadd.f32 %v14127_v63, %v5834_v21  ;;  %v5832_v24 = vmul.f32 %v14112_v35, %v5707_v36 }
 0x3fc   : > { %3326 = vst.msk [vmem:[#allocation5 + $0x88] sm:$0xf] %vm1802_vm3, %v3279_v33  ;;  %3327 = vst.msk [vmem:[#allocation5 + $0x8c] sm:$0xf] %vm1802_vm3, %v3280_v62  ;;  %v14293_v16 = vld [vmem:[#allocation2 + $0x48] sm:$0xf]  ;;  %v12108_v4 = vpop.f32.mrf.mxu1  ;;  %v3518_v55 = vor.u32 %v3517_v58, %v3513_v52 }
 0x3fd   : > { %v3169_v30 = vpop.permute.xlu1 %3168  ;;  %v3171_v23 = vpop.permute.xlu0 %3170  ;;  %11627 = vst [vmem:[#allocation2 + $0x58] sm:$0xff] %v11150_v5   ;;  %v11145_v9 = vpack.c.bf16 %v5930_v13, %v5929_v56  ;;  %v5886_v48 = vadd.f32 %v14127_v63, %v5832_v24  ;;  %v5835_v15 = vmul.f32 %v12108_v4, %v14112_v35  ;;  %v3522_v20 = vrot.slane %v3520_v26, 1  ;;  %v14350_v52 = vld [vmem:[%s16490_s4 + $0x38] sm:$0xff]  }
 0x3fe   : > { %v3277_v22 = vmax.bf16 %v3169_v30, %v14045_v31  ;;  %v3278_v42 = vmax.bf16 %v3171_v23, %v14043_v51  ;;  %6322 = vrot.lane.b32.xlu0 %v14293_v16, %s12594_s12  ;;  %v14303_v51 = vld [vmem:[#allocation2 + $0x44] sm:$0xf]  ;;  %v14305_v31 = vld [vmem:[#allocation2 + $0x40] sm:$0xf]  ;;  %v5710_v49 = vpop.f32.mrf.mxu1  ;;  %v5935_v8 = vmax.f32 %v5888_v10, 0.0  ;;  %v3532_v0 = vshrl.u32 %v14278_v38, 16  ;;  %12129 = vmatprep.subr.bf16.mxu0 %v14350_v52 }
 0x3ff   : > { %11626 = vst [vmem:[#allocation2 + $0x50] sm:$0xff] %v11145_v9   ;;  %6320 = vrot.lane.b32.xlu1 %v14303_v51, %s12594_s12  ;;  %v5889_v45 = vadd.f32 %v14127_v63, %v5835_v15  ;;  %v5833_v3 = vmul.f32 %v14112_v35, %v5710_v49  ;;  %v5933_v50 = vmax.f32 %v5886_v48, 0.0  ;;  %v3536_v27 = vshll.u32 %v14307_v18, 16  ;;  %v14353_v9 = vld [vmem:[#allocation5 + $0x28] sm:$0xff]  }
 0x400   : > { %3324 = vst.msk [vmem:[#allocation5 + $0x80] sm:$0xf] %vm1802_vm3, %v3277_v22  ;;  %3325 = vst.msk [vmem:[#allocation5 + $0x84] sm:$0xf] %vm1802_vm3, %v3278_v42  ;;  %v12111_v44 = vpop.f32.mrf.mxu1  ;;  %v3544_v38 = vshll.u32 %v14316_v47, 16  ;;  %v3534_v30 = vor.u32 %v3532_v0, %v3530_v1 }
 0x401   : > { %v3181_v7 = vpop.permute.xlu1 %3180  ;;  %v3183_v37 = vpop.permute.xlu0 %3182  ;;  %v5936_v34 = vmax.f32 %v5889_v45, 0.0  ;;  %v5887_v19 = vadd.f32 %v14127_v63, %v5833_v3  ;;  %v5838_v29 = vmul.f32 %v12111_v44, %v14112_v35  ;;  %v3538_v23 = vrot.slane %v3536_v27, 1 }
 0x402   : > { %v3283_v6 = vmax.bf16 %v3181_v7, %v14053_v57  ;;  %v3284_v61 = vmax.bf16 %v3183_v37, %v14051_v2  ;;  %6318 = vrot.lane.b32.xlu0 %v14305_v31, %s12594_s12  ;;  %v3523_v2 = vsel %vm534_vm0, %v3518_v55, %v3522_v20  ;;  %v3526_v57 = vor.u32 %v3524_v32, %v3522_v20  ;;  %v5723_v40 = vpop.f32.mrf.mxu1 }
 0x403   : > { %3703 = vrot.lane.b32.xlu1 %v3523_v2, %s12594_s12  ;;  %v11160_v62 = vpack.c.bf16 %v5936_v34, %v5935_v8  ;;  %v5934_v54 = vmax.f32 %v5887_v19, 0.0  ;;  %v5892_v56 = vadd.f32 %v14127_v63, %v5838_v29  ;;  %v5836_v28 = vmul.f32 %v14112_v35, %v5723_v40  ;;  %v14361_v8 = vld [vmem:[#allocation5 + $0x30] sm:$0xff]  }
 0x404   : > { %3330 = vst.msk [vmem:[#allocation5 + $0x98] sm:$0xf] %vm1802_vm3, %v3283_v6  ;;  %3331 = vst.msk [vmem:[#allocation5 + $0x9c] sm:$0xf] %vm1802_vm3, %v3284_v61  ;;  %v3531_v58 = vsel %vm534_vm0, %v3526_v57, %v3530_v1  ;;  %v12112_v26 = vpop.f32.mrf.mxu1  ;;  %v3546_v4 = vrot.slane %v3544_v38, 1  ;;  %v3539_v7 = vsel %vm534_vm0, %v3534_v30, %v3538_v23  ;;  %v3542_v37 = vor.u32 %v3540_v25, %v3538_v23 }
 0x405   : > { %v3177_v59 = vpop.permute.xlu1 %3176  ;;  %v3179_v33 = vpop.permute.xlu0 %3178  ;;  %11629 = vst [vmem:[#allocation2 + $0x68] sm:$0xff] %v11160_v62   ;;  %v11155_v36 = vpack.c.bf16 %v5934_v54, %v5933_v50  ;;  %v5890_v5 = vadd.f32 %v14127_v63, %v5836_v28  ;;  %v5839_v13 = vmul.f32 %v12112_v26, %v14112_v35  ;;  %v5939_v24 = vmax.f32 %v5892_v56, 0.0  ;;  %v14381_v56 = vld [vmem:[#allocation5 + $0x38] sm:$0xff]   ;;  %v14387_v38 = vld [vmem:[#allocation2 + $0x5c] sm:$0xf] }
 0x406   : > { %v3281_v12 = vmax.bf16 %v3177_v59, %v14061_v60  ;;  %v3282_v21 = vmax.bf16 %v3179_v33, %v14059_v17  ;;  %3705 = vrot.lane.b32.xlu0 %v3531_v58, %s12594_s12  ;;  %v14339_v60 = vld [vmem:[#allocation2 + $0x4c] sm:$0xf]  ;;  %v14341_v17 = vld [vmem:[#allocation2 + $0x50] sm:$0xf]  ;;  %v5726_v10 = vpop.f32.mrf.mxu1  ;;  %v3547_v32 = vsel %vm534_vm0, %v3542_v37, %v3546_v4  ;;  %v3552_v1 = vshll.u32 %v14353_v9, 16 }
 0x407   : > { %6324 = vrot.lane.b32.xlu1 %v14339_v60, %s12594_s12  ;;  %11628 = vst [vmem:[#allocation2 + $0x60] sm:$0xff] %v11155_v36   ;;  %v5893_v22 = vadd.f32 %v14127_v63, %v5839_v13  ;;  %v5837_v42 = vmul.f32 %v14112_v35, %v5726_v10  ;;  %v5937_v15 = vmax.f32 %v5890_v5, 0.0  ;;  %v14371_v29 = vld [vmem:[#allocation2 + $0x54] sm:$0xf]  ;;  %v3548_v2 = vshrl.u32 %v14316_v47, 16 }
 0x408   : > { %3328 = vst.msk [vmem:[#allocation5 + $0x90] sm:$0xf] %vm1802_vm3, %v3281_v12  ;;  %3329 = vst.msk [vmem:[#allocation5 + $0x94] sm:$0xf] %vm1802_vm3, %v3282_v21  ;;  %v12115_v48 = vpop.f32.mrf.mxu1  ;;  %v3560_v57 = vshll.u32 %v14361_v8, 16  ;;  %v3554_v54 = vrot.slane %v3552_v1, 1 }
 0x409   : > { %v5940_v55 = vmax.f32 %v5893_v22, 0.0  ;;  %v5891_v20 = vadd.f32 %v14127_v63, %v5837_v42  ;;  %v5842_v49 = vmul.f32 %v12115_v48, %v14112_v35  ;;  %v14379_v33 = vld [vmem:[#allocation2 + $0x58] sm:$0xf]  ;;  %v3550_v62 = vor.u32 %v3548_v2, %v3546_v4 }
 0x40a   : > { %6326 = vrot.lane.b32.xlu0 %v14341_v17, %s12594_s12  ;;  %v5739_v18 = vpop.f32.mrf.mxu1  ;;  %v3556_v26 = vshrl.u32 %v14353_v9, 16  ;;  %v3562_v36 = vrot.slane %v3560_v57, 1  ;;  %v14390_v5 = vld [vmem:[#allocation5 + $0x40] sm:$0xff]   ;;  %v3568_v25 = vshll.u32 %v14381_v56, 16  ;;  %v3572_v57 = vshrl.u32 %v14381_v56, 16 }
 0x40b   : > { %3707 = vrot.lane.b32.xlu1 %v3539_v7, %s12594_s12  ;;  %v11170_v45 = vpack.c.bf16 %v5940_v55, %v5939_v24  ;;  %v5938_v3 = vmax.f32 %v5891_v20, 0.0  ;;  %v5896_v6 = vadd.f32 %v14127_v63, %v5842_v49  ;;  %v5840_v61 = vmul.f32 %v14112_v35, %v5739_v18 }
 0x40c   : > { %v12116_v44 = vpop.f32.mrf.mxu1  ;;  %v3555_v22 = vsel %vm534_vm0, %v3550_v62, %v3554_v54  ;;  %v3558_v42 = vor.u32 %v3556_v26, %v3554_v54  ;;  %v3564_v7 = vshrl.u32 %v14361_v8, 16  ;;  %v3576_v37 = vshll.u32 %v14390_v5, 16 }
 0x40d   : > { %11631 = vst [vmem:[#allocation2 + $0x78] sm:$0xff] %v11170_v45   ;;  %v11165_v50 = vpack.c.bf16 %v5938_v3, %v5937_v15  ;;  %v5894_v34 = vadd.f32 %v14127_v63, %v5840_v61  ;;  %v5843_v19 = vmul.f32 %v12116_v44, %v14112_v35  ;;  %v5943_v27 = vmax.f32 %v5896_v6, 0.0  ;;  %v14411_v44 = vld [vmem:[#allocation5 + $0x48] sm:$0xff]  }
 0x40e   : > { %3709 = vrot.lane.b32.xlu0 %v3547_v32, %s12594_s12  ;;  %v5742_v0 = vpop.f32.mrf.mxu1  ;;  %v3563_v20 = vsel %vm534_vm0, %v3558_v42, %v3562_v36  ;;  %v14402_v49 = vld [vmem:[#allocation2 + $0x60] sm:$0xf]  ;;  %v14409_v61 = vld [vmem:[#allocation2 + $0x64] sm:$0xf]  ;;  %v3566_v32 = vor.u32 %v3564_v7, %v3562_v36  ;;  %v3570_v1 = vrot.slane %v3568_v25, 1 }
 0x40f   : > { %6328 = vrot.lane.b32.xlu1 %v14371_v29, %s12594_s12  ;;  %11630 = vst [vmem:[#allocation2 + $0x70] sm:$0xff] %v11165_v50   ;;  %v5897_v40 = vadd.f32 %v14127_v63, %v5843_v19  ;;  %v5841_v59 = vmul.f32 %v14112_v35, %v5742_v0  ;;  %v5941_v47 = vmax.f32 %v5894_v34, 0.0  ;;  %v3578_v0 = vrot.slane %v3576_v37, 1 }
 0x410   : > { %v12119_v28 = vpop.f32.mrf.mxu1 }
 0x411   : > { %v5944_v12 = vmax.f32 %v5897_v40, 0.0  ;;  %v5895_v21 = vadd.f32 %v14127_v63, %v5841_v59  ;;  %v5846_v58 = vmul.f32 %v12119_v28, %v14112_v35 }
 0x412   : > { %6330 = vrot.lane.b32.xlu0 %v14379_v33, %s12594_s12  ;;  %v5755_v13 = vpop.f32.mrf.mxu1 }
 0x413   : > { %6332 = vrot.lane.b32.xlu1 %v14387_v38, %s12594_s12  ;;  %v11180_v30 = vpack.c.bf16 %v5944_v12, %v5943_v27  ;;  %v5942_v23 = vmax.f32 %v5895_v21, 0.0  ;;  %v5900_v10 = vadd.f32 %v14127_v63, %v5846_v58  ;;  %v5844_v24 = vmul.f32 %v14112_v35, %v5755_v13  ;;  %v14418_v27 = vld [vmem:[#allocation5 + $0x50] sm:$0xff]  }
 0x414   : > { %v12120_v4 = vpop.f32.mrf.mxu1  ;;  %v3574_v12 = vor.u32 %v3572_v57, %v3570_v1  ;;  %v3584_v21 = vshll.u32 %v14411_v44, 16 }
 0x415   : > { %11633 = vst [vmem:[#allocation2 + $0x88] sm:$0xff] %v11180_v30   ;;  %v11175_v48 = vpack.c.bf16 %v5942_v23, %v5941_v47  ;;  %v5898_v15 = vadd.f32 %v14127_v63, %v5844_v24  ;;  %v5847_v55 = vmul.f32 %v12120_v4, %v14112_v35  ;;  %v5947_v45 = vmax.f32 %v5900_v10, 0.0  ;;  %v14435_v4 = vld [vmem:[#allocation2 + $0x68] sm:$0xf] }
 0x416   : > { %3711 = vrot.lane.b32.xlu0 %v3555_v22, %s12594_s12  ;;  %v5758_v18 = vpop.f32.mrf.mxu1  ;;  %v3571_v47 = vsel %vm534_vm0, %v3566_v32, %v3570_v1  ;;  %v3579_v30 = vsel %vm534_vm0, %v3574_v12, %v3578_v0  ;;  %v3580_v23 = vshrl.u32 %v14390_v5, 16  ;;  %v3592_v10 = vshll.u32 %v14418_v27, 16  ;;  %v14448_v1 = vld [vmem:[#allocation5 + $0x60] sm:$0xff]  }
 0x417   : > { %3713 = vrot.lane.b32.xlu1 %v3563_v20, %s12594_s12  ;;  %11632 = vst [vmem:[#allocation2 + $0x80] sm:$0xff] %v11175_v48   ;;  %v5901_v3 = vadd.f32 %v14127_v63, %v5847_v55  ;;  %v5845_v6 = vmul.f32 %v14112_v35, %v5758_v18  ;;  %v5945_v8 = vmax.f32 %v5898_v15, 0.0  ;;  %v3586_v15 = vrot.slane %v3584_v21, 1  ;;  %v14437_v55 = vld [vmem:[#allocation5 + $0x58] sm:$0xff]  }
 0x418   : > { %v12123_v50 = vpop.f32.mrf.mxu1  ;;  %v3582_v48 = vor.u32 %v3580_v23, %v3578_v0  ;;  %v3594_v32 = vrot.slane %v3592_v10, 1  ;;  %v3596_v21 = vshrl.u32 %v14418_v27, 16 }
 0x419   : > { %v5948_v34 = vmax.f32 %v5901_v3, 0.0  ;;  %v5899_v19 = vadd.f32 %v14127_v63, %v5845_v6  ;;  %v5850_v2 = vmul.f32 %v12123_v50, %v14112_v35  ;;  %v3588_v6 = vshrl.u32 %v14411_v44, 16 }
 0x41a   : > { %6334 = vrot.lane.b32.xlu0 %v14402_v49, %s12594_s12  ;;  %v5771_v40 = vpop.f32.mrf.mxu1  ;;  %v3587_v57 = vsel %vm534_vm0, %v3582_v48, %v3586_v15  ;;  %v3598_v23 = vor.u32 %v3596_v21, %v3594_v32 }
 0x41b   : > { %6336 = vrot.lane.b32.xlu1 %v14409_v61, %s12594_s12  ;;  %v11190_v59 = vpack.c.bf16 %v5948_v34, %v5947_v45  ;;  %v5946_v62 = vmax.f32 %v5899_v19, 0.0  ;;  %v5904_v54 = vadd.f32 %v14127_v63, %v5850_v2  ;;  %v5848_v28 = vmul.f32 %v14112_v35, %v5771_v40  ;;  %v12506_v45 = vld [vmem:[%s16488_s2] ss:$0 sm:$0xff] }
 0x41c   : > { %v12124_v58 = vpop.f32.mrf.mxu1  ;;  %v3590_v0 = vor.u32 %v3588_v6, %v3586_v15  ;;  %v3600_v40 = vshll.u32 %v14437_v55, 16  ;;  %v14472_v15 = vld [vmem:[#allocation5 + $0x70] sm:$0xff]   ;;  %v3612_v6 = vshrl.u32 %v14448_v1, 16 }
 0x41d   : > { %11635 = vst [vmem:[#allocation2 + $0x98] sm:$0xff] %v11190_v59   ;;  %v11185_v26 = vpack.c.bf16 %v5946_v62, %v5945_v8  ;;  %v5902_v36 = vadd.f32 %v14127_v63, %v5848_v28  ;;  %v5851_v13 = vmul.f32 %v12124_v58, %v14112_v35  ;;  %v5951_v22 = vmax.f32 %v5904_v54, 0.0  ;;  %v12507_v28 = vld [vmem:[%s16489_s3] ss:$0 sm:$0xff] }
 0x41e   : > { %3715 = vrot.lane.b32.xlu0 %v3571_v47, %s12594_s12  ;;  %v5774_v24 = vpop.f32.mrf.mxu1  ;;  %v3595_v12 = vsel %vm534_vm0, %v3590_v0, %v3594_v32  ;;  %v3608_v58 = vshll.u32 %v14448_v1, 16  ;;  %v3602_v10 = vrot.slane %v3600_v40, 1  ;;  %v3624_v32 = vshll.u32 %v14472_v15, 16  ;;  %v14492_v40 = vld [vmem:[#allocation5 + $0x80] sm:$0xff]  }
 0x41f   : > { %3717 = vrot.lane.b32.xlu1 %v3579_v30, %s12594_s12  ;;  %11634 = vst [vmem:[#allocation2 + $0x90] sm:$0xff] %v11185_v26   ;;  %v5905_v42 = vadd.f32 %v14127_v63, %v5851_v13  ;;  %v5849_v25 = vmul.f32 %v14112_v35, %v5774_v24  ;;  %v5949_v7 = vmax.f32 %v5902_v36, 0.0  ;;  %v14445_v35 = vld [vmem:[#allocation2 + $0x6c] sm:$0xf]  ;;  %v14465_v30 = vld [vmem:[#allocation2 + $0x74] sm:$0xf] }
 0x420   : > { %v12127_v20 = vpop.f32.mrf.mxu1  ;;  %v14467_v24 = vld [vmem:[#allocation5 + $0x68] sm:$0xff]   ;;  %v3610_v48 = vrot.slane %v3608_v58, 1  ;;  %v3626_v0 = vrot.slane %v3624_v32, 1  ;;  %v3640_v21 = vshll.u32 %v14492_v40, 16  ;;  %v14505_v58 = vld [vmem:[#allocation2 + $0x84] sm:$0xf] }
 0x421   : > { %v5952_v37 = vmax.f32 %v5905_v42, 0.0  ;;  %v5903_v18 = vadd.f32 %v14127_v63, %v5849_v25  ;;  %v5854_v3 = vmul.f32 %v12506_v45, %v12127_v20  ;;  %v3604_v25 = vshrl.u32 %v14437_v55, 16  ;;  %v12509_v32 = vld [vmem:[#allocation4 + $0xac] sm:$0xf] }
 0x422   : > { %6338 = vrot.lane.b32.xlu0 %v14435_v4, %s12594_s12  ;;  %v5787_v50 = vpop.f32.mrf.mxu1 }
 0x423   : > { %6340 = vrot.lane.b32.xlu1 %v14445_v35, %s12594_s12  ;;  %v11200_v8 = vpack.c.bf16 %v5952_v37, %v5951_v22  ;;  %v5950_v34 = vmax.f32 %v5903_v18, 0.0  ;;  %v5908_v19 = vadd.f32 %v14127_v63, %v5854_v3  ;;  %v5852_v2 = vmul.f32 %v12506_v45, %v5787_v50  ;;  %v14460_v63 = vld [vmem:[#allocation2 + $0x70] sm:$0xf]  ;;  %v14483_v50 = vld [vmem:[#allocation2 + $0x78] sm:$0xf] }
 0x424   : > { %v12128_v59 = vpop.f32.mrf.mxu1  ;;  %v3606_v37 = vor.u32 %v3604_v25, %v3602_v10  ;;  %v3616_v18 = vshll.u32 %v14467_v24, 16 }
 0x425   : > { %11637 = vst [vmem:[#allocation2 + $0xa8] sm:$0xff] %v11200_v8   ;;  %v11195_v62 = vpack.c.bf16 %v5950_v34, %v5949_v7  ;;  %v5955_v54 = vmax.f32 %v5908_v19, 0.0  ;;  %v5906_v47 = vadd.f32 %v12507_v28, %v5852_v2  ;;  %v3603_v7 = vsel %vm534_vm0, %v3598_v23, %v3602_v10  ;;  %v14485_v19 = vld [vmem:[#allocation5 + $0x78] sm:$0xff]   ;;  %v14489_v2 = vld [vmem:[#allocation2 + $0x7c] sm:$0xf] }
 0x426   : > { %3719 = vrot.lane.b32.xlu0 %v3587_v57, %s12594_s12  ;;  %v5790_v26 = vpop.f32.mrf.mxu1  ;;  %v3611_v3 = vsel %vm534_vm0, %v3606_v37, %v3610_v48  ;;  %v3614_v8 = vor.u32 %v3612_v6, %v3610_v48  ;;  %v3618_v34 = vrot.slane %v3616_v18, 1  ;;  %v3620_v57 = vshrl.u32 %v14467_v24, 16 }
 0x427   : > { %3721 = vrot.lane.b32.xlu1 %v3595_v12, %s12594_s12  ;;  %11636 = vst [vmem:[#allocation2 + $0xa0] sm:$0xff] %v11195_v62   ;;  %v10559_v36 = vpack.c.bf16 %v5955_v54, %v5955_v54  ;;  %v5853_v13 = vmul.f32 %v12506_v45, %v5790_v26  ;;  %v5953_v22 = vmax.f32 %v5906_v47, 0.0  ;;  %v3632_v54 = vshll.u32 %v14485_v19, 16  ;;  %v14500_v47 = vld [vmem:[#allocation2 + $0x80] sm:$0xf] }
 0x428   : > { %v3619_v59 = vsel %vm534_vm0, %v3614_v8, %v3618_v34  ;;  %v3622_v62 = vor.u32 %v3620_v57, %v3618_v34  ;;  %v3628_v12 = vshrl.u32 %v14472_v15, 16  ;;  %v3636_v23 = vshrl.u32 %v14485_v19, 16  ;;  %v14523_v34 = vld [vmem:[#allocation2 + $0x88] sm:$0xf] }
 0x429   : > { %6191 = vst [vmem:[#allocation2 + $0xb8] sm:$0xf] %v10559_v36  ;;  %v5907_v42 = vadd.f32 %v12507_v28, %v5853_v13  ;;  %v3634_v36 = vrot.slane %v3632_v54, 1  ;;  %v14507_v13 = vld [vmem:[#allocation5 + $0x88] sm:$0xff]   ;;  %v3642_v10 = vrot.slane %v3640_v21, 1 }
 0x42a   : > { %6342 = vrot.lane.b32.xlu0 %v14460_v63, %s12594_s12  ;;  %v3627_v28 = vsel %vm534_vm0, %v3622_v62, %v3626_v0  ;;  %v3630_v26 = vor.u32 %v3628_v12, %v3626_v0  ;;  %v3648_v48 = vshll.u32 %v14507_v13, 16  ;;  %v3652_v62 = vshrl.u32 %v14507_v13, 16 }
 0x42b   : > { %6344 = vrot.lane.b32.xlu1 %v14465_v30, %s12594_s12  ;;  %v5954_v20 = vmax.f32 %v5907_v42, 0.0  ;;  %v3638_v25 = vor.u32 %v3636_v23, %v3634_v36  ;;  %v12511_v23 = vld [vmem:[#allocation4 + $0xa4] sm:$0xf] }
 0x42c   : > { %v3635_v42 = vsel %vm534_vm0, %v3630_v26, %v3634_v36  ;;  %v3650_v0 = vrot.slane %v3648_v48, 1  ;;  %v12510_v26 = vld [vmem:[#allocation4 + $0xa0] sm:$0xf] }
 0x42d   : > { %v11205_v45 = vpack.c.bf16 %v5954_v20, %v5953_v22  ;;  %v14512_v22 = vld [vmem:[#allocation5 + $0x90] sm:$0xff]   ;;  %v3643_v20 = vsel %vm534_vm0, %v3638_v25, %v3642_v10 }
 0x42e   : > { %3723 = vrot.lane.b32.xlu0 %v3603_v7, %s12594_s12  ;;  %v3644_v7 = vshrl.u32 %v14492_v40, 16  ;;  %v3656_v37 = vshll.u32 %v14512_v22, 16  ;;  %v3654_v25 = vor.u32 %v3652_v62, %v3650_v0 }
 0x42f   : > { %3725 = vrot.lane.b32.xlu1 %v3611_v3, %s12594_s12  ;;  %11638 = vst [vmem:[#allocation2 + $0xb0] sm:$0xff] %v11205_v45   ;;  %v12508_v3 = vld [vmem:[#allocation4 + $0xa8] sm:$0xf] }
 0x430   : > { %v3646_v57 = vor.u32 %v3644_v7, %v3642_v10  ;;  %v3658_v54 = vrot.slane %v3656_v37, 1  ;;  %v3660_v7 = vshrl.u32 %v14512_v22, 16 }
 0x432   : > { %6346 = vrot.lane.b32.xlu0 %v14483_v50, %s12594_s12  ;;  %v3659_v48 = vsel %vm534_vm0, %v3654_v25, %v3658_v54 }
 0x433   : > { %6348 = vrot.lane.b32.xlu1 %v14489_v2, %s12594_s12 }
 0x436   : > { %3727 = vrot.lane.b32.xlu0 %v3619_v59, %s12594_s12  ;;  %v14529_v59 = vld [vmem:[#allocation2 + $0x8c] sm:$0xf] }
 0x437   : > { %3729 = vrot.lane.b32.xlu1 %v3627_v28, %s12594_s12  ;;  %v14532_v28 = vld [vmem:[#allocation5 + $0x98] sm:$0xff]  }
 0x438   : > { %16513 = vst [vmem:[#allocation12_spill] sm:$0xff] %v14532_v28  ;;  %v3664_v37 = vshll.u32 %v14532_v28, 16 }
 0x43a   : > { %6350 = vrot.lane.b32.xlu0 %v14500_v47, %s12594_s12 }
 0x43b   : > { %6352 = vrot.lane.b32.xlu1 %v14505_v58, %s12594_s12 }
 0x43e   : > { %3731 = vrot.lane.b32.xlu0 %v3635_v42, %s12594_s12  ;;  %v3651_v42 = vsel %vm534_vm0, %v3646_v57, %v3650_v0  ;;  %v3662_v57 = vor.u32 %v3660_v7, %v3658_v54  ;;  %v12514_v54 = vld [vmem:[#allocation4 + $0xb0] sm:$0xf] }
 0x43f   : > { %3733 = vrot.lane.b32.xlu1 %v3643_v20, %s12594_s12  ;;  %v3191_v45 = vpop.permute.xlu0 %3190  ;;  %v14541_v20 = vld [vmem:[#allocation2 + $0x90] sm:$0xf] }
 0x440   : > { %v3189_v18 = vpop.permute.xlu1 %3188  ;;  %v3288_v8 = vmax.bf16 %v12509_v32, %v3191_v45  ;;  %v3340_v45 = vld [vmem:[#allocation5 + $0xb8] sm:$0xf] }
 0x441   : > { %v3287_v6 = vmax.bf16 %v12508_v3, %v3189_v18  ;;  %v16514_v18 = vmov 0 }
 0x442   : > { %6354 = vrot.lane.b32.xlu0 %v14523_v34, %s12594_s12  ;;  %3335 = vst.msk [vmem:[#allocation5 + $0xac] sm:$0xf] %vm1802_vm3, %v3288_v8  ;;  %v16515_v18 = vsel %vm14547_vm7, 4294967295, %v16514_v18  ;;  %v14552_v8 = vld [vmem:[#allocation2 + $0x94] sm:$0xf] }
 0x443   : > { %3334 = vst.msk [vmem:[#allocation5 + $0xa8] sm:$0xf] %vm1802_vm3, %v3287_v6  ;;  %6356 = vrot.lane.b32.xlu1 %v14529_v59, %s12594_s12  ;;  %v3187_v21 = vpop.permute.xlu0 %3186  ;;  %16516 = vst [vmem:[#allocation13_spill] sm:$0xff] %v16515_v18  ;;  %v12512_v6 = vld [vmem:[#allocation4 + $0xb8] sm:$0xf] }
 0x444   : > { %v3185_v12 = vpop.permute.xlu1 %3184  ;;  %v3286_v10 = vmax.bf16 %v12511_v23, %v3187_v21 }
 0x445   : > { %v3285_v36 = vmax.bf16 %v12510_v26, %v3185_v12  ;;  %v12513_v12 = vld [vmem:[#allocation4 + $0xb4] sm:$0xf]  ;;  %v3666_v26 = vrot.slane %v3664_v37, 1  ;;  %v3668_v37 = vshrl.u32 %v14532_v28, 16 }
 0x446   : > { %3735 = vrot.lane.b32.xlu0 %v3651_v42, %s12594_s12  ;;  %3333 = vst.msk [vmem:[#allocation5 + $0xa4] sm:$0xf] %vm1802_vm3, %v3286_v10 }
 0x447   : > { %3332 = vst.msk [vmem:[#allocation5 + $0xa0] sm:$0xf] %vm1802_vm3, %v3285_v36  ;;  %3737 = vrot.lane.b32.xlu1 %v3659_v48, %s12594_s12  ;;  %v3667_v42 = vsel %vm534_vm0, %v3662_v57, %v3666_v26  ;;  %v3670_v57 = vor.u32 %v3668_v37, %v3666_v26 }
 0x448   : > { %v3197_v3 = vpop.permute.xlu1 %3196 }
 0x449   : > { %v3291_v32 = vmax.bf16 %v12512_v6, %v3197_v3  ;;  %v3195_v0 = vpop.permute.xlu0 %3194  ;;  %v12515_v6 = vld [vmem:[#allocation2 + $0xc] sm:$0xf] }
 0x44a   : > { %6358 = vrot.lane.b32.xlu0 %v14541_v20, %s12594_s12  ;;  %v3290_v21 = vmax.bf16 %v12513_v12, %v3195_v0  ;;  %v14560_v23 = vld [vmem:[#allocation5 + $0xa8] sm:$0xff]   ;;  %v12516_v0 = vld [vmem:[#allocation2 + $0x8] sm:$0xf]  ;;  %v14571_v12 = vld [vmem:[#allocation2 + $0x98] sm:$0xf] }
 0x44b   : > { %v3341_v62 = vsel %vm14547_vm7, %v3291_v32, %v3340_v45  ;;  %6360 = vrot.lane.b32.xlu1 %v14552_v8, %s12594_s12  ;;  %v3680_v3 = vshll.u32 %v14560_v23, 16 }
 0x44c   : > { %3342 = vst [vmem:[#allocation5 + $0xb8] sm:$0xf] %v3341_v62  ;;  %v3193_v36 = vpop.permute.xlu1 %3192  ;;  %3337 = vst.msk [vmem:[#allocation5 + $0xb4] sm:$0xf] %vm1802_vm3, %v3290_v21 }
 0x44d   : > { %v3289_v10 = vmax.bf16 %v12514_v54, %v3193_v36 }
 0x44e   : > { %3739 = vrot.lane.b32.xlu0 %v3667_v42, %s12594_s12  ;;  %v14565_v25 = vld [vmem:[#allocation5 + $0xa0] sm:$0xff]  }
 0x44f   : > { %3336 = vst.msk [vmem:[#allocation5 + $0xb0] sm:$0xf] %vm1802_vm3, %v3289_v10  ;;  %v3672_v45 = vshll.u32 %v14565_v25, 16  ;;  %v3676_v36 = vshrl.u32 %v14565_v25, 16 }
 0x450   : > { %v6293_v48 = vpop.permute.xlu1 %6292  ;;  %v6291_v7 = vpop.permute.xlu0 %6290 }
 0x451   : > { %v6430_v32 = vmax.bf16 %v12515_v6, %v6293_v48  ;;  %v6429_v62 = vmax.bf16 %v12516_v0, %v6291_v7  ;;  %v3674_v21 = vrot.slane %v3672_v45, 1  ;;  %v3682_v7 = vrot.slane %v3680_v3, 1  ;;  %v12517_v0 = vld [vmem:[#allocation2 + $0x4] sm:$0xf] }
 0x452   : > { %6362 = vrot.lane.b32.xlu0 %v14571_v12, %s12594_s12 }
 0x453   : > { %6477 = vst.msk [vmem:[#allocation3 + $0xc] sm:$0xf] %vm1802_vm3, %v6430_v32  ;;  %6476 = vst.msk [vmem:[#allocation3 + $0x8] sm:$0xf] %vm1802_vm3, %v6429_v62  ;;  %v12435_v54 = vld [vmem:[#allocation5 + $0xb8] ss:$0 sps:$4 sm:$0xff]   ;;  %v3675_v48 = vsel %vm534_vm0, %v3670_v57, %v3674_v21  ;;  %v3678_v6 = vor.u32 %v3676_v36, %v3674_v21 }
 0x454   : > { %v6289_v10 = vpop.permute.xlu1 %6288  ;;  %v6287_v42 = vpop.permute.xlu0 %6286  ;;  %3741 = vrot.lane.b32.xlu1 %v3675_v48, %s12594_s12  ;;  %v3696_v26 = vshll.u32 %v12435_v54, 16  ;;  %v3700_v62 = vshrl.u32 %v12435_v54, 16  ;;  %v14586_v21 = vld [vmem:[#allocation2 + $0xa0] sm:$0xf]  ;;  %v12519_v36 = vld [vmem:[#allocation2 + $0x1c] sm:$0xf] }
 0x455   : > { %v6428_v18 = vmax.bf16 %v12517_v0, %v6289_v10  ;;  %v6427_v28 = vmax.bf16 %v12518_v11, %v6287_v42  ;;  %v3683_v37 = vsel %vm534_vm0, %v3678_v6, %v3682_v7  ;;  %v12520_v42 = vld [vmem:[#allocation2 + $0x18] sm:$0xf]  ;;  %v3684_v0 = vshrl.u32 %v14560_v23, 16 }
 0x456   : > { %v14581_v45 = vld [vmem:[#allocation5 + $0xb0] sm:$0xff]   ;;  %3743 = vrot.lane.b32.xlu0 %v3683_v37, %s12594_s12  ;;  %v3698_v32 = vrot.slane %v3696_v26, 1 }
 0x457   : > { %16517 = vst [vmem:[#allocation14_spill] sm:$0xff] %v14581_v45  ;;  %6475 = vst.msk [vmem:[#allocation3 + $0x4] sm:$0xf] %vm1802_vm3, %v6428_v18  ;;  %v3688_v11 = vshll.u32 %v14581_v45, 16 }
 0x458   : > { %6474 = vst.msk [vmem:[#allocation3] sm:$0xf] %vm1802_vm3, %v6427_v28  ;;  %v6301_v3 = vpop.permute.xlu1 %6300  ;;  %v6299_v57 = vpop.permute.xlu0 %6298  ;;  %v3702_v6 = vor.u32 %v3700_v62, %v3698_v32  ;;  %v3692_v28 = vshrl.u32 %v14581_v45, 16  ;;  %v12521_v62 = vld [vmem:[#allocation2 + $0x14] sm:$0xf] }
 0x459   : > { %v6434_v10 = vmax.bf16 %v12519_v36, %v6301_v3  ;;  %v6433_v48 = vmax.bf16 %v12520_v42, %v6299_v57  ;;  %v3690_v18 = vrot.slane %v3688_v11, 1  ;;  %v3686_v3 = vor.u32 %v3684_v0, %v3682_v7  ;;  %v12522_v11 = vld [vmem:[#allocation2 + $0x10] sm:$0xf] }
 0x45a   : > { %6366 = vrot.lane.b32.xlu0 %v14586_v21, %s12594_s12  ;;  %3749 = vrot.lane.b32.xlu1 %v3702_v6, %s12594_s12  ;;  %v14596_v57 = vld [vmem:[#allocation3 + $0x8] sm:$0xff]  }
 0x45b   : > { %6481 = vst.msk [vmem:[#allocation3 + $0x1c] sm:$0xf] %vm1802_vm3, %v6434_v10  ;;  %6480 = vst.msk [vmem:[#allocation3 + $0x18] sm:$0xf] %vm1802_vm3, %v6433_v48  ;;  %v3694_v37 = vor.u32 %v3692_v28, %v3690_v18  ;;  %v3691_v10 = vsel %vm534_vm0, %v3686_v3, %v3690_v18  ;;  %v6694_v28 = vshll.u32 %v14596_v57, 16 }
 0x45c   : > { %v6297_v54 = vpop.permute.xlu1 %6296  ;;  %v6295_v26 = vpop.permute.xlu0 %6294  ;;  %16518 = vst [vmem:[#allocation15_spill] sm:$0xff] %v14596_v57  ;;  %v14610_v3 = vld [vmem:[#allocation2 + $0x9c] sm:$0xf] }
 0x45d   : > { %v6432_v36 = vmax.bf16 %v12521_v62, %v6297_v54  ;;  %v6431_v42 = vmax.bf16 %v12522_v11, %v6295_v26  ;;  %v3699_v45 = vsel %vm534_vm0, %v3694_v37, %v3698_v32  ;;  %v12523_v54 = vld [vmem:[#allocation2 + $0x2c] sm:$0xf]  ;;  %v12524_v26 = vld [vmem:[#allocation2 + $0x28] sm:$0xf] }
 0x45e   : > { %3747 = vrot.lane.b32.xlu0 %v3699_v45, %s12594_s12  ;;  %3745 = vrot.lane.b32.xlu1 %v3691_v10, %s12594_s12  ;;  %v14608_v37 = vld [vmem:[#allocation2 + $0xa8] sm:$0xf]  ;;  %v6696_v10 = vrot.slane %v6694_v28, 1 }
 0x45f   : > { %v14600_v48 = vld [vmem:[#allocation3] sm:$0xff]   ;;  %6479 = vst.msk [vmem:[#allocation3 + $0x14] sm:$0xf] %vm1802_vm3, %v6432_v36  ;;  %6478 = vst.msk [vmem:[#allocation3 + $0x10] sm:$0xf] %vm1802_vm3, %v6431_v42 }
 0x460   : > { %16519 = vst [vmem:[#allocation16_spill] sm:$0xff] %v14600_v48  ;;  %v6309_v7 = vpop.permute.xlu1 %6308  ;;  %v6307_v6 = vpop.permute.xlu0 %6306  ;;  %v6689_v0 = vshll.u32 %v14600_v48, 16  ;;  %v6687_v62 = vshrl.u32 %v14600_v48, 16 }
 0x461   : > { %v6438_v32 = vmax.bf16 %v12523_v54, %v6309_v7  ;;  %v6437_v18 = vmax.bf16 %v12524_v26, %v6307_v6  ;;  %v14623_v54 = vld [vmem:[#allocation2 + $0xa4] sm:$0xf] }
 0x462   : > { %v6691_v36 = vrot.slane %v6689_v0, 1  ;;  %6370 = vrot.lane.b32.xlu0 %v14608_v37, %s12594_s12  ;;  %6364 = vrot.lane.b32.xlu1 %v14610_v3, %s12594_s12  ;;  %v14619_v7 = vld [vmem:[#allocation3 + $0x18] sm:$0xff]  }
 0x463   : > { %6485 = vst.msk [vmem:[#allocation3 + $0x2c] sm:$0xf] %vm1802_vm3, %v6438_v32  ;;  %6484 = vst.msk [vmem:[#allocation3 + $0x28] sm:$0xf] %vm1802_vm3, %v6437_v18 }
 0x464   : > { %v6305_v45 = vpop.permute.xlu1 %6304  ;;  %v6303_v11 = vpop.permute.xlu0 %6302  ;;  %v6692_v42 = vor.u32 %v6691_v36, %v6687_v62  ;;  %16520 = vst [vmem:[#allocation17_spill] sm:$0xff] %v14619_v7  ;;  %v6710_v62 = vshll.u32 %v14619_v7, 16 }
 0x465   : > { %v6436_v6 = vmax.bf16 %v6305_v45, %v14234_v43  ;;  %v6435_v0 = vmax.bf16 %v6303_v11, %v14236_v14  ;;  %v14633_v43 = vld [vmem:[#allocation2 + $0xb0] sm:$0xf]  ;;  %v14639_v11 = vld [vmem:[#allocation2 + $0xac] sm:$0xf] }
 0x466   : > { %v6697_v32 = vsel %vm534_vm0, %v6692_v42, %v6696_v10  ;;  %v14626_v26 = vld [vmem:[#allocation3 + $0x10] sm:$0xff]   ;;  %6368 = vrot.lane.b32.xlu1 %v14623_v54, %s12594_s12  ;;  %v6698_v42 = vshrl.u32 %v14596_v57, 16 }
 0x467   : > { %16521 = vst [vmem:[#allocation18_spill] sm:$0xff] %v14626_v26  ;;  %6483 = vst.msk [vmem:[#allocation3 + $0x24] sm:$0xf] %vm1802_vm3, %v6436_v6  ;;  %6877 = vrot.lane.b32.xlu0 %v6697_v32, %s12594_s12  ;;  %v6702_v14 = vshll.u32 %v14626_v26, 16 }
 0x468   : > { %6482 = vst.msk [vmem:[#allocation3 + $0x20] sm:$0xf] %vm1802_vm3, %v6435_v0  ;;  %v6317_v28 = vpop.permute.xlu1 %6316  ;;  %v6315_v18 = vpop.permute.xlu0 %6314  ;;  %v6706_v0 = vshrl.u32 %v14626_v26, 16 }
 0x469   : > { %v6442_v36 = vmax.bf16 %v6317_v28, %v14252_v53  ;;  %v6441_v45 = vmax.bf16 %v6315_v18, %v14254_v46  ;;  %v6704_v6 = vrot.slane %v6702_v14, 1  ;;  %v6712_v28 = vrot.slane %v6710_v62, 1  ;;  %v14663_v62 = vld [vmem:[#allocation2 + $0xb8] sm:$0xf] }
 0x46a   : > { %6372 = vrot.lane.b32.xlu1 %v14639_v11, %s12594_s12  ;;  %v6700_v18 = vor.u32 %v6698_v42, %v6696_v10  ;;  %v14651_v26 = vld [vmem:[#allocation3 + $0x28] sm:$0xff]   ;;  %16524 = vst [vmem:[#allocation21_spill] sm:$0xff] %v14663_v62  ;;  %v14665_v42 = vld [vmem:[#allocation2 + $0xb4] sm:$0xf] }
 0x46b   : > { %6489 = vst.msk [vmem:[#allocation3 + $0x3c] sm:$0xf] %vm1802_vm3, %v6442_v36  ;;  %6488 = vst.msk [vmem:[#allocation3 + $0x38] sm:$0xf] %vm1802_vm3, %v6441_v45  ;;  %6374 = vrot.lane.b32.xlu0 %v14633_v43, %s12594_s12  ;;  %v6708_v46 = vor.u32 %v6706_v0, %v6704_v6 }
 0x46c   : > { %v6313_v53 = vpop.permute.xlu1 %6312  ;;  %v6311_v32 = vpop.permute.xlu0 %6310  ;;  %16522 = vst [vmem:[#allocation19_spill] sm:$0xff] %v14651_v26  ;;  %v6705_v45 = vsel %vm534_vm0, %v6700_v18, %v6704_v6  ;;  %v6714_v6 = vshrl.u32 %v14619_v7, 16 }
 0x46d   : > { %v6440_v57 = vmax.bf16 %v6313_v53, %v14264_v41  ;;  %v6439_v14 = vmax.bf16 %v6311_v32, %v14266_v39  ;;  %v6713_v36 = vsel %vm534_vm0, %v6708_v46, %v6712_v28 }
 0x46e   : > { %6879 = vrot.lane.b32.xlu1 %v6705_v45, %s12594_s12  ;;  %v6716_v46 = vor.u32 %v6714_v6, %v6712_v28 }
 0x46f   : > { %v14655_v48 = vld [vmem:[#allocation3 + $0x20] sm:$0xff]   ;;  %6487 = vst.msk [vmem:[#allocation3 + $0x34] sm:$0xf] %vm1802_vm3, %v6440_v57  ;;  %6486 = vst.msk [vmem:[#allocation3 + $0x30] sm:$0xf] %vm1802_vm3, %v6439_v14  ;;  %6881 = vrot.lane.b32.xlu0 %v6713_v36, %s12594_s12  ;;  %v6726_v57 = vshll.u32 %v14651_v26, 16 }
 0x470   : > { %16523 = vst [vmem:[#allocation20_spill] sm:$0xff] %v14655_v48  ;;  %v6323_v10 = vpop.permute.xlu0 %6322  ;;  %v6718_v41 = vshll.u32 %v14655_v48, 16  ;;  %v6722_v18 = vshrl.u32 %v14655_v48, 16 }
 0x471   : > { %v6445_v39 = vmax.bf16 %v6323_v10, %v14293_v16  ;;  %v6321_v0 = vpop.permute.xlu1 %6320 }
 0x472   : > { %v6720_v53 = vrot.slane %v6718_v41, 1  ;;  %v6444_v32 = vmax.bf16 %v6321_v0, %v14303_v51  ;;  %6376 = vrot.lane.b32.xlu1 %v14665_v42, %s12594_s12  ;;  %v14676_v14 = vld [vmem:[#allocation3 + $0x38] sm:$0xff]   ;;  %v6728_v41 = vrot.slane %v6726_v57, 1  ;;  %v12526_v57 = vld [vmem:[#allocation5 + $0x8] sm:$0xff]  }
 0x473   : > { %6492 = vst.msk [vmem:[#allocation3 + $0x48] sm:$0xf] %vm1802_vm3, %v6445_v39  ;;  %6378 = vrot.lane.b32.xlu0 %v14663_v62, %s12594_s12  ;;  %v12525_v0 = vld [vmem:[#allocation5] sm:$0xff]  }
 0x474   : > { %v6319_v16 = vpop.permute.xlu0 %6318  ;;  %6491 = vst.msk [vmem:[#allocation3 + $0x44] sm:$0xf] %vm1802_vm3, %v6444_v32  ;;  %v6721_v10 = vsel %vm534_vm0, %v6716_v46, %v6720_v53  ;;  %v6724_v51 = vor.u32 %v6722_v18, %v6720_v53  ;;  %v6730_v32 = vshrl.u32 %v14651_v26, 16  ;;  %v12451_v53 = vld [vmem:[%s16490_s4 + $0x30] sm:$0xff]  }
 0x475   : > { %v6443_v36 = vmax.bf16 %v6319_v16, %v14305_v31  ;;  %v3704_v45 = vpop.permute.xlu1 %3703  ;;  %v6742_v16 = vshll.u32 %v14676_v14, 16 }
 0x476   : > { %v14681_v39 = vld [vmem:[#allocation3 + $0x30] sm:$0xff]   ;;  %v3752_v28 = vsel %vm856_vm2, %v12525_v0, %v3704_v45  ;;  %6883 = vrot.lane.b32.xlu1 %v6721_v10, %s12594_s12  ;;  %v6732_v45 = vor.u32 %v6730_v32, %v6728_v41  ;;  %v12527_v32 = vld [vmem:[#allocation5 + $0x10] sm:$0xff]  }
 0x477   : > { %6490 = vst.msk [vmem:[#allocation3 + $0x40] sm:$0xf] %vm1802_vm3, %v6443_v36  ;;  %12025 = vmatprep.mubr.bf16.mxu0 %v3752_v28  ;;  %v6734_v31 = vshll.u32 %v14681_v39, 16  ;;  %v6729_v36 = vsel %vm534_vm0, %v6724_v51, %v6728_v41  ;;  %v6738_v0 = vshrl.u32 %v14681_v39, 16  ;;  %v6744_v62 = vrot.slane %v6742_v16, 1  ;;  %v12454_v51 = vld [vmem:[%s16490_s4 + $0x28] sm:$0xff]  }
 0x478   : > { %v3706_v6 = vpop.permute.xlu0 %3705 }
 0x479   : > { %v3755_v46 = vsel %vm856_vm2, %v12526_v57, %v3706_v6  ;;  %v6325_v18 = vpop.permute.xlu1 %6324  ;;  %v6736_v10 = vrot.slane %v6734_v31, 1  ;;  %v6746_v57 = vshrl.u32 %v14676_v14, 16 }
 0x47a   : > { %12026 = vmatmul.mubr.bf16.vlgmr.msra.gmra.mxu0 %v3755_v46  ;;  %v6446_v28 = vmax.bf16 %v6325_v18, %v14339_v60  ;;  %6885 = vrot.lane.b32.xlu1 %v6729_v36, %s12594_s12 }
 0x47b   : > { %12130 = vmatpush3.bf16.msra.mxu0 %v14350_v52  ;;  %v6737_v48 = vsel %vm534_vm0, %v6732_v45, %v6736_v10  ;;  %v6740_v7 = vor.u32 %v6738_v0, %v6736_v10  ;;  %v6748_v18 = vor.u32 %v6746_v57, %v6744_v62 }
 0x47c   : > { %v6327_v26 = vpop.permute.xlu0 %6326  ;;  %12131 = vmatprep.subr.bf16.mxu0 %v12451_v53  ;;  %6493 = vst.msk [vmem:[#allocation3 + $0x4c] sm:$0xf] %vm1802_vm3, %v6446_v28  ;;  %6887 = vrot.lane.b32.xlu0 %v6737_v48, %s12594_s12  ;;  %v12457_v48 = vld [vmem:[%s16490_s4 + $0x20] sm:$0xff]   ;;  %v12459_v28 = vld [vmem:[%s16490_s4 + $0x18] sm:$0xff]  }
 0x47d   : > { %v6447_v41 = vmax.bf16 %v6327_v26, %v14341_v17  ;;  %v3708_v60 = vpop.permute.xlu1 %3707  ;;  %v6745_v6 = vsel %vm534_vm0, %v6740_v7, %v6744_v62  ;;  %v12528_v7 = vld [vmem:[#allocation5 + $0x18] sm:$0xff]  }
 0x47e   : > { %v14706_v52 = vld [vmem:[#allocation3 + $0x40] sm:$0xff]   ;;  %6889 = vrot.lane.b32.xlu1 %v6745_v6, %s12594_s12  ;;  %v3758_v31 = vsel %vm856_vm2, %v12527_v32, %v3708_v60 }
 0x47f   : > { %6494 = vst.msk [vmem:[#allocation3 + $0x50] sm:$0xf] %vm1802_vm3, %v6447_v41  ;;  %12132 = vmatpush3.bf16.msra.mxu0 %v12451_v53  ;;  %12029 = vmatprep.mubr.bf16.mxu0 %v3758_v31  ;;  %v6750_v17 = vshll.u32 %v14706_v52, 16 }
 0x480   : > { %v3710_v16 = vpop.permute.xlu0 %3709  ;;  %12133 = vmatprep.subr.bf16.mxu0 %v12454_v51 }
 0x481   : > { %v3761_v26 = vsel %vm856_vm2, %v12528_v7, %v3710_v16  ;;  %v6329_v46 = vpop.permute.xlu1 %6328  ;;  %v6752_v36 = vrot.slane %v6750_v17, 1  ;;  %v12529_v16 = vld [vmem:[#allocation5 + $0x20] sm:$0xff]  }
 0x482   : > { %12030 = vmatmul.mubr.bf16.gmra.mxu0 %v3761_v26  ;;  %v6448_v53 = vmax.bf16 %v6329_v46, %v14371_v29  ;;  %v6754_v29 = vshrl.u32 %v14706_v52, 16  ;;  %v12464_v46 = vld [vmem:[%s16490_s4 + $0x8] sm:$0xff]  }
 0x483   : > { %12134 = vmatpush3.bf16.msra.mxu0 %v12454_v51  ;;  %v6753_v10 = vsel %vm534_vm0, %v6748_v18, %v6752_v36  ;;  %v14719_v0 = vld [vmem:[#allocation3 + $0x48] sm:$0xff]  }
 0x484   : > { %v6331_v45 = vpop.permute.xlu0 %6330  ;;  %12135 = vmatprep.subr.bf16.mxu0 %v12457_v48  ;;  %6495 = vst.msk [vmem:[#allocation3 + $0x54] sm:$0xf] %vm1802_vm3, %v6448_v53  ;;  %6891 = vrot.lane.b32.xlu0 %v6753_v10, %s12594_s12  ;;  %v6758_v51 = vshll.u32 %v14719_v0, 16  ;;  %v6756_v32 = vor.u32 %v6754_v29, %v6752_v36  ;;  %v6762_v53 = vshrl.u32 %v14719_v0, 16  ;;  %v12530_v29 = vld [vmem:[#allocation5 + $0x30] sm:$0xff]  }
 0x485   : > { %v6449_v41 = vmax.bf16 %v6331_v45, %v14379_v33  ;;  %v6333_v62 = vpop.permute.xlu1 %6332  ;;  %v12462_v33 = vld [vmem:[%s16490_s4 + $0x10] sm:$0xff]  }
 0x486   : > { %v6450_v60 = vmax.bf16 %v6333_v62, %v14387_v38  ;;  %v6760_v31 = vrot.slane %v6758_v51, 1 }
 0x487   : > { %6496 = vst.msk [vmem:[#allocation3 + $0x58] sm:$0xf] %vm1802_vm3, %v6449_v41  ;;  %12136 = vmatpush3.bf16.msra.mxu0 %v12457_v48 }
 0x488   : > { %v3712_v6 = vpop.permute.xlu0 %3711  ;;  %12137 = vmatprep.subr.bf16.mxu0 %v12459_v28  ;;  %6497 = vst.msk [vmem:[#allocation3 + $0x5c] sm:$0xf] %vm1802_vm3, %v6450_v60  ;;  %v6761_v7 = vsel %vm534_vm0, %v6756_v32, %v6760_v31 }
 0x489   : > { %v3764_v57 = vsel %vm856_vm2, %v12529_v16, %v3712_v6  ;;  %v3714_v17 = vpop.permute.xlu1 %3713  ;;  %6893 = vrot.lane.b32.xlu1 %v6761_v7, %s12594_s12 }
 0x48a   : > { %12033 = vmatprep.mubr.bf16.mxu0 %v3764_v57  ;;  %v3767_v38 = vsel %vm856_vm2, %v14353_v9, %v3714_v17 }
 0x48b   : > { %12138 = vmatpush3.bf16.msra.mxu0 %v12459_v28  ;;  %v14740_v26 = vld [vmem:[#allocation3 + $0x50] sm:$0xff]   ;;  %v6764_v28 = vor.u32 %v6762_v53, %v6760_v31 }
 0x48c   : > { %12034 = vmatmul.mubr.bf16.gmra.mxu0 %v3767_v38  ;;  %v6335_v48 = vpop.permute.xlu0 %6334  ;;  %12139 = vmatprep.subr.bf16.mxu0 %v12462_v33  ;;  %v6766_v45 = vshll.u32 %v14740_v26, 16  ;;  %v6770_v6 = vshrl.u32 %v14740_v26, 16 }
 0x48d   : > { %v6451_v18 = vmax.bf16 %v6335_v48, %v14402_v49  ;;  %v6337_v36 = vpop.permute.xlu1 %6336  ;;  %v12466_v49 = vld [vmem:[%s16490_s4] sm:$0xff]  }
 0x48e   : > { %v6452_v9 = vmax.bf16 %v6337_v36, %v14409_v61  ;;  %v6768_v41 = vrot.slane %v6766_v45, 1 }
 0x48f   : > { %6498 = vst.msk [vmem:[#allocation3 + $0x60] sm:$0xf] %vm1802_vm3, %v6451_v18  ;;  %12140 = vmatpush3.bf16.msra.mxu0 %v12462_v33  ;;  %v14750_v62 = vld [vmem:[#allocation3 + $0x58] sm:$0xff]  }
 0x490   : > { %v3716_v10 = vpop.permute.xlu0 %3715  ;;  %12141 = vmatprep.subr.bf16.mxu0 %v12464_v46  ;;  %6499 = vst.msk [vmem:[#allocation3 + $0x64] sm:$0xf] %vm1802_vm3, %v6452_v9  ;;  %v6769_v61 = vsel %vm534_vm0, %v6764_v28, %v6768_v41  ;;  %v6774_v32 = vshll.u32 %v14750_v62, 16  ;;  %v6772_v16 = vor.u32 %v6770_v6, %v6768_v41 }
 0x491   : > { %v3770_v51 = vsel %vm856_vm2, %v12530_v29, %v3716_v10  ;;  %v3718_v60 = vpop.permute.xlu1 %3717  ;;  %6895 = vrot.lane.b32.xlu0 %v6769_v61, %s12594_s12 }
 0x492   : > { %12037 = vmatprep.mubr.bf16.mxu0 %v3770_v51  ;;  %v3773_v31 = vsel %vm856_vm2, %v14381_v56, %v3718_v60  ;;  %v6776_v57 = vrot.slane %v6774_v32, 1 }
 0x493   : > { %12142 = vmatpush3.bf16.msra.mxu0 %v12464_v46 }
 0x494   : > { %12038 = vmatmul.mubr.bf16.gmra.mxu0 %v3773_v31  ;;  %v6339_v33 = vpop.permute.xlu0 %6338  ;;  %12143 = vmatprep.subr.bf16.mxu0 %v12466_v49  ;;  %v6777_v38 = vsel %vm534_vm0, %v6772_v16, %v6776_v57 }
 0x495   : > { %v6453_v17 = vmax.bf16 %v6339_v33, %v14435_v4  ;;  %v6341_v7 = vpop.permute.xlu1 %6340  ;;  %6897 = vrot.lane.b32.xlu1 %v6777_v38, %s12594_s12  ;;  %v6778_v4 = vshrl.u32 %v14750_v62, 16 }
 0x496   : > { %v6454_v48 = vmax.bf16 %v6341_v7, %v14445_v35 }
 0x497   : > { %6500 = vst.msk [vmem:[#allocation3 + $0x68] sm:$0xf] %vm1802_vm3, %v6453_v17  ;;  %12144 = vmatpush3.bf16.msra.mxu0 %v12466_v49  ;;  %v14768_v56 = vld [vmem:[#allocation3 + $0x60] sm:$0xff]   ;;  %v6780_v9 = vor.u32 %v6778_v4, %v6776_v57 }
 0x498   : > { %v3720_v18 = vpop.permute.xlu0 %3719  ;;  %6501 = vst.msk [vmem:[#allocation3 + $0x6c] sm:$0xf] %vm1802_vm3, %v6454_v48  ;;  %v6782_v53 = vshll.u32 %v14768_v56, 16 }
 0x499   : > { %v3776_v46 = vsel %vm856_vm2, %v14390_v5, %v3720_v18  ;;  %v3722_v36 = vpop.permute.xlu1 %3721 }
 0x49a   : > { %12041 = vmatprep.mubr.bf16.mxu0 %v3776_v46  ;;  %v3779_v35 = vsel %vm856_vm2, %v14411_v44, %v3722_v36  ;;  %v6784_v10 = vrot.slane %v6782_v53, 1 }
 0x49c   : > { %12042 = vmatmul.mubr.bf16.gmra.mxu0 %v3779_v35  ;;  %v6343_v45 = vpop.permute.xlu0 %6342  ;;  %v6785_v49 = vsel %vm534_vm0, %v6780_v9, %v6784_v10 }
 0x49d   : > { %v6455_v28 = vmax.bf16 %v6343_v45, %v14460_v63  ;;  %v6345_v41 = vpop.permute.xlu1 %6344  ;;  %6899 = vrot.lane.b32.xlu0 %v6785_v49, %s12594_s12  ;;  %v6786_v63 = vshrl.u32 %v14768_v56, 16 }
 0x49e   : > { %v6456_v5 = vmax.bf16 %v6345_v41, %v14465_v30 }
 0x49f   : > { %6502 = vst.msk [vmem:[#allocation3 + $0x70] sm:$0xf] %vm1802_vm3, %v6455_v28  ;;  %v14782_v51 = vld [vmem:[#allocation3 + $0x68] sm:$0xff]   ;;  %v6788_v32 = vor.u32 %v6786_v63, %v6784_v10 }
 0x4a0   : > { %v3724_v29 = vpop.permute.xlu0 %3723  ;;  %6503 = vst.msk [vmem:[#allocation3 + $0x74] sm:$0xf] %vm1802_vm3, %v6456_v5  ;;  %v6790_v61 = vshll.u32 %v14782_v51, 16 }
 0x4a1   : > { %v3782_v44 = vsel %vm856_vm2, %v14418_v27, %v3724_v29  ;;  %v3726_v60 = vpop.permute.xlu1 %3725 }
 0x4a2   : > { %12045 = vmatprep.mubr.bf16.mxu0 %v3782_v44  ;;  %v3785_v6 = vsel %vm856_vm2, %v14437_v55, %v3726_v60  ;;  %v6792_v31 = vrot.slane %v6790_v61, 1 }
 0x4a4   : > { %12046 = vmatmul.mubr.bf16.gmra.mxu0 %v3785_v6  ;;  %v6347_v30 = vpop.permute.xlu0 %6346  ;;  %v6793_v57 = vsel %vm534_vm0, %v6788_v32, %v6792_v31 }
 0x4a5   : > { %v6457_v33 = vmax.bf16 %v6347_v30, %v14483_v50  ;;  %v6349_v16 = vpop.permute.xlu1 %6348  ;;  %6901 = vrot.lane.b32.xlu1 %v6793_v57, %s12594_s12  ;;  %v6794_v50 = vshrl.u32 %v14782_v51, 16 }
 0x4a6   : > { %v6458_v27 = vmax.bf16 %v6349_v16, %v14489_v2 }
 0x4a7   : > { %6504 = vst.msk [vmem:[#allocation3 + $0x78] sm:$0xf] %vm1802_vm3, %v6457_v33  ;;  %v14796_v7 = vld [vmem:[#allocation3 + $0x70] sm:$0xff]   ;;  %v6796_v46 = vor.u32 %v6794_v50, %v6792_v31 }
 0x4a8   : > { %v3728_v17 = vpop.permute.xlu0 %3727  ;;  %6505 = vst.msk [vmem:[#allocation3 + $0x7c] sm:$0xf] %vm1802_vm3, %v6458_v27  ;;  %v6798_v48 = vshll.u32 %v14796_v7, 16 }
 0x4a9   : > { %v3788_v55 = vsel %vm856_vm2, %v14448_v1, %v3728_v17  ;;  %v3730_v38 = vpop.permute.xlu1 %3729 }
 0x4aa   : > { %12049 = vmatprep.mubr.bf16.mxu0 %v3788_v55  ;;  %v3791_v18 = vsel %vm856_vm2, %v14467_v24, %v3730_v38  ;;  %v6800_v36 = vrot.slane %v6798_v48, 1 }
 0x4ac   : > { %12050 = vmatmul.mubr.bf16.gmra.mxu0 %v3791_v18  ;;  %v6351_v2 = vpop.permute.xlu0 %6350  ;;  %v6801_v35 = vsel %vm534_vm0, %v6796_v46, %v6800_v36 }
 0x4ad   : > { %v6459_v4 = vmax.bf16 %v6351_v2, %v14500_v47  ;;  %v6353_v53 = vpop.permute.xlu1 %6352  ;;  %6903 = vrot.lane.b32.xlu0 %v6801_v35, %s12594_s12  ;;  %v6802_v47 = vshrl.u32 %v14796_v7, 16 }
 0x4ae   : > { %v6460_v1 = vmax.bf16 %v6353_v53, %v14505_v58 }
 0x4af   : > { %6506 = vst.msk [vmem:[#allocation3 + $0x80] sm:$0xf] %vm1802_vm3, %v6459_v4  ;;  %v14810_v9 = vld [vmem:[#allocation3 + $0x78] sm:$0xff]   ;;  %v6804_v49 = vor.u32 %v6802_v47, %v6800_v36 }
 0x4b0   : > { %v3732_v45 = vpop.permute.xlu0 %3731  ;;  %6507 = vst.msk [vmem:[#allocation3 + $0x84] sm:$0xf] %vm1802_vm3, %v6460_v1  ;;  %v6806_v28 = vshll.u32 %v14810_v9, 16  ;;  %v16525_v36 = vld [vmem:[#allocation12_spill] sm:$0xff] }
 0x4b1   : > { %v3794_v24 = vsel %vm856_vm2, %v14472_v15, %v3732_v45  ;;  %v3734_v10 = vpop.permute.xlu1 %3733 }
 0x4b2   : > { %12053 = vmatprep.mubr.bf16.mxu0 %v3794_v24  ;;  %v3797_v41 = vsel %vm856_vm2, %v14485_v19, %v3734_v10  ;;  %v6808_v5 = vrot.slane %v6806_v28, 1 }
 0x4b4   : > { %12054 = vmatmul.mubr.bf16.gmra.mxu0 %v3797_v41  ;;  %v6355_v58 = vpop.permute.xlu0 %6354  ;;  %v6809_v60 = vsel %vm534_vm0, %v6804_v49, %v6808_v5 }
 0x4b5   : > { %v6461_v29 = vmax.bf16 %v6355_v58, %v14523_v34  ;;  %v6357_v44 = vpop.permute.xlu1 %6356  ;;  %6905 = vrot.lane.b32.xlu1 %v6809_v60, %s12594_s12  ;;  %v6810_v34 = vshrl.u32 %v14810_v9, 16 }
 0x4b6   : > { %v6462_v15 = vmax.bf16 %v6357_v44, %v14529_v59 }
 0x4b7   : > { %6508 = vst.msk [vmem:[#allocation3 + $0x88] sm:$0xf] %vm1802_vm3, %v6461_v29  ;;  %v14824_v61 = vld [vmem:[#allocation3 + $0x80] sm:$0xff]   ;;  %v6812_v31 = vor.u32 %v6810_v34, %v6808_v5  ;;  %v16526_v5 = vld [vmem:[#allocation14_spill] sm:$0xff] }
 0x4b8   : > { %v3736_v63 = vpop.permute.xlu0 %3735  ;;  %6509 = vst.msk [vmem:[#allocation3 + $0x8c] sm:$0xf] %vm1802_vm3, %v6462_v15  ;;  %v6814_v30 = vshll.u32 %v14824_v61, 16 }
 0x4b9   : > { %v3800_v19 = vsel %vm856_vm2, %v14492_v40, %v3736_v63  ;;  %v3738_v6 = vpop.permute.xlu1 %3737  ;;  %v12467_v63 = vld [vmem:[#allocation5 + $0xb8] ss:$0 sps:$4 sm:$0x77]  }
 0x4ba   : > { %12057 = vmatprep.mubr.bf16.mxu0 %v3800_v19  ;;  %v3803_v32 = vsel %vm856_vm2, %v14507_v13, %v3738_v6  ;;  %v6816_v33 = vrot.slane %v6814_v30, 1  ;;  %v16527_v30 = vld [vmem:[#allocation16_spill] sm:$0xff] }
 0x4bc   : > { %12058 = vmatmul.mubr.bf16.gmra.mxu0 %v3803_v32  ;;  %v6359_v59 = vpop.permute.xlu0 %6358  ;;  %v6817_v27 = vsel %vm534_vm0, %v6812_v31, %v6816_v33 }
 0x4bd   : > { %v6463_v16 = vmax.bf16 %v6359_v59, %v14541_v20  ;;  %v6361_v57 = vpop.permute.xlu1 %6360  ;;  %6907 = vrot.lane.b32.xlu0 %v6817_v27, %s12594_s12  ;;  %v6818_v20 = vshrl.u32 %v14824_v61, 16 }
 0x4be   : > { %v6464_v40 = vmax.bf16 %v6361_v57, %v14552_v8 }
 0x4bf   : > { %6510 = vst.msk [vmem:[#allocation3 + $0x90] sm:$0xf] %vm1802_vm3, %v6463_v16  ;;  %v14838_v55 = vld [vmem:[#allocation3 + $0x88] sm:$0xff]   ;;  %v6820_v48 = vor.u32 %v6818_v20, %v6816_v33 }
 0x4c0   : > { %v3740_v17 = vpop.permute.xlu0 %3739  ;;  %6511 = vst.msk [vmem:[#allocation3 + $0x94] sm:$0xf] %vm1802_vm3, %v6464_v40  ;;  %v6822_v38 = vshll.u32 %v14838_v55, 16  ;;  %v6826_v1 = vshrl.u32 %v14838_v55, 16  ;;  %v16528_v40 = vld [vmem:[#allocation15_spill] sm:$0xff] }
 0x4c1   : > { %v3806_v13 = vsel %vm856_vm2, %v14512_v22, %v3740_v17 }
 0x4c2   : > { %12061 = vmatprep.mubr.bf16.mxu0 %v3806_v13  ;;  %v6824_v18 = vrot.slane %v6822_v38, 1  ;;  %v16529_v13 = vld [vmem:[#allocation18_spill] sm:$0xff] }
 0x4c4   : > { %v6363_v50 = vpop.permute.xlu0 %6362  ;;  %v6825_v2 = vsel %vm534_vm0, %v6820_v48, %v6824_v18  ;;  %v6828_v45 = vor.u32 %v6826_v1, %v6824_v18 }
 0x4c5   : > { %v6465_v8 = vmax.bf16 %v6363_v50, %v14571_v12  ;;  %6909 = vrot.lane.b32.xlu1 %v6825_v2, %s12594_s12 }
 0x4c6   : > { %v3742_v46 = vpop.permute.xlu1 %3741 }
 0x4c7   : > { %6512 = vst.msk [vmem:[#allocation3 + $0x98] sm:$0xf] %vm1802_vm3, %v6465_v8  ;;  %v3809_v22 = vsel %vm856_vm2, %v16525_v36, %v3742_v46  ;;  %v14851_v4 = vld [vmem:[#allocation3 + $0x90] sm:$0xff]   ;;  %v16530_v36 = vld [vmem:[#allocation21_spill] sm:$0xff] }
 0x4c8   : > { %12062 = vmatmul.mubr.bf16.gmra.mxu0 %v3809_v22  ;;  %v3744_v53 = vpop.permute.xlu0 %3743  ;;  %v6830_v12 = vshll.u32 %v14851_v4, 16  ;;  %v6834_v57 = vshrl.u32 %v14851_v4, 16 }
 0x4c9   : > { %v3812_v35 = vsel %vm856_vm2, %v14565_v25, %v3744_v53 }
 0x4ca   : > { %12065 = vmatprep.mubr.bf16.mxu0 %v3812_v35  ;;  %v6832_v24 = vrot.slane %v6830_v12, 1 }
 0x4cc   : > { %v3750_v10 = vpop.permute.xlu1 %3749  ;;  %v6367_v47 = vpop.permute.xlu0 %6366  ;;  %v6833_v41 = vsel %vm534_vm0, %v6828_v45, %v6832_v24 }
 0x4cd   : > { %v6467_v28 = vmax.bf16 %v6367_v47, %v14586_v21  ;;  %6911 = vrot.lane.b32.xlu0 %v6833_v41, %s12594_s12  ;;  %v3822_v34 = vsel %vm856_vm2, %v12467_v63, %v3750_v10 }
 0x4cf   : > { %6514 = vst.msk [vmem:[#allocation3 + $0xa0] sm:$0xf] %vm1802_vm3, %v6467_v28 }
 0x4d0   : > { %v3746_v58 = vpop.permute.xlu1 %3745  ;;  %v3748_v49 = vpop.permute.xlu0 %3747 }
 0x4d1   : > { %v3815_v25 = vsel %vm856_vm2, %v14560_v23, %v3746_v58  ;;  %v3818_v29 = vsel %vm856_vm2, %v16526_v5, %v3748_v49 }
 0x4d2   : > { %12066 = vmatmul.mubr.bf16.gmra.mxu0 %v3815_v25  ;;  %v16532_v25 = vld [vmem:[#allocation20_spill] sm:$0xff] }
 0x4d3   : > { %12069 = vmatprep.mubr.bf16.mxu0 %v3818_v29 }
 0x4d4   : > { %v6365_v44 = vpop.permute.xlu1 %6364  ;;  %v6371_v60 = vpop.permute.xlu0 %6370 }
 0x4d5   : > { %v6466_v21 = vmax.bf16 %v6365_v44, %v14610_v3  ;;  %v6469_v15 = vmax.bf16 %v6371_v60, %v14608_v37 }
 0x4d7   : > { %6513 = vst.msk [vmem:[#allocation3 + $0x9c] sm:$0xf] %vm1802_vm3, %v6466_v21  ;;  %6516 = vst.msk [vmem:[#allocation3 + $0xa8] sm:$0xf] %vm1802_vm3, %v6469_v15 }
 0x4d8   : > { %v6369_v19 = vpop.permute.xlu1 %6368 }
 0x4d9   : > { %v6878_v6 = vpop.permute.xlu0 %6877  ;;  %v6468_v23 = vmax.bf16 %v6369_v19, %v14623_v54  ;;  %v16533_v19 = vld [vmem:[#allocation19_spill] sm:$0xff] }
 0x4da   : > { %v6926_v32 = vsel %vm856_vm2, %v16527_v30, %v6878_v6  ;;  %12070 = vmatmul.mubr.bf16.gmra.mxu0 %v3822_v34 }
 0x4db   : > { %6515 = vst.msk [vmem:[#allocation3 + $0xa4] sm:$0xf] %vm1802_vm3, %v6468_v23  ;;  %12145 = vmatprep.mubr.bf16.mxu0 %v6926_v32 }
 0x4dc   : > { %v6373_v3 = vpop.permute.xlu1 %6372 }
 0x4dd   : > { %v6375_v37 = vpop.permute.xlu0 %6374  ;;  %v6470_v59 = vmax.bf16 %v6373_v3, %v14639_v11 }
 0x4de   : > { %v6471_v31 = vmax.bf16 %v6375_v37, %v14633_v43  ;;  %v14876_v33 = vld [vmem:[#allocation3 + $0x98] sm:$0xff]   ;;  %v6836_v43 = vor.u32 %v6834_v57, %v6832_v24 }
 0x4df   : > { %6517 = vst.msk [vmem:[#allocation3 + $0xac] sm:$0xf] %vm1802_vm3, %v6470_v59  ;;  %v6838_v27 = vshll.u32 %v14876_v33, 16  ;;  %v6842_v8 = vshrl.u32 %v14876_v33, 16 }
 0x4e0   : > { %6518 = vst.msk [vmem:[#allocation3 + $0xb0] sm:$0xf] %vm1802_vm3, %v6471_v31  ;;  %v6880_v54 = vpop.permute.xlu1 %6879 }
 0x4e1   : > { %v6882_v16 = vpop.permute.xlu0 %6881  ;;  %v6929_v17 = vsel %vm856_vm2, %v16528_v40, %v6880_v54  ;;  %v6840_v20 = vrot.slane %v6838_v27, 1 }
 0x4e2   : > { %v6932_v11 = vsel %vm856_vm2, %v16529_v13, %v6882_v16  ;;  %12146 = vmatmul.mubr.bf16.vlgmr.msra.gmra.mxu0 %v6929_v17  ;;  %v14886_v38 = vld [vmem:[#allocation3 + $0xa0] sm:$0xff]  }
 0x4e3   : > { %12149 = vmatprep.mubr.bf16.mxu0 %v6932_v11  ;;  %v6841_v18 = vsel %vm534_vm0, %v6836_v43, %v6840_v20  ;;  %v6846_v2 = vshll.u32 %v14886_v38, 16  ;;  %v6844_v53 = vor.u32 %v6842_v8, %v6840_v20  ;;  %v6850_v24 = vshrl.u32 %v14886_v38, 16 }
 0x4e4   : > { %v6377_v50 = vpop.permute.xlu1 %6376  ;;  %6913 = vrot.lane.b32.xlu1 %v6841_v18, %s12594_s12 }
 0x4e5   : > { %v6379_v48 = vpop.permute.xlu0 %6378  ;;  %v6472_v46 = vmax.bf16 %v6377_v50, %v14665_v42  ;;  %v6848_v35 = vrot.slane %v6846_v2, 1  ;;  %v16531_v42 = vld [vmem:[#allocation17_spill] sm:$0xff] }
 0x4e6   : > { %v6473_v22 = vmax.bf16 %v6379_v48, %v16530_v36  ;;  %v14894_v1 = vld [vmem:[#allocation3 + $0xa8] sm:$0xff]  }
 0x4e7   : > { %6519 = vst.msk [vmem:[#allocation3 + $0xb4] sm:$0xf] %vm1802_vm3, %v6472_v46  ;;  %v6849_v45 = vsel %vm534_vm0, %v6844_v53, %v6848_v35  ;;  %v6854_v10 = vshll.u32 %v14894_v1, 16  ;;  %v6852_v28 = vor.u32 %v6850_v24, %v6848_v35  ;;  %v6858_v15 = vshrl.u32 %v14894_v1, 16 }
 0x4e8   : > { %6520 = vst.msk [vmem:[#allocation3 + $0xb8] sm:$0xf] %vm1802_vm3, %v6473_v22  ;;  %v6884_v12 = vpop.permute.xlu1 %6883  ;;  %6915 = vrot.lane.b32.xlu0 %v6849_v45, %s12594_s12 }
 0x4e9   : > { %v6935_v47 = vsel %vm856_vm2, %v16531_v42, %v6884_v12  ;;  %v6856_v41 = vrot.slane %v6854_v10, 1 }
 0x4ea   : > { %12150 = vmatmul.mubr.bf16.gmra.mxu0 %v6935_v47 }
 0x4eb   : > { %v6857_v49 = vsel %vm534_vm0, %v6852_v28, %v6856_v41  ;;  %v6860_v30 = vor.u32 %v6858_v15, %v6856_v41 }
 0x4ec   : > { %v6886_v58 = vpop.permute.xlu1 %6885  ;;  %6917 = vrot.lane.b32.xlu1 %v6857_v49, %s12594_s12 }
 0x4ed   : > { %v6938_v5 = vsel %vm856_vm2, %v16532_v25, %v6886_v58 }
 0x4ee   : > { %12153 = vmatprep.mubr.bf16.mxu0 %v6938_v5  ;;  %v6888_v29 = vpop.permute.xlu0 %6887  ;;  %v14908_v44 = vld [vmem:[#allocation3 + $0xb0] sm:$0xff]  }
 0x4ef   : > { %v14910_v60 = vld [vmem:[#allocation3 + $0xb8] ss:$0 sps:$4 sm:$0xff]   ;;  %v6862_v63 = vshll.u32 %v14908_v44, 16  ;;  %v6941_v6 = vsel %vm856_vm2, %v16533_v19, %v6888_v29  ;;  %v6866_v3 = vshrl.u32 %v14908_v44, 16 }
 0x4f0   : > { %v6890_v21 = vpop.permute.xlu1 %6889  ;;  %v6870_v34 = vshll.u32 %v14910_v60, 16  ;;  %v6874_v54 = vshrl.u32 %v14910_v60, 16 }
 0x4f1   : > { %v6944_v23 = vsel %vm856_vm2, %v14681_v39, %v6890_v21  ;;  %v6864_v32 = vrot.slane %v6862_v63, 1 }
 0x4f2   : > { %12154 = vmatmul.mubr.bf16.gmra.mxu0 %v6941_v6  ;;  %v6872_v37 = vrot.slane %v6870_v34, 1 }
 0x4f3   : > { %12157 = vmatprep.mubr.bf16.mxu0 %v6944_v23  ;;  %v6865_v59 = vsel %vm534_vm0, %v6860_v30, %v6864_v32  ;;  %v6868_v31 = vor.u32 %v6866_v3, %v6864_v32 }
 0x4f4   : > { %6919 = vrot.lane.b32.xlu0 %v6865_v59, %s12594_s12  ;;  %v6876_v39 = vor.u32 %v6874_v54, %v6872_v37 }
 0x4f5   : > { %v6873_v57 = vsel %vm534_vm0, %v6868_v31, %v6872_v37 }
 0x4f6   : > { %v6892_v16 = vpop.permute.xlu0 %6891  ;;  %6921 = vrot.lane.b32.xlu1 %v6873_v57, %s12594_s12 }
 0x4f7   : > { %v6947_v27 = vsel %vm856_vm2, %v14676_v14, %v6892_v16 }
 0x4f8   : > { %6923 = vrot.lane.b32.xlu0 %v6876_v39, %s12594_s12 }
 0x4fa   : > { %12158 = vmatmul.mubr.bf16.gmra.mxu0 %v6947_v27 }
 0x4fb   : > { %v6894_v40 = vpop.permute.xlu1 %6893 }
 0x4fc   : > { %v6950_v17 = vsel %vm856_vm2, %v14706_v52, %v6894_v40 }
 0x4fd   : > { %12161 = vmatprep.mubr.bf16.mxu0 %v6950_v17 }
 0x503   : > { %v6896_v13 = vpop.permute.xlu0 %6895 }
 0x504   : > { %v6953_v11 = vsel %vm856_vm2, %v14719_v0, %v6896_v13 }
 0x505   : > { %12162 = vmatmul.mubr.bf16.gmra.mxu0 %v6953_v11 }
 0x507   : > { %v6898_v43 = vpop.permute.xlu1 %6897 }
 0x508   : > { %v6956_v20 = vsel %vm856_vm2, %v14740_v26, %v6898_v43 }
 0x509   : > { %12165 = vmatprep.mubr.bf16.mxu0 %v6956_v20 }
 0x50f   : > { %v6900_v50 = vpop.permute.xlu0 %6899 }
 0x510   : > { %v6959_v14 = vsel %vm856_vm2, %v14750_v62, %v6900_v50 }
 0x511   : > { %12166 = vmatmul.mubr.bf16.gmra.mxu0 %v6959_v14 }
 0x517   : > { %v6902_v48 = vpop.permute.xlu1 %6901 }
 0x518   : > { %v6962_v52 = vsel %vm856_vm2, %v14768_v56, %v6902_v48  ;;  %v14947_v56 = vld [vmem:[%s16494_s8] ss:$0 sm:$0xff] }
 0x519   : > { %12169 = vmatprep.mubr.bf16.mxu0 %v6962_v52 }
 0x51f   : > { %v6904_v18 = vpop.permute.xlu0 %6903 }
 0x520   : > { %v6965_v0 = vsel %vm856_vm2, %v14782_v51, %v6904_v18 }
 0x521   : > { %12170 = vmatmul.mubr.bf16.gmra.mxu0 %v6965_v0 }
 0x527   : > { %v6906_v8 = vpop.permute.xlu1 %6905 }
 0x528   : > { %v6968_v26 = vsel %vm856_vm2, %v14796_v7, %v6906_v8  ;;  %v14955_v7 = vld [vmem:[%s16495_s9] ss:$0 sm:$0xff] }
 0x529   : > { %12173 = vmatprep.mubr.bf16.mxu0 %v6968_v26 }
 0x52f   : > { %v6908_v2 = vpop.permute.xlu0 %6907 }
 0x530   : > { %v6971_v62 = vsel %vm856_vm2, %v14810_v9, %v6908_v2 }
 0x531   : > { %12174 = vmatmul.mubr.bf16.gmra.mxu0 %v6971_v62 }
 0x537   : > { %v6910_v46 = vpop.permute.xlu1 %6909 }
 0x538   : > { %v6974_v51 = vsel %vm856_vm2, %v14824_v61, %v6910_v46 }
 0x539   : > { %12177 = vmatprep.mubr.bf16.mxu0 %v6974_v51 }
 0x53a   : > { %v12027_v36 = vpop.f32.mrf.mxu0 }
 0x53b   : > { %v4121_v22 = vmul.f32 %v12027_v36, %v14947_v56 }
 0x53c   : > { %v3922_v9 = vpop.f32.mrf.mxu0 }
 0x53d   : > { %v4119_v53 = vmul.f32 %v14947_v56, %v3922_v9  ;;  %v4175_v12 = vadd.f32 %v14955_v7, %v4121_v22 }
 0x53e   : > { %v12028_v35 = vpop.f32.mrf.mxu0 }
 0x53f   : > { %v4122_v45 = vmul.f32 %v12028_v35, %v14947_v56  ;;  %v4173_v10 = vadd.f32 %v14955_v7, %v4119_v53  ;;  %v6912_v47 = vpop.permute.xlu0 %6911  ;;  %v4222_v58 = vmax.f32 %v4175_v12, 0.0 }
 0x540   : > { %v3925_v24 = vpop.f32.mrf.mxu0  ;;  %v6977_v41 = vsel %vm856_vm2, %v14838_v55, %v6912_v47 }
 0x541   : > { %v4176_v61 = vadd.f32 %v14955_v7, %v4122_v45  ;;  %v4120_v42 = vmul.f32 %v14947_v56, %v3925_v24  ;;  %12178 = vmatmul.mubr.bf16.gmra.mxu0 %v6977_v41  ;;  %v4220_v21 = vmax.f32 %v4173_v10, 0.0 }
 0x542   : > { %v12031_v28 = vpop.f32.mrf.mxu0 }
 0x543   : > { %v4223_v49 = vmax.f32 %v4176_v61, 0.0  ;;  %v4174_v25 = vadd.f32 %v14955_v7, %v4120_v42  ;;  %v4125_v5 = vmul.f32 %v12031_v28, %v14947_v56 }
 0x544   : > { %v3938_v29 = vpop.f32.mrf.mxu0 }
 0x545   : > { %v10893_v15 = vpack.c.bf16 %v4223_v49, %v4222_v58  ;;  %v4221_v63 = vmax.f32 %v4174_v25, 0.0  ;;  %v4123_v19 = vmul.f32 %v14947_v56, %v3938_v29  ;;  %v4179_v34 = vadd.f32 %v14955_v7, %v4125_v5 }
 0x546   : > { %v12032_v6 = vpop.f32.mrf.mxu0 }
 0x547   : > { %11573 = vst [vmem:[#allocation6 + $0x8] sm:$0xff] %v10893_v15   ;;  %v10888_v23 = vpack.c.bf16 %v4221_v63, %v4220_v21  ;;  %v4126_v55 = vmul.f32 %v12032_v6, %v14947_v56  ;;  %v4177_v32 = vadd.f32 %v14955_v7, %v4123_v19  ;;  %v4226_v59 = vmax.f32 %v4179_v34, 0.0 }
 0x548   : > { %v3941_v30 = vpop.f32.mrf.mxu0 }
 0x549   : > { %10889 = vst [vmem:[#allocation6] sm:$0xff] %v10888_v23   ;;  %v4180_v3 = vadd.f32 %v14955_v7, %v4126_v55  ;;  %v4124_v37 = vmul.f32 %v14947_v56, %v3941_v30  ;;  %v4224_v57 = vmax.f32 %v4177_v32, 0.0 }
 0x54b   : > { %v4227_v31 = vmax.f32 %v4180_v3, 0.0  ;;  %v4178_v54 = vadd.f32 %v14955_v7, %v4124_v37 }
 0x54c   : > { %v12035_v16 = vpop.f32.mrf.mxu0 }
 0x54d   : > { %v10903_v39 = vpack.c.bf16 %v4227_v31, %v4226_v59  ;;  %v4225_v27 = vmax.f32 %v4178_v54, 0.0  ;;  %v4129_v40 = vmul.f32 %v12035_v16, %v14947_v56 }
 0x54e   : > { %v3954_v17 = vpop.f32.mrf.mxu0 }
 0x54f   : > { %11575 = vst [vmem:[#allocation6 + $0x18] sm:$0xff] %v10903_v39   ;;  %v10898_v13 = vpack.c.bf16 %v4225_v27, %v4224_v57  ;;  %v4127_v11 = vmul.f32 %v14947_v56, %v3954_v17  ;;  %v4183_v20 = vadd.f32 %v14955_v7, %v4129_v40 }
 0x550   : > { %v12036_v43 = vpop.f32.mrf.mxu0 }
 0x551   : > { %11574 = vst [vmem:[#allocation6 + $0x10] sm:$0xff] %v10898_v13   ;;  %v4130_v50 = vmul.f32 %v12036_v43, %v14947_v56  ;;  %v4181_v48 = vadd.f32 %v14955_v7, %v4127_v11  ;;  %v4230_v8 = vmax.f32 %v4183_v20, 0.0 }
 0x552   : > { %v3957_v14 = vpop.f32.mrf.mxu0 }
 0x553   : > { %v4184_v52 = vadd.f32 %v14955_v7, %v4130_v50  ;;  %v4128_v18 = vmul.f32 %v14947_v56, %v3957_v14  ;;  %v4228_v36 = vmax.f32 %v4181_v48, 0.0 }
 0x554   : > { %v12039_v0 = vpop.f32.mrf.mxu0 }
 0x555   : > { %v4231_v26 = vmax.f32 %v4184_v52, 0.0  ;;  %v4182_v2 = vadd.f32 %v14955_v7, %v4128_v18  ;;  %v4133_v62 = vmul.f32 %v12039_v0, %v14947_v56 }
 0x556   : > { %v3970_v46 = vpop.f32.mrf.mxu0  ;;  %v6914_v12 = vpop.permute.xlu1 %6913 }
 0x557   : > { %v10913_v51 = vpack.c.bf16 %v4231_v26, %v4230_v8  ;;  %v4229_v22 = vmax.f32 %v4182_v2, 0.0  ;;  %v4131_v9 = vmul.f32 %v14947_v56, %v3970_v46  ;;  %v4187_v53 = vadd.f32 %v14955_v7, %v4133_v62 }
 0x558   : > { %v12040_v35 = vpop.f32.mrf.mxu0  ;;  %v6980_v61 = vsel %vm856_vm2, %v14851_v4, %v6914_v12 }
 0x559   : > { %11577 = vst [vmem:[#allocation6 + $0x28] sm:$0xff] %v10913_v51   ;;  %v10908_v45 = vpack.c.bf16 %v4229_v22, %v4228_v36  ;;  %v4134_v24 = vmul.f32 %v12040_v35, %v14947_v56  ;;  %v4185_v42 = vadd.f32 %v14955_v7, %v4131_v9  ;;  %12181 = vmatprep.mubr.bf16.mxu0 %v6980_v61  ;;  %v4234_v41 = vmax.f32 %v4187_v53, 0.0 }
 0x55a   : > { %v3973_v10 = vpop.f32.mrf.mxu0  ;;  %v6916_v49 = vpop.permute.xlu0 %6915 }
 0x55b   : > { %11576 = vst [vmem:[#allocation6 + $0x20] sm:$0xff] %v10908_v45   ;;  %v4188_v47 = vadd.f32 %v14955_v7, %v4134_v24  ;;  %v4132_v28 = vmul.f32 %v14947_v56, %v3973_v10  ;;  %v6983_v21 = vsel %vm856_vm2, %v14876_v33, %v6916_v49  ;;  %v4232_v15 = vmax.f32 %v4185_v42, 0.0 }
 0x55c   : > { %v12043_v58 = vpop.f32.mrf.mxu0  ;;  %12182 = vmatmul.mubr.bf16.gmra.mxu0 %v6983_v21 }
 0x55d   : > { %v4235_v25 = vmax.f32 %v4188_v47, 0.0  ;;  %v4186_v5 = vadd.f32 %v14955_v7, %v4132_v28  ;;  %v4137_v29 = vmul.f32 %v12043_v58, %v14947_v56 }
 0x55e   : > { %v3986_v4 = vpop.f32.mrf.mxu0  ;;  %v6918_v34 = vpop.permute.xlu1 %6917 }
 0x55f   : > { %v10923_v63 = vpack.c.bf16 %v4235_v25, %v4234_v41  ;;  %v4233_v19 = vmax.f32 %v4186_v5, 0.0  ;;  %v4135_v6 = vmul.f32 %v14947_v56, %v3986_v4  ;;  %v4191_v30 = vadd.f32 %v14955_v7, %v4137_v29 }
 0x560   : > { %v12044_v23 = vpop.f32.mrf.mxu0  ;;  %v6986_v37 = vsel %vm856_vm2, %v14886_v38, %v6918_v34 }
 0x561   : > { %11579 = vst [vmem:[#allocation6 + $0x38] sm:$0xff] %v10923_v63   ;;  %v10918_v55 = vpack.c.bf16 %v4233_v19, %v4232_v15  ;;  %v4138_v32 = vmul.f32 %v12044_v23, %v14947_v56  ;;  %v4189_v33 = vadd.f32 %v14955_v7, %v4135_v6  ;;  %12185 = vmatprep.mubr.bf16.mxu0 %v6986_v37  ;;  %v4238_v16 = vmax.f32 %v4191_v30, 0.0 }
 0x562   : > { %v3989_v3 = vpop.f32.mrf.mxu0 }
 0x563   : > { %11578 = vst [vmem:[#allocation6 + $0x30] sm:$0xff] %v10918_v55   ;;  %v4192_v59 = vadd.f32 %v14955_v7, %v4138_v32  ;;  %v4136_v31 = vmul.f32 %v14947_v56, %v3989_v3  ;;  %v4236_v17 = vmax.f32 %v4189_v33, 0.0 }
 0x564   : > { %v12047_v54 = vpop.f32.mrf.mxu0 }
 0x565   : > { %v4239_v57 = vmax.f32 %v4192_v59, 0.0  ;;  %v4190_v39 = vadd.f32 %v14955_v7, %v4136_v31  ;;  %v4141_v27 = vmul.f32 %v12047_v54, %v14947_v56 }
 0x566   : > { %v4002_v40 = vpop.f32.mrf.mxu0  ;;  %v6920_v20 = vpop.permute.xlu0 %6919 }
 0x567   : > { %v10933_v13 = vpack.c.bf16 %v4239_v57, %v4238_v16  ;;  %v4237_v11 = vmax.f32 %v4190_v39, 0.0  ;;  %v4139_v38 = vmul.f32 %v14947_v56, %v4002_v40  ;;  %v4195_v14 = vadd.f32 %v14955_v7, %v4141_v27 }
 0x568   : > { %v12048_v43 = vpop.f32.mrf.mxu0  ;;  %v6989_v18 = vsel %vm856_vm2, %v14894_v1, %v6920_v20  ;;  %v6922_v0 = vpop.permute.xlu1 %6921 }
 0x569   : > { %11581 = vst [vmem:[#allocation6 + $0x48] sm:$0xff] %v10933_v13   ;;  %v10928_v50 = vpack.c.bf16 %v4237_v11, %v4236_v17  ;;  %v4142_v48 = vmul.f32 %v12048_v43, %v14947_v56  ;;  %v4193_v8 = vadd.f32 %v14955_v7, %v4139_v38  ;;  %12186 = vmatmul.mubr.bf16.gmra.mxu0 %v6989_v18  ;;  %v4242_v36 = vmax.f32 %v4195_v14, 0.0 }
 0x56a   : > { %v4005_v52 = vpop.f32.mrf.mxu0  ;;  %v6992_v62 = vsel %vm856_vm2, %v14908_v44, %v6922_v0  ;;  %v6924_v24 = vpop.permute.xlu0 %6923 }
 0x56b   : > { %11580 = vst [vmem:[#allocation6 + $0x40] sm:$0xff] %v10928_v50   ;;  %v4196_v26 = vadd.f32 %v14955_v7, %v4142_v48  ;;  %v4140_v2 = vmul.f32 %v14947_v56, %v4005_v52  ;;  %12189 = vmatprep.mubr.bf16.mxu0 %v6992_v62  ;;  %v4240_v53 = vmax.f32 %v4193_v8, 0.0  ;;  %v6995_v47 = vsel %vm856_vm2, %v14910_v60, %v6924_v24 }
 0x56c   : > { %v12051_v46 = vpop.f32.mrf.mxu0 }
 0x56d   : > { %v4243_v51 = vmax.f32 %v4196_v26, 0.0  ;;  %v4194_v22 = vadd.f32 %v14955_v7, %v4140_v2  ;;  %v4145_v1 = vmul.f32 %v12051_v46, %v14947_v56 }
 0x56e   : > { %v4018_v9 = vpop.f32.mrf.mxu0 }
 0x56f   : > { %v10943_v35 = vpack.c.bf16 %v4243_v51, %v4242_v36  ;;  %v4241_v12 = vmax.f32 %v4194_v22, 0.0  ;;  %v4143_v45 = vmul.f32 %v14947_v56, %v4018_v9  ;;  %v4199_v44 = vadd.f32 %v14955_v7, %v4145_v1 }
 0x570   : > { %v12052_v10 = vpop.f32.mrf.mxu0 }
 0x571   : > { %11583 = vst [vmem:[#allocation6 + $0x58] sm:$0xff] %v10943_v35   ;;  %v10938_v61 = vpack.c.bf16 %v4241_v12, %v4240_v53  ;;  %v4146_v42 = vmul.f32 %v12052_v10, %v14947_v56  ;;  %v4197_v41 = vadd.f32 %v14955_v7, %v4143_v45  ;;  %12190 = vmatmul.mubr.bf16.gmra.mxu0 %v6995_v47  ;;  %v4246_v5 = vmax.f32 %v4199_v44, 0.0 }
 0x572   : > { %v4021_v28 = vpop.f32.mrf.mxu0 }
 0x573   : > { %11582 = vst [vmem:[#allocation6 + $0x50] sm:$0xff] %v10938_v61   ;;  %v4200_v58 = vadd.f32 %v14955_v7, %v4146_v42  ;;  %v4144_v49 = vmul.f32 %v14947_v56, %v4021_v28  ;;  %v4244_v63 = vmax.f32 %v4197_v41, 0.0 }
 0x574   : > { %v12055_v25 = vpop.f32.mrf.mxu0 }
 0x575   : > { %v4247_v29 = vmax.f32 %v4200_v58, 0.0  ;;  %v4198_v21 = vadd.f32 %v14955_v7, %v4144_v49  ;;  %v4149_v4 = vmul.f32 %v12055_v25, %v14947_v56 }
 0x576   : > { %v4034_v15 = vpop.f32.mrf.mxu0 }
 0x577   : > { %v10953_v19 = vpack.c.bf16 %v4247_v29, %v4246_v5  ;;  %v4245_v60 = vmax.f32 %v4198_v21, 0.0  ;;  %v4147_v6 = vmul.f32 %v14947_v56, %v4034_v15  ;;  %v4203_v55 = vadd.f32 %v14955_v7, %v4149_v4 }
 0x578   : > { %v12056_v23 = vpop.f32.mrf.mxu0 }
 0x579   : > { %11585 = vst [vmem:[#allocation6 + $0x68] sm:$0xff] %v10953_v19   ;;  %v10948_v34 = vpack.c.bf16 %v4245_v60, %v4244_v63  ;;  %v4150_v30 = vmul.f32 %v12056_v23, %v14947_v56  ;;  %v4201_v3 = vadd.f32 %v14955_v7, %v4147_v6  ;;  %v4250_v31 = vmax.f32 %v4203_v55, 0.0 }
 0x57a   : > { %v4037_v32 = vpop.f32.mrf.mxu0 }
 0x57b   : > { %11584 = vst [vmem:[#allocation6 + $0x60] sm:$0xff] %v10948_v34   ;;  %v4204_v37 = vadd.f32 %v14955_v7, %v4150_v30  ;;  %v4148_v33 = vmul.f32 %v14947_v56, %v4037_v32  ;;  %v4248_v27 = vmax.f32 %v4201_v3, 0.0 }
 0x57c   : > { %v12059_v59 = vpop.f32.mrf.mxu0 }
 0x57d   : > { %v4251_v54 = vmax.f32 %v4204_v37, 0.0  ;;  %v4202_v16 = vadd.f32 %v14955_v7, %v4148_v33  ;;  %v4153_v57 = vmul.f32 %v12059_v59, %v14947_v56 }
 0x57e   : > { %v4050_v39 = vpop.f32.mrf.mxu0 }
 0x57f   : > { %v10963_v40 = vpack.c.bf16 %v4251_v54, %v4250_v31  ;;  %v4249_v17 = vmax.f32 %v4202_v16, 0.0  ;;  %v4151_v13 = vmul.f32 %v14947_v56, %v4050_v39  ;;  %v4207_v43 = vadd.f32 %v14955_v7, %v4153_v57 }
 0x580   : > { %v12060_v11 = vpop.f32.mrf.mxu0 }
 0x581   : > { %11587 = vst [vmem:[#allocation6 + $0x78] sm:$0xff] %v10963_v40   ;;  %v10958_v38 = vpack.c.bf16 %v4249_v17, %v4248_v27  ;;  %v4154_v20 = vmul.f32 %v12060_v11, %v14947_v56  ;;  %v4205_v14 = vadd.f32 %v14955_v7, %v4151_v13  ;;  %v4254_v18 = vmax.f32 %v4207_v43, 0.0  ;;  %v15064_v40 = vld [vmem:[%s16491_s5] ss:$0 sm:$0xff] }
 0x582   : > { %v4053_v50 = vpop.f32.mrf.mxu0 }
 0x583   : > { %11586 = vst [vmem:[#allocation6 + $0x70] sm:$0xff] %v10958_v38   ;;  %v4208_v48 = vadd.f32 %v14955_v7, %v4154_v20  ;;  %v4152_v52 = vmul.f32 %v14947_v56, %v4053_v50  ;;  %v4252_v26 = vmax.f32 %v4205_v14, 0.0  ;;  %v15073_v50 = vld [vmem:[%s16492_s6] ss:$0 sm:$0xff] }
 0x585   : > { %v4255_v0 = vmax.f32 %v4208_v48, 0.0  ;;  %v4206_v8 = vadd.f32 %v14955_v7, %v4152_v52 }
 0x587   : > { %v10973_v2 = vpack.c.bf16 %v4255_v0, %v4254_v18  ;;  %v4253_v62 = vmax.f32 %v4206_v8, 0.0 }
 0x588   : > { %v12063_v36 = vpop.f32.mrf.mxu0 }
 0x589   : > { %11589 = vst [vmem:[#allocation6 + $0x88] sm:$0xff] %v10973_v2   ;;  %v10968_v46 = vpack.c.bf16 %v4253_v62, %v4252_v26  ;;  %v4157_v51 = vmul.f32 %v12063_v36, %v14947_v56 }
 0x58a   : > { %v4066_v22 = vpop.f32.mrf.mxu0 }
 0x58b   : > { %11588 = vst [vmem:[#allocation6 + $0x80] sm:$0xff] %v10968_v46   ;;  %v4155_v1 = vmul.f32 %v14947_v56, %v4066_v22  ;;  %v4211_v53 = vadd.f32 %v14955_v7, %v4157_v51 }
 0x58c   : > { %v12064_v9 = vpop.f32.mrf.mxu0 }
 0x58d   : > { %v4158_v35 = vmul.f32 %v12064_v9, %v14947_v56  ;;  %v4209_v45 = vadd.f32 %v14955_v7, %v4155_v1  ;;  %v4258_v61 = vmax.f32 %v4211_v53, 0.0 }
 0x58e   : > { %v4069_v12 = vpop.f32.mrf.mxu0 }
 0x58f   : > { %v4212_v24 = vadd.f32 %v14955_v7, %v4158_v35  ;;  %v4156_v10 = vmul.f32 %v14947_v56, %v4069_v12  ;;  %v4256_v28 = vmax.f32 %v4209_v45, 0.0 }
 0x591   : > { %v4259_v44 = vmax.f32 %v4212_v24, 0.0  ;;  %v4210_v42 = vadd.f32 %v14955_v7, %v4156_v10 }
 0x592   : > { %v12067_v47 = vpop.f32.mrf.mxu0 }
 0x593   : > { %v10983_v41 = vpack.c.bf16 %v4259_v44, %v4258_v61  ;;  %v4257_v58 = vmax.f32 %v4210_v42, 0.0  ;;  %v4161_v49 = vmul.f32 %v12067_v47, %v14947_v56 }
 0x594   : > { %v4082_v25 = vpop.f32.mrf.mxu0 }
 0x595   : > { %11591 = vst [vmem:[#allocation6 + $0x98] sm:$0xff] %v10983_v41   ;;  %v10978_v5 = vpack.c.bf16 %v4257_v58, %v4256_v28  ;;  %v4159_v29 = vmul.f32 %v14947_v56, %v4082_v25  ;;  %v4215_v4 = vadd.f32 %v14955_v7, %v4161_v49 }
 0x596   : > { %v12068_v21 = vpop.f32.mrf.mxu0 }
 0x597   : > { %11590 = vst [vmem:[#allocation6 + $0x90] sm:$0xff] %v10978_v5   ;;  %v4162_v15 = vmul.f32 %v12068_v21, %v14947_v56  ;;  %v4213_v63 = vadd.f32 %v14955_v7, %v4159_v29  ;;  %v4262_v34 = vmax.f32 %v4215_v4, 0.0 }
 0x598   : > { %v4085_v19 = vpop.f32.mrf.mxu0 }
 0x599   : > { %v4216_v60 = vadd.f32 %v14955_v7, %v4162_v15  ;;  %v4160_v6 = vmul.f32 %v14947_v56, %v4085_v19  ;;  %v4260_v3 = vmax.f32 %v4213_v63, 0.0 }
 0x59a   : > { %v12071_v23 = vpop.f32.mrf.mxu0 }
 0x59b   : > { %v4263_v55 = vmax.f32 %v4216_v60, 0.0  ;;  %v4214_v30 = vadd.f32 %v14955_v7, %v4160_v6  ;;  %v4165_v32 = vmul.f32 %v12071_v23, %v14947_v56 }
 0x59c   : > { %v4098_v37 = vpop.f32.mrf.mxu0 }
 0x59d   : > { %v10993_v33 = vpack.c.bf16 %v4263_v55, %v4262_v34  ;;  %v4261_v59 = vmax.f32 %v4214_v30, 0.0  ;;  %v4219_v31 = vadd.f32 %v14955_v7, %v4165_v32  ;;  %v4163_v54 = vmul.f32 %v14947_v56, %v4098_v37 }
 0x59e   : > { %v12072_v16 = vpop.f32.mrf.mxu0 }
 0x59f   : > { %11593 = vst [vmem:[#allocation6 + $0xa8] sm:$0xff] %v10993_v33   ;;  %v10988_v57 = vpack.c.bf16 %v4261_v59, %v4260_v3  ;;  %v4266_v39 = vmax.f32 %v4219_v31, 0.0  ;;  %v4217_v13 = vadd.f32 %v14955_v7, %v4163_v54 }
 0x5a0   : > { %v4101_v27 = vpop.f32.mrf.mxu0 }
 0x5a1   : > { %11592 = vst [vmem:[#allocation6 + $0xa0] sm:$0xff] %v10988_v57   ;;  %v10512_v17 = vpack.c.bf16 %v4266_v39, %v4266_v39  ;;  %v4164_v11 = vmul.f32 %v14947_v56, %v4101_v27  ;;  %v4264_v48 = vmax.f32 %v4217_v13, 0.0 }
 0x5a2   : > { %v12147_v38 = vpop.f32.mrf.mxu0 }
 0x5a3   : > { %4502 = vst [vmem:[#allocation6 + $0xb8] sm:$0x7] %v10512_v17  ;;  %v4218_v43 = vadd.f32 %v14955_v7, %v4164_v11  ;;  %v7294_v20 = vmul.f32 %v12147_v38, %v15064_v40 }
 0x5a4   : > { %v7095_v14 = vpop.f32.mrf.mxu0 }
 0x5a5   : > { %v4265_v52 = vmax.f32 %v4218_v43, 0.0  ;;  %v7292_v18 = vmul.f32 %v15064_v40, %v7095_v14  ;;  %v7348_v56 = vadd.f32 %v15073_v50, %v7294_v20 }
 0x5a6   : > { %v12148_v0 = vpop.f32.mrf.mxu0 }
 0x5a7   : > { %v10998_v8 = vpack.c.bf16 %v4265_v52, %v4264_v48  ;;  %v7295_v26 = vmul.f32 %v12148_v0, %v15064_v40  ;;  %v7346_v7 = vadd.f32 %v15073_v50, %v7292_v18  ;;  %v7395_v51 = vmax.f32 %v7348_v56, 0.0 }
 0x5a8   : > { %v7098_v2 = vpop.f32.mrf.mxu0 }
 0x5a9   : > { %11594 = vst [vmem:[#allocation6 + $0xb0] sm:$0xff] %v10998_v8   ;;  %v7349_v62 = vadd.f32 %v15073_v50, %v7295_v26  ;;  %v7293_v46 = vmul.f32 %v15064_v40, %v7098_v2  ;;  %v7393_v35 = vmax.f32 %v7346_v7, 0.0 }
 0x5aa   : > { %v12151_v36 = vpop.f32.mrf.mxu0 }
 0x5ab   : > { %v7396_v22 = vmax.f32 %v7349_v62, 0.0  ;;  %v7347_v1 = vadd.f32 %v15073_v50, %v7293_v46  ;;  %v7298_v9 = vmul.f32 %v12151_v36, %v15064_v40 }
 0x5ac   : > { %v7111_v53 = vpop.f32.mrf.mxu0 }
 0x5ad   : > { %v11215_v12 = vpack.c.bf16 %v7396_v22, %v7395_v51  ;;  %v7394_v45 = vmax.f32 %v7347_v1, 0.0  ;;  %v7296_v24 = vmul.f32 %v15064_v40, %v7111_v53  ;;  %v7352_v44 = vadd.f32 %v15073_v50, %v7298_v9 }
 0x5ae   : > { %v12152_v10 = vpop.f32.mrf.mxu0 }
 0x5af   : > { %11639 = vst [vmem:[#allocation4 + $0x8] sm:$0xff] %v11215_v12   ;;  %v11210_v61 = vpack.c.bf16 %v7394_v45, %v7393_v35  ;;  %v7299_v42 = vmul.f32 %v12152_v10, %v15064_v40  ;;  %v7350_v28 = vadd.f32 %v15073_v50, %v7296_v24  ;;  %v7399_v25 = vmax.f32 %v7352_v44, 0.0 }
 0x5b0   : > { %v7114_v47 = vpop.f32.mrf.mxu0 }
 0x5b1   : > { %11211 = vst [vmem:[#allocation4] sm:$0xff] %v11210_v61   ;;  %v7353_v41 = vadd.f32 %v15073_v50, %v7299_v42  ;;  %v7297_v58 = vmul.f32 %v15064_v40, %v7114_v47  ;;  %v7397_v15 = vmax.f32 %v7350_v28, 0.0 }
 0x5b2   : > { %v12155_v49 = vpop.f32.mrf.mxu0 }
 0x5b3   : > { %v7400_v5 = vmax.f32 %v7353_v41, 0.0  ;;  %v7351_v29 = vadd.f32 %v15073_v50, %v7297_v58  ;;  %v7302_v21 = vmul.f32 %v12155_v49, %v15064_v40 }
 0x5b4   : > { %v7127_v4 = vpop.f32.mrf.mxu0 }
 0x5b5   : > { %v11225_v63 = vpack.c.bf16 %v7400_v5, %v7399_v25  ;;  %v7398_v19 = vmax.f32 %v7351_v29, 0.0  ;;  %v7300_v60 = vmul.f32 %v15064_v40, %v7127_v4  ;;  %v7356_v30 = vadd.f32 %v15073_v50, %v7302_v21 }
 0x5b6   : > { %v12156_v6 = vpop.f32.mrf.mxu0  ;;  %v15092_v23 = vld [vmem:[#allocation4 + $0xc] sm:$0xf]  ;;  %v15094_v34 = vld [vmem:[#allocation4 + $0x8] sm:$0xf] }
 0x5b7   : > { %11641 = vst [vmem:[#allocation4 + $0x18] sm:$0xff] %v11225_v63   ;;  %v11220_v55 = vpack.c.bf16 %v7398_v19, %v7397_v15  ;;  %v7303_v32 = vmul.f32 %v12156_v6, %v15064_v40  ;;  %7778 = vrot.lane.b32.xlu0 %v15092_v23, %s12594_s12  ;;  %7776 = vrot.lane.b32.xlu1 %v15094_v34, %s12594_s12  ;;  %v7403_v57 = vmax.f32 %v7356_v30, 0.0 }
 0x5b8   : > { %v7130_v3 = vpop.f32.mrf.mxu0  ;;  %v7354_v37 = vadd.f32 %v15073_v50, %v7300_v60  ;;  %v15105_v54 = vld [vmem:[#allocation4 + $0x4] sm:$0xf]  ;;  %v15107_v16 = vld [vmem:[#allocation4] sm:$0xf] }
 0x5b9   : > { %11640 = vst [vmem:[#allocation4 + $0x10] sm:$0xff] %v11220_v55   ;;  %v7357_v33 = vadd.f32 %v15073_v50, %v7303_v32  ;;  %v7301_v59 = vmul.f32 %v15064_v40, %v7130_v3 }
 0x5ba   : > { %v12159_v31 = vpop.f32.mrf.mxu0  ;;  %v7401_v11 = vmax.f32 %v7354_v37, 0.0 }
 0x5bb   : > { %v7404_v39 = vmax.f32 %v7357_v33, 0.0  ;;  %v7355_v27 = vadd.f32 %v15073_v50, %v7301_v59  ;;  %v7306_v17 = vmul.f32 %v12159_v31, %v15064_v40  ;;  %7774 = vrot.lane.b32.xlu0 %v15105_v54, %s12594_s12  ;;  %7772 = vrot.lane.b32.xlu1 %v15107_v16, %s12594_s12 }
 0x5bc   : > { %v7143_v13 = vpop.f32.mrf.mxu0 }
 0x5bd   : > { %v11235_v38 = vpack.c.bf16 %v7404_v39, %v7403_v57  ;;  %v7402_v43 = vmax.f32 %v7355_v27, 0.0  ;;  %v7304_v20 = vmul.f32 %v15064_v40, %v7143_v13  ;;  %v7360_v0 = vadd.f32 %v15073_v50, %v7306_v17 }
 0x5be   : > { %v12160_v14 = vpop.f32.mrf.mxu0  ;;  %v15116_v48 = vld [vmem:[#allocation4 + $0x1c] sm:$0xf]  ;;  %v15118_v52 = vld [vmem:[#allocation4 + $0x18] sm:$0xf] }
 0x5bf   : > { %11643 = vst [vmem:[#allocation4 + $0x28] sm:$0xff] %v11235_v38   ;;  %v11230_v18 = vpack.c.bf16 %v7402_v43, %v7401_v11  ;;  %v7307_v8 = vmul.f32 %v12160_v14, %v15064_v40  ;;  %7786 = vrot.lane.b32.xlu0 %v15116_v48, %s12594_s12  ;;  %7784 = vrot.lane.b32.xlu1 %v15118_v52, %s12594_s12  ;;  %v7407_v36 = vmax.f32 %v7360_v0, 0.0 }
 0x5c0   : > { %v7146_v56 = vpop.f32.mrf.mxu0  ;;  %v7358_v26 = vadd.f32 %v15073_v50, %v7304_v20  ;;  %v15129_v62 = vld [vmem:[#allocation4 + $0x14] sm:$0xf]  ;;  %v15131_v46 = vld [vmem:[#allocation4 + $0x10] sm:$0xf] }
 0x5c1   : > { %11642 = vst [vmem:[#allocation4 + $0x20] sm:$0xff] %v11230_v18   ;;  %v7361_v2 = vadd.f32 %v15073_v50, %v7307_v8  ;;  %v7305_v7 = vmul.f32 %v15064_v40, %v7146_v56 }
 0x5c2   : > { %v7405_v1 = vmax.f32 %v7358_v26, 0.0 }
 0x5c3   : > { %v7408_v51 = vmax.f32 %v7361_v2, 0.0  ;;  %v7359_v22 = vadd.f32 %v15073_v50, %v7305_v7  ;;  %7782 = vrot.lane.b32.xlu0 %v15129_v62, %s12594_s12  ;;  %7780 = vrot.lane.b32.xlu1 %v15131_v46, %s12594_s12 }
 0x5c5   : > { %v11245_v9 = vpack.c.bf16 %v7408_v51, %v7407_v36  ;;  %v7406_v53 = vmax.f32 %v7359_v22, 0.0  ;;  %v12163_v35 = vpop.f32.mrf.mxu0 }
 0x5c6   : > { %v15138_v12 = vld [vmem:[#allocation4 + $0x2c] sm:$0xf]  ;;  %v15140_v45 = vld [vmem:[#allocation4 + $0x28] sm:$0xf]  ;;  %v7310_v10 = vmul.f32 %v12163_v35, %v15064_v40 }
 0x5c7   : > { %11645 = vst [vmem:[#allocation4 + $0x38] sm:$0xff] %v11245_v9   ;;  %v11240_v24 = vpack.c.bf16 %v7406_v53, %v7405_v1  ;;  %7794 = vrot.lane.b32.xlu0 %v15138_v12, %s12594_s12  ;;  %7792 = vrot.lane.b32.xlu1 %v15140_v45, %s12594_s12  ;;  %v7159_v61 = vpop.f32.mrf.mxu0 }
 0x5c8   : > { %v7308_v44 = vmul.f32 %v15064_v40, %v7159_v61  ;;  %v15148_v47 = vld [vmem:[#allocation4 + $0x24] sm:$0xf]  ;;  %v15150_v28 = vld [vmem:[#allocation4 + $0x20] sm:$0xf]  ;;  %v7364_v41 = vadd.f32 %v15073_v50, %v7310_v10 }
 0x5c9   : > { %11644 = vst [vmem:[#allocation4 + $0x30] sm:$0xff] %v11240_v24   ;;  %v12164_v42 = vpop.f32.mrf.mxu0 }
 0x5ca   : > { %v7311_v58 = vmul.f32 %v12164_v42, %v15064_v40  ;;  %v7362_v25 = vadd.f32 %v15073_v50, %v7308_v44  ;;  %v7411_v15 = vmax.f32 %v7364_v41, 0.0 }
 0x5cb   : > { %7790 = vrot.lane.b32.xlu0 %v15148_v47, %s12594_s12  ;;  %7788 = vrot.lane.b32.xlu1 %v15150_v28, %s12594_s12  ;;  %v7162_v49 = vpop.f32.mrf.mxu0 }
 0x5cc   : > { %v7365_v5 = vadd.f32 %v15073_v50, %v7311_v58  ;;  %v7309_v29 = vmul.f32 %v15064_v40, %v7162_v49  ;;  %v7409_v60 = vmax.f32 %v7362_v25, 0.0 }
 0x5ce   : > { %v15161_v21 = vld [vmem:[#allocation4 + $0x3c] sm:$0xf]  ;;  %v15163_v4 = vld [vmem:[#allocation4 + $0x38] sm:$0xf]  ;;  %v7412_v63 = vmax.f32 %v7365_v5, 0.0  ;;  %v7363_v19 = vadd.f32 %v15073_v50, %v7309_v29 }
 0x5cf   : > { %7802 = vrot.lane.b32.xlu0 %v15161_v21, %s12594_s12  ;;  %7800 = vrot.lane.b32.xlu1 %v15163_v4, %s12594_s12 }
 0x5d0   : > { %v11255_v6 = vpack.c.bf16 %v7412_v63, %v7411_v15  ;;  %v7410_v55 = vmax.f32 %v7363_v19, 0.0  ;;  %v15170_v32 = vld [vmem:[#allocation4 + $0x34] sm:$0xf]  ;;  %v15172_v3 = vld [vmem:[#allocation4 + $0x30] sm:$0xf] }
 0x5d1   : > { %v12167_v30 = vpop.f32.mrf.mxu0 }
 0x5d2   : > { %11647 = vst [vmem:[#allocation4 + $0x48] sm:$0xff] %v11255_v6   ;;  %v11250_v37 = vpack.c.bf16 %v7410_v55, %v7409_v60  ;;  %v7314_v33 = vmul.f32 %v12167_v30, %v15064_v40 }
 0x5d3   : > { %7798 = vrot.lane.b32.xlu0 %v15170_v32, %s12594_s12  ;;  %7796 = vrot.lane.b32.xlu1 %v15172_v3, %s12594_s12  ;;  %v7175_v59 = vpop.f32.mrf.mxu0 }
 0x5d4   : > { %11646 = vst [vmem:[#allocation4 + $0x40] sm:$0xff] %v11250_v37   ;;  %v7312_v31 = vmul.f32 %v15064_v40, %v7175_v59  ;;  %v7368_v39 = vadd.f32 %v15073_v50, %v7314_v33 }
 0x5d5   : > { %v12168_v57 = vpop.f32.mrf.mxu0 }
 0x5d6   : > { %v7315_v27 = vmul.f32 %v12168_v57, %v15064_v40  ;;  %v7366_v13 = vadd.f32 %v15073_v50, %v7312_v31  ;;  %v7415_v14 = vmax.f32 %v7368_v39, 0.0 }
 0x5d7   : > { %v7178_v17 = vpop.f32.mrf.mxu0 }
 0x5d8   : > { %v7369_v11 = vadd.f32 %v15073_v50, %v7315_v27  ;;  %v7313_v38 = vmul.f32 %v15064_v40, %v7178_v17  ;;  %v7413_v8 = vmax.f32 %v7366_v13, 0.0 }
 0x5d9   : > { %v15185_v43 = vld [vmem:[#allocation4 + $0x4c] sm:$0xf]  ;;  %v15187_v20 = vld [vmem:[#allocation4 + $0x48] sm:$0xf] }
 0x5da   : > { %v7416_v18 = vmax.f32 %v7369_v11, 0.0  ;;  %v7367_v0 = vadd.f32 %v15073_v50, %v7313_v38  ;;  %7810 = vrot.lane.b32.xlu0 %v15185_v43, %s12594_s12  ;;  %7808 = vrot.lane.b32.xlu1 %v15187_v20, %s12594_s12 }
 0x5db   : > { %v15194_v2 = vld [vmem:[#allocation4 + $0x44] sm:$0xf]  ;;  %v15196_v7 = vld [vmem:[#allocation4 + $0x40] sm:$0xf] }
 0x5dc   : > { %v11265_v56 = vpack.c.bf16 %v7416_v18, %v7415_v14  ;;  %v7414_v26 = vmax.f32 %v7367_v0, 0.0 }
 0x5de   : > { %11649 = vst [vmem:[#allocation4 + $0x58] sm:$0xff] %v11265_v56   ;;  %v11260_v36 = vpack.c.bf16 %v7414_v26, %v7413_v8  ;;  %7806 = vrot.lane.b32.xlu0 %v15194_v2, %s12594_s12  ;;  %7804 = vrot.lane.b32.xlu1 %v15196_v7, %s12594_s12 }
 0x5e0   : > { %11648 = vst [vmem:[#allocation4 + $0x50] sm:$0xff] %v11260_v36  }
 0x5e1   : > { %v12171_v51 = vpop.f32.mrf.mxu0 }
 0x5e2   : > { %v7318_v22 = vmul.f32 %v12171_v51, %v15064_v40 }
 0x5e3   : > { %v7191_v1 = vpop.f32.mrf.mxu0 }
 0x5e4   : > { %v7316_v9 = vmul.f32 %v15064_v40, %v7191_v1  ;;  %v7372_v10 = vadd.f32 %v15073_v50, %v7318_v22 }
 0x5e5   : > { %v12172_v53 = vpop.f32.mrf.mxu0  ;;  %v15204_v35 = vld [vmem:[#allocation4 + $0x5c] sm:$0xf]  ;;  %v15206_v24 = vld [vmem:[#allocation4 + $0x58] sm:$0xf] }
 0x5e6   : > { %v7319_v61 = vmul.f32 %v12172_v53, %v15064_v40  ;;  %7818 = vrot.lane.b32.xlu0 %v15204_v35, %s12594_s12  ;;  %7816 = vrot.lane.b32.xlu1 %v15206_v24, %s12594_s12  ;;  %v7370_v42 = vadd.f32 %v15073_v50, %v7316_v9  ;;  %v7419_v5 = vmax.f32 %v7372_v10, 0.0 }
 0x5e7   : > { %v7194_v44 = vpop.f32.mrf.mxu0  ;;  %v15217_v49 = vld [vmem:[#allocation4 + $0x54] sm:$0xf]  ;;  %v15219_v25 = vld [vmem:[#allocation4 + $0x50] sm:$0xf] }
 0x5e8   : > { %v7373_v41 = vadd.f32 %v15073_v50, %v7319_v61  ;;  %v7317_v58 = vmul.f32 %v15064_v40, %v7194_v44  ;;  %v7417_v63 = vmax.f32 %v7370_v42, 0.0 }
 0x5ea   : > { %v7420_v29 = vmax.f32 %v7373_v41, 0.0  ;;  %v7371_v15 = vadd.f32 %v15073_v50, %v7317_v58  ;;  %7814 = vrot.lane.b32.xlu0 %v15217_v49, %s12594_s12  ;;  %7812 = vrot.lane.b32.xlu1 %v15219_v25, %s12594_s12 }
 0x5ec   : > { %v11275_v19 = vpack.c.bf16 %v7420_v29, %v7419_v5  ;;  %v7418_v60 = vmax.f32 %v7371_v15, 0.0 }
 0x5ee   : > { %11651 = vst [vmem:[#allocation4 + $0x68] sm:$0xff] %v11275_v19   ;;  %v11270_v6 = vpack.c.bf16 %v7418_v60, %v7417_v63 }
 0x5f0   : > { %11650 = vst [vmem:[#allocation4 + $0x60] sm:$0xff] %v11270_v6  }
 0x5f1   : > { %v12175_v55 = vpop.f32.mrf.mxu0 }
 0x5f2   : > { %v7322_v30 = vmul.f32 %v12175_v55, %v15064_v40 }
 0x5f3   : > { %v7207_v37 = vpop.f32.mrf.mxu0 }
 0x5f4   : > { %v7320_v33 = vmul.f32 %v15064_v40, %v7207_v37  ;;  %v7376_v39 = vadd.f32 %v15073_v50, %v7322_v30 }
 0x5f5   : > { %v12176_v59 = vpop.f32.mrf.mxu0  ;;  %v15228_v31 = vld [vmem:[#allocation4 + $0x6c] sm:$0xf]  ;;  %v15230_v57 = vld [vmem:[#allocation4 + $0x68] sm:$0xf] }
 0x5f6   : > { %v7323_v27 = vmul.f32 %v12176_v59, %v15064_v40  ;;  %7826 = vrot.lane.b32.xlu0 %v15228_v31, %s12594_s12  ;;  %7824 = vrot.lane.b32.xlu1 %v15230_v57, %s12594_s12  ;;  %v7374_v13 = vadd.f32 %v15073_v50, %v7320_v33  ;;  %v7423_v0 = vmax.f32 %v7376_v39, 0.0 }
 0x5f7   : > { %v7210_v17 = vpop.f32.mrf.mxu0  ;;  %v15241_v14 = vld [vmem:[#allocation4 + $0x64] sm:$0xf]  ;;  %v15243_v18 = vld [vmem:[#allocation4 + $0x60] sm:$0xf] }
 0x5f8   : > { %v7377_v11 = vadd.f32 %v15073_v50, %v7323_v27  ;;  %v7321_v38 = vmul.f32 %v15064_v40, %v7210_v17  ;;  %v7421_v26 = vmax.f32 %v7374_v13, 0.0  ;;  %v12489_v27 = vld [vmem:[%s16493_s7 + $0x38] sm:$0xff]   ;;  %v12490_v17 = vld [vmem:[%s16493_s7 + $0x30] sm:$0xff]  }
 0x5f9   : > { %12193 = vmatprep.subr.bf16.mxu0 %v12489_v27  ;;  %12257 = vmatprep.subr.bf16.mxu1 %v12489_v27 }
 0x5fa   : > { %v7424_v8 = vmax.f32 %v7377_v11, 0.0  ;;  %v7375_v56 = vadd.f32 %v15073_v50, %v7321_v38  ;;  %7822 = vrot.lane.b32.xlu0 %v15241_v14, %s12594_s12  ;;  %7820 = vrot.lane.b32.xlu1 %v15243_v18, %s12594_s12 }
 0x5fb   : > { %12194 = vmatpush3.bf16.msra.mxu0 %v12489_v27  ;;  %12265 = vmatpush3.bf16.msra.mxu1 %v12489_v27 }
 0x5fc   : > { %v11285_v36 = vpack.c.bf16 %v7424_v8, %v7423_v0  ;;  %v7422_v51 = vmax.f32 %v7375_v56, 0.0  ;;  %12195 = vmatprep.subr.bf16.mxu0 %v12490_v17  ;;  %12258 = vmatprep.subr.bf16.mxu1 %v12490_v17 }
 0x5fe   : > { %11653 = vst [vmem:[#allocation4 + $0x78] sm:$0xff] %v11285_v36   ;;  %v11280_v22 = vpack.c.bf16 %v7422_v51, %v7421_v26  ;;  %v12493_v51 = vld [vmem:[%s16493_s7 + $0x28] sm:$0xff]  }
 0x5ff   : > { %12196 = vmatpush3.bf16.msra.mxu0 %v12490_v17  ;;  %12266 = vmatpush3.bf16.msra.mxu1 %v12490_v17 }
 0x600   : > { %11652 = vst [vmem:[#allocation4 + $0x70] sm:$0xff] %v11280_v22   ;;  %12197 = vmatprep.subr.bf16.mxu0 %v12493_v51  ;;  %12259 = vmatprep.subr.bf16.mxu1 %v12493_v51 }
 0x601   : > { %v12179_v1 = vpop.f32.mrf.mxu0 }
 0x602   : > { %v7326_v9 = vmul.f32 %v12179_v1, %v15064_v40 }
 0x603   : > { %v7223_v53 = vpop.f32.mrf.mxu0  ;;  %12198 = vmatpush3.bf16.msra.mxu0 %v12493_v51  ;;  %12267 = vmatpush3.bf16.msra.mxu1 %v12493_v51 }
 0x604   : > { %v7324_v10 = vmul.f32 %v15064_v40, %v7223_v53  ;;  %v7380_v41 = vadd.f32 %v15073_v50, %v7326_v9 }
 0x605   : > { %v12180_v61 = vpop.f32.mrf.mxu0  ;;  %v15252_v44 = vld [vmem:[#allocation4 + $0x7c] sm:$0xf]  ;;  %v15254_v42 = vld [vmem:[#allocation4 + $0x78] sm:$0xf] }
 0x606   : > { %v7327_v58 = vmul.f32 %v12180_v61, %v15064_v40  ;;  %7834 = vrot.lane.b32.xlu0 %v15252_v44, %s12594_s12  ;;  %7832 = vrot.lane.b32.xlu1 %v15254_v42, %s12594_s12  ;;  %v7378_v29 = vadd.f32 %v15073_v50, %v7324_v10  ;;  %v7427_v6 = vmax.f32 %v7380_v41, 0.0 }
 0x607   : > { %v7226_v5 = vpop.f32.mrf.mxu0  ;;  %v15265_v19 = vld [vmem:[#allocation4 + $0x74] sm:$0xf]  ;;  %v15267_v60 = vld [vmem:[#allocation4 + $0x70] sm:$0xf] }
 0x608   : > { %v7381_v15 = vadd.f32 %v15073_v50, %v7327_v58  ;;  %v7325_v63 = vmul.f32 %v15064_v40, %v7226_v5  ;;  %v7425_v37 = vmax.f32 %v7378_v29, 0.0 }
 0x60a   : > { %v7428_v55 = vmax.f32 %v7381_v15, 0.0  ;;  %v7379_v30 = vadd.f32 %v15073_v50, %v7325_v63  ;;  %7830 = vrot.lane.b32.xlu0 %v15265_v19, %s12594_s12  ;;  %7828 = vrot.lane.b32.xlu1 %v15267_v60, %s12594_s12  ;;  %v12494_v15 = vld [vmem:[%s16493_s7 + $0x20] sm:$0xff]  }
 0x60b   : > { %12199 = vmatprep.subr.bf16.mxu0 %v12494_v15  ;;  %12260 = vmatprep.subr.bf16.mxu1 %v12494_v15 }
 0x60c   : > { %v11295_v33 = vpack.c.bf16 %v7428_v55, %v7427_v6  ;;  %v7426_v59 = vmax.f32 %v7379_v30, 0.0  ;;  %12200 = vmatpush3.bf16.msra.mxu0 %v12494_v15  ;;  %12268 = vmatpush3.bf16.msra.mxu1 %v12494_v15 }
 0x60e   : > { %11655 = vst [vmem:[#allocation4 + $0x88] sm:$0xff] %v11295_v33   ;;  %v11290_v39 = vpack.c.bf16 %v7426_v59, %v7425_v37 }
 0x610   : > { %11654 = vst [vmem:[#allocation4 + $0x80] sm:$0xff] %v11290_v39  }
 0x615   : > { %v15280_v13 = vld [vmem:[#allocation4 + $0x8c] sm:$0xf]  ;;  %v15282_v11 = vld [vmem:[#allocation4 + $0x88] sm:$0xf] }
 0x616   : > { %7842 = vrot.lane.b32.xlu0 %v15280_v13, %s12594_s12  ;;  %7840 = vrot.lane.b32.xlu1 %v15282_v11, %s12594_s12 }
 0x617   : > { %v15288_v38 = vld [vmem:[#allocation4 + $0x84] sm:$0xf]  ;;  %v15290_v0 = vld [vmem:[#allocation4 + $0x80] sm:$0xf] }
 0x61a   : > { %7838 = vrot.lane.b32.xlu0 %v15288_v38, %s12594_s12  ;;  %7836 = vrot.lane.b32.xlu1 %v15290_v0, %s12594_s12 }
 0x61c   : > { %v12183_v8 = vpop.f32.mrf.mxu0 }
 0x61d   : > { %v7330_v56 = vmul.f32 %v12183_v8, %v15064_v40  ;;  %v12495_v8 = vld [vmem:[%s16493_s7 + $0x18] sm:$0xff]  }
 0x61e   : > { %v7239_v26 = vpop.f32.mrf.mxu0  ;;  %12201 = vmatprep.subr.bf16.mxu0 %v12495_v8  ;;  %12261 = vmatprep.subr.bf16.mxu1 %v12495_v8 }
 0x61f   : > { %v7328_v36 = vmul.f32 %v15064_v40, %v7239_v26  ;;  %v7384_v1 = vadd.f32 %v15073_v50, %v7330_v56  ;;  %v12496_v56 = vld [vmem:[%s16493_s7 + $0x10] sm:$0xff]   ;;  %12202 = vmatpush3.bf16.msra.mxu0 %v12495_v8  ;;  %12269 = vmatpush3.bf16.msra.mxu1 %v12495_v8 }
 0x620   : > { %v12184_v22 = vpop.f32.mrf.mxu0  ;;  %12203 = vmatprep.subr.bf16.mxu0 %v12496_v56  ;;  %12262 = vmatprep.subr.bf16.mxu1 %v12496_v56 }
 0x621   : > { %v7331_v9 = vmul.f32 %v12184_v22, %v15064_v40  ;;  %v7382_v10 = vadd.f32 %v15073_v50, %v7328_v36  ;;  %v7431_v58 = vmax.f32 %v7384_v1, 0.0 }
 0x622   : > { %v7242_v53 = vpop.f32.mrf.mxu0 }
 0x623   : > { %v7385_v61 = vadd.f32 %v15073_v50, %v7331_v9  ;;  %v7329_v41 = vmul.f32 %v15064_v40, %v7242_v53  ;;  %v7429_v63 = vmax.f32 %v7382_v10, 0.0  ;;  %12204 = vmatpush3.bf16.msra.mxu0 %v12496_v56  ;;  %12270 = vmatpush3.bf16.msra.mxu1 %v12496_v56 }
 0x625   : > { %v7432_v5 = vmax.f32 %v7385_v61, 0.0  ;;  %v7383_v29 = vadd.f32 %v15073_v50, %v7329_v41 }
 0x627   : > { %v11305_v6 = vpack.c.bf16 %v7432_v5, %v7431_v58  ;;  %v7430_v55 = vmax.f32 %v7383_v29, 0.0 }
 0x629   : > { %v7777_v30 = vpop.permute.xlu1 %7776  ;;  %v7779_v37 = vpop.permute.xlu0 %7778  ;;  %11657 = vst [vmem:[#allocation4 + $0x98] sm:$0xff] %v11305_v6   ;;  %v11300_v33 = vpack.c.bf16 %v7430_v55, %v7429_v63 }
 0x62a   : > { %v7915_v59 = vmax.bf16 %v7777_v30, %v15094_v34  ;;  %v7916_v39 = vmax.bf16 %v7779_v37, %v15092_v23  ;;  %v12187_v27 = vpop.f32.mrf.mxu0 }
 0x62b   : > { %v7334_v17 = vmul.f32 %v12187_v27, %v15064_v40  ;;  %11656 = vst [vmem:[#allocation4 + $0x90] sm:$0xff] %v11300_v33  }
 0x62c   : > { %7962 = vst.msk [vmem:[#allocation5 + $0x8] sm:$0xf] %vm1802_vm3, %v7915_v59  ;;  %7963 = vst.msk [vmem:[#allocation5 + $0xc] sm:$0xf] %vm1802_vm3, %v7916_v39  ;;  %v7255_v34 = vpop.f32.mrf.mxu0 }
 0x62d   : > { %v7332_v23 = vmul.f32 %v15064_v40, %v7255_v34  ;;  %v7773_v26 = vpop.permute.xlu1 %7772  ;;  %v7775_v36 = vpop.permute.xlu0 %7774  ;;  %v7388_v9 = vadd.f32 %v15073_v50, %v7334_v17 }
 0x62e   : > { %v7913_v51 = vmax.bf16 %v7773_v26, %v15107_v16  ;;  %v7914_v22 = vmax.bf16 %v7775_v36, %v15105_v54  ;;  %v12188_v1 = vpop.f32.mrf.mxu0 }
 0x62f   : > { %v7335_v53 = vmul.f32 %v12188_v1, %v15064_v40  ;;  %v7386_v10 = vadd.f32 %v15073_v50, %v7332_v23  ;;  %v7435_v55 = vmax.f32 %v7388_v9, 0.0 }
 0x630   : > { %7960 = vst.msk [vmem:[#allocation5] sm:$0xf] %vm1802_vm3, %v7913_v51  ;;  %7961 = vst.msk [vmem:[#allocation5 + $0x4] sm:$0xf] %vm1802_vm3, %v7914_v22  ;;  %v7258_v61 = vpop.f32.mrf.mxu0  ;;  %v15331_v5 = vld [vmem:[#allocation4 + $0x9c] sm:$0xf] }
 0x631   : > { %v7389_v16 = vadd.f32 %v15073_v50, %v7335_v53  ;;  %v7333_v54 = vmul.f32 %v15064_v40, %v7258_v61  ;;  %v7785_v41 = vpop.permute.xlu1 %7784  ;;  %v7787_v58 = vpop.permute.xlu0 %7786  ;;  %v15333_v29 = vld [vmem:[#allocation4 + $0x98] sm:$0xf]  ;;  %7850 = vrot.lane.b32.xlu0 %v15331_v5, %s12594_s12  ;;  %v7433_v59 = vmax.f32 %v7386_v10, 0.0 }
 0x632   : > { %v7919_v15 = vmax.bf16 %v7785_v41, %v15118_v52  ;;  %v7920_v63 = vmax.bf16 %v7787_v58, %v15116_v48  ;;  %v12191_v6 = vpop.f32.mrf.mxu0  ;;  %7848 = vrot.lane.b32.xlu1 %v15333_v29, %s12594_s12  ;;  %v12497_v52 = vld [vmem:[%s16493_s7 + $0x8] sm:$0xff]  }
 0x633   : > { %v7436_v30 = vmax.f32 %v7389_v16, 0.0  ;;  %v7387_v37 = vadd.f32 %v15073_v50, %v7333_v54  ;;  %v7338_v33 = vmul.f32 %v12191_v6, %v15064_v40  ;;  %v15350_v26 = vld [vmem:[#allocation4 + $0x94] sm:$0xf]  ;;  %v15352_v56 = vld [vmem:[#allocation4 + $0x90] sm:$0xf]  ;;  %v15360_v1 = vld [vmem:[#allocation5 + $0x8] sm:$0xff]   ;;  %12205 = vmatprep.subr.bf16.mxu0 %v12497_v52  ;;  %12263 = vmatprep.subr.bf16.mxu1 %v12497_v52 }
 0x634   : > { %7966 = vst.msk [vmem:[#allocation5 + $0x18] sm:$0xf] %vm1802_vm3, %v7919_v15  ;;  %7967 = vst.msk [vmem:[#allocation5 + $0x1c] sm:$0xf] %vm1802_vm3, %v7920_v63  ;;  %v7271_v48 = vpop.f32.mrf.mxu0  ;;  %12206 = vmatpush3.bf16.msra.mxu0 %v12497_v52  ;;  %12271 = vmatpush3.bf16.msra.mxu1 %v12497_v52  ;;  %v7675_v15 = vld [vmem:[#allocation4 + $0xb8] sm:$0xf] }
 0x635   : > { %v11315_v39 = vpack.c.bf16 %v7436_v30, %v7435_v55  ;;  %v7434_v27 = vmax.f32 %v7387_v37, 0.0  ;;  %v7392_v17 = vadd.f32 %v15073_v50, %v7338_v33  ;;  %v7336_v8 = vmul.f32 %v15064_v40, %v7271_v48  ;;  %v7781_v34 = vpop.permute.xlu1 %7780  ;;  %v7783_v23 = vpop.permute.xlu0 %7782  ;;  %7846 = vrot.lane.b32.xlu0 %v15350_v26, %s12594_s12 }
 0x636   : > { %v7917_v36 = vmax.bf16 %v7781_v34, %v15131_v46  ;;  %v7918_v51 = vmax.bf16 %v7783_v23, %v15129_v62  ;;  %v12192_v22 = vpop.f32.mrf.mxu0  ;;  %7844 = vrot.lane.b32.xlu1 %v15352_v56, %s12594_s12  ;;  %v12498_v46 = vld [vmem:[%s16493_s7] sm:$0xff]  }
 0x637   : > { %11659 = vst [vmem:[#allocation4 + $0xa8] sm:$0xff] %v11315_v39   ;;  %v11310_v9 = vpack.c.bf16 %v7434_v27, %v7433_v59  ;;  %v7439_v53 = vmax.f32 %v7392_v17, 0.0  ;;  %v15362_v10 = vld [vmem:[#allocation5] sm:$0xff]   ;;  %v7390_v16 = vadd.f32 %v15073_v50, %v7336_v8  ;;  %12207 = vmatprep.subr.bf16.mxu0 %v12498_v46  ;;  %12264 = vmatprep.subr.bf16.mxu1 %v12498_v46  ;;  %v8186_v59 = vshll.u32 %v15360_v1, 16 }
 0x638   : > { %7964 = vst.msk [vmem:[#allocation5 + $0x10] sm:$0xf] %vm1802_vm3, %v7917_v36  ;;  %7965 = vst.msk [vmem:[#allocation5 + $0x14] sm:$0xf] %vm1802_vm3, %v7918_v51  ;;  %v7274_v62 = vpop.f32.mrf.mxu0  ;;  %v8181_v55 = vshll.u32 %v15362_v10, 16  ;;  %12208 = vmatpush3.bf16.msra.mxu0 %v12498_v46  ;;  %12272 = vmatpush3.bf16.msra.mxu1 %v12498_v46  ;;  %v8190_v22 = vshrl.u32 %v15360_v1, 16 }
 0x639   : > { %11658 = vst [vmem:[#allocation4 + $0xa0] sm:$0xff] %v11310_v9   ;;  %v10606_v61 = vpack.c.bf16 %v7439_v53, %v7439_v53  ;;  %v7337_v54 = vmul.f32 %v15064_v40, %v7274_v62  ;;  %v7793_v41 = vpop.permute.xlu1 %7792  ;;  %v7795_v58 = vpop.permute.xlu0 %7794  ;;  %v7437_v40 = vmax.f32 %v7390_v16, 0.0  ;;  %v8188_v23 = vrot.slane %v8186_v59, 1 }
 0x63a   : > { %v7923_v63 = vmax.bf16 %v7793_v41, %v15140_v45  ;;  %v7924_v6 = vmax.bf16 %v7795_v58, %v15138_v12  ;;  %v8183_v17 = vrot.slane %v8181_v55, 1 }
 0x63b   : > { %v7676_v37 = vsel %vm14103_vm6, %v10606_v61, %v7675_v15  ;;  %v7391_v33 = vadd.f32 %v15073_v50, %v7337_v54  ;;  %v15386_v8 = vld [vmem:[#allocation5 + $0x18] sm:$0xff]   ;;  %v8192_v54 = vor.u32 %v8190_v22, %v8188_v23 }
 0x63c   : > { %7677 = vst [vmem:[#allocation4 + $0xb8] sm:$0xf] %v7676_v37  ;;  %7970 = vst.msk [vmem:[#allocation5 + $0x28] sm:$0xf] %vm1802_vm3, %v7923_v63  ;;  %v8202_v58 = vshll.u32 %v15386_v8, 16 }
 0x63d   : > { %7971 = vst.msk [vmem:[#allocation5 + $0x2c] sm:$0xf] %vm1802_vm3, %v7924_v6  ;;  %v7438_v12 = vmax.f32 %v7391_v33, 0.0  ;;  %v7789_v45 = vpop.permute.xlu1 %7788  ;;  %v7791_v48 = vpop.permute.xlu0 %7790 }
 0x63e   : > { %v7921_v52 = vmax.bf16 %v7789_v45, %v15150_v28  ;;  %v7922_v39 = vmax.bf16 %v7791_v48, %v15148_v47  ;;  %v15382_v27 = vld [vmem:[#allocation4 + $0xac] sm:$0xf]  ;;  %v15384_v50 = vld [vmem:[#allocation4 + $0xa8] sm:$0xf]  ;;  %v8179_v47 = vshrl.u32 %v15362_v10, 16  ;;  %v8204_v37 = vrot.slane %v8202_v58, 1 }
 0x63f   : > { %v11320_v34 = vpack.c.bf16 %v7438_v12, %v7437_v40  ;;  %7858 = vrot.lane.b32.xlu0 %v15382_v27, %s12594_s12  ;;  %7856 = vrot.lane.b32.xlu1 %v15384_v50, %s12594_s12  ;;  %v15392_v36 = vld [vmem:[#allocation5 + $0x10] sm:$0xff]  }
 0x640   : > { %7968 = vst.msk [vmem:[#allocation5 + $0x20] sm:$0xf] %vm1802_vm3, %v7921_v52  ;;  %7969 = vst.msk [vmem:[#allocation5 + $0x24] sm:$0xf] %vm1802_vm3, %v7922_v39  ;;  %v8194_v9 = vshll.u32 %v15392_v36, 16  ;;  %v8184_v16 = vor.u32 %v8183_v17, %v8179_v47  ;;  %v8198_v59 = vshrl.u32 %v15392_v36, 16 }
 0x641   : > { %11660 = vst [vmem:[#allocation4 + $0xb0] sm:$0xff] %v11320_v34   ;;  %v7801_v28 = vpop.permute.xlu1 %7800  ;;  %v7803_v51 = vpop.permute.xlu0 %7802  ;;  %v15401_v46 = vld [vmem:[#allocation4 + $0xa4] sm:$0xf]  ;;  %v15403_v61 = vld [vmem:[#allocation4 + $0xa0] sm:$0xf] }
 0x642   : > { %v7927_v53 = vmax.bf16 %v7801_v28, %v15163_v4  ;;  %v7928_v62 = vmax.bf16 %v7803_v51, %v15161_v21  ;;  %v8196_v41 = vrot.slane %v8194_v9, 1  ;;  %v8189_v55 = vsel %vm534_vm0, %v8184_v16, %v8188_v23 }
 0x643   : > { %7854 = vrot.lane.b32.xlu0 %v15401_v46, %s12594_s12  ;;  %7852 = vrot.lane.b32.xlu1 %v15403_v61, %s12594_s12 }
 0x644   : > { %7974 = vst.msk [vmem:[#allocation5 + $0x38] sm:$0xf] %vm1802_vm3, %v7927_v53  ;;  %7975 = vst.msk [vmem:[#allocation5 + $0x3c] sm:$0xf] %vm1802_vm3, %v7928_v62  ;;  %v8197_v15 = vsel %vm534_vm0, %v8192_v54, %v8196_v41  ;;  %v15416_v30 = vld [vmem:[#allocation5 + $0x28] sm:$0xff]   ;;  %v8200_v45 = vor.u32 %v8198_v59, %v8196_v41 }
 0x645   : > { %v7797_v21 = vpop.permute.xlu1 %7796  ;;  %v7799_v4 = vpop.permute.xlu0 %7798  ;;  %v8218_v39 = vshll.u32 %v15416_v30, 16 }
 0x646   : > { %v7925_v63 = vmax.bf16 %v7797_v21, %v15172_v3  ;;  %v7926_v6 = vmax.bf16 %v7799_v4, %v15170_v32  ;;  %v8206_v3 = vshrl.u32 %v15386_v8, 16  ;;  %v8205_v9 = vsel %vm534_vm0, %v8200_v45, %v8204_v37 }
 0x647   : > { %8369 = vrot.lane.b32.xlu1 %v8189_v55, %s12594_s12  ;;  %8371 = vrot.lane.b32.xlu0 %v8197_v15, %s12594_s12  ;;  %v15420_v33 = vld [vmem:[#allocation5 + $0x20] sm:$0xff]   ;;  %v8220_v62 = vrot.slane %v8218_v39, 1  ;;  %v15454_v15 = vld [vmem:[#allocation4 + $0xb8] sm:$0xf] }
 0x648   : > { %7972 = vst.msk [vmem:[#allocation5 + $0x30] sm:$0xf] %vm1802_vm3, %v7925_v63  ;;  %7973 = vst.msk [vmem:[#allocation5 + $0x34] sm:$0xf] %vm1802_vm3, %v7926_v6  ;;  %v8210_v32 = vshll.u32 %v15420_v33, 16  ;;  %v8208_v48 = vor.u32 %v8206_v3, %v8204_v37  ;;  %v8214_v17 = vshrl.u32 %v15420_v33, 16 }
 0x649   : > { %v15427_v40 = vld [vmem:[#allocation4 + $0xb0] sm:$0xf]  ;;  %v15429_v12 = vld [vmem:[#allocation4 + $0xb4] sm:$0xf] }
 0x64a   : > { %v8212_v52 = vrot.slane %v8210_v32, 1 }
 0x64b   : > { %7860 = vrot.lane.b32.xlu1 %v15427_v40, %s12594_s12  ;;  %7862 = vrot.lane.b32.xlu0 %v15429_v12, %s12594_s12  ;;  %v15438_v28 = vld [vmem:[#allocation5 + $0x38] sm:$0xff]  }
 0x64c   : > { %v7809_v34 = vpop.permute.xlu1 %7808  ;;  %v7811_v23 = vpop.permute.xlu0 %7810  ;;  %v8213_v47 = vsel %vm534_vm0, %v8208_v48, %v8212_v52  ;;  %v8216_v53 = vor.u32 %v8214_v17, %v8212_v52  ;;  %v8234_v58 = vshll.u32 %v15438_v28, 16 }
 0x64d   : > { %v7931_v51 = vmax.bf16 %v7809_v34, %v15187_v20  ;;  %v7932_v22 = vmax.bf16 %v7811_v23, %v15185_v43  ;;  %v8222_v20 = vshrl.u32 %v15416_v30, 16 }
 0x64e   : > { %v8221_v63 = vsel %vm534_vm0, %v8216_v53, %v8220_v62  ;;  %v8236_v59 = vrot.slane %v8234_v58, 1 }
 0x64f   : > { %8373 = vrot.lane.b32.xlu1 %v8205_v9, %s12594_s12  ;;  %8375 = vrot.lane.b32.xlu0 %v8213_v47, %s12594_s12  ;;  %v15445_v16 = vld [vmem:[#allocation5 + $0x30] sm:$0xff]   ;;  %7978 = vst.msk [vmem:[#allocation5 + $0x48] sm:$0xf] %vm1802_vm3, %v7931_v51  ;;  %7979 = vst.msk [vmem:[#allocation5 + $0x4c] sm:$0xf] %vm1802_vm3, %v7932_v22  ;;  %v8224_v6 = vor.u32 %v8222_v20, %v8220_v62  ;;  %v8238_v47 = vshrl.u32 %v15438_v28, 16 }
 0x650   : > { %v7805_v54 = vpop.permute.xlu1 %7804  ;;  %v7807_v41 = vpop.permute.xlu0 %7806  ;;  %v8226_v43 = vshll.u32 %v15445_v16, 16  ;;  %v8230_v37 = vshrl.u32 %v15445_v16, 16 }
 0x651   : > { %v7929_v21 = vmax.bf16 %v7805_v54, %v15196_v7  ;;  %v7930_v4 = vmax.bf16 %v7807_v41, %v15194_v2  ;;  %v8240_v53 = vor.u32 %v8238_v47, %v8236_v59 }
 0x652   : > { %v8228_v55 = vrot.slane %v8226_v43, 1 }
 0x653   : > { %7864 = vrot.lane.b32.xlu1 %v15454_v15, %s12594_s12  ;;  %8377 = vrot.lane.b32.xlu0 %v8221_v63, %s12594_s12  ;;  %7976 = vst.msk [vmem:[#allocation5 + $0x40] sm:$0xf] %vm1802_vm3, %v7929_v21  ;;  %7977 = vst.msk [vmem:[#allocation5 + $0x44] sm:$0xf] %vm1802_vm3, %v7930_v4 }
 0x654   : > { %v8229_v7 = vsel %vm534_vm0, %v8224_v6, %v8228_v55  ;;  %v8232_v2 = vor.u32 %v8230_v37, %v8228_v55 }
 0x656   : > { %v8237_v3 = vsel %vm534_vm0, %v8232_v2, %v8236_v59  ;;  %v15467_v48 = vld [vmem:[#allocation5 + $0x48] sm:$0xff]  }
 0x657   : > { %8379 = vrot.lane.b32.xlu1 %v8229_v7, %s12594_s12  ;;  %8381 = vrot.lane.b32.xlu0 %v8237_v3, %s12594_s12  ;;  %v8250_v22 = vshll.u32 %v15467_v48, 16  ;;  %v8254_v4 = vshrl.u32 %v15467_v48, 16 }
 0x658   : > { %v7817_v32 = vpop.permute.xlu1 %7816  ;;  %v7819_v45 = vpop.permute.xlu0 %7818 }
 0x659   : > { %v7935_v52 = vmax.bf16 %v7817_v32, %v15206_v24  ;;  %v7936_v39 = vmax.bf16 %v7819_v45, %v15204_v35  ;;  %v8252_v20 = vrot.slane %v8250_v22, 1 }
 0x65a   : > { %v15471_v17 = vld [vmem:[#allocation5 + $0x40] sm:$0xff]  }
 0x65b   : > { %7982 = vst.msk [vmem:[#allocation5 + $0x58] sm:$0xf] %vm1802_vm3, %v7935_v52  ;;  %7983 = vst.msk [vmem:[#allocation5 + $0x5c] sm:$0xf] %vm1802_vm3, %v7936_v39  ;;  %v8242_v51 = vshll.u32 %v15471_v17, 16  ;;  %v8246_v62 = vshrl.u32 %v15471_v17, 16  ;;  %v8256_v7 = vor.u32 %v8254_v4, %v8252_v20 }
 0x65c   : > { %v7813_v34 = vpop.permute.xlu1 %7812  ;;  %v7815_v23 = vpop.permute.xlu0 %7814 }
 0x65d   : > { %v7933_v9 = vmax.bf16 %v7813_v34, %v15219_v25  ;;  %v7934_v24 = vmax.bf16 %v7815_v23, %v15217_v49  ;;  %v8244_v35 = vrot.slane %v8242_v51, 1 }
 0x65f   : > { %7980 = vst.msk [vmem:[#allocation5 + $0x50] sm:$0xf] %vm1802_vm3, %v7933_v9  ;;  %7981 = vst.msk [vmem:[#allocation5 + $0x54] sm:$0xf] %vm1802_vm3, %v7934_v24  ;;  %v8245_v54 = vsel %vm534_vm0, %v8240_v53, %v8244_v35  ;;  %v8248_v41 = vor.u32 %v8246_v62, %v8244_v35 }
 0x660   : > { %8383 = vrot.lane.b32.xlu1 %v8245_v54, %s12594_s12 }
 0x661   : > { %v8253_v43 = vsel %vm534_vm0, %v8248_v41, %v8252_v20 }
 0x662   : > { %8385 = vrot.lane.b32.xlu0 %v8253_v43, %s12594_s12  ;;  %v15487_v25 = vld [vmem:[#allocation5 + $0x58] sm:$0xff]  }
 0x663   : > { %v8266_v6 = vshll.u32 %v15487_v25, 16 }
 0x665   : > { %v8268_v39 = vrot.slane %v8266_v6, 1 }
 0x666   : > { %v15489_v49 = vld [vmem:[#allocation5 + $0x50] sm:$0xff]  }
 0x667   : > { %v8258_v63 = vshll.u32 %v15489_v49, 16  ;;  %v8262_v59 = vshrl.u32 %v15489_v49, 16 }
 0x668   : > { %v7825_v58 = vpop.permute.xlu1 %7824  ;;  %v7827_v21 = vpop.permute.xlu0 %7826 }
 0x669   : > { %v7939_v55 = vmax.bf16 %v7825_v58, %v15230_v57  ;;  %v7940_v37 = vmax.bf16 %v7827_v21, %v15228_v31  ;;  %v8260_v2 = vrot.slane %v8258_v63, 1 }
 0x66b   : > { %7986 = vst.msk [vmem:[#allocation5 + $0x68] sm:$0xf] %vm1802_vm3, %v7939_v55  ;;  %7987 = vst.msk [vmem:[#allocation5 + $0x6c] sm:$0xf] %vm1802_vm3, %v7940_v37  ;;  %v8261_v45 = vsel %vm534_vm0, %v8256_v7, %v8260_v2  ;;  %v8264_v52 = vor.u32 %v8262_v59, %v8260_v2 }
 0x66c   : > { %v7821_v3 = vpop.permute.xlu1 %7820  ;;  %v7823_v32 = vpop.permute.xlu0 %7822  ;;  %8387 = vrot.lane.b32.xlu1 %v8261_v45, %s12594_s12 }
 0x66d   : > { %v7937_v34 = vmax.bf16 %v7821_v3, %v15243_v18  ;;  %v7938_v57 = vmax.bf16 %v7823_v32, %v15241_v14  ;;  %v8269_v31 = vsel %vm534_vm0, %v8264_v52, %v8268_v39  ;;  %v8270_v18 = vshrl.u32 %v15487_v25, 16 }
 0x66e   : > { %8389 = vrot.lane.b32.xlu0 %v8269_v31, %s12594_s12 }
 0x66f   : > { %7984 = vst.msk [vmem:[#allocation5 + $0x60] sm:$0xf] %vm1802_vm3, %v7937_v34  ;;  %7985 = vst.msk [vmem:[#allocation5 + $0x64] sm:$0xf] %vm1802_vm3, %v7938_v57  ;;  %v8272_v35 = vor.u32 %v8270_v18, %v8268_v39 }
 0x672   : > { %v15507_v23 = vld [vmem:[#allocation5 + $0x68] sm:$0xff]  }
 0x673   : > { %v8282_v9 = vshll.u32 %v15507_v23, 16 }
 0x675   : > { %v8284_v21 = vrot.slane %v8282_v9, 1 }
 0x676   : > { %v15509_v47 = vld [vmem:[#allocation5 + $0x60] sm:$0xff]  }
 0x677   : > { %v8274_v14 = vshll.u32 %v15509_v47, 16  ;;  %v8278_v54 = vshrl.u32 %v15509_v47, 16 }
 0x678   : > { %v7833_v51 = vpop.permute.xlu1 %7832  ;;  %v7835_v22 = vpop.permute.xlu0 %7834 }
 0x679   : > { %v7943_v24 = vmax.bf16 %v7833_v51, %v15254_v42  ;;  %v7944_v53 = vmax.bf16 %v7835_v22, %v15252_v44  ;;  %v8276_v62 = vrot.slane %v8274_v14, 1 }
 0x67b   : > { %7990 = vst.msk [vmem:[#allocation5 + $0x78] sm:$0xf] %vm1802_vm3, %v7943_v24  ;;  %7991 = vst.msk [vmem:[#allocation5 + $0x7c] sm:$0xf] %vm1802_vm3, %v7944_v53  ;;  %v8277_v43 = vsel %vm534_vm0, %v8272_v35, %v8276_v62  ;;  %v8280_v58 = vor.u32 %v8278_v54, %v8276_v62 }
 0x67c   : > { %v7829_v41 = vpop.permute.xlu1 %7828  ;;  %v7831_v20 = vpop.permute.xlu0 %7830  ;;  %8391 = vrot.lane.b32.xlu1 %v8277_v43, %s12594_s12 }
 0x67d   : > { %v7941_v4 = vmax.bf16 %v7829_v41, %v15267_v60  ;;  %v7942_v42 = vmax.bf16 %v7831_v20, %v15265_v19  ;;  %v8285_v44 = vsel %vm534_vm0, %v8280_v58, %v8284_v21  ;;  %v8286_v60 = vshrl.u32 %v15507_v23, 16 }
 0x67e   : > { %8393 = vrot.lane.b32.xlu0 %v8285_v44, %s12594_s12 }
 0x67f   : > { %7988 = vst.msk [vmem:[#allocation5 + $0x70] sm:$0xf] %vm1802_vm3, %v7941_v4  ;;  %7989 = vst.msk [vmem:[#allocation5 + $0x74] sm:$0xf] %vm1802_vm3, %v7942_v42  ;;  %v8288_v3 = vor.u32 %v8286_v60, %v8284_v21 }
 0x682   : > { %v15527_v63 = vld [vmem:[#allocation5 + $0x78] sm:$0xff]  }
 0x683   : > { %v8298_v7 = vshll.u32 %v15527_v63, 16  ;;  %v8302_v14 = vshrl.u32 %v15527_v63, 16 }
 0x685   : > { %v8300_v31 = vrot.slane %v8298_v7, 1 }
 0x686   : > { %v15529_v6 = vld [vmem:[#allocation5 + $0x70] sm:$0xff]  }
 0x687   : > { %v8290_v19 = vshll.u32 %v15529_v6, 16  ;;  %v8294_v45 = vshrl.u32 %v15529_v6, 16  ;;  %v8304_v9 = vor.u32 %v8302_v14, %v8300_v31 }
 0x688   : > { %v7841_v55 = vpop.permute.xlu1 %7840  ;;  %v7843_v37 = vpop.permute.xlu0 %7842 }
 0x689   : > { %v7947_v2 = vmax.bf16 %v7841_v55, %v15282_v11  ;;  %v7948_v59 = vmax.bf16 %v7843_v37, %v15280_v13  ;;  %v8292_v32 = vrot.slane %v8290_v19, 1 }
 0x68b   : > { %7994 = vst.msk [vmem:[#allocation5 + $0x88] sm:$0xf] %vm1802_vm3, %v7947_v2  ;;  %7995 = vst.msk [vmem:[#allocation5 + $0x8c] sm:$0xf] %vm1802_vm3, %v7948_v59  ;;  %v8293_v34 = vsel %vm534_vm0, %v8288_v3, %v8292_v32  ;;  %v8296_v57 = vor.u32 %v8294_v45, %v8292_v32 }
 0x68c   : > { %v7837_v52 = vpop.permute.xlu1 %7836  ;;  %v7839_v39 = vpop.permute.xlu0 %7838  ;;  %8395 = vrot.lane.b32.xlu1 %v8293_v34, %s12594_s12 }
 0x68d   : > { %v7945_v51 = vmax.bf16 %v7837_v52, %v15290_v0  ;;  %v7946_v11 = vmax.bf16 %v7839_v39, %v15288_v38  ;;  %v8301_v13 = vsel %vm534_vm0, %v8296_v57, %v8300_v31 }
 0x68e   : > { %8397 = vrot.lane.b32.xlu0 %v8301_v13, %s12594_s12 }
 0x68f   : > { %7992 = vst.msk [vmem:[#allocation5 + $0x80] sm:$0xf] %vm1802_vm3, %v7945_v51  ;;  %7993 = vst.msk [vmem:[#allocation5 + $0x84] sm:$0xf] %vm1802_vm3, %v7946_v11 }
 0x692   : > { %v15547_v22 = vld [vmem:[#allocation5 + $0x88] sm:$0xff]  }
 0x693   : > { %v8314_v38 = vshll.u32 %v15547_v22, 16  ;;  %v8318_v2 = vshrl.u32 %v15547_v22, 16 }
 0x695   : > { %v8316_v54 = vrot.slane %v8314_v38, 1 }
 0x696   : > { %v15549_v18 = vld [vmem:[#allocation5 + $0x80] sm:$0xff]  }
 0x697   : > { %v8306_v0 = vshll.u32 %v15549_v18, 16  ;;  %v8310_v53 = vshrl.u32 %v15549_v18, 16  ;;  %v8320_v32 = vor.u32 %v8318_v2, %v8316_v54 }
 0x699   : > { %v8308_v24 = vrot.slane %v8306_v0, 1 }
 0x69b   : > { %v8309_v35 = vsel %vm534_vm0, %v8304_v9, %v8308_v24  ;;  %v8312_v62 = vor.u32 %v8310_v53, %v8308_v24 }
 0x69c   : > { %8399 = vrot.lane.b32.xlu1 %v8309_v35, %s12594_s12 }
 0x69d   : > { %v8317_v41 = vsel %vm534_vm0, %v8312_v62, %v8316_v54 }
 0x69e   : > { %8401 = vrot.lane.b32.xlu0 %v8317_v41, %s12594_s12 }
 0x6a3   : > { %v7851_v43 = vpop.permute.xlu0 %7850 }
 0x6a4   : > { %v7849_v20 = vpop.permute.xlu1 %7848  ;;  %v7952_v21 = vmax.bf16 %v7851_v43, %v15331_v5 }
 0x6a5   : > { %v7951_v58 = vmax.bf16 %v7849_v20, %v15333_v29 }
 0x6a6   : > { %7999 = vst.msk [vmem:[#allocation5 + $0x9c] sm:$0xf] %vm1802_vm3, %v7952_v21 }
 0x6a7   : > { %7998 = vst.msk [vmem:[#allocation5 + $0x98] sm:$0xf] %vm1802_vm3, %v7951_v58  ;;  %v7847_v42 = vpop.permute.xlu0 %7846 }
 0x6a8   : > { %v7845_v4 = vpop.permute.xlu1 %7844  ;;  %v7950_v55 = vmax.bf16 %v7847_v42, %v15350_v26 }
 0x6a9   : > { %v7949_v44 = vmax.bf16 %v7845_v4, %v15352_v56 }
 0x6aa   : > { %7997 = vst.msk [vmem:[#allocation5 + $0x94] sm:$0xf] %vm1802_vm3, %v7950_v55 }
 0x6ab   : > { %7996 = vst.msk [vmem:[#allocation5 + $0x90] sm:$0xf] %vm1802_vm3, %v7949_v44  ;;  %v8006_v44 = vld [vmem:[#allocation5 + $0xb8] sm:$0xf] }
 0x6ae   : > { %v15567_v37 = vld [vmem:[#allocation5 + $0x98] sm:$0xff]  }
 0x6af   : > { %v8330_v56 = vshll.u32 %v15567_v37, 16  ;;  %v8334_v53 = vshrl.u32 %v15567_v37, 16 }
 0x6b1   : > { %v7857_v60 = vpop.permute.xlu1 %7856  ;;  %v7859_v29 = vpop.permute.xlu0 %7858  ;;  %v8332_v57 = vrot.slane %v8330_v56, 1 }
 0x6b2   : > { %v7955_v5 = vmax.bf16 %v7857_v60, %v15384_v50  ;;  %v7956_v19 = vmax.bf16 %v7859_v29, %v15382_v27  ;;  %v15571_v7 = vld [vmem:[#allocation5 + $0x90] sm:$0xff]   ;;  %v15724_v29 = vld [vmem:[#allocation6 + $0x50] sm:$0xf] }
 0x6b3   : > { %v8322_v26 = vshll.u32 %v15571_v7, 16  ;;  %v8326_v52 = vshrl.u32 %v15571_v7, 16 }
 0x6b4   : > { %8002 = vst.msk [vmem:[#allocation5 + $0xa8] sm:$0xf] %vm1802_vm3, %v7955_v5  ;;  %8003 = vst.msk [vmem:[#allocation5 + $0xac] sm:$0xf] %vm1802_vm3, %v7956_v19 }
 0x6b5   : > { %v7853_v59 = vpop.permute.xlu1 %7852  ;;  %v7855_v3 = vpop.permute.xlu0 %7854  ;;  %v8324_v27 = vrot.slane %v8322_v26, 1 }
 0x6b6   : > { %v7953_v45 = vmax.bf16 %v7853_v59, %v15403_v61  ;;  %v7954_v50 = vmax.bf16 %v7855_v3, %v15401_v46 }
 0x6b7   : > { %v8325_v39 = vsel %vm534_vm0, %v8320_v32, %v8324_v27  ;;  %v8328_v34 = vor.u32 %v8326_v52, %v8324_v27 }
 0x6b8   : > { %8000 = vst.msk [vmem:[#allocation5 + $0xa0] sm:$0xf] %vm1802_vm3, %v7953_v45  ;;  %8001 = vst.msk [vmem:[#allocation5 + $0xa4] sm:$0xf] %vm1802_vm3, %v7954_v50  ;;  %8403 = vrot.lane.b32.xlu1 %v8325_v39, %s12594_s12 }
 0x6b9   : > { %v8370_v31 = vpop.permute.xlu1 %8369  ;;  %v8372_v51 = vpop.permute.xlu0 %8371  ;;  %v8333_v11 = vsel %vm534_vm0, %v8328_v34, %v8332_v57 }
 0x6ba   : > { %v8421_v61 = vsel %vm856_vm2, %v15360_v1, %v8372_v51  ;;  %v8418_v46 = vsel %vm856_vm2, %v15362_v10, %v8370_v31  ;;  %8405 = vrot.lane.b32.xlu0 %v8333_v11, %s12594_s12  ;;  %v15638_v11 = vld [vmem:[#allocation6 + $0x4] sm:$0xf] }
 0x6bb   : > { %12209 = vmatprep.mubr.bf16.mxu0 %v8418_v46  ;;  %v15591_v0 = vld [vmem:[#allocation5 + $0xa8] sm:$0xff]   ;;  %v15634_v46 = vld [vmem:[#allocation6] sm:$0xf] }
 0x6bc   : > { %12210 = vmatmul.mubr.bf16.vlgmr.msra.gmra.mxu0 %v8421_v61  ;;  %v8346_v62 = vshll.u32 %v15591_v0, 16  ;;  %v8350_v2 = vshrl.u32 %v15591_v0, 16 }
 0x6bd   : > { %v7861_v13 = vpop.permute.xlu1 %7860  ;;  %v7863_v14 = vpop.permute.xlu0 %7862 }
 0x6be   : > { %v7957_v38 = vmax.bf16 %v7861_v13, %v15427_v40  ;;  %v7958_v9 = vmax.bf16 %v7863_v14, %v15429_v12  ;;  %v8336_v12 = vor.u32 %v8334_v53, %v8332_v57  ;;  %v8348_v42 = vrot.slane %v8346_v62, 1  ;;  %v15646_v13 = vld [vmem:[#allocation6 + $0xc] sm:$0xf]  ;;  %v15662_v53 = vld [vmem:[#allocation6 + $0x18] sm:$0xf] }
 0x6bf   : > { %v15595_v24 = vld [vmem:[#allocation5 + $0xa0] sm:$0xff]  }
 0x6c0   : > { %8004 = vst.msk [vmem:[#allocation5 + $0xb0] sm:$0xf] %vm1802_vm3, %v7957_v38  ;;  %8005 = vst.msk [vmem:[#allocation5 + $0xb4] sm:$0xf] %vm1802_vm3, %v7958_v9  ;;  %v8338_v35 = vshll.u32 %v15595_v24, 16  ;;  %v8342_v20 = vshrl.u32 %v15595_v24, 16  ;;  %v8352_v59 = vor.u32 %v8350_v2, %v8348_v42 }
 0x6c1   : > { %v8374_v1 = vpop.permute.xlu1 %8373  ;;  %v8376_v10 = vpop.permute.xlu0 %8375  ;;  %v15652_v9 = vld [vmem:[#allocation6 + $0x10] sm:$0xf]  ;;  %v15678_v62 = vld [vmem:[#allocation6 + $0x28] sm:$0xf]  ;;  %v15734_v2 = vld [vmem:[#allocation6 + $0x58] sm:$0xf] }
 0x6c2   : > { %v8427_v54 = vsel %vm856_vm2, %v15386_v8, %v8376_v10  ;;  %v8424_v40 = vsel %vm856_vm2, %v15392_v36, %v8374_v1  ;;  %v8340_v41 = vrot.slane %v8338_v35, 1  ;;  %v15656_v1 = vld [vmem:[#allocation6 + $0x14] sm:$0xf]  ;;  %v15670_v35 = vld [vmem:[#allocation6 + $0x20] sm:$0xf] }
 0x6c3   : > { %12213 = vmatprep.mubr.bf16.mxu1 %v8424_v40 }
 0x6c4   : > { %12214 = vmatmul.mubr.bf16.vlgmr.msra.gmra.mxu1 %v8427_v54  ;;  %v8341_v21 = vsel %vm534_vm0, %v8336_v12, %v8340_v41  ;;  %v8344_v4 = vor.u32 %v8342_v20, %v8340_v41  ;;  %v15682_v54 = vld [vmem:[#allocation6 + $0x2c] sm:$0xf]  ;;  %v15688_v20 = vld [vmem:[#allocation6 + $0x30] sm:$0xf] }
 0x6c5   : > { %v7865_v43 = vpop.permute.xlu1 %7864  ;;  %v8378_v58 = vpop.permute.xlu0 %8377  ;;  %8407 = vrot.lane.b32.xlu1 %v8341_v21, %s12594_s12  ;;  %v15698_v21 = vld [vmem:[#allocation6 + $0x38] sm:$0xf] }
 0x6c6   : > { %v7959_v55 = vmax.bf16 %v7865_v43, %v15454_v15  ;;  %v8430_v8 = vsel %vm856_vm2, %v15420_v33, %v8378_v58  ;;  %v8349_v36 = vsel %vm534_vm0, %v8344_v4, %v8348_v42  ;;  %v15692_v43 = vld [vmem:[#allocation6 + $0x34] sm:$0xf]  ;;  %v15706_v4 = vld [vmem:[#allocation6 + $0x40] sm:$0xf]  ;;  %v15714_v42 = vld [vmem:[#allocation6 + $0x48] sm:$0xf] }
 0x6c7   : > { %12217 = vmatprep.mubr.bf16.mxu1 %v8430_v8  ;;  %v15613_v60 = vld [vmem:[#allocation5 + $0xb0] sm:$0xff]   ;;  %8409 = vrot.lane.b32.xlu0 %v8349_v36, %s12594_s12 }
 0x6c8   : > { %v8007_v5 = vsel %vm14547_vm7, %v7959_v55, %v8006_v44  ;;  %v8354_v15 = vshll.u32 %v15613_v60, 16  ;;  %v8358_v50 = vshrl.u32 %v15613_v60, 16  ;;  %v15718_v44 = vld [vmem:[#allocation6 + $0x4c] sm:$0xf] }
 0x6c9   : > { %8008 = vst [vmem:[#allocation5 + $0xb8] sm:$0xf] %v8007_v5  ;;  %v8380_v19 = vpop.permute.xlu1 %8379  ;;  %v8382_v26 = vpop.permute.xlu0 %8381  ;;  %v15728_v5 = vld [vmem:[#allocation6 + $0x54] sm:$0xf] }
 0x6ca   : > { %v8433_v33 = vsel %vm856_vm2, %v15416_v30, %v8380_v19  ;;  %v8436_v56 = vsel %vm856_vm2, %v15445_v16, %v8382_v26  ;;  %v8356_v3 = vrot.slane %v8354_v15, 1  ;;  %v15742_v15 = vld [vmem:[#allocation6 + $0x60] sm:$0xf]  ;;  %v15750_v26 = vld [vmem:[#allocation6 + $0x68] sm:$0xf] }
 0x6cc   : > { %12218 = vmatmul.mubr.bf16.gmra.mxu1 %v8433_v33  ;;  %v8357_v32 = vsel %vm534_vm0, %v8352_v59, %v8356_v3  ;;  %v8360_v39 = vor.u32 %v8358_v50, %v8356_v3  ;;  %v15754_v33 = vld [vmem:[#allocation6 + $0x6c] sm:$0xf] }
 0x6cd   : > { %12221 = vmatprep.mubr.bf16.mxu1 %v8436_v56  ;;  %8411 = vrot.lane.b32.xlu1 %v8357_v32, %s12594_s12  ;;  %v15760_v32 = vld [vmem:[#allocation6 + $0x70] sm:$0xf] }
 0x6d0   : > { %v12504_v45 = vld [vmem:[#allocation5 + $0xb8] ss:$0 sps:$4 sm:$0xff]  }
 0x6d1   : > { %v8362_v27 = vshll.u32 %v12504_v45, 16  ;;  %v8366_v57 = vshrl.u32 %v12504_v45, 16  ;;  %v15764_v45 = vld [vmem:[#allocation6 + $0x74] sm:$0xf] }
 0x6d2   : > { %v8384_v52 = vpop.permute.xlu1 %8383 }
 0x6d3   : > { %v8364_v34 = vrot.slane %v8362_v27, 1  ;;  %v8439_v30 = vsel %vm856_vm2, %v15438_v28, %v8384_v52  ;;  %v15642_v28 = vld [vmem:[#allocation6 + $0x8] sm:$0xf]  ;;  %v15770_v27 = vld [vmem:[#allocation6 + $0x78] sm:$0xf] }
 0x6d4   : > { %12222 = vmatmul.mubr.bf16.gmra.mxu1 %v8439_v30  ;;  %v8386_v16 = vpop.permute.xlu0 %8385  ;;  %v15778_v52 = vld [vmem:[#allocation6 + $0x80] sm:$0xf]  ;;  %v15798_v30 = vld [vmem:[#allocation6 + $0x94] sm:$0xf] }
 0x6d5   : > { %v8365_v31 = vsel %vm534_vm0, %v8360_v39, %v8364_v34  ;;  %v8368_v51 = vor.u32 %v8366_v57, %v8364_v34  ;;  %v8442_v61 = vsel %vm856_vm2, %v15471_v17, %v8386_v16  ;;  %v15786_v39 = vld [vmem:[#allocation6 + $0x88] sm:$0xf]  ;;  %v15790_v34 = vld [vmem:[#allocation6 + $0x8c] sm:$0xf]  ;;  %v15794_v57 = vld [vmem:[#allocation6 + $0x90] sm:$0xf] }
 0x6d6   : > { %8413 = vrot.lane.b32.xlu0 %v8365_v31, %s12594_s12  ;;  %12225 = vmatprep.mubr.bf16.mxu1 %v8442_v61  ;;  %v15802_v16 = vld [vmem:[#allocation6 + $0x98] sm:$0xf]  ;;  %v15806_v31 = vld [vmem:[#allocation6 + $0x9c] sm:$0xf] }
 0x6d7   : > { %8415 = vrot.lane.b32.xlu1 %v8368_v51, %s12594_s12  ;;  %v15810_v51 = vld [vmem:[#allocation6 + $0xa0] sm:$0xf] }
 0x6da   : > { %4597 = vrot.lane.b32.xlu0 %v15634_v46, %s12594_s12 }
 0x6db   : > { %4599 = vrot.lane.b32.xlu1 %v15638_v11, %s12594_s12 }
 0x6de   : > { %4601 = vrot.lane.b32.xlu0 %v15642_v28, %s12594_s12  ;;  %v8388_v17 = vpop.permute.xlu1 %8387 }
 0x6df   : > { %4603 = vrot.lane.b32.xlu1 %v15646_v13, %s12594_s12  ;;  %v8445_v14 = vsel %vm856_vm2, %v15467_v48, %v8388_v17  ;;  %v15666_v48 = vld [vmem:[#allocation6 + $0x1c] sm:$0xf]  ;;  %v15814_v17 = vld [vmem:[#allocation6 + $0xa4] sm:$0xf] }
 0x6e0   : > { %12226 = vmatmul.mubr.bf16.gmra.mxu1 %v8445_v14  ;;  %v8390_v38 = vpop.permute.xlu0 %8389 }
 0x6e1   : > { %v8448_v10 = vsel %vm856_vm2, %v15489_v49, %v8390_v38  ;;  %v15674_v49 = vld [vmem:[#allocation6 + $0x24] sm:$0xf] }
 0x6e2   : > { %4605 = vrot.lane.b32.xlu0 %v15652_v9, %s12594_s12  ;;  %12229 = vmatprep.mubr.bf16.mxu1 %v8448_v10  ;;  %v15820_v10 = vld [vmem:[#allocation6 + $0xa8] sm:$0xf] }
 0x6e3   : > { %4607 = vrot.lane.b32.xlu1 %v15656_v1, %s12594_s12 }
 0x6e6   : > { %4609 = vrot.lane.b32.xlu0 %v15662_v53, %s12594_s12 }
 0x6e7   : > { %4611 = vrot.lane.b32.xlu1 %v15666_v48, %s12594_s12 }
 0x6ea   : > { %4613 = vrot.lane.b32.xlu0 %v15670_v35, %s12594_s12 }
 0x6eb   : > { %4615 = vrot.lane.b32.xlu1 %v15674_v49, %s12594_s12 }
 0x6ee   : > { %4617 = vrot.lane.b32.xlu0 %v15678_v62, %s12594_s12  ;;  %v8392_v40 = vpop.permute.xlu1 %8391 }
 0x6ef   : > { %4619 = vrot.lane.b32.xlu1 %v15682_v54, %s12594_s12  ;;  %v8451_v12 = vsel %vm856_vm2, %v15487_v25, %v8392_v40  ;;  %v15702_v25 = vld [vmem:[#allocation6 + $0x3c] sm:$0xf] }
 0x6f0   : > { %12230 = vmatmul.mubr.bf16.gmra.mxu1 %v8451_v12  ;;  %v8394_v41 = vpop.permute.xlu0 %8393  ;;  %v15826_v12 = vld [vmem:[#allocation6 + $0xac] sm:$0xf] }
 0x6f1   : > { %v8454_v58 = vsel %vm856_vm2, %v15509_v47, %v8394_v41  ;;  %v15710_v47 = vld [vmem:[#allocation6 + $0x44] sm:$0xf] }
 0x6f2   : > { %4621 = vrot.lane.b32.xlu0 %v15688_v20, %s12594_s12  ;;  %12233 = vmatprep.mubr.bf16.mxu1 %v8454_v58 }
 0x6f3   : > { %4623 = vrot.lane.b32.xlu1 %v15692_v43, %s12594_s12 }
 0x6f6   : > { %4625 = vrot.lane.b32.xlu0 %v15698_v21, %s12594_s12 }
 0x6f7   : > { %4627 = vrot.lane.b32.xlu1 %v15702_v25, %s12594_s12 }
 0x6fa   : > { %4629 = vrot.lane.b32.xlu0 %v15706_v4, %s12594_s12 }
 0x6fb   : > { %4631 = vrot.lane.b32.xlu1 %v15710_v47, %s12594_s12 }
 0x6fe   : > { %4633 = vrot.lane.b32.xlu0 %v15714_v42, %s12594_s12  ;;  %v8396_v55 = vpop.permute.xlu1 %8395 }
 0x6ff   : > { %4635 = vrot.lane.b32.xlu1 %v15718_v44, %s12594_s12  ;;  %v8457_v8 = vsel %vm856_vm2, %v15507_v23, %v8396_v55  ;;  %v15738_v23 = vld [vmem:[#allocation6 + $0x5c] sm:$0xf] }
 0x700   : > { %12234 = vmatmul.mubr.bf16.gmra.mxu1 %v8457_v8  ;;  %v8398_v36 = vpop.permute.xlu0 %8397 }
 0x701   : > { %v8460_v19 = vsel %vm856_vm2, %v15529_v6, %v8398_v36  ;;  %v15746_v6 = vld [vmem:[#allocation6 + $0x64] sm:$0xf] }
 0x702   : > { %4637 = vrot.lane.b32.xlu0 %v15724_v29, %s12594_s12  ;;  %12237 = vmatprep.mubr.bf16.mxu1 %v8460_v19 }
 0x703   : > { %4639 = vrot.lane.b32.xlu1 %v15728_v5, %s12594_s12 }
 0x706   : > { %4641 = vrot.lane.b32.xlu0 %v15734_v2, %s12594_s12 }
 0x707   : > { %4643 = vrot.lane.b32.xlu1 %v15738_v23, %s12594_s12 }
 0x70a   : > { %4645 = vrot.lane.b32.xlu0 %v15742_v15, %s12594_s12 }
 0x70b   : > { %4647 = vrot.lane.b32.xlu1 %v15746_v6, %s12594_s12 }
 0x70e   : > { %4649 = vrot.lane.b32.xlu0 %v15750_v26, %s12594_s12  ;;  %v8400_v56 = vpop.permute.xlu1 %8399 }
 0x70f   : > { %4651 = vrot.lane.b32.xlu1 %v15754_v33, %s12594_s12  ;;  %v8463_v59 = vsel %vm856_vm2, %v15527_v63, %v8400_v56  ;;  %v15774_v63 = vld [vmem:[#allocation6 + $0x7c] sm:$0xf] }
 0x710   : > { %12238 = vmatmul.mubr.bf16.gmra.mxu1 %v8463_v59  ;;  %v8402_v3 = vpop.permute.xlu0 %8401  ;;  %v12505_v56 = vld [vmem:[#allocation5 + $0xb8] ss:$0 sps:$4 sm:$0x77]  }
 0x711   : > { %v8466_v50 = vsel %vm856_vm2, %v15549_v18, %v8402_v3  ;;  %v15782_v18 = vld [vmem:[#allocation6 + $0x84] sm:$0xf] }
 0x712   : > { %4653 = vrot.lane.b32.xlu0 %v15760_v32, %s12594_s12  ;;  %12241 = vmatprep.mubr.bf16.mxu1 %v8466_v50 }
 0x713   : > { %4655 = vrot.lane.b32.xlu1 %v15764_v45, %s12594_s12 }
 0x716   : > { %4657 = vrot.lane.b32.xlu0 %v15770_v27, %s12594_s12 }
 0x717   : > { %4659 = vrot.lane.b32.xlu1 %v15774_v63, %s12594_s12 }
 0x71a   : > { %4661 = vrot.lane.b32.xlu0 %v15778_v52, %s12594_s12 }
 0x71b   : > { %4663 = vrot.lane.b32.xlu1 %v15782_v18, %s12594_s12 }
 0x71e   : > { %4665 = vrot.lane.b32.xlu0 %v15786_v39, %s12594_s12 }
 0x71f   : > { %4667 = vrot.lane.b32.xlu1 %v15790_v34, %s12594_s12 }
 0x722   : > { %4669 = vrot.lane.b32.xlu0 %v15794_v57, %s12594_s12 }
 0x723   : > { %4671 = vrot.lane.b32.xlu1 %v15798_v30, %s12594_s12 }
 0x726   : > { %4673 = vrot.lane.b32.xlu0 %v15802_v16, %s12594_s12 }
 0x727   : > { %4675 = vrot.lane.b32.xlu1 %v15806_v31, %s12594_s12 }
 0x72a   : > { %4677 = vrot.lane.b32.xlu0 %v15810_v51, %s12594_s12  ;;  %v8404_v61 = vpop.permute.xlu1 %8403 }
 0x72b   : > { %v8469_v14 = vsel %vm856_vm2, %v15547_v22, %v8404_v61  ;;  %4679 = vrot.lane.b32.xlu1 %v15814_v17, %s12594_s12  ;;  %v15830_v22 = vld [vmem:[#allocation6 + $0xb0] sm:$0xf] }
 0x72c   : > { %12242 = vmatmul.mubr.bf16.gmra.mxu1 %v8469_v14  ;;  %v8406_v38 = vpop.permute.xlu0 %8405 }
 0x72d   : > { %v8472_v40 = vsel %vm856_vm2, %v15571_v7, %v8406_v38 }
 0x72e   : > { %4681 = vrot.lane.b32.xlu0 %v15820_v10, %s12594_s12  ;;  %12245 = vmatprep.mubr.bf16.mxu1 %v8472_v40 }
 0x72f   : > { %4683 = vrot.lane.b32.xlu1 %v15826_v12, %s12594_s12 }
 0x732   : > { %4685 = vrot.lane.b32.xlu0 %v15830_v22, %s12594_s12 }
 0x737   : > { %v8408_v41 = vpop.permute.xlu1 %8407 }
 0x738   : > { %v8475_v58 = vsel %vm856_vm2, %v15567_v37, %v8408_v41 }
 0x739   : > { %12246 = vmatmul.mubr.bf16.gmra.mxu1 %v8475_v58  ;;  %v8410_v7 = vpop.permute.xlu0 %8409 }
 0x73a   : > { %v8478_v55 = vsel %vm856_vm2, %v15595_v24, %v8410_v7 }
 0x73b   : > { %12249 = vmatprep.mubr.bf16.mxu1 %v8478_v55 }
 0x73f   : > { %v8412_v8 = vpop.permute.xlu1 %8411 }
 0x740   : > { %v8481_v36 = vsel %vm856_vm2, %v15591_v0, %v8412_v8 }
 0x741   : > { %12250 = vmatmul.mubr.bf16.gmra.mxu1 %v8481_v36 }
 0x748   : > { %v8414_v19 = vpop.permute.xlu0 %8413 }
 0x749   : > { %v8416_v59 = vpop.permute.xlu1 %8415  ;;  %v8484_v3 = vsel %vm856_vm2, %v15613_v60, %v8414_v19 }
 0x74a   : > { %v8488_v50 = vsel %vm856_vm2, %v12505_v56, %v8416_v59  ;;  %12253 = vmatprep.mubr.bf16.mxu1 %v8484_v3 }
 0x74b   : > { %12254 = vmatmul.mubr.bf16.gmra.mxu1 %v8488_v50 }
 0x74c   : > { %v4598_v37 = vpop.permute.xlu0 %4597 }
 0x74d   : > { %v4738_v61 = vmax.bf16 %v4598_v37, %v15634_v46  ;;  %v4600_v24 = vpop.permute.xlu1 %4599 }
 0x74e   : > { %v4739_v14 = vmax.bf16 %v4600_v24, %v15638_v11 }
 0x74f   : > { %4785 = vst.msk [vmem:[#allocation7] sm:$0xf] %vm1802_vm3, %v4738_v61 }
 0x750   : > { %4786 = vst.msk [vmem:[#allocation7 + $0x4] sm:$0xf] %vm1802_vm3, %v4739_v14  ;;  %v4602_v0 = vpop.permute.xlu0 %4601 }
 0x751   : > { %v4740_v38 = vmax.bf16 %v4602_v0, %v15642_v28  ;;  %v4604_v40 = vpop.permute.xlu1 %4603 }
 0x752   : > { %v4741_v60 = vmax.bf16 %v4604_v40, %v15646_v13 }
 0x753   : > { %4787 = vst.msk [vmem:[#allocation7 + $0x8] sm:$0xf] %vm1802_vm3, %v4740_v38 }
 0x754   : > { %4788 = vst.msk [vmem:[#allocation7 + $0xc] sm:$0xf] %vm1802_vm3, %v4741_v60  ;;  %v4606_v41 = vpop.permute.xlu0 %4605 }
 0x755   : > { %v4742_v46 = vmax.bf16 %v4606_v41, %v15652_v9  ;;  %v4608_v58 = vpop.permute.xlu1 %4607 }
 0x756   : > { %v4743_v11 = vmax.bf16 %v4608_v58, %v15656_v1 }
 0x757   : > { %4789 = vst.msk [vmem:[#allocation7 + $0x10] sm:$0xf] %vm1802_vm3, %v4742_v46 }
 0x758   : > { %4790 = vst.msk [vmem:[#allocation7 + $0x14] sm:$0xf] %vm1802_vm3, %v4743_v11  ;;  %v4610_v7 = vpop.permute.xlu0 %4609 }
 0x759   : > { %v4744_v28 = vmax.bf16 %v4610_v7, %v15662_v53  ;;  %v4612_v55 = vpop.permute.xlu1 %4611 }
 0x75a   : > { %v4745_v13 = vmax.bf16 %v4612_v55, %v15666_v48 }
 0x75b   : > { %4791 = vst.msk [vmem:[#allocation7 + $0x18] sm:$0xf] %vm1802_vm3, %v4744_v28 }
 0x75c   : > { %4792 = vst.msk [vmem:[#allocation7 + $0x1c] sm:$0xf] %vm1802_vm3, %v4745_v13  ;;  %v4614_v8 = vpop.permute.xlu0 %4613 }
 0x75d   : > { %v4746_v9 = vmax.bf16 %v4614_v8, %v15670_v35  ;;  %v4616_v36 = vpop.permute.xlu1 %4615 }
 0x75e   : > { %v4747_v1 = vmax.bf16 %v4616_v36, %v15674_v49 }
 0x75f   : > { %4793 = vst.msk [vmem:[#allocation7 + $0x20] sm:$0xf] %vm1802_vm3, %v4746_v9 }
 0x760   : > { %4794 = vst.msk [vmem:[#allocation7 + $0x24] sm:$0xf] %vm1802_vm3, %v4747_v1  ;;  %v4618_v19 = vpop.permute.xlu0 %4617 }
 0x761   : > { %v4748_v53 = vmax.bf16 %v4618_v19, %v15678_v62  ;;  %v4620_v56 = vpop.permute.xlu1 %4619 }
 0x762   : > { %v4749_v48 = vmax.bf16 %v4620_v56, %v15682_v54 }
 0x763   : > { %4795 = vst.msk [vmem:[#allocation7 + $0x28] sm:$0xf] %vm1802_vm3, %v4748_v53 }
 0x764   : > { %4796 = vst.msk [vmem:[#allocation7 + $0x2c] sm:$0xf] %vm1802_vm3, %v4749_v48  ;;  %v4622_v59 = vpop.permute.xlu0 %4621 }
 0x765   : > { %v4750_v35 = vmax.bf16 %v4622_v59, %v15688_v20  ;;  %v4624_v3 = vpop.permute.xlu1 %4623 }
 0x766   : > { %v4751_v49 = vmax.bf16 %v4624_v3, %v15692_v43 }
 0x767   : > { %4797 = vst.msk [vmem:[#allocation7 + $0x30] sm:$0xf] %vm1802_vm3, %v4750_v35 }
 0x768   : > { %4798 = vst.msk [vmem:[#allocation7 + $0x34] sm:$0xf] %vm1802_vm3, %v4751_v49  ;;  %v4626_v50 = vpop.permute.xlu0 %4625 }
 0x769   : > { %v4752_v62 = vmax.bf16 %v4626_v50, %v15698_v21  ;;  %v4628_v37 = vpop.permute.xlu1 %4627 }
 0x76a   : > { %v4753_v54 = vmax.bf16 %v4628_v37, %v15702_v25 }
 0x76b   : > { %4799 = vst.msk [vmem:[#allocation7 + $0x38] sm:$0xf] %vm1802_vm3, %v4752_v62 }
 0x76c   : > { %4800 = vst.msk [vmem:[#allocation7 + $0x3c] sm:$0xf] %vm1802_vm3, %v4753_v54  ;;  %v4630_v61 = vpop.permute.xlu0 %4629 }
 0x76d   : > { %v4754_v20 = vmax.bf16 %v4630_v61, %v15706_v4  ;;  %v4632_v24 = vpop.permute.xlu1 %4631 }
 0x76e   : > { %v4755_v43 = vmax.bf16 %v4632_v24, %v15710_v47 }
 0x76f   : > { %4801 = vst.msk [vmem:[#allocation7 + $0x40] sm:$0xf] %vm1802_vm3, %v4754_v20 }
 0x770   : > { %4802 = vst.msk [vmem:[#allocation7 + $0x44] sm:$0xf] %vm1802_vm3, %v4755_v43  ;;  %v4634_v14 = vpop.permute.xlu0 %4633 }
 0x771   : > { %v4756_v21 = vmax.bf16 %v4634_v14, %v15714_v42  ;;  %v4636_v0 = vpop.permute.xlu1 %4635 }
 0x772   : > { %v4757_v25 = vmax.bf16 %v4636_v0, %v15718_v44  ;;  %v15891_v44 = vld [vmem:[%s16494_s8] ss:$0 sm:$0xff] }
 0x773   : > { %4803 = vst.msk [vmem:[#allocation7 + $0x48] sm:$0xf] %vm1802_vm3, %v4756_v21 }
 0x774   : > { %4804 = vst.msk [vmem:[#allocation7 + $0x4c] sm:$0xf] %vm1802_vm3, %v4757_v25  ;;  %v4638_v38 = vpop.permute.xlu0 %4637 }
 0x775   : > { %v4758_v4 = vmax.bf16 %v4638_v38, %v15724_v29  ;;  %v4640_v40 = vpop.permute.xlu1 %4639 }
 0x776   : > { %v4759_v47 = vmax.bf16 %v4640_v40, %v15728_v5 }
 0x777   : > { %4805 = vst.msk [vmem:[#allocation7 + $0x50] sm:$0xf] %vm1802_vm3, %v4758_v4 }
 0x778   : > { %4806 = vst.msk [vmem:[#allocation7 + $0x54] sm:$0xf] %vm1802_vm3, %v4759_v47  ;;  %v4642_v60 = vpop.permute.xlu0 %4641 }
 0x779   : > { %v4760_v42 = vmax.bf16 %v4642_v60, %v15734_v2  ;;  %v4644_v41 = vpop.permute.xlu1 %4643  ;;  %v15900_v2 = vld [vmem:[%s16495_s9] ss:$0 sm:$0xff] }
 0x77a   : > { %v4761_v46 = vmax.bf16 %v4644_v41, %v15738_v23 }
 0x77b   : > { %4807 = vst.msk [vmem:[#allocation7 + $0x58] sm:$0xf] %vm1802_vm3, %v4760_v42 }
 0x77c   : > { %v12211_v29 = vpop.f32.mrf.mxu0  ;;  %4808 = vst.msk [vmem:[#allocation7 + $0x5c] sm:$0xf] %vm1802_vm3, %v4761_v46  ;;  %v4646_v58 = vpop.permute.xlu0 %4645 }
 0x77d   : > { %v8787_v5 = vmul.f32 %v12211_v29, %v15891_v44  ;;  %v4762_v7 = vmax.bf16 %v4646_v58, %v15742_v15  ;;  %v4648_v28 = vpop.permute.xlu1 %4647 }
 0x77e   : > { %v8588_v11 = vpop.f32.mrf.mxu0  ;;  %v4763_v23 = vmax.bf16 %v4648_v28, %v15746_v6 }
 0x77f   : > { %v8785_v55 = vmul.f32 %v15891_v44, %v8588_v11  ;;  %4809 = vst.msk [vmem:[#allocation7 + $0x60] sm:$0xf] %vm1802_vm3, %v4762_v7  ;;  %v8841_v8 = vadd.f32 %v15900_v2, %v8787_v5 }
 0x780   : > { %v12212_v13 = vpop.f32.mrf.mxu0  ;;  %4810 = vst.msk [vmem:[#allocation7 + $0x64] sm:$0xf] %vm1802_vm3, %v4763_v23  ;;  %v4650_v36 = vpop.permute.xlu0 %4649 }
 0x781   : > { %v8788_v9 = vmul.f32 %v12212_v13, %v15891_v44  ;;  %v4764_v19 = vmax.bf16 %v4650_v36, %v15750_v26  ;;  %v4652_v53 = vpop.permute.xlu1 %4651  ;;  %v8839_v15 = vadd.f32 %v15900_v2, %v8785_v55  ;;  %v8888_v35 = vmax.f32 %v8841_v8, 0.0 }
 0x782   : > { %v8591_v1 = vpop.f32.mrf.mxu0  ;;  %v4765_v48 = vmax.bf16 %v4652_v53, %v15754_v33 }
 0x783   : > { %v8842_v56 = vadd.f32 %v15900_v2, %v8788_v9  ;;  %v8786_v6 = vmul.f32 %v15891_v44, %v8591_v1  ;;  %4811 = vst.msk [vmem:[#allocation7 + $0x68] sm:$0xf] %vm1802_vm3, %v4764_v19  ;;  %v8886_v61 = vmax.f32 %v8839_v15, 0.0 }
 0x784   : > { %v12215_v59 = vpop.f32.mrf.mxu1  ;;  %4812 = vst.msk [vmem:[#allocation7 + $0x6c] sm:$0xf] %vm1802_vm3, %v4765_v48  ;;  %v4654_v50 = vpop.permute.xlu0 %4653 }
 0x785   : > { %v8889_v3 = vmax.f32 %v8842_v56, 0.0  ;;  %v8840_v49 = vadd.f32 %v15900_v2, %v8786_v6  ;;  %v8791_v26 = vmul.f32 %v12215_v59, %v15891_v44  ;;  %v4766_v37 = vmax.bf16 %v4654_v50, %v15760_v32  ;;  %v4656_v54 = vpop.permute.xlu1 %4655 }
 0x786   : > { %v8604_v62 = vpop.f32.mrf.mxu1  ;;  %v4767_v43 = vmax.bf16 %v4656_v54, %v15764_v45 }
 0x787   : > { %v11330_v20 = vpack.c.bf16 %v8889_v3, %v8888_v35  ;;  %v8887_v24 = vmax.f32 %v8840_v49, 0.0  ;;  %v8789_v33 = vmul.f32 %v15891_v44, %v8604_v62  ;;  %4813 = vst.msk [vmem:[#allocation7 + $0x70] sm:$0xf] %vm1802_vm3, %v4766_v37  ;;  %v8845_v0 = vadd.f32 %v15900_v2, %v8791_v26 }
 0x788   : > { %v12216_v14 = vpop.f32.mrf.mxu1  ;;  %v4658_v38 = vpop.permute.xlu0 %4657  ;;  %4814 = vst.msk [vmem:[#allocation7 + $0x74] sm:$0xf] %vm1802_vm3, %v4767_v43 }
 0x789   : > { %11661 = vst [vmem:[#allocation6 + $0x8] sm:$0xff] %v11330_v20   ;;  %v11325_v21 = vpack.c.bf16 %v8887_v24, %v8886_v61  ;;  %v8792_v25 = vmul.f32 %v12216_v14, %v15891_v44  ;;  %v4768_v4 = vmax.bf16 %v4658_v38, %v15770_v27  ;;  %v4660_v40 = vpop.permute.xlu1 %4659  ;;  %v8843_v47 = vadd.f32 %v15900_v2, %v8789_v33 }
 0x78a   : > { %v8607_v32 = vpop.f32.mrf.mxu1  ;;  %v4769_v42 = vmax.bf16 %v4660_v40, %v15774_v63  ;;  %v8892_v46 = vmax.f32 %v8845_v0, 0.0 }
 0x78b   : > { %11326 = vst [vmem:[#allocation6] sm:$0xff] %v11325_v21   ;;  %v8846_v60 = vadd.f32 %v15900_v2, %v8792_v25  ;;  %v8790_v45 = vmul.f32 %v15891_v44, %v8607_v32  ;;  %4815 = vst.msk [vmem:[#allocation7 + $0x78] sm:$0xf] %vm1802_vm3, %v4768_v4  ;;  %v8890_v55 = vmax.f32 %v8843_v47, 0.0 }
 0x78c   : > { %v12219_v41 = vpop.f32.mrf.mxu1  ;;  %4816 = vst.msk [vmem:[#allocation7 + $0x7c] sm:$0xf] %vm1802_vm3, %v4769_v42  ;;  %v4662_v58 = vpop.permute.xlu0 %4661 }
 0x78d   : > { %v8893_v29 = vmax.f32 %v8846_v60, 0.0  ;;  %v8844_v5 = vadd.f32 %v15900_v2, %v8790_v45  ;;  %v8795_v27 = vmul.f32 %v12219_v41, %v15891_v44  ;;  %v4770_v7 = vmax.bf16 %v4662_v58, %v15778_v52  ;;  %v4664_v28 = vpop.permute.xlu1 %4663 }
 0x78e   : > { %v8620_v11 = vpop.f32.mrf.mxu1  ;;  %v4771_v8 = vmax.bf16 %v4664_v28, %v15782_v18 }
 0x78f   : > { %v11340_v23 = vpack.c.bf16 %v8893_v29, %v8892_v46  ;;  %v8891_v13 = vmax.f32 %v8844_v5, 0.0  ;;  %v8793_v63 = vmul.f32 %v15891_v44, %v8620_v11  ;;  %4817 = vst.msk [vmem:[#allocation7 + $0x80] sm:$0xf] %vm1802_vm3, %v4770_v7  ;;  %v8849_v53 = vadd.f32 %v15900_v2, %v8795_v27 }
 0x790   : > { %v12220_v9 = vpop.f32.mrf.mxu1  ;;  %v15938_v36 = vld [vmem:[#allocation6 + $0x8] sm:$0xf]  ;;  %v15940_v1 = vld [vmem:[#allocation6 + $0xc] sm:$0xf]  ;;  %v4666_v15 = vpop.permute.xlu0 %4665  ;;  %4818 = vst.msk [vmem:[#allocation7 + $0x84] sm:$0xf] %vm1802_vm3, %v4771_v8 }
 0x791   : > { %11663 = vst [vmem:[#allocation6 + $0x18] sm:$0xff] %v11340_v23   ;;  %v11335_v19 = vpack.c.bf16 %v8891_v13, %v8890_v55  ;;  %v8796_v52 = vmul.f32 %v12220_v9, %v15891_v44  ;;  %9267 = vrot.lane.b32.xlu0 %v15938_v36, %s12594_s12  ;;  %9269 = vrot.lane.b32.xlu1 %v15940_v1, %s12594_s12  ;;  %v4668_v48 = vpop.permute.xlu1 %4667  ;;  %v8896_v50 = vmax.f32 %v8849_v53, 0.0 }
 0x792   : > { %v8847_v18 = vadd.f32 %v15900_v2, %v8793_v63  ;;  %v8623_v56 = vpop.f32.mrf.mxu1  ;;  %v4772_v6 = vmax.bf16 %v4666_v15, %v15786_v39  ;;  %v4773_v3 = vmax.bf16 %v4668_v48, %v15790_v34  ;;  %v15955_v49 = vld [vmem:[#allocation6] sm:$0xf]  ;;  %v15957_v26 = vld [vmem:[#allocation6 + $0x4] sm:$0xf] }
 0x793   : > { %11662 = vst [vmem:[#allocation6 + $0x10] sm:$0xff] %v11335_v19   ;;  %v8850_v59 = vadd.f32 %v15900_v2, %v8796_v52  ;;  %v8794_v35 = vmul.f32 %v15891_v44, %v8623_v56 }
 0x794   : > { %4819 = vst.msk [vmem:[#allocation7 + $0x88] sm:$0xf] %vm1802_vm3, %v4772_v6  ;;  %4820 = vst.msk [vmem:[#allocation7 + $0x8c] sm:$0xf] %vm1802_vm3, %v4773_v3  ;;  %v4670_v39 = vpop.permute.xlu0 %4669  ;;  %v8894_v34 = vmax.f32 %v8847_v18, 0.0  ;;  %v12223_v20 = vpop.f32.mrf.mxu1 }
 0x795   : > { %v8897_v62 = vmax.f32 %v8850_v59, 0.0  ;;  %v8848_v37 = vadd.f32 %v15900_v2, %v8794_v35  ;;  %9263 = vrot.lane.b32.xlu0 %v15955_v49, %s12594_s12  ;;  %9265 = vrot.lane.b32.xlu1 %v15957_v26, %s12594_s12  ;;  %v4774_v54 = vmax.bf16 %v4670_v39, %v15794_v57  ;;  %v4672_v61 = vpop.permute.xlu1 %4671  ;;  %v8799_v14 = vmul.f32 %v12223_v20, %v15891_v44 }
 0x796   : > { %v4775_v43 = vmax.bf16 %v4672_v61, %v15798_v30  ;;  %v8636_v25 = vpop.f32.mrf.mxu1 }
 0x797   : > { %v11350_v24 = vpack.c.bf16 %v8897_v62, %v8896_v50  ;;  %v8895_v33 = vmax.f32 %v8848_v37, 0.0  ;;  %4821 = vst.msk [vmem:[#allocation7 + $0x90] sm:$0xf] %vm1802_vm3, %v4774_v54  ;;  %v8797_v57 = vmul.f32 %v15891_v44, %v8636_v25  ;;  %v8853_v47 = vadd.f32 %v15900_v2, %v8799_v14 }
 0x798   : > { %v15969_v21 = vld [vmem:[#allocation6 + $0x1c] sm:$0xf]  ;;  %v15971_v0 = vld [vmem:[#allocation6 + $0x18] sm:$0xf]  ;;  %4822 = vst.msk [vmem:[#allocation7 + $0x94] sm:$0xf] %vm1802_vm3, %v4775_v43  ;;  %v4674_v30 = vpop.permute.xlu0 %4673  ;;  %v12224_v40 = vpop.f32.mrf.mxu1 }
 0x799   : > { %11665 = vst [vmem:[#allocation6 + $0x28] sm:$0xff] %v11350_v24   ;;  %v11345_v38 = vpack.c.bf16 %v8895_v33, %v8894_v34  ;;  %9277 = vrot.lane.b32.xlu1 %v15969_v21, %s12594_s12  ;;  %9275 = vrot.lane.b32.xlu0 %v15971_v0, %s12594_s12  ;;  %v4776_v32 = vmax.bf16 %v4674_v30, %v15802_v16  ;;  %v4676_v4 = vpop.permute.xlu1 %4675  ;;  %v8900_v11 = vmax.f32 %v8853_v47, 0.0 }
 0x79a   : > { %v4777_v60 = vmax.bf16 %v4676_v4, %v15806_v31  ;;  %v8800_v45 = vmul.f32 %v12224_v40, %v15891_v44  ;;  %v15984_v42 = vld [vmem:[#allocation6 + $0x14] sm:$0xf]  ;;  %v15986_v41 = vld [vmem:[#allocation6 + $0x10] sm:$0xf]  ;;  %v8639_v46 = vpop.f32.mrf.mxu1  ;;  %v8851_v29 = vadd.f32 %v15900_v2, %v8797_v57 }
 0x79b   : > { %11664 = vst [vmem:[#allocation6 + $0x20] sm:$0xff] %v11345_v38   ;;  %4823 = vst.msk [vmem:[#allocation7 + $0x98] sm:$0xf] %vm1802_vm3, %v4776_v32  ;;  %v8798_v31 = vmul.f32 %v15891_v44, %v8639_v46 }
 0x79c   : > { %4824 = vst.msk [vmem:[#allocation7 + $0x9c] sm:$0xf] %vm1802_vm3, %v4777_v60  ;;  %v8854_v16 = vadd.f32 %v15900_v2, %v8800_v45  ;;  %v4678_v5 = vpop.permute.xlu0 %4677  ;;  %v8898_v63 = vmax.f32 %v8851_v29, 0.0 }
 0x79d   : > { %9273 = vrot.lane.b32.xlu1 %v15984_v42, %s12594_s12  ;;  %9271 = vrot.lane.b32.xlu0 %v15986_v41, %s12594_s12  ;;  %v4778_v27 = vmax.bf16 %v4678_v5, %v15810_v51  ;;  %v4680_v58 = vpop.permute.xlu1 %4679  ;;  %v8852_v28 = vadd.f32 %v15900_v2, %v8798_v31 }
 0x79e   : > { %v8901_v7 = vmax.f32 %v8854_v16, 0.0  ;;  %v4779_v55 = vmax.bf16 %v4680_v58, %v15814_v17 }
 0x79f   : > { %4825 = vst.msk [vmem:[#allocation7 + $0xa0] sm:$0xf] %vm1802_vm3, %v4778_v27  ;;  %v8899_v9 = vmax.f32 %v8852_v28, 0.0 }
 0x7a0   : > { %v16000_v23 = vld [vmem:[#allocation6 + $0x2c] sm:$0xf]  ;;  %v16002_v13 = vld [vmem:[#allocation6 + $0x28] sm:$0xf]  ;;  %v11360_v8 = vpack.c.bf16 %v8901_v7, %v8900_v11  ;;  %4826 = vst.msk [vmem:[#allocation7 + $0xa4] sm:$0xf] %vm1802_vm3, %v4779_v55  ;;  %v4682_v51 = vpop.permute.xlu0 %4681  ;;  %v12227_v53 = vpop.f32.mrf.mxu1 }
 0x7a1   : > { %9285 = vrot.lane.b32.xlu1 %v16000_v23, %s12594_s12  ;;  %9283 = vrot.lane.b32.xlu0 %v16002_v13, %s12594_s12  ;;  %v4780_v17 = vmax.bf16 %v4682_v51, %v15820_v10  ;;  %v4684_v19 = vpop.permute.xlu1 %4683  ;;  %v11355_v52 = vpack.c.bf16 %v8899_v9, %v8898_v63  ;;  %v8803_v18 = vmul.f32 %v12227_v53, %v15891_v44 }
 0x7a2   : > { %11667 = vst [vmem:[#allocation6 + $0x38] sm:$0xff] %v11360_v8   ;;  %v4781_v15 = vmax.bf16 %v4684_v19, %v15826_v12  ;;  %v16013_v56 = vld [vmem:[#allocation6 + $0x24] sm:$0xf]  ;;  %v16015_v6 = vld [vmem:[#allocation6 + $0x20] sm:$0xf]  ;;  %v8652_v48 = vpop.f32.mrf.mxu1 }
 0x7a3   : > { %4827 = vst.msk [vmem:[#allocation7 + $0xa8] sm:$0xf] %vm1802_vm3, %v4780_v17  ;;  %11666 = vst [vmem:[#allocation6 + $0x30] sm:$0xff] %v11355_v52   ;;  %v8801_v10 = vmul.f32 %v15891_v44, %v8652_v48  ;;  %v8857_v3 = vadd.f32 %v15900_v2, %v8803_v18 }
 0x7a4   : > { %4828 = vst.msk [vmem:[#allocation7 + $0xac] sm:$0xf] %vm1802_vm3, %v4781_v15  ;;  %v4686_v12 = vpop.permute.xlu0 %4685  ;;  %v12228_v35 = vpop.f32.mrf.mxu1 }
 0x7a5   : > { %9281 = vrot.lane.b32.xlu1 %v16013_v56, %s12594_s12  ;;  %9279 = vrot.lane.b32.xlu0 %v16015_v6, %s12594_s12  ;;  %v4782_v59 = vmax.bf16 %v4686_v12, %v15830_v22  ;;  %v8804_v50 = vmul.f32 %v12228_v35, %v15891_v44  ;;  %v8855_v37 = vadd.f32 %v15900_v2, %v8801_v10  ;;  %v8904_v20 = vmax.f32 %v8857_v3, 0.0 }
 0x7a6   : > { %v8655_v62 = vpop.f32.mrf.mxu1 }
 0x7a7   : > { %4829 = vst.msk [vmem:[#allocation7 + $0xb0] sm:$0xf] %vm1802_vm3, %v4782_v59  ;;  %v8858_v39 = vadd.f32 %v15900_v2, %v8804_v50  ;;  %v8802_v34 = vmul.f32 %v15891_v44, %v8655_v62  ;;  %v8902_v33 = vmax.f32 %v8855_v37, 0.0 }
 0x7a9   : > { %v16030_v54 = vld [vmem:[#allocation6 + $0x3c] sm:$0xf]  ;;  %v16032_v61 = vld [vmem:[#allocation6 + $0x38] sm:$0xf]  ;;  %v8905_v22 = vmax.f32 %v8858_v39, 0.0  ;;  %v8856_v24 = vadd.f32 %v15900_v2, %v8802_v34 }
 0x7aa   : > { %9293 = vrot.lane.b32.xlu1 %v16030_v54, %s12594_s12  ;;  %9291 = vrot.lane.b32.xlu0 %v16032_v61, %s12594_s12  ;;  %v16039_v25 = vld [vmem:[#allocation6 + $0x34] sm:$0xf]  ;;  %v16041_v38 = vld [vmem:[#allocation6 + $0x30] sm:$0xf] }
 0x7ab   : > { %v11370_v43 = vpack.c.bf16 %v8905_v22, %v8904_v20  ;;  %v8903_v14 = vmax.f32 %v8856_v24, 0.0 }
 0x7ad   : > { %11669 = vst [vmem:[#allocation6 + $0x48] sm:$0xff] %v11370_v43   ;;  %v11365_v57 = vpack.c.bf16 %v8903_v14, %v8902_v33 }
 0x7ae   : > { %9289 = vrot.lane.b32.xlu1 %v16039_v25, %s12594_s12  ;;  %9287 = vrot.lane.b32.xlu0 %v16041_v38, %s12594_s12 }
 0x7af   : > { %11668 = vst [vmem:[#allocation6 + $0x40] sm:$0xff] %v11365_v57  }
 0x7b0   : > { %v12231_v30 = vpop.f32.mrf.mxu1 }
 0x7b1   : > { %v8807_v32 = vmul.f32 %v12231_v30, %v15891_v44 }
 0x7b2   : > { %v8668_v4 = vpop.f32.mrf.mxu1 }
 0x7b3   : > { %v8805_v40 = vmul.f32 %v15891_v44, %v8668_v4  ;;  %v8861_v46 = vadd.f32 %v15900_v2, %v8807_v32 }
 0x7b4   : > { %v12232_v47 = vpop.f32.mrf.mxu1  ;;  %v16049_v60 = vld [vmem:[#allocation6 + $0x4c] sm:$0xf]  ;;  %v16051_v45 = vld [vmem:[#allocation6 + $0x48] sm:$0xf] }
 0x7b5   : > { %v8808_v29 = vmul.f32 %v12232_v47, %v15891_v44  ;;  %9301 = vrot.lane.b32.xlu1 %v16049_v60, %s12594_s12  ;;  %9299 = vrot.lane.b32.xlu0 %v16051_v45, %s12594_s12  ;;  %v8859_v31 = vadd.f32 %v15900_v2, %v8805_v40  ;;  %v8908_v7 = vmax.f32 %v8861_v46, 0.0 }
 0x7b6   : > { %v8671_v16 = vpop.f32.mrf.mxu1  ;;  %v16062_v58 = vld [vmem:[#allocation6 + $0x44] sm:$0xf]  ;;  %v16064_v11 = vld [vmem:[#allocation6 + $0x40] sm:$0xf] }
 0x7b7   : > { %v8862_v5 = vadd.f32 %v15900_v2, %v8808_v29  ;;  %v8806_v27 = vmul.f32 %v15891_v44, %v8671_v16  ;;  %v8906_v63 = vmax.f32 %v8859_v31, 0.0 }
 0x7b9   : > { %v8909_v28 = vmax.f32 %v8862_v5, 0.0  ;;  %v8860_v55 = vadd.f32 %v15900_v2, %v8806_v27  ;;  %9297 = vrot.lane.b32.xlu1 %v16062_v58, %s12594_s12  ;;  %9295 = vrot.lane.b32.xlu0 %v16064_v11, %s12594_s12 }
 0x7bb   : > { %v11380_v8 = vpack.c.bf16 %v8909_v28, %v8908_v7  ;;  %v8907_v9 = vmax.f32 %v8860_v55, 0.0 }
 0x7bd   : > { %11671 = vst [vmem:[#allocation6 + $0x58] sm:$0xff] %v11380_v8   ;;  %v11375_v51 = vpack.c.bf16 %v8907_v9, %v8906_v63 }
 0x7bf   : > { %11670 = vst [vmem:[#allocation6 + $0x50] sm:$0xff] %v11375_v51  }
 0x7c0   : > { %v12235_v17 = vpop.f32.mrf.mxu1 }
 0x7c1   : > { %v8811_v19 = vmul.f32 %v12235_v17, %v15891_v44 }
 0x7c2   : > { %v8684_v53 = vpop.f32.mrf.mxu1 }
 0x7c3   : > { %v8809_v52 = vmul.f32 %v15891_v44, %v8684_v53  ;;  %v8865_v10 = vadd.f32 %v15900_v2, %v8811_v19  ;;  %v11001_v53 = vld [vmem:[#allocation7] sm:$0xff]  }
 0x7c4   : > { %v12236_v15 = vpop.f32.mrf.mxu1  ;;  %v16073_v18 = vld [vmem:[#allocation6 + $0x5c] sm:$0xf]  ;;  %v16075_v48 = vld [vmem:[#allocation6 + $0x58] sm:$0xf] }
 0x7c5   : > { %v8812_v12 = vmul.f32 %v12236_v15, %v15891_v44  ;;  %9309 = vrot.lane.b32.xlu1 %v16073_v18, %s12594_s12  ;;  %9307 = vrot.lane.b32.xlu0 %v16075_v48, %s12594_s12  ;;  %v8863_v35 = vadd.f32 %v15900_v2, %v8809_v52  ;;  %v8912_v39 = vmax.f32 %v8865_v10, 0.0  ;;  %v11595_v10 = vld [vmem:[#allocation7 + $0x8] sm:$0xff]  }
 0x7c6   : > { %v8687_v59 = vpop.f32.mrf.mxu1  ;;  %v16086_v62 = vld [vmem:[#allocation6 + $0x54] sm:$0xf]  ;;  %v16088_v37 = vld [vmem:[#allocation6 + $0x50] sm:$0xf] }
 0x7c7   : > { %v8866_v3 = vadd.f32 %v15900_v2, %v8812_v12  ;;  %v8810_v50 = vmul.f32 %v15891_v44, %v8687_v59  ;;  %v8910_v22 = vmax.f32 %v8863_v35, 0.0  ;;  %v11002_v12 = vunpack.c.l.bf16 %v11001_v53 }
 0x7c8   : > { %v11003_v59 = vunpack.c.h.bf16 %v11001_v53  ;;  %v11006_v35 = vunpack.c.l.bf16 %v11595_v10  ;;  %v11597_v53 = vld [vmem:[#allocation7 + $0x18] sm:$0xff]  }
 0x7c9   : > { %v8913_v34 = vmax.f32 %v8866_v3, 0.0  ;;  %v8864_v20 = vadd.f32 %v15900_v2, %v8810_v50  ;;  %9305 = vrot.lane.b32.xlu1 %v16086_v62, %s12594_s12  ;;  %9303 = vrot.lane.b32.xlu0 %v16088_v37, %s12594_s12 }
 0x7cb   : > { %v11390_v24 = vpack.c.bf16 %v8913_v34, %v8912_v39  ;;  %v8911_v33 = vmax.f32 %v8864_v20, 0.0  ;;  %v4927_v39 = vsel %vm856_vm2, %v11002_v12, 0.0  ;;  %v4928_v34 = vsel %vm856_vm2, %v11003_v59, 0.0 }
 0x7cd   : > { %11673 = vst [vmem:[#allocation6 + $0x68] sm:$0xff] %v11390_v24   ;;  %v11385_v43 = vpack.c.bf16 %v8911_v33, %v8910_v22  ;;  %v4930_v22 = vsel %vm856_vm2, %v11006_v35, 0.0  ;;  %v4929_v33 = vadd.f32 %v4928_v34, %v4927_v39  ;;  %v11014_v34 = vunpack.c.l.bf16 %v11597_v53 }
 0x7cf   : > { %11672 = vst [vmem:[#allocation6 + $0x60] sm:$0xff] %v11385_v43   ;;  %v11596_v43 = vld [vmem:[#allocation7 + $0x10] sm:$0xff]  }
 0x7d0   : > { %v12239_v14 = vpop.f32.mrf.mxu1 }
 0x7d1   : > { %v8815_v57 = vmul.f32 %v12239_v14, %v15891_v44 }
 0x7d2   : > { %v8700_v30 = vpop.f32.mrf.mxu1 }
 0x7d3   : > { %v8813_v32 = vmul.f32 %v15891_v44, %v8700_v30  ;;  %v8869_v46 = vadd.f32 %v15900_v2, %v8815_v57  ;;  %v11007_v57 = vunpack.c.h.bf16 %v11595_v10  ;;  %v11011_v10 = vunpack.c.h.bf16 %v11596_v43 }
 0x7d4   : > { %v12240_v4 = vpop.f32.mrf.mxu1  ;;  %v16097_v40 = vld [vmem:[#allocation6 + $0x6c] sm:$0xf]  ;;  %v16099_v47 = vld [vmem:[#allocation6 + $0x68] sm:$0xf] }
 0x7d5   : > { %v8816_v29 = vmul.f32 %v12240_v4, %v15891_v44  ;;  %9317 = vrot.lane.b32.xlu1 %v16097_v40, %s12594_s12  ;;  %9315 = vrot.lane.b32.xlu0 %v16099_v47, %s12594_s12  ;;  %v8867_v31 = vadd.f32 %v15900_v2, %v8813_v32  ;;  %v8916_v55 = vmax.f32 %v8869_v46, 0.0  ;;  %v4931_v32 = vadd.f32 %v4930_v22, %v4929_v33 }
 0x7d6   : > { %v8703_v16 = vpop.f32.mrf.mxu1  ;;  %v16110_v7 = vld [vmem:[#allocation6 + $0x64] sm:$0xf]  ;;  %v16112_v28 = vld [vmem:[#allocation6 + $0x60] sm:$0xf]  ;;  %v11010_v46 = vunpack.c.l.bf16 %v11596_v43  ;;  %v4936_v33 = vsel %vm856_vm2, %v11011_v10, 0.0 }
 0x7d7   : > { %v8870_v5 = vadd.f32 %v15900_v2, %v8816_v29  ;;  %v8814_v27 = vmul.f32 %v15891_v44, %v8703_v16  ;;  %v8914_v9 = vmax.f32 %v8867_v31, 0.0  ;;  %v16152_v43 = vld [vmem:[#allocation7 + $0x20] sm:$0xff]  }
 0x7d9   : > { %v8917_v63 = vmax.f32 %v8870_v5, 0.0  ;;  %v8868_v8 = vadd.f32 %v15900_v2, %v8814_v27  ;;  %9313 = vrot.lane.b32.xlu1 %v16110_v7, %s12594_s12  ;;  %9311 = vrot.lane.b32.xlu0 %v16112_v28, %s12594_s12  ;;  %v4932_v5 = vsel %vm856_vm2, %v11007_v57, 0.0 }
 0x7db   : > { %v11400_v51 = vpack.c.bf16 %v8917_v63, %v8916_v55  ;;  %v8915_v17 = vmax.f32 %v8868_v8, 0.0  ;;  %v4933_v8 = vadd.f32 %v4932_v5, %v4931_v32  ;;  %v4938_v32 = vsel %vm856_vm2, %v11014_v34, 0.0 }
 0x7dd   : > { %11675 = vst [vmem:[#allocation6 + $0x78] sm:$0xff] %v11400_v51   ;;  %v11395_v19 = vpack.c.bf16 %v8915_v17, %v8914_v9  ;;  %v4934_v9 = vsel %vm856_vm2, %v11010_v46, 0.0  ;;  %v11015_v46 = vunpack.c.h.bf16 %v11597_v53 }
 0x7de   : > { %v4935_v39 = vadd.f32 %v4934_v9, %v4933_v8 }
 0x7df   : > { %11674 = vst [vmem:[#allocation6 + $0x70] sm:$0xff] %v11395_v19  }
 0x7e0   : > { %v4937_v57 = vadd.f32 %v4936_v33, %v4935_v39 }
 0x7e2   : > { %v4939_v5 = vadd.f32 %v4938_v32, %v4937_v57 }
 0x7e4   : > { %v16119_v52 = vld [vmem:[#allocation6 + $0x7c] sm:$0xf]  ;;  %v16121_v15 = vld [vmem:[#allocation6 + $0x78] sm:$0xf] }
 0x7e5   : > { %9325 = vrot.lane.b32.xlu1 %v16119_v52, %s12594_s12  ;;  %9323 = vrot.lane.b32.xlu0 %v16121_v15, %s12594_s12 }
 0x7e6   : > { %v16127_v3 = vld [vmem:[#allocation6 + $0x74] sm:$0xf]  ;;  %v16129_v50 = vld [vmem:[#allocation6 + $0x70] sm:$0xf] }
 0x7e9   : > { %9321 = vrot.lane.b32.xlu1 %v16127_v3, %s12594_s12  ;;  %9319 = vrot.lane.b32.xlu0 %v16129_v50, %s12594_s12 }
 0x7ec   : > { %v12243_v20 = vpop.f32.mrf.mxu1 }
 0x7ed   : > { %v8819_v24 = vmul.f32 %v12243_v20, %v15891_v44 }
 0x7ee   : > { %v8716_v14 = vpop.f32.mrf.mxu1 }
 0x7ef   : > { %v8817_v30 = vmul.f32 %v15891_v44, %v8716_v14  ;;  %v8873_v29 = vadd.f32 %v15900_v2, %v8819_v24 }
 0x7f0   : > { %v12244_v4 = vpop.f32.mrf.mxu1 }
 0x7f1   : > { %v8820_v16 = vmul.f32 %v12244_v4, %v15891_v44  ;;  %v8871_v27 = vadd.f32 %v15900_v2, %v8817_v30  ;;  %v8920_v51 = vmax.f32 %v8873_v29, 0.0 }
 0x7f2   : > { %v8719_v31 = vpop.f32.mrf.mxu1 }
 0x7f3   : > { %v8874_v55 = vadd.f32 %v15900_v2, %v8820_v16  ;;  %v8818_v63 = vmul.f32 %v15891_v44, %v8719_v31  ;;  %v8918_v12 = vmax.f32 %v8871_v27, 0.0  ;;  %v11018_v27 = vunpack.c.l.bf16 %v16152_v43 }
 0x7f5   : > { %v8921_v17 = vmax.f32 %v8874_v55, 0.0  ;;  %v8872_v19 = vadd.f32 %v15900_v2, %v8818_v63 }
 0x7f7   : > { %v11410_v59 = vpack.c.bf16 %v8921_v17, %v8920_v51  ;;  %v8919_v35 = vmax.f32 %v8872_v19, 0.0  ;;  %v4940_v19 = vsel %vm856_vm2, %v11015_v46, 0.0 }
 0x7f8   : > { %v4941_v33 = vadd.f32 %v4940_v19, %v4939_v5 }
 0x7f9   : > { %11677 = vst [vmem:[#allocation6 + $0x88] sm:$0xff] %v11410_v59   ;;  %v11405_v20 = vpack.c.bf16 %v8919_v35, %v8918_v12  ;;  %v12247_v22 = vpop.f32.mrf.mxu1 }
 0x7fa   : > { %v8823_v24 = vmul.f32 %v12247_v22, %v15891_v44 }
 0x7fb   : > { %11676 = vst [vmem:[#allocation6 + $0x80] sm:$0xff] %v11405_v20   ;;  %v8732_v14 = vpop.f32.mrf.mxu1 }
 0x7fc   : > { %v8821_v30 = vmul.f32 %v15891_v44, %v8732_v14  ;;  %v8877_v29 = vadd.f32 %v15900_v2, %v8823_v24  ;;  %v16173_v24 = vld [vmem:[#allocation7 + $0x28] sm:$0xff]   ;;  %v4942_v14 = vsel %vm856_vm2, %v11018_v27, 0.0 }
 0x7fd   : > { %v12248_v4 = vpop.f32.mrf.mxu1  ;;  %v11022_v19 = vunpack.c.l.bf16 %v16173_v24 }
 0x7fe   : > { %v8824_v16 = vmul.f32 %v12248_v4, %v15891_v44  ;;  %v8875_v55 = vadd.f32 %v15900_v2, %v8821_v30  ;;  %v8924_v53 = vmax.f32 %v8877_v29, 0.0 }
 0x7ff   : > { %v8735_v31 = vpop.f32.mrf.mxu1 }
 0x800   : > { %v8878_v63 = vadd.f32 %v15900_v2, %v8824_v16  ;;  %v8822_v8 = vmul.f32 %v15891_v44, %v8735_v31  ;;  %v16160_v9 = vld [vmem:[#allocation6 + $0x8c] sm:$0xf]  ;;  %v16162_v51 = vld [vmem:[#allocation6 + $0x88] sm:$0xf]  ;;  %v8922_v57 = vmax.f32 %v8875_v55, 0.0  ;;  %v11019_v55 = vunpack.c.h.bf16 %v16152_v43 }
 0x801   : > { %v12251_v17 = vpop.f32.mrf.mxu1  ;;  %9333 = vrot.lane.b32.xlu1 %v16160_v9, %s12594_s12  ;;  %9331 = vrot.lane.b32.xlu0 %v16162_v51, %s12594_s12 }
 0x802   : > { %v8925_v10 = vmax.f32 %v8878_v63, 0.0  ;;  %v8876_v12 = vadd.f32 %v15900_v2, %v8822_v8  ;;  %v8827_v35 = vmul.f32 %v12251_v17, %v15891_v44  ;;  %v16177_v46 = vld [vmem:[#allocation6 + $0x84] sm:$0xf]  ;;  %v16179_v29 = vld [vmem:[#allocation6 + $0x80] sm:$0xf] }
 0x803   : > { %v9270_v59 = vpop.permute.xlu1 %9269  ;;  %v9268_v39 = vpop.permute.xlu0 %9267 }
 0x804   : > { %v9407_v34 = vmax.bf16 %v9270_v59, %v15940_v1  ;;  %v9406_v20 = vmax.bf16 %v9268_v39, %v15938_v36  ;;  %v8748_v22 = vpop.f32.mrf.mxu1  ;;  %v11420_v30 = vpack.c.bf16 %v8925_v10, %v8924_v53  ;;  %v8923_v32 = vmax.f32 %v8876_v12, 0.0 }
 0x805   : > { %v8825_v4 = vmul.f32 %v15891_v44, %v8748_v22  ;;  %9329 = vrot.lane.b32.xlu1 %v16177_v46, %s12594_s12  ;;  %9327 = vrot.lane.b32.xlu0 %v16179_v29, %s12594_s12  ;;  %v8881_v16 = vadd.f32 %v15900_v2, %v8827_v35  ;;  %v4943_v53 = vadd.f32 %v4942_v14, %v4941_v33  ;;  %v4946_v14 = vsel %vm856_vm2, %v11022_v19, 0.0 }
 0x806   : > { %9454 = vst.msk [vmem:[#allocation7 + $0xc] sm:$0xf] %vm1802_vm3, %v9407_v34  ;;  %9453 = vst.msk [vmem:[#allocation7 + $0x8] sm:$0xf] %vm1802_vm3, %v9406_v20  ;;  %v12252_v36 = vpop.f32.mrf.mxu1  ;;  %v11415_v1 = vpack.c.bf16 %v8923_v32, %v8922_v57  ;;  %v4944_v34 = vsel %vm856_vm2, %v11019_v55, 0.0 }
 0x807   : > { %11679 = vst [vmem:[#allocation6 + $0x98] sm:$0xff] %v11420_v30   ;;  %v9266_v31 = vpop.permute.xlu1 %9265  ;;  %v8828_v5 = vmul.f32 %v12252_v36, %v15891_v44  ;;  %v9264_v27 = vpop.permute.xlu0 %9263  ;;  %v8879_v10 = vadd.f32 %v15900_v2, %v8825_v4  ;;  %v8928_v43 = vmax.f32 %v8881_v16, 0.0  ;;  %v4945_v57 = vadd.f32 %v4944_v34, %v4943_v53 }
 0x808   : > { %v9405_v63 = vmax.bf16 %v9266_v31, %v15957_v26  ;;  %v9404_v8 = vmax.bf16 %v9264_v27, %v15955_v49  ;;  %v8751_v17 = vpop.f32.mrf.mxu1  ;;  %11678 = vst [vmem:[#allocation6 + $0x90] sm:$0xff] %v11415_v1  }
 0x809   : > { %v8882_v12 = vadd.f32 %v15900_v2, %v8828_v5  ;;  %v8826_v59 = vmul.f32 %v15891_v44, %v8751_v17  ;;  %v8926_v30 = vmax.f32 %v8879_v10, 0.0  ;;  %v4947_v10 = vadd.f32 %v4946_v14, %v4945_v57 }
 0x80a   : > { %9452 = vst.msk [vmem:[#allocation7 + $0x4] sm:$0xf] %vm1802_vm3, %v9405_v63  ;;  %9451 = vst.msk [vmem:[#allocation7] sm:$0xf] %vm1802_vm3, %v9404_v8  ;;  %v11023_v8 = vunpack.c.h.bf16 %v16173_v24 }
 0x80b   : > { %v8929_v35 = vmax.f32 %v8882_v12, 0.0  ;;  %v8880_v26 = vadd.f32 %v15900_v2, %v8826_v59  ;;  %v9278_v49 = vpop.permute.xlu1 %9277  ;;  %v9276_v39 = vpop.permute.xlu0 %9275 }
 0x80c   : > { %v9411_v20 = vmax.bf16 %v9278_v49, %v15969_v21  ;;  %v9410_v22 = vmax.bf16 %v9276_v39, %v15971_v0  ;;  %v12255_v33 = vpop.f32.mrf.mxu1  ;;  %v16210_v21 = vld [vmem:[#allocation7 + $0x30] sm:$0xff]  }
 0x80d   : > { %v11430_v32 = vpack.c.bf16 %v8929_v35, %v8928_v43  ;;  %v8927_v4 = vmax.f32 %v8880_v26, 0.0  ;;  %v8831_v36 = vmul.f32 %v12255_v33, %v15891_v44  ;;  %v11026_v43 = vunpack.c.l.bf16 %v16210_v21  ;;  %v11683_v14 = vld [vmem:[#allocation7 + $0x8] sm:$0xff]  }
 0x80e   : > { %9458 = vst.msk [vmem:[#allocation7 + $0x1c] sm:$0xf] %vm1802_vm3, %v9411_v20  ;;  %9457 = vst.msk [vmem:[#allocation7 + $0x18] sm:$0xf] %vm1802_vm3, %v9410_v22  ;;  %v8764_v1 = vpop.f32.mrf.mxu1  ;;  %v16206_v16 = vld [vmem:[#allocation6 + $0x9c] sm:$0xf] }
 0x80f   : > { %v16208_v31 = vld [vmem:[#allocation6 + $0x98] sm:$0xf]  ;;  %11681 = vst [vmem:[#allocation6 + $0xa8] sm:$0xff] %v11430_v32   ;;  %v11425_v0 = vpack.c.bf16 %v8927_v4, %v8926_v30  ;;  %v8885_v5 = vadd.f32 %v15900_v2, %v8831_v36  ;;  %v9274_v27 = vpop.permute.xlu1 %9273  ;;  %v8829_v55 = vmul.f32 %v15891_v44, %v8764_v1  ;;  %v9272_v63 = vpop.permute.xlu0 %9271  ;;  %9341 = vrot.lane.b32.xlu1 %v16206_v16, %s12594_s12  ;;  %v16224_v39 = vld [vmem:[#allocation6 + $0x94] sm:$0xf]  ;;  %v4948_v20 = vsel %vm856_vm2, %v11023_v8, 0.0 }
 0x810   : > { %9339 = vrot.lane.b32.xlu0 %v16208_v31, %s12594_s12  ;;  %v9409_v17 = vmax.bf16 %v9274_v27, %v15984_v42  ;;  %v9408_v19 = vmax.bf16 %v9272_v63, %v15986_v41  ;;  %v12256_v53 = vpop.f32.mrf.mxu1  ;;  %v16226_v24 = vld [vmem:[#allocation6 + $0x90] sm:$0xf]  ;;  %v16237_v32 = vld [vmem:[#allocation6 + $0xb8] sm:$0x7]  ;;  %v4949_v4 = vadd.f32 %v4948_v20, %v4947_v10 }
 0x811   : > { %v11438_v12 = vld [vmem:[#allocation7] sm:$0xff]   ;;  %11680 = vst [vmem:[#allocation6 + $0xa0] sm:$0xff] %v11425_v0   ;;  %v8932_v59 = vmax.f32 %v8885_v5, 0.0  ;;  %v8883_v41 = vadd.f32 %v15900_v2, %v8829_v55  ;;  %v4950_v0 = vsel %vm856_vm2, %v11026_v43, 0.0  ;;  %v16245_v5 = vld [vmem:[#allocation6 + $0xb4] sm:$0xf] }
 0x812   : > { %v11439_v35 = vunpack.c.l.bf16 %v11438_v12  ;;  %v11440_v26 = vunpack.c.h.bf16 %v11438_v12  ;;  %9456 = vst.msk [vmem:[#allocation7 + $0x14] sm:$0xf] %vm1802_vm3, %v9409_v17  ;;  %9455 = vst.msk [vmem:[#allocation7 + $0x10] sm:$0xf] %vm1802_vm3, %v9408_v19  ;;  %v8767_v49 = vpop.f32.mrf.mxu1  ;;  %v4951_v10 = vadd.f32 %v4950_v0, %v4949_v4  ;;  %v11602_v4 = vld [vmem:[#allocation7 + $0x40] sm:$0xff]  }
 0x813   : > { %v10653_v42 = vpack.c.bf16 %v8932_v59, %v8932_v59  ;;  %v9286_v34 = vpop.permute.xlu1 %9285  ;;  %v8830_v22 = vmul.f32 %v15891_v44, %v8767_v49  ;;  %v9284_v33 = vpop.permute.xlu0 %9283  ;;  %9337 = vrot.lane.b32.xlu1 %v16224_v39, %s12594_s12  ;;  %v8930_v27 = vmax.f32 %v8883_v41, 0.0  ;;  %v11444_v49 = vunpack.c.h.bf16 %v11683_v14 }
 0x814   : > { %9335 = vrot.lane.b32.xlu0 %v16226_v24, %s12594_s12  ;;  %v9415_v57 = vmax.bf16 %v9286_v34, %v16000_v23  ;;  %v9414_v30 = vmax.bf16 %v9284_v33, %v16002_v13  ;;  %v9592_v36 = vsel %vm856_vm2, %v11439_v35, 0.0  ;;  %v9593_v1 = vsel %vm856_vm2, %v11440_v26, 0.0  ;;  %v11601_v23 = vld [vmem:[#allocation7 + $0x38] sm:$0xff]  }
 0x815   : > { %v8884_v44 = vadd.f32 %v15900_v2, %v8830_v22  ;;  %9168 = vst [vmem:[#allocation6 + $0xb8] sm:$0x7] %v10653_v42  ;;  %v11443_v13 = vunpack.c.l.bf16 %v11683_v14  ;;  %v11027_v2 = vunpack.c.h.bf16 %v16210_v21  ;;  %v9594_v17 = vadd.f32 %v9593_v1, %v9592_v36 }
 0x816   : > { %9462 = vst.msk [vmem:[#allocation7 + $0x2c] sm:$0xf] %vm1802_vm3, %v9415_v57  ;;  %9461 = vst.msk [vmem:[#allocation7 + $0x28] sm:$0xf] %vm1802_vm3, %v9414_v30  ;;  %v11030_v43 = vunpack.c.l.bf16 %v11601_v23  ;;  %v16269_v57 = vld [vmem:[#allocation6 + $0xa8] sm:$0xf] }
 0x817   : > { %v8931_v55 = vmax.f32 %v8884_v44, 0.0  ;;  %v9282_v63 = vpop.permute.xlu1 %9281  ;;  %v9280_v8 = vpop.permute.xlu0 %9279  ;;  %4687 = vrot.lane.b32.xlu1 %v16245_v5, %s12594_s12  ;;  %v9595_v21 = vsel %vm856_vm2, %v11443_v13, 0.0  ;;  %v16271_v30 = vld [vmem:[#allocation6 + $0xac] sm:$0xf]  ;;  %v9597_v36 = vsel %vm856_vm2, %v11444_v49, 0.0  ;;  %v11031_v44 = vunpack.c.h.bf16 %v11601_v23  ;;  %v11603_v49 = vld [vmem:[#allocation7 + $0x48] sm:$0xff]  }
 0x818   : > { %4689 = vrot.lane.b32.xlu0 %v16237_v32, %s12594_s12  ;;  %v9413_v19 = vmax.bf16 %v9282_v63, %v16013_v56  ;;  %v9412_v53 = vmax.bf16 %v9280_v8, %v16015_v6  ;;  %v16256_v35 = vld [vmem:[#allocation6 + $0xa4] sm:$0xf]  ;;  %v16258_v26 = vld [vmem:[#allocation6 + $0xa0] sm:$0xf]  ;;  %v4952_v56 = vsel %vm856_vm2, %v11027_v2, 0.0  ;;  %v9596_v6 = vadd.f32 %v9595_v21, %v9594_v17  ;;  %v11685_v63 = vld [vmem:[#allocation7 + $0x18] sm:$0xff]  }
 0x819   : > { %v11684_v12 = vld [vmem:[#allocation7 + $0x10] sm:$0xff]   ;;  %v11435_v59 = vpack.c.bf16 %v8931_v55, %v8930_v27  ;;  %v4953_v41 = vadd.f32 %v4952_v56, %v4951_v10  ;;  %v4954_v20 = vsel %vm856_vm2, %v11030_v43, 0.0  ;;  %v11034_v55 = vunpack.c.l.bf16 %v11602_v4 }
 0x81a   : > { %9460 = vst.msk [vmem:[#allocation7 + $0x24] sm:$0xf] %vm1802_vm3, %v9413_v19  ;;  %9459 = vst.msk [vmem:[#allocation7 + $0x20] sm:$0xf] %vm1802_vm3, %v9412_v53  ;;  %v11447_v42 = vunpack.c.l.bf16 %v11684_v12  ;;  %v9598_v0 = vadd.f32 %v9597_v36, %v9596_v6  ;;  %v4956_v53 = vsel %vm856_vm2, %v11031_v44, 0.0  ;;  %v11035_v21 = vunpack.c.h.bf16 %v11602_v4 }
 0x81b   : > { %11682 = vst [vmem:[#allocation6 + $0xb0] sm:$0xff] %v11435_v59   ;;  %9345 = vrot.lane.b32.xlu1 %v16256_v35, %s12594_s12  ;;  %v11452_v6 = vunpack.c.h.bf16 %v11685_v63 }
 0x81c   : > { %9343 = vrot.lane.b32.xlu0 %v16258_v26, %s12594_s12  ;;  %v9294_v34 = vpop.permute.xlu1 %9293  ;;  %v9292_v22 = vpop.permute.xlu0 %9291  ;;  %v9599_v1 = vsel %vm856_vm2, %v11447_v42, 0.0  ;;  %v16296_v43 = vld [vmem:[#allocation6 + $0xb8] sm:$0x7]  ;;  %v4960_v44 = vsel %vm856_vm2, %v11035_v21, 0.0 }
 0x81d   : > { %v9419_v33 = vmax.bf16 %v9294_v34, %v16030_v54  ;;  %v9418_v14 = vmax.bf16 %v9292_v22, %v16032_v61  ;;  %v4955_v54 = vadd.f32 %v4954_v20, %v4953_v41  ;;  %v11448_v61 = vunpack.c.h.bf16 %v11684_v12 }
 0x81e   : > { %v9600_v8 = vadd.f32 %v9599_v1, %v9598_v0  ;;  %v4958_v12 = vsel %vm856_vm2, %v11034_v55, 0.0  ;;  %v11038_v20 = vunpack.c.l.bf16 %v11603_v49  ;;  %v9605_v0 = vsel %vm856_vm2, %v11452_v6, 0.0 }
 0x81f   : > { %9347 = vrot.lane.b32.xlu1 %v16269_v57, %s12594_s12  ;;  %9466 = vst.msk [vmem:[#allocation7 + $0x3c] sm:$0xf] %vm1802_vm3, %v9419_v33  ;;  %9465 = vst.msk [vmem:[#allocation7 + $0x38] sm:$0xf] %vm1802_vm3, %v9418_v14  ;;  %v4957_v10 = vadd.f32 %v4956_v53, %v4955_v54 }
 0x820   : > { %9349 = vrot.lane.b32.xlu0 %v16271_v30, %s12594_s12  ;;  %v9290_v13 = vpop.permute.xlu1 %9289  ;;  %v9288_v27 = vpop.permute.xlu0 %9287  ;;  %v4962_v54 = vsel %vm856_vm2, %v11038_v20, 0.0 }
 0x821   : > { %v9417_v23 = vmax.bf16 %v9290_v13, %v16039_v25  ;;  %v9416_v2 = vmax.bf16 %v9288_v27, %v16041_v38  ;;  %v11451_v25 = vunpack.c.l.bf16 %v11685_v63  ;;  %v9601_v38 = vsel %vm856_vm2, %v11448_v61, 0.0  ;;  %v11686_v42 = vld [vmem:[#allocation7 + $0x20] sm:$0xff]  }
 0x822   : > { %v16283_v17 = vld [vmem:[#allocation6 + $0xb4] sm:$0xf]  ;;  %v16285_v19 = vld [vmem:[#allocation6 + $0xb0] sm:$0xf]  ;;  %v9602_v59 = vadd.f32 %v9601_v38, %v9600_v8  ;;  %v4959_v56 = vadd.f32 %v4958_v12, %v4957_v10  ;;  %v11455_v1 = vunpack.c.l.bf16 %v11686_v42  ;;  %v11039_v8 = vunpack.c.h.bf16 %v11603_v49  ;;  %v11687_v10 = vld [vmem:[#allocation7 + $0x28] sm:$0xff]  }
 0x823   : > { %9351 = vrot.lane.b32.xlu1 %v16285_v19, %s12594_s12  ;;  %9464 = vst.msk [vmem:[#allocation7 + $0x34] sm:$0xf] %vm1802_vm3, %v9417_v23  ;;  %9463 = vst.msk [vmem:[#allocation7 + $0x30] sm:$0xf] %vm1802_vm3, %v9416_v2  ;;  %v9603_v41 = vsel %vm856_vm2, %v11451_v25, 0.0  ;;  %v11456_v2 = vunpack.c.h.bf16 %v11686_v42  ;;  %v11605_v49 = vld [vmem:[#allocation7 + $0x58] sm:$0xff]  }
 0x824   : > { %9353 = vrot.lane.b32.xlu0 %v16283_v17, %s12594_s12  ;;  %v9604_v33 = vadd.f32 %v9603_v41, %v9602_v59  ;;  %v4961_v4 = vadd.f32 %v4960_v44, %v4959_v56  ;;  %v9607_v63 = vsel %vm856_vm2, %v11455_v1, 0.0  ;;  %v4964_v38 = vsel %vm856_vm2, %v11039_v8, 0.0 }
 0x825   : > { %v11459_v59 = vunpack.c.l.bf16 %v11687_v10  ;;  %v11047_v8 = vunpack.c.h.bf16 %v11605_v49 }
 0x826   : > { %v9606_v27 = vadd.f32 %v9605_v0, %v9604_v33  ;;  %v4963_v23 = vadd.f32 %v4962_v54, %v4961_v4  ;;  %v11046_v33 = vunpack.c.l.bf16 %v11605_v49 }
 0x827   : > { %9355 = vrot.lane.b32.xlu1 %v16296_v43, %s12594_s12  ;;  %v9302_v34 = vpop.permute.xlu1 %9301  ;;  %v9300_v22 = vpop.permute.xlu0 %9299  ;;  %v9611_v20 = vsel %vm856_vm2, %v11459_v59, 0.0  ;;  %s12595_s12 = smov 96  }
 0x828   : > { %v9423_v14 = vmax.bf16 %v9302_v34, %v16049_v60  ;;  %v9422_v36 = vmax.bf16 %v9300_v22, %v16051_v45  ;;  %v11604_v45 = vld [vmem:[#allocation7 + $0x50] sm:$0xff]   ;;  %v9608_v25 = vadd.f32 %v9607_v63, %v9606_v27  ;;  %v4965_v12 = vadd.f32 %v4964_v38, %v4963_v23  ;;  %v11689_v23 = vld [vmem:[#allocation7 + $0x38] sm:$0xff]  }
 0x829   : > { %v11042_v53 = vunpack.c.l.bf16 %v11604_v45  ;;  %v11043_v6 = vunpack.c.h.bf16 %v11604_v45  ;;  %v11460_v34 = vunpack.c.h.bf16 %v11687_v10  ;;  %v11606_v45 = vld [vmem:[#allocation7 + $0x60] sm:$0xff]  }
 0x82a   : > { %9470 = vst.msk [vmem:[#allocation7 + $0x4c] sm:$0xf] %vm1802_vm3, %v9423_v14  ;;  %9469 = vst.msk [vmem:[#allocation7 + $0x48] sm:$0xf] %vm1802_vm3, %v9422_v36  ;;  %v11688_v56 = vld [vmem:[#allocation7 + $0x30] sm:$0xff]   ;;  %v11050_v10 = vunpack.c.l.bf16 %v11606_v45 }
 0x82b   : > { %v9298_v61 = vpop.permute.xlu1 %9297  ;;  %v9296_v13 = vpop.permute.xlu0 %9295  ;;  %v11463_v42 = vunpack.c.l.bf16 %v11688_v56  ;;  %v4968_v4 = vsel %vm856_vm2, %v11043_v6, 0.0  ;;  %v9613_v54 = vsel %vm856_vm2, %v11460_v34, 0.0  ;;  %v11464_v63 = vunpack.c.h.bf16 %v11688_v56 }
 0x82c   : > { %v9421_v55 = vmax.bf16 %v9298_v61, %v16062_v58  ;;  %v9420_v60 = vmax.bf16 %v9296_v13, %v16064_v11  ;;  %v9609_v58 = vsel %vm856_vm2, %v11456_v2, 0.0  ;;  %v4966_v11 = vsel %vm856_vm2, %v11042_v53, 0.0 }
 0x82d   : > { %v9610_v21 = vadd.f32 %v9609_v58, %v9608_v25  ;;  %v4967_v41 = vadd.f32 %v4966_v11, %v4965_v12  ;;  %v9615_v61 = vsel %vm856_vm2, %v11463_v42, 0.0  ;;  %v4970_v13 = vsel %vm856_vm2, %v11046_v33, 0.0  ;;  %v11607_v11 = vld [vmem:[#allocation7 + $0x68] sm:$0xff]  }
 0x82e   : > { %9468 = vst.msk [vmem:[#allocation7 + $0x44] sm:$0xf] %vm1802_vm3, %v9421_v55  ;;  %9467 = vst.msk [vmem:[#allocation7 + $0x40] sm:$0xf] %vm1802_vm3, %v9420_v60  ;;  %v11467_v25 = vunpack.c.l.bf16 %v11689_v23  ;;  %v9617_v38 = vsel %vm856_vm2, %v11464_v63, 0.0  ;;  %v4972_v12 = vsel %vm856_vm2, %v11047_v8, 0.0  ;;  %v11051_v6 = vunpack.c.h.bf16 %v11606_v45 }
 0x82f   : > { %v9612_v36 = vadd.f32 %v9611_v20, %v9610_v21  ;;  %v4969_v0 = vadd.f32 %v4968_v4, %v4967_v41  ;;  %v11468_v21 = vunpack.c.h.bf16 %v11689_v23  ;;  %v11054_v42 = vunpack.c.l.bf16 %v11607_v11 }
 0x830   : > { %v9619_v56 = vsel %vm856_vm2, %v11467_v25, 0.0 }
 0x831   : > { %v9614_v60 = vadd.f32 %v9613_v54, %v9612_v36  ;;  %v4971_v53 = vadd.f32 %v4970_v13, %v4969_v0  ;;  %v9621_v36 = vsel %vm856_vm2, %v11468_v21, 0.0 }
 0x833   : > { %v9616_v2 = vadd.f32 %v9615_v61, %v9614_v60  ;;  %v4973_v58 = vadd.f32 %v4972_v12, %v4971_v53  ;;  %v4978_v61 = vsel %vm856_vm2, %v11054_v42, 0.0 }
 0x835   : > { %v9618_v59 = vadd.f32 %v9617_v38, %v9616_v2 }
 0x837   : > { %v9310_v22 = vpop.permute.xlu1 %9309  ;;  %v9308_v14 = vpop.permute.xlu0 %9307  ;;  %v9620_v41 = vadd.f32 %v9619_v56, %v9618_v59 }
 0x838   : > { %v9427_v1 = vmax.bf16 %v9310_v22, %v16073_v18  ;;  %v9426_v44 = vmax.bf16 %v9308_v14, %v16075_v48 }
 0x839   : > { %v9622_v4 = vadd.f32 %v9621_v36, %v9620_v41 }
 0x83a   : > { %9474 = vst.msk [vmem:[#allocation7 + $0x5c] sm:$0xf] %vm1802_vm3, %v9427_v1  ;;  %9473 = vst.msk [vmem:[#allocation7 + $0x58] sm:$0xf] %vm1802_vm3, %v9426_v44  ;;  %v4976_v44 = vsel %vm856_vm2, %v11051_v6, 0.0 }
 0x83b   : > { %v9306_v27 = vpop.permute.xlu1 %9305  ;;  %v9304_v55 = vpop.permute.xlu0 %9303 }
 0x83c   : > { %v9425_v18 = vmax.bf16 %v9306_v27, %v16086_v62  ;;  %v9424_v48 = vmax.bf16 %v9304_v55, %v16088_v37  ;;  %v11690_v62 = vld [vmem:[#allocation7 + $0x40] sm:$0xff]   ;;  %v4974_v37 = vsel %vm856_vm2, %v11050_v10, 0.0 }
 0x83d   : > { %v11471_v49 = vunpack.c.l.bf16 %v11690_v62  ;;  %v4975_v34 = vadd.f32 %v4974_v37, %v4973_v58  ;;  %v11472_v54 = vunpack.c.h.bf16 %v11690_v62  ;;  %v11609_v62 = vld [vmem:[#allocation7 + $0x78] sm:$0xff]  }
 0x83e   : > { %9472 = vst.msk [vmem:[#allocation7 + $0x54] sm:$0xf] %vm1802_vm3, %v9425_v18  ;;  %9471 = vst.msk [vmem:[#allocation7 + $0x50] sm:$0xf] %vm1802_vm3, %v9424_v48  ;;  %v11608_v18 = vld [vmem:[#allocation7 + $0x70] sm:$0xff]   ;;  %v11055_v48 = vunpack.c.h.bf16 %v11607_v11 }
 0x83f   : > { %v9623_v1 = vsel %vm856_vm2, %v11471_v49, 0.0  ;;  %v4977_v0 = vadd.f32 %v4976_v44, %v4975_v34  ;;  %v9625_v8 = vsel %vm856_vm2, %v11472_v54, 0.0  ;;  %v11058_v23 = vunpack.c.l.bf16 %v11608_v18  ;;  %v11610_v54 = vld [vmem:[#allocation7 + $0x80] sm:$0xff]  }
 0x840   : > { %v9624_v55 = vadd.f32 %v9623_v1, %v9622_v4  ;;  %v4980_v10 = vsel %vm856_vm2, %v11055_v48, 0.0  ;;  %v11059_v58 = vunpack.c.h.bf16 %v11608_v18  ;;  %v11062_v49 = vunpack.c.l.bf16 %v11609_v62 }
 0x841   : > { %v4979_v45 = vadd.f32 %v4978_v61, %v4977_v0  ;;  %v4982_v12 = vsel %vm856_vm2, %v11058_v23, 0.0 }
 0x842   : > { %v9626_v2 = vadd.f32 %v9625_v8, %v9624_v55  ;;  %v4986_v1 = vsel %vm856_vm2, %v11062_v49, 0.0  ;;  %v11611_v8 = vld [vmem:[#allocation7 + $0x88] sm:$0xff]  }
 0x843   : > { %v4981_v25 = vadd.f32 %v4980_v10, %v4979_v45  ;;  %v11071_v49 = vunpack.c.h.bf16 %v11611_v8 }
 0x845   : > { %v11692_v53 = vld [vmem:[#allocation7 + $0x50] sm:$0xff]   ;;  %v4983_v37 = vadd.f32 %v4982_v12, %v4981_v25 }
 0x846   : > { %v11480_v42 = vunpack.c.h.bf16 %v11692_v53 }
 0x847   : > { %v9318_v20 = vpop.permute.xlu1 %9317  ;;  %v9316_v22 = vpop.permute.xlu0 %9315 }
 0x848   : > { %v9431_v33 = vmax.bf16 %v9318_v20, %v16097_v40  ;;  %v9430_v14 = vmax.bf16 %v9316_v22, %v16099_v47  ;;  %v11691_v40 = vld [vmem:[#allocation7 + $0x48] sm:$0xff]   ;;  %v4984_v22 = vsel %vm856_vm2, %v11059_v58, 0.0  ;;  %v9633_v61 = vsel %vm856_vm2, %v11480_v42, 0.0 }
 0x849   : > { %v11475_v63 = vunpack.c.l.bf16 %v11691_v40  ;;  %v11476_v38 = vunpack.c.h.bf16 %v11691_v40  ;;  %v4985_v36 = vadd.f32 %v4984_v22, %v4983_v37 }
 0x84a   : > { %9478 = vst.msk [vmem:[#allocation7 + $0x6c] sm:$0xf] %vm1802_vm3, %v9431_v33  ;;  %9477 = vst.msk [vmem:[#allocation7 + $0x68] sm:$0xf] %vm1802_vm3, %v9430_v14  ;;  %v11693_v33 = vld [vmem:[#allocation7 + $0x58] sm:$0xff]  }
 0x84b   : > { %v9314_v13 = vpop.permute.xlu1 %9313  ;;  %v9312_v27 = vpop.permute.xlu0 %9311  ;;  %v9629_v11 = vsel %vm856_vm2, %v11476_v38, 0.0  ;;  %v4987_v55 = vadd.f32 %v4986_v1, %v4985_v36 }
 0x84c   : > { %v9429_v47 = vmax.bf16 %v9314_v13, %v16110_v7  ;;  %v9428_v60 = vmax.bf16 %v9312_v27, %v16112_v28  ;;  %v9627_v7 = vsel %vm856_vm2, %v11475_v63, 0.0  ;;  %v11479_v28 = vunpack.c.l.bf16 %v11692_v53 }
 0x84d   : > { %v9628_v59 = vadd.f32 %v9627_v7, %v9626_v2  ;;  %v11063_v13 = vunpack.c.h.bf16 %v11609_v62  ;;  %v11067_v53 = vunpack.c.h.bf16 %v11610_v54  ;;  %v11070_v7 = vunpack.c.l.bf16 %v11611_v8 }
 0x84e   : > { %9476 = vst.msk [vmem:[#allocation7 + $0x64] sm:$0xf] %vm1802_vm3, %v9429_v47  ;;  %9475 = vst.msk [vmem:[#allocation7 + $0x60] sm:$0xf] %vm1802_vm3, %v9428_v60  ;;  %v9631_v21 = vsel %vm856_vm2, %v11479_v28, 0.0  ;;  %v11066_v47 = vunpack.c.l.bf16 %v11610_v54  ;;  %v11484_v60 = vunpack.c.h.bf16 %v11693_v33 }
 0x84f   : > { %v9630_v41 = vadd.f32 %v9629_v11, %v9628_v59  ;;  %v4992_v59 = vsel %vm856_vm2, %v11067_v53, 0.0  ;;  %v4994_v11 = vsel %vm856_vm2, %v11070_v7, 0.0 }
 0x850   : > { %v4990_v63 = vsel %vm856_vm2, %v11066_v47, 0.0  ;;  %v9637_v23 = vsel %vm856_vm2, %v11484_v60, 0.0 }
 0x851   : > { %v9632_v14 = vadd.f32 %v9631_v21, %v9630_v41  ;;  %v11695_v28 = vld [vmem:[#allocation7 + $0x68] sm:$0xff]  }
 0x852   : > { %v11491_v58 = vunpack.c.l.bf16 %v11695_v28 }
 0x853   : > { %v9634_v27 = vadd.f32 %v9633_v61, %v9632_v14  ;;  %v4996_v14 = vsel %vm856_vm2, %v11071_v49, 0.0 }
 0x855   : > { %v11694_v40 = vld [vmem:[#allocation7 + $0x60] sm:$0xff]  }
 0x856   : > { %v11487_v48 = vunpack.c.l.bf16 %v11694_v40  ;;  %v11488_v38 = vunpack.c.h.bf16 %v11694_v40 }
 0x857   : > { %v9326_v56 = vpop.permute.xlu1 %9325  ;;  %v9324_v6 = vpop.permute.xlu0 %9323 }
 0x858   : > { %v9435_v34 = vmax.bf16 %v9326_v56, %v16119_v52  ;;  %v9434_v20 = vmax.bf16 %v9324_v6, %v16121_v15  ;;  %v11483_v15 = vunpack.c.l.bf16 %v11693_v33  ;;  %v9639_v2 = vsel %vm856_vm2, %v11487_v48, 0.0  ;;  %v11612_v6 = vld [vmem:[#allocation7 + $0x90] sm:$0xff]  }
 0x859   : > { %v9641_v37 = vsel %vm856_vm2, %v11488_v38, 0.0  ;;  %v11074_v33 = vunpack.c.l.bf16 %v11612_v6 }
 0x85a   : > { %9482 = vst.msk [vmem:[#allocation7 + $0x7c] sm:$0xf] %vm1802_vm3, %v9435_v34  ;;  %9481 = vst.msk [vmem:[#allocation7 + $0x78] sm:$0xf] %vm1802_vm3, %v9434_v20  ;;  %v9635_v18 = vsel %vm856_vm2, %v11483_v15, 0.0  ;;  %v11492_v34 = vunpack.c.h.bf16 %v11695_v28  ;;  %v9643_v20 = vsel %vm856_vm2, %v11491_v58, 0.0 }
 0x85b   : > { %v9322_v44 = vpop.permute.xlu1 %9321  ;;  %v9320_v4 = vpop.permute.xlu0 %9319  ;;  %v4998_v61 = vsel %vm856_vm2, %v11074_v33, 0.0 }
 0x85c   : > { %v9433_v0 = vmax.bf16 %v9322_v44, %v16127_v3  ;;  %v9432_v52 = vmax.bf16 %v9320_v4, %v16129_v50  ;;  %v4988_v3 = vsel %vm856_vm2, %v11063_v13, 0.0  ;;  %v9636_v50 = vadd.f32 %v9635_v18, %v9634_v27  ;;  %v11613_v27 = vld [vmem:[#allocation7 + $0x98] sm:$0xff]  }
 0x85d   : > { %v4989_v45 = vadd.f32 %v4988_v3, %v4987_v55  ;;  %v9645_v4 = vsel %vm856_vm2, %v11492_v34, 0.0  ;;  %v11075_v18 = vunpack.c.h.bf16 %v11612_v6 }
 0x85e   : > { %9480 = vst.msk [vmem:[#allocation7 + $0x74] sm:$0xf] %vm1802_vm3, %v9433_v0  ;;  %9479 = vst.msk [vmem:[#allocation7 + $0x70] sm:$0xf] %vm1802_vm3, %v9432_v52  ;;  %v9638_v10 = vadd.f32 %v9637_v23, %v9636_v50 }
 0x85f   : > { %v4991_v25 = vadd.f32 %v4990_v63, %v4989_v45  ;;  %v5000_v8 = vsel %vm856_vm2, %v11075_v18, 0.0 }
 0x860   : > { %v9640_v12 = vadd.f32 %v9639_v2, %v9638_v10  ;;  %v11614_v10 = vld [vmem:[#allocation7 + $0xa0] sm:$0xff]  }
 0x861   : > { %v4993_v62 = vadd.f32 %v4992_v59, %v4991_v25  ;;  %v11697_v40 = vld [vmem:[#allocation7 + $0x78] sm:$0xff]   ;;  %v11082_v58 = vunpack.c.l.bf16 %v11614_v10 }
 0x862   : > { %v9642_v21 = vadd.f32 %v9641_v37, %v9640_v12  ;;  %v11499_v50 = vunpack.c.l.bf16 %v11697_v40  ;;  %v11500_v53 = vunpack.c.h.bf16 %v11697_v40 }
 0x863   : > { %v4995_v41 = vadd.f32 %v4994_v11, %v4993_v62 }
 0x864   : > { %v9644_v22 = vadd.f32 %v9643_v20, %v9642_v21  ;;  %v9653_v37 = vsel %vm856_vm2, %v11500_v53, 0.0 }
 0x865   : > { %v11696_v56 = vld [vmem:[#allocation7 + $0x70] sm:$0xff]   ;;  %v4997_v44 = vadd.f32 %v4996_v14, %v4995_v41  ;;  %v11615_v14 = vld [vmem:[#allocation7 + $0xa8] sm:$0xff]  }
 0x866   : > { %v11495_v42 = vunpack.c.l.bf16 %v11696_v56  ;;  %v9646_v15 = vadd.f32 %v9645_v4, %v9644_v22  ;;  %v11496_v13 = vunpack.c.h.bf16 %v11696_v56  ;;  %v5006_v22 = vsel %vm856_vm2, %v11082_v58, 0.0 }
 0x867   : > { %v4999_v3 = vadd.f32 %v4998_v61, %v4997_v44 }
 0x868   : > { %v9647_v0 = vsel %vm856_vm2, %v11495_v42, 0.0  ;;  %v9649_v45 = vsel %vm856_vm2, %v11496_v13, 0.0 }
 0x869   : > { %v9648_v55 = vadd.f32 %v9647_v0, %v9646_v15  ;;  %v5001_v23 = vadd.f32 %v5000_v8, %v4999_v3  ;;  %v11086_v15 = vunpack.c.l.bf16 %v11615_v14 }
 0x86b   : > { %v9650_v63 = vadd.f32 %v9649_v45, %v9648_v55 }
 0x873   : > { %v9334_v36 = vpop.permute.xlu1 %9333  ;;  %v9332_v1 = vpop.permute.xlu0 %9331 }
 0x874   : > { %v9439_v52 = vmax.bf16 %v9334_v36, %v16160_v9  ;;  %v9438_v54 = vmax.bf16 %v9332_v1, %v16162_v51  ;;  %v11078_v51 = vunpack.c.l.bf16 %v11613_v27  ;;  %v11083_v36 = vunpack.c.h.bf16 %v11614_v10 }
 0x876   : > { %9486 = vst.msk [vmem:[#allocation7 + $0x8c] sm:$0xf] %vm1802_vm3, %v9439_v52  ;;  %9485 = vst.msk [vmem:[#allocation7 + $0x88] sm:$0xf] %vm1802_vm3, %v9438_v54  ;;  %v5002_v2 = vsel %vm856_vm2, %v11078_v51, 0.0  ;;  %v5008_v61 = vsel %vm856_vm2, %v11083_v36, 0.0 }
 0x877   : > { %v9330_v47 = vpop.permute.xlu1 %9329  ;;  %v9328_v60 = vpop.permute.xlu0 %9327  ;;  %v5003_v28 = vadd.f32 %v5002_v2, %v5001_v23 }
 0x878   : > { %v9437_v48 = vmax.bf16 %v9330_v47, %v16177_v46  ;;  %v9436_v9 = vmax.bf16 %v9328_v60, %v16179_v29  ;;  %v9651_v46 = vsel %vm856_vm2, %v11499_v50, 0.0  ;;  %v11079_v29 = vunpack.c.h.bf16 %v11613_v27 }
 0x879   : > { %v9652_v25 = vadd.f32 %v9651_v46, %v9650_v63 }
 0x87a   : > { %9484 = vst.msk [vmem:[#allocation7 + $0x84] sm:$0xf] %vm1802_vm3, %v9437_v48  ;;  %9483 = vst.msk [vmem:[#allocation7 + $0x80] sm:$0xf] %vm1802_vm3, %v9436_v9  ;;  %v5004_v56 = vsel %vm856_vm2, %v11079_v29, 0.0  ;;  %v11087_v9 = vunpack.c.h.bf16 %v11615_v14 }
 0x87b   : > { %v9654_v49 = vadd.f32 %v9653_v37, %v9652_v25  ;;  %v5005_v34 = vadd.f32 %v5004_v56, %v5003_v28 }
 0x87c   : > { %v5012_v10 = vsel %vm856_vm2, %v11087_v9, 0.0 }
 0x87d   : > { %v11699_v20 = vld [vmem:[#allocation7 + $0x88] sm:$0xff]   ;;  %v5007_v52 = vadd.f32 %v5006_v22, %v5005_v34 }
 0x87e   : > { %v11507_v1 = vunpack.c.l.bf16 %v11699_v20  ;;  %v11508_v13 = vunpack.c.h.bf16 %v11699_v20 }
 0x87f   : > { %v5009_v55 = vadd.f32 %v5008_v61, %v5007_v52 }
 0x880   : > { %v9659_v27 = vsel %vm856_vm2, %v11507_v1, 0.0  ;;  %v9661_v45 = vsel %vm856_vm2, %v11508_v13, 0.0 }
 0x881   : > { %v9342_v38 = vpop.permute.xlu1 %9341  ;;  %v11698_v12 = vld [vmem:[#allocation7 + $0x80] sm:$0xff]  }
 0x882   : > { %v9340_v7 = vpop.permute.xlu0 %9339  ;;  %v9443_v59 = vmax.bf16 %v9342_v38, %v16206_v16  ;;  %v11503_v11 = vunpack.c.l.bf16 %v11698_v12  ;;  %v11504_v21 = vunpack.c.h.bf16 %v11698_v12 }
 0x883   : > { %v9442_v62 = vmax.bf16 %v9340_v7, %v16208_v31 }
 0x884   : > { %9490 = vst.msk [vmem:[#allocation7 + $0x9c] sm:$0xf] %vm1802_vm3, %v9443_v59  ;;  %v9655_v16 = vsel %vm856_vm2, %v11503_v11, 0.0  ;;  %v9657_v44 = vsel %vm856_vm2, %v11504_v21, 0.0 }
 0x885   : > { %9489 = vst.msk [vmem:[#allocation7 + $0x98] sm:$0xf] %vm1802_vm3, %v9442_v62  ;;  %v9338_v6 = vpop.permute.xlu1 %9337  ;;  %v9656_v33 = vadd.f32 %v9655_v16, %v9654_v49 }
 0x886   : > { %v9336_v41 = vpop.permute.xlu0 %9335  ;;  %v9441_v31 = vmax.bf16 %v9338_v6, %v16224_v39 }
 0x887   : > { %v9440_v42 = vmax.bf16 %v9336_v41, %v16226_v24  ;;  %v9658_v54 = vadd.f32 %v9657_v44, %v9656_v33 }
 0x888   : > { %9488 = vst.msk [vmem:[#allocation7 + $0x94] sm:$0xf] %vm1802_vm3, %v9441_v31 }
 0x889   : > { %9487 = vst.msk [vmem:[#allocation7 + $0x90] sm:$0xf] %vm1802_vm3, %v9440_v42  ;;  %v4688_v4 = vpop.permute.xlu1 %4687  ;;  %v9660_v60 = vadd.f32 %v9659_v27, %v9658_v54 }
 0x88a   : > { %v4690_v0 = vpop.permute.xlu0 %4689  ;;  %v4783_v39 = vmax.bf16 %v4688_v4, %v16245_v5 }
 0x88b   : > { %v4784_v24 = vmax.bf16 %v4690_v0, %v16237_v32  ;;  %v5010_v32 = vsel %vm856_vm2, %v11086_v15, 0.0 }
 0x88c   : > { %4830 = vst.msk [vmem:[#allocation7 + $0xb4] sm:$0xf] %vm1802_vm3, %v4783_v39  ;;  %v11701_v48 = vld [vmem:[#allocation7 + $0x98] sm:$0xff]   ;;  %v5011_v8 = vadd.f32 %v5010_v32, %v5009_v55 }
 0x88d   : > { %4832 = vst.msk [vmem:[#allocation7 + $0xb8] sm:$0x7] %vm4831_vm8, %v4784_v24  ;;  %v9346_v40 = vpop.permute.xlu1 %9345  ;;  %v11515_v2 = vunpack.c.l.bf16 %v11701_v48  ;;  %v11516_v12 = vunpack.c.h.bf16 %v11701_v48 }
 0x88e   : > { %v9344_v47 = vpop.permute.xlu0 %9343  ;;  %v9445_v18 = vmax.bf16 %v9346_v40, %v16256_v35  ;;  %v9662_v35 = vadd.f32 %v9661_v45, %v9660_v60  ;;  %v5013_v58 = vadd.f32 %v5012_v10, %v5011_v8 }
 0x88f   : > { %v9444_v5 = vmax.bf16 %v9344_v47, %v16258_v26  ;;  %v9667_v37 = vsel %vm856_vm2, %v11515_v2, 0.0  ;;  %v9669_v42 = vsel %vm856_vm2, %v11516_v12, 0.0 }
 0x890   : > { %v11700_v3 = vld [vmem:[#allocation7 + $0x90] sm:$0xff]   ;;  %9492 = vst.msk [vmem:[#allocation7 + $0xa4] sm:$0xf] %vm1802_vm3, %v9445_v18 }
 0x891   : > { %9491 = vst.msk [vmem:[#allocation7 + $0xa0] sm:$0xf] %vm1802_vm3, %v9444_v5  ;;  %v11511_v51 = vunpack.c.l.bf16 %v11700_v3  ;;  %v11512_v50 = vunpack.c.h.bf16 %v11700_v3  ;;  %v9348_v63 = vpop.permute.xlu1 %9347 }
 0x892   : > { %v9350_v23 = vpop.permute.xlu0 %9349  ;;  %v9446_v26 = vmax.bf16 %v9348_v63, %v16269_v57 }
 0x893   : > { %v9447_v53 = vmax.bf16 %v9350_v23, %v16271_v30  ;;  %v9663_v46 = vsel %vm856_vm2, %v11511_v51, 0.0  ;;  %v11616_v29 = vld [vmem:[#allocation7 + $0xb0] sm:$0xff]   ;;  %v9665_v59 = vsel %vm856_vm2, %v11512_v50, 0.0 }
 0x894   : > { %v4879_v25 = vld [vmem:[#allocation7 + $0xb8] sm:$0x7]  ;;  %v9664_v38 = vadd.f32 %v9663_v46, %v9662_v35  ;;  %9493 = vst.msk [vmem:[#allocation7 + $0xa8] sm:$0xf] %vm1802_vm3, %v9446_v26  ;;  %v11090_v7 = vunpack.c.l.bf16 %v11616_v29  ;;  %v11091_v28 = vunpack.c.h.bf16 %v11616_v29 }
 0x895   : > { %9494 = vst.msk [vmem:[#allocation7 + $0xac] sm:$0xf] %vm1802_vm3, %v9447_v53  ;;  %v9352_v62 = vpop.permute.xlu1 %9351  ;;  %v4926_v56 = vunpack.c.l.bf16 %v4879_v25  ;;  %v5032_v1 = vld [vmem:[#allocation7 + $0xb8] sm:$0x4] }
 0x896   : > { %v9354_v57 = vpop.permute.xlu0 %9353  ;;  %v9666_v30 = vadd.f32 %v9665_v59, %v9664_v38  ;;  %v9448_v11 = vmax.bf16 %v9352_v62, %v16285_v19  ;;  %v5014_v49 = vsel %vm856_vm2, %v11090_v7, 0.0  ;;  %v5016_v20 = vsel %vm856_vm2, %v11091_v28, 0.0 }
 0x897   : > { %v9449_v21 = vmax.bf16 %v9354_v57, %v16283_v17  ;;  %v5015_v6 = vadd.f32 %v5014_v49, %v5013_v58  ;;  %v5019_v14 = vsel %vm5018_vm9, %v4926_v56, 0.0  ;;  %v5033_v29 = vunpack.c.l.bf16 %v5032_v1 }
 0x898   : > { %v11702_v41 = vld [vmem:[#allocation7 + $0xa0] sm:$0xff]   ;;  %v9668_v34 = vadd.f32 %v9667_v37, %v9666_v30  ;;  %9495 = vst.msk [vmem:[#allocation7 + $0xb0] sm:$0xf] %vm1802_vm3, %v9448_v11 }
 0x899   : > { %9496 = vst.msk [vmem:[#allocation7 + $0xb4] sm:$0xf] %vm1802_vm3, %v9449_v21  ;;  %v11519_v16 = vunpack.c.l.bf16 %v11702_v41  ;;  %v11520_v31 = vunpack.c.h.bf16 %v11702_v41  ;;  %v9356_v19 = vpop.permute.xlu1 %9355  ;;  %v5017_v22 = vadd.f32 %v5016_v20, %v5015_v6  ;;  %v5035_v38 = vrot.slane %v5033_v29, 5 }
 0x89a   : > { %v9670_v17 = vadd.f32 %v9669_v42, %v9668_v34  ;;  %v9450_v33 = vmax.bf16 %v9356_v19, %v16296_v43 }
 0x89b   : > { %v9671_v36 = vsel %vm856_vm2, %v11519_v16, 0.0  ;;  %v5020_v44 = vadd.f32 %v5019_v14, %v5017_v22  ;;  %v9673_v39 = vsel %vm856_vm2, %v11520_v31, 0.0 }
 0x89c   : > { %v11703_v4 = vld [vmem:[#allocation7 + $0xa8] sm:$0xff]   ;;  %v9672_v0 = vadd.f32 %v9671_v36, %v9670_v17  ;;  %9497 = vst.msk [vmem:[#allocation7 + $0xb8] sm:$0x7] %vm4831_vm8, %v9450_v33 }
 0x89d   : > { %v11523_v52 = vunpack.c.l.bf16 %v11703_v4  ;;  %v11524_v54 = vunpack.c.h.bf16 %v11703_v4  ;;  %v5021_v24 = vrot.slane %v5020_v44, 4 }
 0x89e   : > { %v9674_v15 = vadd.f32 %v9673_v39, %v9672_v0 }
 0x89f   : > { %v9675_v61 = vsel %vm856_vm2, %v11523_v52, 0.0  ;;  %v5022_v13 = vadd.f32 %v5021_v24, %v5020_v44  ;;  %v9677_v47 = vsel %vm856_vm2, %v11524_v54, 0.0 }
 0x8a0   : > { %v11704_v43 = vld [vmem:[#allocation7 + $0xb0] sm:$0xff]   ;;  %v9676_v27 = vadd.f32 %v9675_v61, %v9674_v15 }
 0x8a1   : > { %v11527_v40 = vunpack.c.l.bf16 %v11704_v43  ;;  %v11528_v55 = vunpack.c.h.bf16 %v11704_v43  ;;  %v5023_v60 = vrot.slane %v5022_v13, 2 }
 0x8a2   : > { %v9678_v18 = vadd.f32 %v9677_v47, %v9676_v27 }
 0x8a3   : > { %v9679_v5 = vsel %vm856_vm2, %v11527_v40, 0.0  ;;  %v5024_v32 = vadd.f32 %v5023_v60, %v5022_v13  ;;  %v9544_v48 = vld [vmem:[#allocation7 + $0xb8] sm:$0x7]  ;;  %v9681_v51 = vsel %vm856_vm2, %v11528_v55, 0.0 }
 0x8a4   : > { %v9680_v9 = vadd.f32 %v9679_v5, %v9678_v18  ;;  %v9591_v3 = vunpack.c.l.bf16 %v9544_v48  ;;  %v9696_v59 = vld [vmem:[#allocation7 + $0xb8] sm:$0x4] }
 0x8a5   : > { %v5025_v50 = vrot.slane %v5024_v32, 1  ;;  %v9697_v62 = vunpack.c.l.bf16 %v9696_v59 }
 0x8a6   : > { %v9682_v45 = vadd.f32 %v9681_v51, %v9680_v9  ;;  %v9683_v63 = vsel %vm5018_vm9, %v9591_v3, 0.0 }
 0x8a7   : > { %v5026_v8 = vadd.f32 %v5025_v50, %v5024_v32  ;;  %v9699_v58 = vrot.slane %v9697_v62, 5 }
 0x8a8   : > { %v9684_v23 = vadd.f32 %v9683_v63, %v9682_v45 }
 0x8a9   : > { %5028 = vrot.lane.b32.xlu0 %v5026_v8, %s12595_s12 }
 0x8aa   : > { %v9685_v2 = vrot.slane %v9684_v23, 4 }
 0x8ac   : > { %v9686_v35 = vadd.f32 %v9685_v2, %v9684_v23 }
 0x8ae   : > { %v9687_v26 = vrot.slane %v9686_v35, 2 }
 0x8b0   : > { %v9688_v53 = vadd.f32 %v9687_v26, %v9686_v35 }
 0x8b2   : > { %v9689_v46 = vrot.slane %v9688_v53, 1 }
 0x8b4   : > { %v9690_v10 = vadd.f32 %v9689_v46, %v9688_v53 }
 0x8b6   : > { %9692 = vrot.lane.b32.xlu1 %v9690_v10, %s12595_s12  ;;  %s12535_s12 = sshll.u32 %s12596_s17, 4  ;;  %s12536_s12 = int_to_ptr.vmem [resolvable:$false] %s12535_s12 }
 0x8b7   : > { %s12537_s20 = scalar_lea.vmem %s12536_s12, 64  ;;  %p12538_p0 = scmp.lt.s32.totalorder %s16444_s28, %s12536_s12 }
 0x8b8   : > { %p12539_p1 = scmp.lt.s32.totalorder %s12537_s20, %s12531_s25 }
 0x8ba   : > { %p12540_p2 = por %p12539_p1, %p12538_p0 }
 0x8bc   : > { %p12541_p3 = pnand %p12540_p2, %p12534_p13 }
 0x91b   : > { %v5029_v25 = vpop.permute.xlu0 %5028 }
 0x91c   : > { %v5031_v7 = vadd.f32 %v5029_v25, %v5026_v8 }
 0x91e   : > { %v5037_v28 = vadd.f32 %v5035_v38, %v5031_v7 }
 0x920   : > { %v5038_v12 = vmul.f32 0.0013386881, %v5037_v28 }
 0x922   : > { %9704 = vst.msk [vmem:[%s355_s26] sm:$0x1] %vm9703_vm10, %v5038_v12 }
 0x928   : > { %v9693_v57 = vpop.permute.xlu1 %9692 }
 0x929   : > { %v9695_v30 = vadd.f32 %v9693_v57, %v9690_v10 }
 0x92b   : > { %v9701_v37 = vadd.f32 %v9699_v58, %v9695_v30 }
 0x92d   : > { %v9702_v11 = vmul.f32 0.0013386881, %v9701_v37 }
 0x92f   : > { %9705 = vst.msk [vmem:[%s355_s26 + $0x1] sm:$0x1] %vm9703_vm10, %v9702_v11 }
 0x930   : > { %12544 = shalt.err (!%p12541_p3)
}
 0x931   : > { %s12545_s18 = scalar_lea.hbm %s16442_s11, 32  ;;  %s12549_s29 = scalar_lea.hbm %s16496_s10, 64 }
 0x932   : > { %p12546_p4 = scmp.ne.s32.totalorder %s16442_s11, %s12545_s18  ;;  %p12550_p9 = scmp.lt.s32.totalorder %s16442_s11, %s16496_s10 }
 0x933   : > { %p12551_p10 = scmp.lt.s32.totalorder %s12549_s29, %s12545_s18 }
 0x934   : > { %p12547_p7 = pnand %p12546_p4, %p12692_p5 }
 0x935   : > { %p12552_p11 = por %p12551_p10, %p12550_p9 }
 0x936   : > { %p12548_p8 = pneg %p12547_p7 }
 0x938   : > { %p12553_p12 = pnand %p12552_p11, %p12548_p8 }
 0x93a   : > { %12556 = shalt.err (!%p12553_p12)
}
 0x93b   : > { %s12597_s25 = smov 16   ;;  %s12598_s12 = smov 1  }
 0x93c   : > { %12274 = dma.vmem_to_hbm [thread:$0]  (%p12692_p5), %s16444_s28, 32, %s16442_s11, %s16446_s21, %s12597_s25, %s12597_s25, %s12598_s12  }
 0x93d PF: > { %p12280_p13 = scmp.ge.s32.totalorder %s12591_s16, 2  ;;  %s9735_s20 = sand.u32 1, %s12579_s13  }
 0x93e   : > { %s9736_s18 = scalar_lea.sflag [#allocation9], %s9735_s20 }
 0x93f   : > { %p12277_p0 = pnand %p12280_p13, %p12696_p6 }
 0x941   : > { %p12278_p1 = pneg %p12277_p0 }
 0x943   : > { %12574 = dma.done.wait (%p12278_p1), %s9736_s18, 32  }
 0x944   : > { %12576 = vsyncadd (%p12278_p1), %s9736_s18, 4294967264  ;;  %p20_p2 = scmp.ge.s32.totalorder %s12679_s19, 4   ;;  %s16536_s13 = smov %s12583_s14 }
 0x945   : > { %s16537_s14 = smov %s12587_s15  ;;  %s16538_s15 = smov %s12690_s22 }
 0x946   : > { %s16539_s16 = smov %s12679_s19  ;;  %22 = sbr.rel (!%p20_p2) target bundleno = 3 (0x3), region = 96 }
 0x94b   :  { %9741 = vsyncpa [#allocation9], 1 }
 0x94c   :  { %9743 = vsyncpa [#allocation9 + $0x1], 1 }

</bundles_post_ra>
